<compile_context>
chip_gen: v5e
topology: v5e:2x2
jax: 0.10.0
libtpu: 0.0.40
codegen_flags: <defaults>
</compile_context>

<pallas_src>
import math

import jax
import jax.numpy as jnp
from jax import lax
from jax.experimental import pallas as pl
from jax.experimental.pallas import tpu as pltpu

L_IN = 3      # implied by the 254 -> fc8(254, 256) flatten
C_IN = 32     # input channels
K_IN = 128    # packed-input lane width (96 valid lanes, zero-padded to 128)


def _round_up(x, m):
    return ((x + m - 1) // m) * m


# --------------------------------------------------------------------------
# Kernel
# --------------------------------------------------------------------------
def _disc_kernel(x_ref, w1_ref, b1_ref, w2_ref, b2_ref, w3_ref, b3_ref,
                 w4_ref, b4_ref, w8_ref, b8_ref, w9_ref, b9_ref, out_ref):
    # x_ref: (TB, 128) bf16.  Conv/fc weights bf16, biases f32, w9/b9 f32.

    def mm_relu(a_bf16, w_ref, b_ref):
        acc = jnp.dot(a_bf16, w_ref[...], preferred_element_type=jnp.float32)
        return jnp.maximum(acc + b_ref[...], 0.0)            # f32

    x = x_ref[...]                                            # (TB, 128)

    # conv6_1 / conv6_2 / conv7_1 ("same", K=3) as fused block-Toeplitz matmuls.
    y1 = mm_relu(x, w1_ref, b1_ref).astype(jnp.bfloat16)      # (TB, 768)
    y2 = mm_relu(y1, w2_ref, b2_ref).astype(jnp.bfloat16)     # (TB, 768)
    y3 = mm_relu(y2, w3_ref, b3_ref).astype(jnp.bfloat16)     # (TB, 1536)

    # conv7_2 (valid, K=3) -> one matmul; Cout padded 254 -> 256 with zeros.
    a4 = mm_relu(y3, w4_ref, b4_ref).astype(jnp.bfloat16)     # (TB, 256)

    # fc8 + ReLU (w8 rows 254..255 are zero, so the padding is value-preserving)
    f8 = mm_relu(a4, w8_ref, b8_ref)                          # (TB, 256) f32

    # drop8: identity at inference time.
    # fc9: N=1 head as VPU multiply + XLU lane reduce; transpose the (TB, 1)
    # column to a lane-dense (1, TB) row so the output store is unmasked.
    col = jnp.sum(f8 * w9_ref[...], axis=-1, keepdims=True) + b9_ref[...]
    out_ref[...] = col.T                                      # (1, TB) f32


# --------------------------------------------------------------------------
# Wrapper
# --------------------------------------------------------------------------
def _auto_batch_tile():
    """1024 on 128-MiB-VMEM chips (v5e/v6e), 512 on v7x (64 MiB) / unknown."""
    try:
        vmem = getattr(pltpu.get_tpu_info(), "vmem_capacity_bytes", None)
    except Exception:
        vmem = None
    if vmem is not None and vmem >= (100 << 20):
        return 1024
    return 512


def discriminator_forward(x_ncl, packed, *, tb=None):
    """x_ncl: (B, 32, 3) float32 in PyTorch NCL layout.  `packed` = pack_params().

    tb = max batch tile (multiple of 128).  Defaults to 1024 on v5e/v6e and
    512 on v7x; tiny batches are shrunk to round_up(B, 8) so small-batch
    inference does not pay for a full tile of padded rows.
    """
    B = x_ncl.shape[0]
    if tb is None:
        tb = _auto_batch_tile()
    assert tb % 128 == 0, "batch tile must be a multiple of 128"

    tb_eff = max(8, min(tb, _round_up(B, 8)))
    nb = pl.cdiv(B, tb_eff)
    b_pad = nb * tb_eff

    # Lane-dense input: (B, 32, 3) -> (B, 96) = [x[:,:,0]|x[:,:,1]|x[:,:,2]],
    # then zero-pad lanes 96..127 and batch rows to the tile multiple.
    x_cat = jnp.transpose(x_ncl, (0, 2, 1)).reshape(B, L_IN * C_IN)
    x_cat = jnp.pad(x_cat, ((0, b_pad - B), (0, K_IN - L_IN * C_IN)))
    x_cat = x_cat.astype(jnp.bfloat16)

    weight_names = ["w1", "b1", "w2", "b2", "w3", "b3",
                    "w4", "b4", "w8", "b8", "w9", "b9"]
    weights = [packed[n] for n in weight_names]

    # Weights/biases: full-array blocks with a constant index_map (single
    # HBM->VMEM DMA, VMEM-resident across all grid steps) and single-buffered
    # (the default second pipeline buffer would be pure VMEM waste).
    buffered_one = {"pipeline_mode": pl.Buffered(1)} if hasattr(pl, "Buffered") else {}

    def const_spec(a):
        return pl.BlockSpec(a.shape, lambda i, n=a.ndim: (0,) * n, **buffered_one)

    in_specs = [pl.BlockSpec((tb_eff, K_IN), lambda i: (i, 0))]
    in_specs += [const_spec(a) for a in weights]

    out = pl.pallas_call(
        _disc_kernel,
        out_shape=jax.ShapeDtypeStruct((1, b_pad), jnp.float32),
        grid=(nb,),
        in_specs=in_specs,
        # Lane-dense output: each grid step writes one unmasked (1, tb) block.
        out_specs=pl.BlockSpec((1, tb_eff), lambda i: (0, i)),
        compiler_params=pltpu.CompilerParams(
            dimension_semantics=("parallel",),       # megacore shard on v7x
            vmem_limit_bytes=48 * 1024 * 1024),
    )(x_cat, *weights)

    return out[0, :B].reshape(B, 1)


# --------------------------------------------------------------------------
# Parameters
# --------------------------------------------------------------------------
def init_params(key):
    """Deterministic init matching Discriminator._initialize_weights.

    Conv1d:  weight ~ N(0, sqrt(2 / (K * Cout))), bias = 0
    Linear:  weight ~ N(0, 0.01),                 bias = 0
    Conv weights stored as (K, Cin, Cout); linear as (in, out).
    """
    ks = jax.random.split(key, 6)

    def conv(k, cin, cout, ksz=3):
        std = math.sqrt(2.0 / (ksz * cout))
        w = jax.random.normal(k, (ksz, cin, cout), jnp.float32) * std
        b = jnp.zeros((1, cout), jnp.float32)
        return w, b

    def linear(k, fin, fout):
        w = jax.random.normal(k, (fin, fout), jnp.float32) * 0.01
        b = jnp.zeros((1, fout), jnp.float32)
        return w, b

    p = {}
    p["w1"], p["b1"] = conv(ks[0], 32, 256)
    p["w2"], p["b2"] = conv(ks[1], 256, 256)
    p["w3"], p["b3"] = conv(ks[2], 256, 512)
    p["w4"], p["b4"] = conv(ks[3], 512, 254)
    p["w8"], p["b8"] = linear(ks[4], 254, 256)
    p["w9"], p["b9"] = linear(ks[5], 256, 1)
    return p


def pack_params(p):
    """Repack reference-layout params into the fused kernel layout."""
    f32, bf16 = jnp.float32, jnp.bfloat16

    def toeplitz(w_kic):
        # "same" conv (K=3, pad=1) over L_IN=3 positions as one matmul:
        # [y0|y1|y2] = [x0|x1|x2] @ W_toep, block(s, j) = w[s - j + 1] (zero if oob).
        K, cin, cout = w_kic.shape
        z = jnp.zeros((cin, cout), w_kic.dtype)
        cols = []
        for j in range(L_IN):
            blocks = [w_kic[s - j + 1] if 0 <= s - j + 1 < K else z
                      for s in range(L_IN)]
            cols.append(jnp.concatenate(blocks, axis=0))      # (3*cin, cout)
        return jnp.concatenate(cols, axis=1)                  # (3*cin, 3*cout)

    packed = {}
    # conv6_1: pad the contraction dim 96 -> 128 (matches zero-padded input lanes).
    w1 = toeplitz(p["w1"])                                            # (96, 768)
    packed["w1"] = jnp.pad(w1, ((0, K_IN - w1.shape[0]), (0, 0))).astype(bf16)  # (128, 768)
    packed["b1"] = jnp.tile(p["b1"], (1, L_IN)).astype(f32)           # (1, 768)
    packed["w2"] = toeplitz(p["w2"]).astype(bf16)                     # (768, 768)
    packed["b2"] = jnp.tile(p["b2"], (1, L_IN)).astype(f32)
    packed["w3"] = toeplitz(p["w3"]).astype(bf16)                     # (768, 1536)
    packed["b3"] = jnp.tile(p["b3"], (1, L_IN)).astype(f32)

    # conv7_2 (valid): stack the 3 taps along Cin, zero-pad Cout 254 -> 256.
    w4 = jnp.concatenate([p["w4"][k] for k in range(L_IN)], axis=0)   # (1536, 254)
    packed["w4"] = jnp.pad(w4, ((0, 0), (0, 2))).astype(bf16)         # (1536, 256)
    packed["b4"] = jnp.pad(p["b4"], ((0, 0), (0, 2))).astype(f32)     # (1, 256)

    # fc8: zero-pad the contraction dim 254 -> 256 (value-preserving).
    packed["w8"] = jnp.pad(p["w8"], ((0, 2), (0, 0))).astype(bf16)    # (256, 256)
    packed["b8"] = p["b8"].astype(f32)

    # fc9 head kept f32 (VPU mul + XLU reduce; no per-step cast in the kernel).
    packed["w9"] = p["w9"].T.astype(f32)                              # (1, 256)
    packed["b9"] = p["b9"].astype(f32)                                # (1, 1)
    return packed


# --------------------------------------------------------------------------
# Pure-JAX reference
# --------------------------------------------------------------------------
def reference_forward(x_ncl, params):
    """Pure-JAX f32 reference using lax.conv_general_dilated (NCL layout)."""
    def conv1d(x, w_kic, b, pad):
        w_oik = jnp.transpose(w_kic, (2, 1, 0))  # (Cout, Cin, K)
        y = lax.conv_general_dilated(
            x, w_oik, window_strides=(1,), padding=[(pad, pad)],
            dimension_numbers=("NCH", "OIH", "NCH"))
        return y + b.reshape(1, -1, 1)

    a = jax.nn.relu(conv1d(x_ncl, params["w1"], params["b1"], 1))
    a = jax.nn.relu(conv1d(a, params["w2"], params["b2"], 1))
    a = jax.nn.relu(conv1d(a, params["w3"], params["b3"], 1))
    a = jax.nn.relu(conv1d(a, params["w4"], params["b4"], 0))   # (B, 254, 1)
    a = a.reshape(a.shape[0], -1)                               # (B, 254)
    fc8 = jax.nn.relu(a @ params["w8"] + params["b8"])
    return fc8 @ params["w9"] + params["b9"]                    # (B, 1)


if __name__ == "__main__":
    key = jax.random.PRNGKey(0)
    k_x, k_p, k_x2 = jax.random.split(key, 3)

    params = init_params(k_p)
    packed = pack_params(params)

    # Small-batch case (typical inference use): tile shrinks to 8 rows.
    B = 2
    x = jax.random.normal(k_x, (B, C_IN, L_IN), jnp.float32)   # PyTorch NCL input
    out = jax.block_until_ready(discriminator_forward(x, packed))
    ref = jax.block_until_ready(reference_forward(x, params))
    assert out.shape == (B, 1), out.shape
    assert jnp.allclose(out, ref, atol=2e-2, rtol=2e-2), (out, ref)

    # Multi-tile batch: exercises the batch grid / pipelining / megacore path
    # (tb=256 -> 2 grid steps) and the lane-dense tiled output.
    B2 = 384
    x2 = jax.random.normal(k_x2, (B2, C_IN, L_IN), jnp.float32)
    out2 = jax.block_until_ready(discriminator_forward(x2, packed, tb=256))
    ref2 = jax.block_until_ready(reference_forward(x2, params))
    assert out2.shape == (B2, 1), out2.shape
    assert jnp.allclose(out2, ref2, atol=2e-2, rtol=2e-2), (out2, ref2)

    print("KERNEL_OK")
</pallas_src>

<mosaic_0001>
module attributes {stable_mosaic.version = 11 : i64} {
  func.func @_disc_kernel(%arg0: i32, %arg1: memref<8x128xbf16, #tpu.memory_space<vmem>>, %arg2: memref<128x768xbf16, #tpu.memory_space<vmem>>, %arg3: memref<1x768xf32, #tpu.memory_space<vmem>>, %arg4: memref<768x768xbf16, #tpu.memory_space<vmem>>, %arg5: memref<1x768xf32, #tpu.memory_space<vmem>>, %arg6: memref<768x1536xbf16, #tpu.memory_space<vmem>>, %arg7: memref<1x1536xf32, #tpu.memory_space<vmem>>, %arg8: memref<1536x256xbf16, #tpu.memory_space<vmem>>, %arg9: memref<1x256xf32, #tpu.memory_space<vmem>>, %arg10: memref<256x256xbf16, #tpu.memory_space<vmem>>, %arg11: memref<1x256xf32, #tpu.memory_space<vmem>>, %arg12: memref<1x256xf32, #tpu.memory_space<vmem>>, %arg13: memref<1x1xf32, #tpu.memory_space<vmem>>, %arg14: memref<1x8xf32, #tpu.memory_space<vmem>>) attributes {dimension_semantics = [#tpu.dimension_semantics<parallel>], iteration_bounds = array<i64: 1>, scalar_prefetch = 0 : i64, scratch_operands = 0 : i64, tpu.core_type = #tpu.core_type<tc>, window_params = [{transform_indices = @transform_0, window_bounds = array<i64: 8, 128>}, {pipeline_mode = #tpu.pipeline_mode<synchronous>, transform_indices = @transform_1, window_bounds = array<i64: 128, 768>}, {pipeline_mode = #tpu.pipeline_mode<synchronous>, transform_indices = @transform_2, window_bounds = array<i64: 1, 768>}, {pipeline_mode = #tpu.pipeline_mode<synchronous>, transform_indices = @transform_3, window_bounds = array<i64: 768, 768>}, {pipeline_mode = #tpu.pipeline_mode<synchronous>, transform_indices = @transform_4, window_bounds = array<i64: 1, 768>}, {pipeline_mode = #tpu.pipeline_mode<synchronous>, transform_indices = @transform_5, window_bounds = array<i64: 768, 1536>}, {pipeline_mode = #tpu.pipeline_mode<synchronous>, transform_indices = @transform_6, window_bounds = array<i64: 1, 1536>}, {pipeline_mode = #tpu.pipeline_mode<synchronous>, transform_indices = @transform_7, window_bounds = array<i64: 1536, 256>}, {pipeline_mode = #tpu.pipeline_mode<synchronous>, transform_indices = @transform_8, window_bounds = array<i64: 1, 256>}, {pipeline_mode = #tpu.pipeline_mode<synchronous>, transform_indices = @transform_9, window_bounds = array<i64: 256, 256>}, {pipeline_mode = #tpu.pipeline_mode<synchronous>, transform_indices = @transform_10, window_bounds = array<i64: 1, 256>}, {pipeline_mode = #tpu.pipeline_mode<synchronous>, transform_indices = @transform_11, window_bounds = array<i64: 1, 256>}, {pipeline_mode = #tpu.pipeline_mode<synchronous>, transform_indices = @transform_12, window_bounds = array<i64: 1, 1>}, {transform_indices = @transform_13, window_bounds = array<i64: 1, 8>}]} {
    %c0 = arith.constant 0 : index
    %c0_0 = arith.constant 0 : index
    %0 = vector.load %arg1[%c0, %c0_0] : memref<8x128xbf16, #tpu.memory_space<vmem>>, vector<8x128xbf16>
    %c0_1 = arith.constant 0 : index
    %c0_2 = arith.constant 0 : index
    %1 = vector.load %arg2[%c0_1, %c0_2] : memref<128x768xbf16, #tpu.memory_space<vmem>>, vector<128x768xbf16>
    %cst = arith.constant dense<0.000000e+00> : vector<8x768xf32>
    %2 = tpu.matmul %0, %1, %cst {dimension_numbers = #tpu.dot_dimension_numbers<[1], [0], [0], [1], [0, 0, 1, 1], [], []>} : vector<8x128xbf16>, vector<128x768xbf16>, vector<8x768xf32> -> vector<8x768xf32>
    %c0_3 = arith.constant 0 : index
    %c0_4 = arith.constant 0 : index
    %3 = vector.load %arg3[%c0_3, %c0_4] : memref<1x768xf32, #tpu.memory_space<vmem>>, vector<1x768xf32>
    %4 = vector.broadcast %3 : vector<1x768xf32> to vector<8x768xf32>
    %5 = arith.addf %2, %4 : vector<8x768xf32>
    %cst_5 = arith.constant 0.000000e+00 : f32
    %6 = vector.broadcast %cst_5 : f32 to vector<8x768xf32>
    %7 = arith.maximumf %5, %6 : vector<8x768xf32>
    %8 = arith.truncf %7 : vector<8x768xf32> to vector<8x768xbf16>
    %c0_6 = arith.constant 0 : index
    %c0_7 = arith.constant 0 : index
    %9 = vector.load %arg4[%c0_6, %c0_7] : memref<768x768xbf16, #tpu.memory_space<vmem>>, vector<768x768xbf16>
    %cst_8 = arith.constant dense<0.000000e+00> : vector<8x768xf32>
    %10 = tpu.matmul %8, %9, %cst_8 {dimension_numbers = #tpu.dot_dimension_numbers<[1], [0], [0], [1], [0, 0, 1, 1], [], []>} : vector<8x768xbf16>, vector<768x768xbf16>, vector<8x768xf32> -> vector<8x768xf32>
    %c0_9 = arith.constant 0 : index
    %c0_10 = arith.constant 0 : index
    %11 = vector.load %arg5[%c0_9, %c0_10] : memref<1x768xf32, #tpu.memory_space<vmem>>, vector<1x768xf32>
    %12 = vector.broadcast %11 : vector<1x768xf32> to vector<8x768xf32>
    %13 = arith.addf %10, %12 : vector<8x768xf32>
    %cst_11 = arith.constant 0.000000e+00 : f32
    %14 = vector.broadcast %cst_11 : f32 to vector<8x768xf32>
    %15 = arith.maximumf %13, %14 : vector<8x768xf32>
    %16 = arith.truncf %15 : vector<8x768xf32> to vector<8x768xbf16>
    %c0_12 = arith.constant 0 : index
    %c0_13 = arith.constant 0 : index
    %17 = vector.load %arg6[%c0_12, %c0_13] : memref<768x1536xbf16, #tpu.memory_space<vmem>>, vector<768x1536xbf16>
    %cst_14 = arith.constant dense<0.000000e+00> : vector<8x1536xf32>
    %18 = tpu.matmul %16, %17, %cst_14 {dimension_numbers = #tpu.dot_dimension_numbers<[1], [0], [0], [1], [0, 0, 1, 1], [], []>} : vector<8x768xbf16>, vector<768x1536xbf16>, vector<8x1536xf32> -> vector<8x1536xf32>
    %c0_15 = arith.constant 0 : index
    %c0_16 = arith.constant 0 : index
    %19 = vector.load %arg7[%c0_15, %c0_16] : memref<1x1536xf32, #tpu.memory_space<vmem>>, vector<1x1536xf32>
    %20 = vector.broadcast %19 : vector<1x1536xf32> to vector<8x1536xf32>
    %21 = arith.addf %18, %20 : vector<8x1536xf32>
    %cst_17 = arith.constant 0.000000e+00 : f32
    %22 = vector.broadcast %cst_17 : f32 to vector<8x1536xf32>
    %23 = arith.maximumf %21, %22 : vector<8x1536xf32>
    %24 = arith.truncf %23 : vector<8x1536xf32> to vector<8x1536xbf16>
    %c0_18 = arith.constant 0 : index
    %c0_19 = arith.constant 0 : index
    %25 = vector.load %arg8[%c0_18, %c0_19] : memref<1536x256xbf16, #tpu.memory_space<vmem>>, vector<1536x256xbf16>
    %cst_20 = arith.constant dense<0.000000e+00> : vector<8x256xf32>
    %26 = tpu.matmul %24, %25, %cst_20 {dimension_numbers = #tpu.dot_dimension_numbers<[1], [0], [0], [1], [0, 0, 1, 1], [], []>} : vector<8x1536xbf16>, vector<1536x256xbf16>, vector<8x256xf32> -> vector<8x256xf32>
    %c0_21 = arith.constant 0 : index
    %c0_22 = arith.constant 0 : index
    %27 = vector.load %arg9[%c0_21, %c0_22] : memref<1x256xf32, #tpu.memory_space<vmem>>, vector<1x256xf32>
    %28 = vector.broadcast %27 : vector<1x256xf32> to vector<8x256xf32>
    %29 = arith.addf %26, %28 : vector<8x256xf32>
    %cst_23 = arith.constant 0.000000e+00 : f32
    %30 = vector.broadcast %cst_23 : f32 to vector<8x256xf32>
    %31 = arith.maximumf %29, %30 : vector<8x256xf32>
    %32 = arith.truncf %31 : vector<8x256xf32> to vector<8x256xbf16>
    %c0_24 = arith.constant 0 : index
    %c0_25 = arith.constant 0 : index
    %33 = vector.load %arg10[%c0_24, %c0_25] : memref<256x256xbf16, #tpu.memory_space<vmem>>, vector<256x256xbf16>
    %cst_26 = arith.constant dense<0.000000e+00> : vector<8x256xf32>
    %34 = tpu.matmul %32, %33, %cst_26 {dimension_numbers = #tpu.dot_dimension_numbers<[1], [0], [0], [1], [0, 0, 1, 1], [], []>} : vector<8x256xbf16>, vector<256x256xbf16>, vector<8x256xf32> -> vector<8x256xf32>
    %c0_27 = arith.constant 0 : index
    %c0_28 = arith.constant 0 : index
    %35 = vector.load %arg11[%c0_27, %c0_28] : memref<1x256xf32, #tpu.memory_space<vmem>>, vector<1x256xf32>
    %36 = vector.broadcast %35 : vector<1x256xf32> to vector<8x256xf32>
    %37 = arith.addf %34, %36 : vector<8x256xf32>
    %cst_29 = arith.constant 0.000000e+00 : f32
    %38 = vector.broadcast %cst_29 : f32 to vector<8x256xf32>
    %39 = arith.maximumf %37, %38 : vector<8x256xf32>
    %c0_30 = arith.constant 0 : index
    %c0_31 = arith.constant 0 : index
    %40 = vector.load %arg12[%c0_30, %c0_31] : memref<1x256xf32, #tpu.memory_space<vmem>>, vector<1x256xf32>
    %41 = vector.broadcast %40 : vector<1x256xf32> to vector<8x256xf32>
    %42 = arith.mulf %39, %41 : vector<8x256xf32>
    %cst_32 = arith.constant dense<0.000000e+00> : vector<8xf32>
    %43 = vector.multi_reduction <add>, %42, %cst_32 [1] : vector<8x256xf32> to vector<8xf32>
    %44 = vector.shape_cast %43 : vector<8xf32> to vector<8x1xf32>
    %c0_33 = arith.constant 0 : index
    %c0_34 = arith.constant 0 : index
    %45 = vector.load %arg13[%c0_33, %c0_34] : memref<1x1xf32, #tpu.memory_space<vmem>>, vector<1x1xf32>
    %46 = vector.broadcast %45 : vector<1x1xf32> to vector<8x1xf32>
    %47 = arith.addf %44, %46 : vector<8x1xf32>
    %48 = tpu.transpose %47, [1, 0] : vector<8x1xf32> -> vector<1x8xf32>
    %c0_35 = arith.constant 0 : index
    %c0_36 = arith.constant 0 : index
    %49 = vector.load %arg14[%c0_35, %c0_36] : memref<1x8xf32, #tpu.memory_space<vmem>>, vector<1x8xf32>
    tpu.vector_store %arg14[%c0_35, %c0_36], %48 {strides = array<i32>} : memref<1x8xf32, #tpu.memory_space<vmem>>, vector<1x8xf32>,
    return
  }
  func.func @transform_0(%arg0: i32) -> (i32, i32) {
    %c0_i32 = arith.constant 0 : i32
    %c0_i32_0 = arith.constant 0 : i32
    return %arg0, %c0_i32 : i32, i32
  }
  func.func @transform_1(%arg0: i32) -> (i32, i32) {
    %c0_i32 = arith.constant 0 : i32
    %c0_i32_0 = arith.constant 0 : i32
    %c0_i32_1 = arith.constant 0 : i32
    return %c0_i32, %c0_i32_0 : i32, i32
  }
  func.func @transform_2(%arg0: i32) -> (i32, i32) {
    %c0_i32 = arith.constant 0 : i32
    %c0_i32_0 = arith.constant 0 : i32
    %c0_i32_1 = arith.constant 0 : i32
    return %c0_i32, %c0_i32_0 : i32, i32
  }
  func.func @transform_3(%arg0: i32) -> (i32, i32) {
    %c0_i32 = arith.constant 0 : i32
    %c0_i32_0 = arith.constant 0 : i32
    %c0_i32_1 = arith.constant 0 : i32
    return %c0_i32, %c0_i32_0 : i32, i32
  }
  func.func @transform_4(%arg0: i32) -> (i32, i32) {
    %c0_i32 = arith.constant 0 : i32
    %c0_i32_0 = arith.constant 0 : i32
    %c0_i32_1 = arith.constant 0 : i32
    return %c0_i32, %c0_i32_0 : i32, i32
  }
  func.func @transform_5(%arg0: i32) -> (i32, i32) {
    %c0_i32 = arith.constant 0 : i32
    %c0_i32_0 = arith.constant 0 : i32
    %c0_i32_1 = arith.constant 0 : i32
    return %c0_i32, %c0_i32_0 : i32, i32
  }
  func.func @transform_6(%arg0: i32) -> (i32, i32) {
    %c0_i32 = arith.constant 0 : i32
    %c0_i32_0 = arith.constant 0 : i32
    %c0_i32_1 = arith.constant 0 : i32
    return %c0_i32, %c0_i32_0 : i32, i32
  }
  func.func @transform_7(%arg0: i32) -> (i32, i32) {
    %c0_i32 = arith.constant 0 : i32
    %c0_i32_0 = arith.constant 0 : i32
    %c0_i32_1 = arith.constant 0 : i32
    return %c0_i32, %c0_i32_0 : i32, i32
  }
  func.func @transform_8(%arg0: i32) -> (i32, i32) {
    %c0_i32 = arith.constant 0 : i32
    %c0_i32_0 = arith.constant 0 : i32
    %c0_i32_1 = arith.constant 0 : i32
    return %c0_i32, %c0_i32_0 : i32, i32
  }
  func.func @transform_9(%arg0: i32) -> (i32, i32) {
    %c0_i32 = arith.constant 0 : i32
    %c0_i32_0 = arith.constant 0 : i32
    %c0_i32_1 = arith.constant 0 : i32
    return %c0_i32, %c0_i32_0 : i32, i32
  }
  func.func @transform_10(%arg0: i32) -> (i32, i32) {
    %c0_i32 = arith.constant 0 : i32
    %c0_i32_0 = arith.constant 0 : i32
    %c0_i32_1 = arith.constant 0 : i32
    return %c0_i32, %c0_i32_0 : i32, i32
  }
  func.func @transform_11(%arg0: i32) -> (i32, i32) {
    %c0_i32 = arith.constant 0 : i32
    %c0_i32_0 = arith.constant 0 : i32
    %c0_i32_1 = arith.constant 0 : i32
    return %c0_i32, %c0_i32_0 : i32, i32
  }
  func.func @transform_12(%arg0: i32) -> (i32, i32) {
    %c0_i32 = arith.constant 0 : i32
    %c0_i32_0 = arith.constant 0 : i32
    %c0_i32_1 = arith.constant 0 : i32
    return %c0_i32, %c0_i32_0 : i32, i32
  }
  func.func @transform_13(%arg0: i32) -> (i32, i32) {
    %c0_i32 = arith.constant 0 : i32
    %c0_i32_0 = arith.constant 0 : i32
    return %c0_i32, %arg0 : i32, i32
  }
}

</mosaic_0001>

<bundles_post_ra>
// kernel: tpu_custom_call.1
= control target key start
LH: loop header
LB: loop body
LE: loop exit
PB: predicated region body
PF: predicated region fallthrough
CT: control target
= control target key end

     0   :  { %s15743_s0 = inlined_call_operand.hbm [shape: bf16[8,128], index: 0, kind: input, shape index: {}]   ;;  %s15744_s1 = inlined_call_operand.hbm [shape: bf16[128,768], index: 1, kind: input, shape index: {}]   ;;  %s15745_s2 = inlined_call_operand.hbm [shape: f32[1,768], index: 2, kind: input, shape index: {}]   ;;  %s15746_s3 = inlined_call_operand.hbm [shape: bf16[768,768], index: 3, kind: input, shape index: {}]   ;;  %s15747_s4 = inlined_call_operand.hbm [shape: f32[1,768], index: 4, kind: input, shape index: {}]   ;;  %s15748_s5 = inlined_call_operand.hbm [shape: bf16[768,1536], index: 5, kind: input, shape index: {}]   ;;  %s15749_s6 = inlined_call_operand.hbm [shape: f32[1,1536], index: 6, kind: input, shape index: {}]   ;;  %s15750_s7 = inlined_call_operand.hbm [shape: bf16[1536,256], index: 7, kind: input, shape index: {}]   ;;  %s15751_s8 = inlined_call_operand.hbm [shape: f32[1,256], index: 8, kind: input, shape index: {}]   ;;  %s15752_s9 = inlined_call_operand.hbm [shape: bf16[256,256], index: 9, kind: input, shape index: {}]   ;;  %s15753_s10 = inlined_call_operand.hbm [shape: f32[1,256], index: 10, kind: input, shape index: {}]   ;;  %s15754_s11 = inlined_call_operand.hbm [shape: f32[1,256], index: 11, kind: input, shape index: {}]   ;;  %s15755_s12 = inlined_call_operand.<no memory space> [shape: f32[1,1], index: 12, kind: input, shape index: {}]   ;;  %s15756_s13 = inlined_call_operand.hbm [shape: f32[1,8], index: 13, kind: output, shape index: {}]  }
   0x1   :  { %v18_v0 = vstv %s15755_s12 }
   0x2   :  { %19 = vst [vmem:[#allocation2] sm:$0x1] %v18_v0 }
   0x3   :  { %20 = vsyncpa [#allocation4], 0 }
   0x4   :  { %21 = vsyncpa [#allocation7], 0 }
   0x5   :  { %22 = vsyncpa [#allocation10], 0 }
   0x6   :  { %23 = vsyncpa [#allocation13], 0 }
   0x7   :  { %24 = vsyncpa [#allocation16], 0 }
   0x8   :  { %25 = vsyncpa [#allocation19], 0 }
   0x9   :  { %26 = vsyncpa [#allocation22], 0  ;;  %s43_s29 = sshll.u32 %s15744_s1, 4  ;;  %s44_s29 = int_to_ptr.hbm [resolvable:$true] %s43_s29 }
   0xa   :  { %27 = vsyncpa [#allocation5], 0  ;;  %s15111_s30 = smov [#allocation6]   ;;  %s67_s12 = sshll.u32 %s15746_s3, 4  ;;  %s68_s12 = int_to_ptr.hbm [resolvable:$true] %s67_s12 }
   0xb   :  { %s45_s14 = sshll.u32 %s15111_s30, 4  ;;  %s15112_s17 = smov 384   ;;  %s46_s14 = int_to_ptr.vmem [resolvable:$true] %s45_s14 }
   0xc   :  { %s15113_s18 = smov 24   ;;  %s15114_s19 = smov [#allocation9]  }
   0xd   :  { %51 = dma.hbm_to_vmem [thread:$0]  %s44_s29, 6144, %s46_s14, [#allocation7], %s15112_s17, %s15112_s17, %s15113_s18  }
   0xe   :  { %s69_s20 = sshll.u32 %s15114_s19, 4  ;;  %s91_s23 = sshll.u32 %s15748_s5, 4  ;;  %s70_s20 = int_to_ptr.vmem [resolvable:$true] %s69_s20  ;;  %s92_s23 = int_to_ptr.hbm [resolvable:$true] %s91_s23 }
   0xf   :  { %75 = dma.hbm_to_vmem [thread:$0]  %s68_s12, 36864, %s70_s20, [#allocation10], %s15112_s17, %s15112_s17, %s15113_s18  }
  0x10   :  { %s15115_s1 = smov [#allocation12]   ;;  %s115_s3 = sshll.u32 %s15750_s7, 4  ;;  %s116_s3 = int_to_ptr.hbm [resolvable:$true] %s115_s3 }
  0x11   :  { %s93_s24 = sshll.u32 %s15115_s1, 4  ;;  %s15116_s27 = smov 768   ;;  %s94_s24 = int_to_ptr.vmem [resolvable:$true] %s93_s24 }
  0x12   :  { %s15117_s28 = smov 48   ;;  %s15118_s29 = smov [#allocation15]  }
  0x13   :  { %99 = dma.hbm_to_vmem [thread:$0]  %s92_s23, 73728, %s94_s24, [#allocation13], %s15116_s27, %s15116_s27, %s15117_s28  }
  0x14   :  { %s117_s30 = sshll.u32 %s15118_s29, 4  ;;  %s15119_s14 = smov 128   ;;  %s118_s30 = int_to_ptr.vmem [resolvable:$true] %s117_s30 }
  0x15   :  { %s15120_s15 = smov 8   ;;  %s139_s12 = sshll.u32 %s15752_s9, 4  ;;  %s140_s12 = int_to_ptr.hbm [resolvable:$true] %s139_s12 }
  0x16   :  { %123 = dma.hbm_to_vmem [thread:$0]  %s116_s3, 24576, %s118_s30, [#allocation16], %s15119_s14, %s15119_s14, %s15120_s15  }
  0x17   :  { %s15121_s17 = smov [#allocation18]   ;;  %s33_s20 = sshll.u32 %s15743_s0, 4  ;;  %s34_s20 = int_to_ptr.hbm [resolvable:$true] %s33_s20 }
  0x18   :  { %s141_s18 = sshll.u32 %s15121_s17, 4  ;;  %s15122_s21 = smov [#allocation3]   ;;  %s142_s18 = int_to_ptr.vmem [resolvable:$true] %s141_s18 }
  0x19   :  { %147 = dma.hbm_to_vmem [thread:$0]  %s140_s12, 4096, %s142_s18, [#allocation19], %s15119_s14, %s15119_s14, %s15120_s15  }
  0x1a   :  { %s35_s22 = sshll.u32 %s15122_s21, 4  ;;  %s57_s24 = sshll.u32 %s15745_s2, 4  ;;  %s36_s22 = int_to_ptr.vmem [resolvable:$true] %s35_s22  ;;  %s58_s24 = int_to_ptr.hbm [resolvable:$true] %s57_s24 }
  0x1b   :  { %38 = dma.hbm_to_vmem [thread:$0]  %s34_s20, 64, %s36_s22, [#allocation4]  }
  0x1c   :  { %s81_s26 = sshll.u32 %s15747_s4, 4  ;;  %s15123_s3 = smov [#allocation8]   ;;  %s82_s26 = int_to_ptr.hbm [resolvable:$true] %s81_s26 }
  0x1d   :  { %s59_s27 = sshll.u32 %s15123_s3, 4  ;;  %s15124_s0 = smov [#allocation11]   ;;  %s60_s27 = int_to_ptr.vmem [resolvable:$true] %s59_s27 }
  0x1e   :  { %62 = dma.hbm_to_vmem [thread:$0]  %s58_s24, 96, %s60_s27, [#allocation7]  }
  0x1f   :  { %s83_s28 = sshll.u32 %s15124_s0, 4  ;;  %s105_s14 = sshll.u32 %s15749_s6, 4  ;;  %s84_s28 = int_to_ptr.vmem [resolvable:$true] %s83_s28  ;;  %s106_s14 = int_to_ptr.hbm [resolvable:$true] %s105_s14 }
  0x20   :  { %86 = dma.hbm_to_vmem [thread:$0]  %s82_s26, 96, %s84_s28, [#allocation10]  }
  0x21   :  { %s129_s5 = sshll.u32 %s15751_s8, 4  ;;  %s15125_s16 = smov [#allocation14]   ;;  %s130_s5 = int_to_ptr.hbm [resolvable:$true] %s129_s5 }
  0x22   :  { %s107_s4 = sshll.u32 %s15125_s16, 4  ;;  %s15126_s12 = smov [#allocation17]   ;;  %s108_s4 = int_to_ptr.vmem [resolvable:$true] %s107_s4 }
  0x23   :  { %110 = dma.hbm_to_vmem [thread:$0]  %s106_s14, 192, %s108_s4, [#allocation13]  }
  0x24   :  { %s131_s17 = sshll.u32 %s15126_s12, 4  ;;  %s153_s7 = sshll.u32 %s15753_s10, 4  ;;  %s132_s17 = int_to_ptr.vmem [resolvable:$true] %s131_s17  ;;  %s154_s7 = int_to_ptr.hbm [resolvable:$true] %s153_s7 }
  0x25   :  { %134 = dma.hbm_to_vmem [thread:$0]  %s130_s5, 32, %s132_s17, [#allocation16]  }
  0x26   :  { %s164_s21 = sshll.u32 %s15754_s11, 4  ;;  %s15127_s22 = smov [#allocation20]   ;;  %s165_s21 = int_to_ptr.hbm [resolvable:$true] %s164_s21 }
  0x27   :  { %s155_s8 = sshll.u32 %s15127_s22, 4  ;;  %s15128_s23 = smov [#allocation21]   ;;  %s156_s8 = int_to_ptr.vmem [resolvable:$true] %s155_s8 }
  0x28   :  { %158 = dma.hbm_to_vmem [thread:$0]  %s154_s7, 32, %s156_s8, [#allocation19]  }
  0x29   :  { %s166_s1 = sshll.u32 %s15128_s23, 4  ;;  %s167_s1 = int_to_ptr.vmem [resolvable:$true] %s166_s1 }
  0x2a   :  { %169 = dma.hbm_to_vmem [thread:$0]  %s165_s21, 32, %s167_s1, [#allocation22]  }
  0x2b   :  { %15095 = dma.done.wait [#allocation4], 64  }
  0x2c   :  { %15096 = vsyncadd [#allocation4], 4294967232 }
  0x2d   :  { %15097 = dma.done.wait [#allocation7], 6240  }
  0x2e   :  { %15098 = vsyncadd [#allocation7], 4294961056 }
  0x2f   :  { %15099 = dma.done.wait [#allocation10], 36960  }
  0x30   :  { %15100 = vsyncadd [#allocation10], 4294930336 }
  0x31   :  { %15101 = dma.done.wait [#allocation13], 73920  }
  0x32   :  { %15102 = vsyncadd [#allocation13], 4294893376 }
  0x33   :  { %15103 = dma.done.wait [#allocation16], 24608  }
  0x34   :  { %15104 = vsyncadd [#allocation16], 4294942688 }
  0x35   :  { %15105 = dma.done.wait [#allocation19], 4128  }
  0x36   :  { %15106 = vsyncadd [#allocation19], 4294963168 }
  0x37   :  { %15107 = dma.done.wait [#allocation22], 32  }
  0x38   :  { %15108 = vsyncadd [#allocation22], 4294967264  ;;  %v9248_v1 = vld [vmem:[#allocation6 + $0x150] sm:$0xf]  ;;  %v13667_v2 = vld [vmem:[#allocation6 + $0x164] sm:$0xf0] }
  0x39   :  { %v13664_v3 = vld [vmem:[#allocation6 + $0x154] sm:$0xf]  ;;  %v9249_v4 = vor.u32 %v13667_v2, %v9248_v1  ;;  %v9250_v5 = vld [vmem:[#allocation6 + $0x168] sm:$0xf0]  ;;  %v9256_v6 = vld [vmem:[#allocation6 + $0x158] sm:$0xf] }
  0x3a   :  { %v13668_v7 = vld [vmem:[#allocation6 + $0x16c] sm:$0xf0]  ;;  %v9253_v8 = vor.u32 %v13664_v3, %v9250_v5  ;;  %v13665_v10 = vld [vmem:[#allocation6 + $0x15c] sm:$0xf]  ;;  %v9258_v11 = vld [vmem:[#allocation6 + $0x170] sm:$0xf0] }
  0x3b   :  { %v9257_v9 = vor.u32 %v13668_v7, %v9256_v6  ;;  %v9224_v12 = vld [vmem:[#allocation6 + $0x120] sm:$0xf]  ;;  %523 = vmatpush.bf16.msra.mxu0 %v9249_v4  ;;  %v9261_v13 = vor.u32 %v13665_v10, %v9258_v11  ;;  %v13661_v14 = vld [vmem:[#allocation6 + $0x134] sm:$0xf0]  ;;  %v13658_v15 = vld [vmem:[#allocation6 + $0x124] sm:$0xf] }
  0x3c   :  { %v9226_v16 = vld [vmem:[#allocation6 + $0x138] sm:$0xf0]  ;;  %536 = vmatpush.bf16.msra.mxu1 %v9253_v8  ;;  %v9225_v17 = vor.u32 %v13661_v14, %v9224_v12  ;;  %v9232_v19 = vld [vmem:[#allocation6 + $0x128] sm:$0xf]  ;;  %v13662_v20 = vld [vmem:[#allocation6 + $0x13c] sm:$0xf0] }
  0x3d   :  { %549 = vmatpush.bf16.msra.mxu2 %v9257_v9  ;;  %v9229_v18 = vor.u32 %v13658_v15, %v9226_v16  ;;  %v13659_v21 = vld [vmem:[#allocation6 + $0x12c] sm:$0xf]  ;;  %562 = vmatpush.bf16.msra.mxu3 %v9261_v13  ;;  %v9233_v22 = vor.u32 %v13662_v20, %v9232_v19  ;;  %v9234_v23 = vld [vmem:[#allocation6 + $0x140] sm:$0xf0]  ;;  %v9200_v24 = vld [vmem:[#allocation6 + $0xf0] sm:$0xf] }
  0x3e   :  { %v13655_v25 = vld [vmem:[#allocation6 + $0x104] sm:$0xf0]  ;;  %v9237_v26 = vor.u32 %v13659_v21, %v9234_v23  ;;  %v13652_v27 = vld [vmem:[#allocation6 + $0xf4] sm:$0xf]  ;;  %v9202_v28 = vld [vmem:[#allocation6 + $0x108] sm:$0xf0] }
  0x3f   :  { %v9208_v29 = vld [vmem:[#allocation6 + $0xf8] sm:$0xf]  ;;  %524 = vmatpush.bf16.msra.mxu0 %v9225_v17  ;;  %v9201_v30 = vor.u32 %v13655_v25, %v9200_v24  ;;  %v13656_v31 = vld [vmem:[#allocation6 + $0x10c] sm:$0xf0]  ;;  %v13653_v32 = vld [vmem:[#allocation6 + $0xfc] sm:$0xf]  ;;  %v9205_v34 = vor.u32 %v13652_v27, %v9202_v28 }
  0x40   :  { %v9210_v33 = vld [vmem:[#allocation6 + $0x110] sm:$0xf0]  ;;  %537 = vmatpush.bf16.msra.mxu1 %v9229_v18  ;;  %v9209_v35 = vor.u32 %v13656_v31, %v9208_v29  ;;  %v9176_v36 = vld [vmem:[#allocation6 + $0xc0] sm:$0xf]  ;;  %v13649_v37 = vld [vmem:[#allocation6 + $0xd4] sm:$0xf0] }
  0x41   :  { %550 = vmatpush.bf16.msra.mxu2 %v9233_v22  ;;  %v13646_v38 = vld [vmem:[#allocation6 + $0xc4] sm:$0xf]  ;;  %563 = vmatpush.bf16.msra.mxu3 %v9237_v26  ;;  %v9213_v39 = vor.u32 %v13653_v32, %v9210_v33  ;;  %v9178_v40 = vld [vmem:[#allocation6 + $0xd8] sm:$0xf0]  ;;  %v9184_v41 = vld [vmem:[#allocation6 + $0xc8] sm:$0xf]  ;;  %v9177_v45 = vor.u32 %v13649_v37, %v9176_v36 }
  0x42   :  { %v13650_v42 = vld [vmem:[#allocation6 + $0xdc] sm:$0xf0]  ;;  %v13647_v43 = vld [vmem:[#allocation6 + $0xcc] sm:$0xf]  ;;  %v9186_v44 = vld [vmem:[#allocation6 + $0xe0] sm:$0xf0]  ;;  %v9181_v46 = vor.u32 %v13646_v38, %v9178_v40 }
  0x43   :  { %525 = vmatpush.bf16.msra.mxu0 %v9201_v30  ;;  %v9185_v47 = vor.u32 %v13650_v42, %v9184_v41  ;;  %v9152_v48 = vld [vmem:[#allocation6 + $0x90] sm:$0xf]  ;;  %v13643_v49 = vld [vmem:[#allocation6 + $0xa4] sm:$0xf0]  ;;  %v13640_v50 = vld [vmem:[#allocation6 + $0x94] sm:$0xf]  ;;  %v9189_v51 = vor.u32 %v13647_v43, %v9186_v44 }
  0x44   :  { %538 = vmatpush.bf16.msra.mxu1 %v9205_v34  ;;  %v9154_v52 = vld [vmem:[#allocation6 + $0xa8] sm:$0xf0]  ;;  %v9160_v53 = vld [vmem:[#allocation6 + $0x98] sm:$0xf]  ;;  %v13644_v54 = vld [vmem:[#allocation6 + $0xac] sm:$0xf0]  ;;  %v9153_v57 = vor.u32 %v13643_v49, %v9152_v48 }
  0x45   :  { %551 = vmatpush.bf16.msra.mxu2 %v9209_v35  ;;  %564 = vmatpush.bf16.msra.mxu3 %v9213_v39  ;;  %v13641_v55 = vld [vmem:[#allocation6 + $0x9c] sm:$0xf]  ;;  %v9162_v56 = vld [vmem:[#allocation6 + $0xb0] sm:$0xf0]  ;;  %v9157_v58 = vor.u32 %v13640_v50, %v9154_v52  ;;  %v9161_v59 = vor.u32 %v13644_v54, %v9160_v53  ;;  %v9128_v60 = vld [vmem:[#allocation6 + $0x60] sm:$0xf] }
  0x46   :  { %v13637_v61 = vld [vmem:[#allocation6 + $0x74] sm:$0xf0]  ;;  %v13634_v62 = vld [vmem:[#allocation6 + $0x64] sm:$0xf]  ;;  %v9165_v63 = vor.u32 %v13641_v55, %v9162_v56  ;;  %v9130_v0 = vld [vmem:[#allocation6 + $0x78] sm:$0xf0] }
  0x47   :  { %526 = vmatpush.bf16.msra.mxu0 %v9177_v45  ;;  %v9136_v1 = vld [vmem:[#allocation6 + $0x68] sm:$0xf]  ;;  %v13638_v2 = vld [vmem:[#allocation6 + $0x7c] sm:$0xf0]  ;;  %v13635_v3 = vld [vmem:[#allocation6 + $0x6c] sm:$0xf]  ;;  %v9129_v5 = vor.u32 %v13637_v61, %v9128_v60  ;;  %v9133_v6 = vor.u32 %v13634_v62, %v9130_v0 }
  0x48   :  { %539 = vmatpush.bf16.msra.mxu1 %v9181_v46  ;;  %v9138_v4 = vld [vmem:[#allocation6 + $0x80] sm:$0xf0]  ;;  %v9137_v7 = vor.u32 %v13638_v2, %v9136_v1  ;;  %v9104_v8 = vld [vmem:[#allocation6 + $0x30] sm:$0xf]  ;;  %v13631_v9 = vld [vmem:[#allocation6 + $0x44] sm:$0xf0] }
  0x49   :  { %552 = vmatpush.bf16.msra.mxu2 %v9185_v47  ;;  %565 = vmatpush.bf16.msra.mxu3 %v9189_v51  ;;  %v13628_v10 = vld [vmem:[#allocation6 + $0x34] sm:$0xf]  ;;  %v9141_v11 = vor.u32 %v13635_v3, %v9138_v4  ;;  %v9106_v12 = vld [vmem:[#allocation6 + $0x48] sm:$0xf0]  ;;  %v9112_v13 = vld [vmem:[#allocation6 + $0x38] sm:$0xf]  ;;  %v9105_v17 = vor.u32 %v13631_v9, %v9104_v8 }
  0x4a   :  { %v13632_v14 = vld [vmem:[#allocation6 + $0x4c] sm:$0xf0]  ;;  %v13629_v15 = vld [vmem:[#allocation6 + $0x3c] sm:$0xf]  ;;  %v9114_v16 = vld [vmem:[#allocation6 + $0x50] sm:$0xf0]  ;;  %v9109_v19 = vor.u32 %v13628_v10, %v9106_v12 }
  0x4b   :  { %527 = vmatpush.bf16.msra.mxu0 %v9153_v57  ;;  %v9080_v18 = vld [vmem:[#allocation6] sm:$0xf]  ;;  %v9113_v20 = vor.u32 %v13632_v14, %v9112_v13  ;;  %v13625_v21 = vld [vmem:[#allocation6 + $0x14] sm:$0xf0]  ;;  %v13622_v22 = vld [vmem:[#allocation6 + $0x4] sm:$0xf]  ;;  %v9117_v24 = vor.u32 %v13629_v15, %v9114_v16 }
  0x4c   :  { %540 = vmatpush.bf16.msra.mxu1 %v9157_v58  ;;  %v9082_v23 = vld [vmem:[#allocation6 + $0x18] sm:$0xf0]  ;;  %v9088_v25 = vld [vmem:[#allocation6 + $0x8] sm:$0xf]  ;;  %v13626_v26 = vld [vmem:[#allocation6 + $0x1c] sm:$0xf0]  ;;  %v9081_v31 = vor.u32 %v13625_v21, %v9080_v18 }
  0x4d   :  { %553 = vmatpush.bf16.msra.mxu2 %v9161_v59  ;;  %566 = vmatpush.bf16.msra.mxu3 %v9165_v63  ;;  %v13623_v27 = vld [vmem:[#allocation6 + $0xc] sm:$0xf]  ;;  %v9090_v28 = vld [vmem:[#allocation6 + $0x20] sm:$0xf0]  ;;  %v9264_v29 = vld [vmem:[#allocation6 + $0x160] sm:$0xf]  ;;  %v9085_v34 = vor.u32 %v13622_v22, %v9082_v23  ;;  %v9089_v35 = vor.u32 %v13626_v26, %v9088_v25 }
  0x4e   :  { %v13669_v30 = vld [vmem:[#allocation6 + $0x174] sm:$0xf0]  ;;  %v13666_v32 = vld [vmem:[#allocation6 + $0x164] sm:$0xf]  ;;  %v9266_v33 = vld [vmem:[#allocation6 + $0x178] sm:$0xf0]  ;;  %v9093_v36 = vor.u32 %v13623_v27, %v9090_v28 }
  0x4f   :  { %528 = vmatpush.bf16.msra.mxu0 %v9129_v5  ;;  %v9265_v37 = vor.u32 %v13669_v30, %v9264_v29  ;;  %v9269_v38 = vor.u32 %v13666_v32, %v9266_v33  ;;  %v9240_v39 = vld [vmem:[#allocation6 + $0x130] sm:$0xf]  ;;  %v13663_v40 = vld [vmem:[#allocation6 + $0x144] sm:$0xf0]  ;;  %v15239_v41 = vld [vmem:[#allocation3] sm:$0xf] }
  0x50   :  { %541 = vmatpush.bf16.msra.mxu1 %v9133_v6  ;;  %v13660_v42 = vld [vmem:[#allocation6 + $0x134] sm:$0xf]  ;;  %v9242_v43 = vld [vmem:[#allocation6 + $0x148] sm:$0xf0]  ;;  %v9216_v44 = vld [vmem:[#allocation6 + $0x100] sm:$0xf]  ;;  %v9241_v46 = vor.u32 %v13663_v40, %v9240_v39 }
  0x51   :  { %554 = vmatpush.bf16.msra.mxu2 %v9137_v7  ;;  %567 = vmatpush.bf16.msra.mxu3 %v9141_v11  ;;  %v13657_v45 = vld [vmem:[#allocation6 + $0x114] sm:$0xf0]  ;;  %v13654_v47 = vld [vmem:[#allocation6 + $0x104] sm:$0xf]  ;;  %v13715_v49 = vld [vmem:[#allocation9 + $0x164] sm:$0xf0]  ;;  %v9245_v51 = vor.u32 %v13660_v42, %v9242_v43 }
  0x52   :  { %v9440_v48 = vld [vmem:[#allocation9 + $0x150] sm:$0xf]  ;;  %v13763_v53 = vld [vmem:[#allocation9 + $0x2e4] sm:$0xf0]  ;;  %v9416_v54 = vld [vmem:[#allocation9 + $0x120] sm:$0xf]  ;;  %v9217_v61 = vor.u32 %v13657_v45, %v9216_v44 }
  0x53   :  { %529 = vmatpush.bf16.msra.mxu0 %v9105_v17  ;;  %v9632_v50 = vld [vmem:[#allocation9 + $0x2d0] sm:$0xf]  ;;  %v9441_v52 = vor.u32 %v13715_v49, %v9440_v48  ;;  %v13709_v55 = vld [vmem:[#allocation9 + $0x134] sm:$0xf0]  ;;  %v9608_v58 = vld [vmem:[#allocation9 + $0x2a0] sm:$0xf] }
  0x54   :  { %542 = vmatpush.bf16.msra.mxu1 %v9109_v19  ;;  %v9218_v56 = vld [vmem:[#allocation6 + $0x118] sm:$0xf0]  ;;  %v9633_v57 = vor.u32 %v13763_v53, %v9632_v50  ;;  %v9417_v60 = vor.u32 %v13709_v55, %v9416_v54  ;;  %v9192_v62 = vld [vmem:[#allocation6 + $0xd0] sm:$0xf]  ;;  %v9392_v0 = vld [vmem:[#allocation9 + $0xf0] sm:$0xf] }
  0x55   :  { %555 = vmatpush.bf16.msra.mxu2 %v9113_v20  ;;  %568 = vmatpush.bf16.msra.mxu3 %v9117_v24  ;;  %v13757_v59 = vld [vmem:[#allocation9 + $0x2b4] sm:$0xf0]  ;;  %v13703_v1 = vld [vmem:[#allocation9 + $0x104] sm:$0xf0]  ;;  %v9221_v2 = vor.u32 %v13654_v47, %v9218_v56  ;;  %v13651_v3 = vld [vmem:[#allocation6 + $0xe4] sm:$0xf0] }
  0x56   :  { %v9609_v63 = vor.u32 %v13757_v59, %v9608_v58  ;;  %v9584_v4 = vld [vmem:[#allocation9 + $0x270] sm:$0xf]  ;;  %v13751_v5 = vld [vmem:[#allocation9 + $0x284] sm:$0xf0]  ;;  %v9393_v8 = vor.u32 %v13703_v1, %v9392_v0  ;;  %v9193_v9 = vor.u32 %v13651_v3, %v9192_v62  ;;  %v9168_v10 = vld [vmem:[#allocation6 + $0xa0] sm:$0xf] }
  0x57   :  { %530 = vmatpush.bf16.msra.mxu0 %v9081_v31  ;;  %v13648_v6 = vld [vmem:[#allocation6 + $0xd4] sm:$0xf]  ;;  %v9194_v7 = vld [vmem:[#allocation6 + $0xe8] sm:$0xf0]  ;;  %v9585_v11 = vor.u32 %v13751_v5, %v9584_v4  ;;  %v9368_v12 = vld [vmem:[#allocation9 + $0xc0] sm:$0xf] }
  0x58   :  { %543 = vmatpush.bf16.msra.mxu1 %v9085_v34  ;;  %v13697_v13 = vld [vmem:[#allocation9 + $0xd4] sm:$0xf0]  ;;  %v9197_v14 = vor.u32 %v13648_v6, %v9194_v7  ;;  %v13645_v15 = vld [vmem:[#allocation6 + $0xb4] sm:$0xf0]  ;;  %v9560_v16 = vld [vmem:[#allocation9 + $0x240] sm:$0xf] }
  0x59   :  { %556 = vmatpush.bf16.msra.mxu2 %v9089_v35  ;;  %569 = vmatpush.bf16.msra.mxu3 %v9093_v36  ;;  %v13745_v17 = vld [vmem:[#allocation9 + $0x254] sm:$0xf0]  ;;  %v13642_v18 = vld [vmem:[#allocation6 + $0xa4] sm:$0xf]  ;;  %v9369_v20 = vor.u32 %v13697_v13, %v9368_v12  ;;  %v9169_v21 = vor.u32 %v13645_v15, %v9168_v10  ;;  %v9144_v22 = vld [vmem:[#allocation6 + $0x70] sm:$0xf] }
  0x5a   :  { %531 = vmatmul.bf16.vlgmr.msra.gmra.mxu0 %v15239_v41  ;;  %v9170_v19 = vld [vmem:[#allocation6 + $0xb8] sm:$0xf0]  ;;  %v9561_v23 = vor.u32 %v13745_v17, %v9560_v16  ;;  %v9344_v24 = vld [vmem:[#allocation9 + $0x90] sm:$0xf]  ;;  %v13691_v25 = vld [vmem:[#allocation9 + $0xa4] sm:$0xf0] }
  0x5b   :  { %575 = vmatpush.bf16.msrb.mxu0 %v9265_v37  ;;  %544 = vmatmul.bf16.vlgmr.msra.gmra.mxu1 %v15239_v41  ;;  %v9173_v26 = vor.u32 %v13642_v18, %v9170_v19  ;;  %v13639_v27 = vld [vmem:[#allocation6 + $0x84] sm:$0xf0]  ;;  %v9536_v28 = vld [vmem:[#allocation9 + $0x210] sm:$0xf]  ;;  %v13739_v29 = vld [vmem:[#allocation9 + $0x224] sm:$0xf0]  ;;  %v9345_v32 = vor.u32 %v13691_v25, %v9344_v24 }
  0x5c   :  { %588 = vmatpush.bf16.msrb.mxu1 %v9269_v38  ;;  %557 = vmatmul.bf16.vlgmr.msra.gmra.mxu2 %v15239_v41  ;;  %v13636_v30 = vld [vmem:[#allocation6 + $0x74] sm:$0xf]  ;;  %v9146_v31 = vld [vmem:[#allocation6 + $0x88] sm:$0xf0]  ;;  %v9145_v33 = vor.u32 %v13639_v27, %v9144_v22  ;;  %v9120_v34 = vld [vmem:[#allocation6 + $0x40] sm:$0xf]  ;;  %v9537_v35 = vor.u32 %v13739_v29, %v9536_v28 }
  0x5d   :  { %570 = vmatmul.bf16.vlgmr.msra.gmra.mxu3 %v15239_v41  ;;  %2355 = vmatpush.bf16.msrb.mxu2 %v9441_v52  ;;  %v9320_v36 = vld [vmem:[#allocation9 + $0x60] sm:$0xf]  ;;  %v13685_v37 = vld [vmem:[#allocation9 + $0x74] sm:$0xf0]  ;;  %v9149_v38 = vor.u32 %v13636_v30, %v9146_v31  ;;  %v13633_v39 = vld [vmem:[#allocation6 + $0x54] sm:$0xf0] }
  0x5e   :  { %2368 = vmatpush.bf16.msrb.mxu3 %v9633_v57  ;;  %v9512_v40 = vld [vmem:[#allocation9 + $0x1e0] sm:$0xf]  ;;  %v13733_v42 = vld [vmem:[#allocation9 + $0x1f4] sm:$0xf0]  ;;  %v9096_v45 = vld [vmem:[#allocation6 + $0x10] sm:$0xf]  ;;  %v9121_v47 = vor.u32 %v13633_v39, %v9120_v34 }
  0x5f   :  { %576 = vmatpush.bf16.msrb.mxu0 %v9241_v46  ;;  %v13630_v43 = vld [vmem:[#allocation6 + $0x44] sm:$0xf]  ;;  %v9122_v44 = vld [vmem:[#allocation6 + $0x58] sm:$0xf0]  ;;  %v9321_v46 = vor.u32 %v13685_v37, %v9320_v36  ;;  %v13627_v48 = vld [vmem:[#allocation6 + $0x24] sm:$0xf0]  ;;  %v9513_v49 = vor.u32 %v13733_v42, %v9512_v40 }
  0x60   :  { %589 = vmatpush.bf16.msrb.mxu1 %v9245_v51  ;;  %v9296_v50 = vld [vmem:[#allocation9 + $0x30] sm:$0xf]  ;;  %v13679_v51 = vld [vmem:[#allocation9 + $0x44] sm:$0xf0]  ;;  %v9125_v52 = vor.u32 %v13630_v43, %v9122_v44  ;;  %v9097_v62 = vor.u32 %v13627_v48, %v9096_v45  ;;  %v9272_v1 = vld [vmem:[#allocation9] sm:$0xf] }
  0x61   :  { %2356 = vmatpush.bf16.msrb.mxu2 %v9417_v60  ;;  %v13624_v53 = vld [vmem:[#allocation6 + $0x14] sm:$0xf]  ;;  %v13727_v55 = vld [vmem:[#allocation9 + $0x1c4] sm:$0xf0]  ;;  %v13805_v5 = vld [vmem:[#allocation9 + $0x434] sm:$0xf0] }
  0x62   :  { %2369 = vmatpush.bf16.msrb.mxu3 %v9609_v63  ;;  %v9488_v54 = vld [vmem:[#allocation9 + $0x1b0] sm:$0xf]  ;;  %v9098_v56 = vld [vmem:[#allocation6 + $0x28] sm:$0xf0]  ;;  %v9800_v63 = vld [vmem:[#allocation9 + $0x420] sm:$0xf] }
  0x63   :  { %577 = vmatpush.bf16.msrb.mxu0 %v9217_v61  ;;  %v9824_v57 = vld [vmem:[#allocation9 + $0x450] sm:$0xf]  ;;  %v13811_v58 = vld [vmem:[#allocation9 + $0x464] sm:$0xf0]  ;;  %v9297_v61 = vor.u32 %v13679_v51, %v9296_v50  ;;  %v9489_v0 = vor.u32 %v13727_v55, %v9488_v54  ;;  %v9101_v3 = vor.u32 %v13624_v53, %v9098_v56  ;;  %v9464_v6 = vld [vmem:[#allocation9 + $0x180] sm:$0xf]  ;;  %v9801_v17 = vor.u32 %v13805_v5, %v9800_v63 }
  0x64   :  { %590 = vmatpush.bf16.msrb.mxu1 %v9221_v2  ;;  %v10016_v59 = vld [vmem:[#allocation9 + $0x5d0] sm:$0xf]  ;;  %v13859_v60 = vld [vmem:[#allocation9 + $0x5e4] sm:$0xf0]  ;;  %v13673_v2 = vld [vmem:[#allocation9 + $0x14] sm:$0xf0]  ;;  %v9825_v4 = vor.u32 %v13811_v58, %v9824_v57 }
  0x65   :  { %2357 = vmatpush.bf16.msrb.mxu2 %v9393_v8  ;;  %v13721_v7 = vld [vmem:[#allocation9 + $0x194] sm:$0xf0]  ;;  %v10017_v8 = vor.u32 %v13859_v60, %v10016_v59  ;;  %v10208_v10 = vld [vmem:[#allocation9 + $0x750] sm:$0xf]  ;;  %v9273_v13 = vor.u32 %v13673_v2, %v9272_v1  ;;  %v13955_v15 = vld [vmem:[#allocation9 + $0x8e4] sm:$0xf0] }
  0x66   :  { %2370 = vmatpush.bf16.msrb.mxu3 %v9585_v11  ;;  %v13907_v11 = vld [vmem:[#allocation9 + $0x764] sm:$0xf0]  ;;  %v13853_v12 = vld [vmem:[#allocation9 + $0x5b4] sm:$0xf0]  ;;  %v9465_v16 = vor.u32 %v13721_v7, %v9464_v6  ;;  %v9776_v18 = vld [vmem:[#allocation9 + $0x3f0] sm:$0xf] }
  0x67   :  { %578 = vmatpush.bf16.msrb.mxu0 %v9193_v9  ;;  %v9992_v9 = vld [vmem:[#allocation9 + $0x5a0] sm:$0xf]  ;;  %v13799_v19 = vld [vmem:[#allocation9 + $0x404] sm:$0xf0]  ;;  %v9968_v22 = vld [vmem:[#allocation9 + $0x570] sm:$0xf] }
  0x68   :  { %591 = vmatpush.bf16.msrb.mxu1 %v9197_v14  ;;  %v10400_v14 = vld [vmem:[#allocation9 + $0x8d0] sm:$0xf]  ;;  %v10184_v24 = vld [vmem:[#allocation9 + $0x720] sm:$0xf]  ;;  %v13901_v25 = vld [vmem:[#allocation9 + $0x734] sm:$0xf0]  ;;  %v9777_v29 = vor.u32 %v13799_v19, %v9776_v18 }
  0x69   :  { %2358 = vmatpush.bf16.msrb.mxu2 %v9369_v20  ;;  %v10209_v20 = vor.u32 %v13907_v11, %v10208_v10  ;;  %v10376_v27 = vld [vmem:[#allocation9 + $0x8a0] sm:$0xf]  ;;  %v13949_v28 = vld [vmem:[#allocation9 + $0x8b4] sm:$0xf0]  ;;  %v10160_v36 = vld [vmem:[#allocation9 + $0x6f0] sm:$0xf] }
  0x6a   :  { %2371 = vmatpush.bf16.msrb.mxu3 %v9561_v23  ;;  %v10401_v23 = vor.u32 %v13955_v15, %v10400_v14  ;;  %v9752_v30 = vld [vmem:[#allocation9 + $0x3c0] sm:$0xf]  ;;  %v13793_v31 = vld [vmem:[#allocation9 + $0x3d4] sm:$0xf0]  ;;  %v13895_v37 = vld [vmem:[#allocation9 + $0x704] sm:$0xf0] }
  0x6b   :  { %579 = vmatpush.bf16.msrb.mxu0 %v9169_v21  ;;  %v9993_v21 = vor.u32 %v13853_v12, %v9992_v9  ;;  %v9944_v34 = vld [vmem:[#allocation9 + $0x540] sm:$0xf]  ;;  %v10352_v39 = vld [vmem:[#allocation9 + $0x870] sm:$0xf]  ;;  %v13943_v40 = vld [vmem:[#allocation9 + $0x884] sm:$0xf0]  ;;  %v9753_v42 = vor.u32 %v13793_v31, %v9752_v30  ;;  %v10161_v44 = vor.u32 %v13895_v37, %v10160_v36 }
  0x6c   :  { %592 = vmatpush.bf16.msrb.mxu1 %v9173_v26  ;;  %v13847_v26 = vld [vmem:[#allocation9 + $0x584] sm:$0xf0]  ;;  %v10136_v48 = vld [vmem:[#allocation9 + $0x6c0] sm:$0xf]  ;;  %v13781_v55 = vld [vmem:[#allocation9 + $0x374] sm:$0xf0] }
  0x6d   :  { %2359 = vmatpush.bf16.msrb.mxu2 %v9345_v32  ;;  %v10185_v32 = vor.u32 %v13901_v25, %v10184_v24  ;;  %v13787_v43 = vld [vmem:[#allocation9 + $0x3a4] sm:$0xf0]  ;;  %v10328_v51 = vld [vmem:[#allocation9 + $0x840] sm:$0xf]  ;;  %v10112_v60 = vld [vmem:[#allocation9 + $0x690] sm:$0xf] }
  0x6e   :  { %2372 = vmatpush.bf16.msrb.mxu3 %v9537_v35  ;;  %v10377_v35 = vor.u32 %v13949_v28, %v10376_v27  ;;  %v13835_v50 = vld [vmem:[#allocation9 + $0x524] sm:$0xf0]  ;;  %v9704_v54 = vld [vmem:[#allocation9 + $0x360] sm:$0xf]  ;;  %v10304_v63 = vld [vmem:[#allocation9 + $0x810] sm:$0xf] }
  0x6f   :  { %580 = vmatpush.bf16.msrb.mxu0 %v9145_v33  ;;  %v9969_v33 = vor.u32 %v13847_v26, %v9968_v22  ;;  %v9896_v58 = vld [vmem:[#allocation9 + $0x4e0] sm:$0xf]  ;;  %v9705_v1 = vor.u32 %v13781_v55, %v9704_v54  ;;  %v9680_v2 = vld [vmem:[#allocation9 + $0x330] sm:$0xf]  ;;  %v13877_v9 = vld [vmem:[#allocation9 + $0x674] sm:$0xf0] }
  0x70   :  { %593 = vmatpush.bf16.msrb.mxu1 %v9149_v38  ;;  %v13841_v38 = vld [vmem:[#allocation9 + $0x554] sm:$0xf0]  ;;  %v9872_v6 = vld [vmem:[#allocation9 + $0x4b0] sm:$0xf]  ;;  %v13823_v10 = vld [vmem:[#allocation9 + $0x4c4] sm:$0xf0] }
  0x71   :  { %2360 = vmatpush.bf16.msrb.mxu2 %v9321_v46  ;;  %v9945_v45 = vor.u32 %v13841_v38, %v9944_v34  ;;  %v9920_v46 = vld [vmem:[#allocation9 + $0x510] sm:$0xf]  ;;  %v10280_v11 = vld [vmem:[#allocation9 + $0x7e0] sm:$0xf]  ;;  %v13925_v12 = vld [vmem:[#allocation9 + $0x7f4] sm:$0xf0]  ;;  %v9873_v15 = vor.u32 %v13823_v10, %v9872_v6 }
  0x72   :  { %2373 = vmatpush.bf16.msrb.mxu3 %v9513_v49  ;;  %v13889_v49 = vld [vmem:[#allocation9 + $0x6d4] sm:$0xf0]  ;;  %v9921_v57 = vor.u32 %v13835_v50, %v9920_v46  ;;  %v9848_v18 = vld [vmem:[#allocation9 + $0x480] sm:$0xf]  ;;  %v10281_v19 = vor.u32 %v13925_v12, %v10280_v11  ;;  %v9442_v22 = vld [vmem:[#allocation9 + $0x168] sm:$0xf0] }
  0x73   :  { %581 = vmatpush.bf16.msrb.mxu0 %v9121_v47  ;;  %v10353_v47 = vor.u32 %v13943_v40, %v10352_v39  ;;  %v10137_v56 = vor.u32 %v13889_v49, %v10136_v48  ;;  %v9634_v24 = vld [vmem:[#allocation9 + $0x2e8] sm:$0xf0]  ;;  %v9418_v30 = vld [vmem:[#allocation9 + $0x138] sm:$0xf0]  ;;  %v13754_v31 = vld [vmem:[#allocation9 + $0x2a4] sm:$0xf] }
  0x74   :  { %594 = vmatpush.bf16.msrb.mxu1 %v9125_v52  ;;  %v13937_v52 = vld [vmem:[#allocation9 + $0x854] sm:$0xf0]  ;;  %v9394_v36 = vld [vmem:[#allocation9 + $0x108] sm:$0xf0]  ;;  %v13748_v37 = vld [vmem:[#allocation9 + $0x274] sm:$0xf] }
  0x75   :  { %2361 = vmatpush.bf16.msrb.mxu2 %v9297_v61  ;;  %v10329_v59 = vor.u32 %v13937_v52, %v10328_v51  ;;  %v13883_v61 = vld [vmem:[#allocation9 + $0x6a4] sm:$0xf0]  ;;  %v9586_v38 = vld [vmem:[#allocation9 + $0x288] sm:$0xf0]  ;;  %v13736_v49 = vld [vmem:[#allocation9 + $0x214] sm:$0xf] }
  0x76   :  { %2374 = vmatpush.bf16.msrb.mxu3 %v9489_v0  ;;  %v13931_v0 = vld [vmem:[#allocation9 + $0x824] sm:$0xf0]  ;;  %v9589_v40 = vor.u32 %v13748_v37, %v9586_v38  ;;  %v9346_v48 = vld [vmem:[#allocation9 + $0xa8] sm:$0xf0]  ;;  %v13724_v10 = vld [vmem:[#allocation9 + $0x1b4] sm:$0xf] }
  0x77   :  { %582 = vmatpush.bf16.msrb.mxu0 %v9097_v62  ;;  %v13829_v62 = vld [vmem:[#allocation9 + $0x4f4] sm:$0xf0]  ;;  %v10305_v7 = vor.u32 %v13931_v0, %v10304_v63  ;;  %v9538_v51 = vld [vmem:[#allocation9 + $0x228] sm:$0xf0]  ;;  %v13871_v54 = vld [vmem:[#allocation9 + $0x644] sm:$0xf0] }
  0x78   :  { %595 = vmatpush.bf16.msrb.mxu1 %v9101_v3  ;;  %v13775_v3 = vld [vmem:[#allocation9 + $0x344] sm:$0xf0]  ;;  %v9897_v5 = vor.u32 %v13829_v62, %v9896_v58  ;;  %v9541_v52 = vor.u32 %v13736_v49, %v9538_v51  ;;  %v9514_v63 = vld [vmem:[#allocation9 + $0x1f8] sm:$0xf0]  ;;  %v9490_v11 = vld [vmem:[#allocation9 + $0x1c8] sm:$0xf0] }
  0x79   :  { %2362 = vmatpush.bf16.msrb.mxu2 %v9273_v13  ;;  %v9681_v13 = vor.u32 %v13775_v3, %v9680_v2  ;;  %v13865_v2 = vld [vmem:[#allocation9 + $0x614] sm:$0xf0]  ;;  %v10232_v3 = vld [vmem:[#allocation9 + $0x780] sm:$0xf]  ;;  %v9493_v12 = vor.u32 %v13724_v10, %v9490_v11  ;;  %v13802_v37 = vld [vmem:[#allocation9 + $0x424] sm:$0xf] }
  0x7a   :  { %583 = vmatmul.bf16.vlgmr.msrb.gmra.mxu0 %v15239_v41  ;;  %2375 = vmatpush.bf16.msrb.mxu3 %v9465_v16  ;;  %v9656_v16 = vld [vmem:[#allocation9 + $0x300] sm:$0xf]  ;;  %v9802_v38 = vld [vmem:[#allocation9 + $0x438] sm:$0xf0]  ;;  %v13952_v49 = vld [vmem:[#allocation9 + $0x8d4] sm:$0xf] }
  0x7b   :  { %2381 = vmatpush.bf16.msra.mxu0 %v9825_v4  ;;  %596 = vmatmul.bf16.vlgmr.msrb.gmra.mxu1 %v15239_v41  ;;  %v9728_v41 = vld [vmem:[#allocation9 + $0x390] sm:$0xf]  ;;  %v10113_v4 = vor.u32 %v13883_v61, %v10112_v60  ;;  %v9322_v60 = vld [vmem:[#allocation9 + $0x78] sm:$0xf0]  ;;  %v13730_v61 = vld [vmem:[#allocation9 + $0x1e4] sm:$0xf] }
  0x7c   :  { %2394 = vmatpush.bf16.msra.mxu1 %v10017_v8  ;;  %v9729_v53 = vor.u32 %v13787_v43, %v9728_v41  ;;  %v10088_v8 = vld [vmem:[#allocation9 + $0x660] sm:$0xf]  ;;  %v9370_v41 = vld [vmem:[#allocation9 + $0xd8] sm:$0xf0]  ;;  %v13742_v43 = vld [vmem:[#allocation9 + $0x244] sm:$0xf]  ;;  %v9517_v0 = vor.u32 %v13730_v61, %v9514_v63 }
  0x7d   :  { %2407 = vmatpush.bf16.msra.mxu2 %v10209_v20  ;;  %v10089_v14 = vor.u32 %v13877_v9, %v10088_v8  ;;  %v13817_v20 = vld [vmem:[#allocation9 + $0x494] sm:$0xf0]  ;;  %v9298_v8 = vld [vmem:[#allocation9 + $0x48] sm:$0xf0]  ;;  %s15129_s10 = smov [#allocation23]   ;;  %s9062_s25 = sshll.u32 %s15756_s13, 4  ;;  %s9063_s25 = int_to_ptr.hbm [resolvable:$true] %s9062_s25 }
  0x7e   :  { %2420 = vmatpush.bf16.msra.mxu3 %v10401_v23  ;;  %v13760_v23 = vld [vmem:[#allocation9 + $0x2d4] sm:$0xf]  ;;  %v9849_v26 = vor.u32 %v13817_v20, %v9848_v18  ;;  %s9060_s11 = sshll.u32 %s15129_s10, 4  ;;  %vm9053_vm0 = vcmask 57344   ;;  %s9061_s11 = int_to_ptr.vmem [resolvable:$true] %s9060_s11 }
  0x7f   :  { %2382 = vmatpush.bf16.msra.mxu0 %v9801_v17  ;;  %v13769_v17 = vld [vmem:[#allocation9 + $0x314] sm:$0xf0]  ;;  %v9637_v28 = vor.u32 %v13760_v23, %v9634_v24 }
  0x80   :  { %2395 = vmatpush.bf16.msra.mxu1 %v9993_v21  ;;  %v13712_v21 = vld [vmem:[#allocation9 + $0x154] sm:$0xf]  ;;  %v9657_v25 = vor.u32 %v13769_v17, %v9656_v16  ;;  %v13718_v16 = vld [vmem:[#allocation9 + $0x184] sm:$0xf]  ;;  %v9466_v17 = vld [vmem:[#allocation9 + $0x198] sm:$0xf0] }
  0x81   :  { %2408 = vmatpush.bf16.msra.mxu2 %v10185_v32  ;;  %v9445_v27 = vor.u32 %v13712_v21, %v9442_v22  ;;  %v9610_v32 = vld [vmem:[#allocation9 + $0x2b8] sm:$0xf0]  ;;  %v9469_v18 = vor.u32 %v13718_v16, %v9466_v17  ;;  %v10162_v16 = vld [vmem:[#allocation9 + $0x708] sm:$0xf0]  ;;  %v13940_v17 = vld [vmem:[#allocation9 + $0x874] sm:$0xf] }
  0x82   :  { %2421 = vmatpush.bf16.msra.mxu3 %v10377_v35  ;;  %v9613_v34 = vor.u32 %v13754_v31, %v9610_v32  ;;  %v13700_v35 = vld [vmem:[#allocation9 + $0xf4] sm:$0xf] }
  0x83   :  { %2383 = vmatpush.bf16.msra.mxu0 %v9777_v29  ;;  %v13706_v29 = vld [vmem:[#allocation9 + $0x124] sm:$0xf]  ;;  %v9397_v39 = vor.u32 %v13700_v35, %v9394_v36 }
  0x84   :  { %2396 = vmatpush.bf16.msra.mxu1 %v9969_v33  ;;  %v9421_v33 = vor.u32 %v13706_v29, %v9418_v30  ;;  %v10018_v29 = vld [vmem:[#allocation9 + $0x5e8] sm:$0xf0] }
  0x85   :  { %2409 = vmatpush.bf16.msra.mxu2 %v10161_v44  ;;  %v9562_v44 = vld [vmem:[#allocation9 + $0x258] sm:$0xf0] }
  0x86   :  { %2422 = vmatpush.bf16.msra.mxu3 %v10353_v47  ;;  %v9565_v46 = vor.u32 %v13742_v43, %v9562_v44  ;;  %v13688_v47 = vld [vmem:[#allocation9 + $0x94] sm:$0xf] }
  0x87   :  { %2384 = vmatpush.bf16.msra.mxu0 %v9753_v42  ;;  %v13694_v42 = vld [vmem:[#allocation9 + $0xc4] sm:$0xf]  ;;  %v9349_v50 = vor.u32 %v13688_v47, %v9346_v48  ;;  %v13904_v47 = vld [vmem:[#allocation9 + $0x754] sm:$0xf]  ;;  %v10210_v48 = vld [vmem:[#allocation9 + $0x768] sm:$0xf0] }
  0x88   :  { %2397 = vmatpush.bf16.msra.mxu1 %v9945_v45  ;;  %v9373_v45 = vor.u32 %v13694_v42, %v9370_v41  ;;  %v9994_v42 = vld [vmem:[#allocation9 + $0x5b8] sm:$0xf0] }
  0x89   :  { %2410 = vmatpush.bf16.msra.mxu2 %v10137_v56  ;;  %v10256_v56 = vld [vmem:[#allocation9 + $0x7b0] sm:$0xf] }
  0x8a   :  { %2423 = vmatpush.bf16.msra.mxu3 %v10329_v59  ;;  %v13682_v59 = vld [vmem:[#allocation9 + $0x64] sm:$0xf] }
  0x8b   :  { %2385 = vmatpush.bf16.msra.mxu0 %v9729_v53  ;;  %v10064_v53 = vld [vmem:[#allocation9 + $0x630] sm:$0xf]  ;;  %v9325_v62 = vor.u32 %v13682_v59, %v9322_v60  ;;  %v10213_v60 = vor.u32 %v13904_v47, %v10210_v48  ;;  %v13772_v47 = vld [vmem:[#allocation9 + $0x334] sm:$0xf]  ;;  %v9682_v48 = vld [vmem:[#allocation9 + $0x348] sm:$0xf0] }
  0x8c   :  { %2398 = vmatpush.bf16.msra.mxu1 %v9921_v57  ;;  %v10065_v55 = vor.u32 %v13871_v54, %v10064_v53  ;;  %v13919_v57 = vld [vmem:[#allocation9 + $0x7c4] sm:$0xf0]  ;;  %v10402_v53 = vld [vmem:[#allocation9 + $0x8e8] sm:$0xf0]  ;;  %v13796_v54 = vld [vmem:[#allocation9 + $0x3f4] sm:$0xf] }
  0x8d   :  { %2411 = vmatpush.bf16.msra.mxu2 %v10113_v4  ;;  %v10257_v58 = vor.u32 %v13919_v57, %v10256_v56  ;;  %v13844_v57 = vld [vmem:[#allocation9 + $0x574] sm:$0xf] }
  0x8e   :  { %2424 = vmatpush.bf16.msra.mxu3 %v10305_v7  ;;  %v13676_v7 = vld [vmem:[#allocation9 + $0x34] sm:$0xf] }
  0x8f   :  { %2386 = vmatpush.bf16.msra.mxu0 %v9705_v1  ;;  %v10040_v1 = vld [vmem:[#allocation9 + $0x600] sm:$0xf]  ;;  %v9301_v9 = vor.u32 %v13676_v7, %v9298_v8  ;;  %v9754_v7 = vld [vmem:[#allocation9 + $0x3d8] sm:$0xf0]  ;;  %v13838_v8 = vld [vmem:[#allocation9 + $0x544] sm:$0xf] }
  0x90   :  { %2399 = vmatpush.bf16.msra.mxu1 %v9897_v5  ;;  %v10041_v4 = vor.u32 %v13865_v2, %v10040_v1  ;;  %v13913_v5 = vld [vmem:[#allocation9 + $0x794] sm:$0xf0]  ;;  %v10186_v1 = vld [vmem:[#allocation9 + $0x738] sm:$0xf0]  ;;  %v13946_v2 = vld [vmem:[#allocation9 + $0x8a4] sm:$0xf] }
  0x91   :  { %2412 = vmatpush.bf16.msra.mxu2 %v10089_v14  ;;  %v10233_v6 = vor.u32 %v13913_v5, %v10232_v3  ;;  %v9274_v14 = vld [vmem:[#allocation9 + $0x18] sm:$0xf0] }
  0x92   :  { %2425 = vmatpush.bf16.msra.mxu3 %v10281_v19  ;;  %v15247_v19 = vld [vmem:[#allocation8] sm:$0x3f] }
  0x93   :  { %2387 = vmatpush.bf16.msra.mxu0 %v9681_v13  ;;  %v13670_v13 = vld [vmem:[#allocation9 + $0x4] sm:$0xf]  ;;  %v271_v20 = vperm.slane %v15247_v19, 0  ;;  %v272_v21 = vperm.slane %v15247_v19, 1  ;;  %v273_v32 = vperm.slane %v15247_v19, 2  ;;  %v274_v35 = vperm.slane %v15247_v19, 3 }
  0x94   :  { %2400 = vmatpush.bf16.msra.mxu1 %v9873_v15  ;;  %v9277_v15 = vor.u32 %v13670_v13, %v9274_v14  ;;  %v10378_v5 = vld [vmem:[#allocation9 + $0x8b8] sm:$0xf0] }
  0x95   :  { %2413 = vmatpush.bf16.msra.mxu2 %v10065_v55  ;;  %v9778_v55 = vld [vmem:[#allocation9 + $0x408] sm:$0xf0]  ;;  %v10381_v13 = vor.u32 %v13946_v2, %v10378_v5  ;;  %v9850_v2 = vld [vmem:[#allocation9 + $0x498] sm:$0xf0] }
  0x96   :  { %2426 = vmatpush.bf16.msra.mxu3 %v10257_v58  ;;  %v9970_v58 = vld [vmem:[#allocation9 + $0x588] sm:$0xf0]  ;;  %v9781_v63 = vor.u32 %v13796_v54, %v9778_v55  ;;  %v9685_v55 = vor.u32 %v13772_v47, %v9682_v48  ;;  %v13704_v47 = vld [vmem:[#allocation9 + $0x10c] sm:$0xf0] }
  0x97   :  { %2388 = vmatpush.bf16.msra.mxu0 %v9657_v25  ;;  %v13808_v25 = vld [vmem:[#allocation9 + $0x454] sm:$0xf] }
  0x98   :  { %2401 = vmatpush.bf16.msra.mxu1 %v9849_v26  ;;  %v9826_v26 = vld [vmem:[#allocation9 + $0x468] sm:$0xf0] }
  0x99   :  { %2414 = vmatpush.bf16.msra.mxu2 %v10041_v4  ;;  %v9973_v4 = vor.u32 %v13844_v57, %v9970_v58  ;;  %v10090_v57 = vld [vmem:[#allocation9 + $0x678] sm:$0xf0]  ;;  %v13922_v58 = vld [vmem:[#allocation9 + $0x7e4] sm:$0xf] }
  0x9a   :  { %2427 = vmatpush.bf16.msra.mxu3 %v10233_v6  ;;  %v13790_v6 = vld [vmem:[#allocation9 + $0x3c4] sm:$0xf] }
  0x9b   :  { %2433 = vmatpush.bf16.msrb.mxu0 %v9445_v27  ;;  %v9757_v14 = vor.u32 %v13790_v6, %v9754_v7  ;;  %v9448_v6 = vld [vmem:[#allocation9 + $0x158] sm:$0xf]  ;;  %v13716_v7 = vld [vmem:[#allocation9 + $0x16c] sm:$0xf0] }
  0x9c   :  { %2446 = vmatpush.bf16.msrb.mxu1 %v9637_v28  ;;  %v13856_v28 = vld [vmem:[#allocation9 + $0x5d4] sm:$0xf] }
  0x9d   :  { %v10021_v36 = vor.u32 %v13856_v28, %v10018_v29  ;;  %v13886_v28 = vld [vmem:[#allocation9 + $0x6c4] sm:$0xf]  ;;  %v10138_v29 = vld [vmem:[#allocation9 + $0x6d8] sm:$0xf0] }
  0x9f   :  { %2434 = vmatpush.bf16.msrb.mxu0 %v9421_v33  ;;  %v9829_v33 = vor.u32 %v13808_v25, %v9826_v26 }
  0xa0   :  { %2447 = vmatpush.bf16.msrb.mxu1 %v9613_v34 }
  0xa3   :  { %2435 = vmatpush.bf16.msrb.mxu0 %v9397_v39 }
  0xa4   :  { %2448 = vmatpush.bf16.msrb.mxu1 %v9589_v40  ;;  %v13850_v40 = vld [vmem:[#allocation9 + $0x5a4] sm:$0xf] }
  0xa7   :  { %2436 = vmatpush.bf16.msrb.mxu0 %v9373_v45 }
  0xa8   :  { %2449 = vmatpush.bf16.msrb.mxu1 %v9565_v46  ;;  %v9805_v46 = vor.u32 %v13802_v37, %v9802_v38  ;;  %v9898_v37 = vld [vmem:[#allocation9 + $0x4f8] sm:$0xf0]  ;;  %v10141_v38 = vor.u32 %v13886_v28, %v10138_v29  ;;  %v13758_v28 = vld [vmem:[#allocation9 + $0x2bc] sm:$0xf0] }
  0xab   :  { %2437 = vmatpush.bf16.msrb.mxu0 %v9349_v50 }
  0xac   :  { %2450 = vmatpush.bf16.msrb.mxu1 %v9541_v52  ;;  %v9997_v52 = vor.u32 %v13850_v40, %v9994_v42 }
  0xaf   :  { %2438 = vmatpush.bf16.msrb.mxu0 %v9325_v62  ;;  %v10405_v62 = vor.u32 %v13952_v49, %v10402_v53  ;;  %v13820_v49 = vld [vmem:[#allocation9 + $0x4b4] sm:$0xf] }
  0xb0   :  { %2451 = vmatpush.bf16.msrb.mxu1 %v9517_v0  ;;  %v13898_v0 = vld [vmem:[#allocation9 + $0x724] sm:$0xf] }
  0xb1   :  { %v10189_v11 = vor.u32 %v13898_v0, %v10186_v1  ;;  %v13814_v1 = vld [vmem:[#allocation9 + $0x484] sm:$0xf] }
  0xb3   :  { %2439 = vmatpush.bf16.msrb.mxu0 %v9301_v9  ;;  %v9946_v9 = vld [vmem:[#allocation9 + $0x558] sm:$0xf0] }
  0xb4   :  { %2452 = vmatpush.bf16.msrb.mxu1 %v9493_v12 }
  0xb7   :  { %2440 = vmatpush.bf16.msrb.mxu0 %v9277_v15  ;;  %v13892_v15 = vld [vmem:[#allocation9 + $0x6f4] sm:$0xf] }
  0xb8   :  { %2453 = vmatpush.bf16.msrb.mxu1 %v9469_v18  ;;  %v9949_v18 = vor.u32 %v13838_v8, %v9946_v9  ;;  %v10165_v25 = vor.u32 %v13892_v15, %v10162_v16  ;;  %v9640_v8 = vld [vmem:[#allocation9 + $0x2d8] sm:$0xf]  ;;  %v9853_v16 = vor.u32 %v13814_v1, %v9850_v2 }
  0xb9   :  { %v9784_v2 = vld [vmem:[#allocation9 + $0x3f8] sm:$0xf] }
  0xd7   :  { %v532_v22 = vpop.f32.mrf.mxu0 }
  0xd8   :  { %v533_v23 = vadd.f32 %v532_v22, %v271_v20  ;;  %v545_v24 = vpop.f32.mrf.mxu1  ;;  %v10354_v20 = vld [vmem:[#allocation9 + $0x888] sm:$0xf0] }
  0xd9   :  { %v546_v27 = vadd.f32 %v545_v24, %v272_v21  ;;  %v13784_v21 = vld [vmem:[#allocation9 + $0x394] sm:$0xf]  ;;  %v9730_v22 = vld [vmem:[#allocation9 + $0x3a8] sm:$0xf0]  ;;  %v10357_v26 = vor.u32 %v13940_v17, %v10354_v20 }
  0xda   :  { %v601_v30 = vmax.f32 %v533_v23, 0.0  ;;  %v13832_v23 = vld [vmem:[#allocation9 + $0x514] sm:$0xf]  ;;  %v9922_v24 = vld [vmem:[#allocation9 + $0x528] sm:$0xf0] }
  0xdb   :  { %v602_v31 = vmax.f32 %v546_v27, 0.0  ;;  %v9733_v27 = vor.u32 %v13784_v21, %v9730_v22  ;;  %v13916_v17 = vld [vmem:[#allocation9 + $0x7b4] sm:$0xf]  ;;  %v9449_v21 = vor.u32 %v13716_v7, %v9448_v6  ;;  %v9424_v22 = vld [vmem:[#allocation9 + $0x128] sm:$0xf] }
  0xdc   :  { %v15252_v34 = vpack.c.bf16 %v601_v30, %v601_v30  ;;  %v13934_v30 = vld [vmem:[#allocation9 + $0x844] sm:$0xf]  ;;  %v13848_v6 = vld [vmem:[#allocation9 + $0x58c] sm:$0xf0] }
  0xdd   :  { %v15255_v39 = vpack.c.bf16 %v602_v31, %v602_v31  ;;  %v9925_v31 = vor.u32 %v13832_v23, %v9922_v24 }
  0xde   :  { %2363 = vmatmul.bf16.vlgmr.msrb.gmra.mxu2 %v15252_v34 }
  0xdf   :  { %v558_v41 = vpop.f32.mrf.mxu2  ;;  %2376 = vmatmul.bf16.vlgmr.msrb.gmra.mxu3 %v15255_v39  ;;  %2459 = vmatpush.bf16.msrb.mxu2 %v9829_v33  ;;  %v534_v45 = vpop.f32.mrf.mxu0  ;;  %v13778_v33 = vld [vmem:[#allocation9 + $0x364] sm:$0xf] }
  0xe0   :  { %v559_v43 = vadd.f32 %v558_v41, %v273_v32  ;;  %v571_v44 = vpop.f32.mrf.mxu3  ;;  %2472 = vmatpush.bf16.msrb.mxu3 %v10021_v36  ;;  %v547_v51 = vpop.f32.mrf.mxu1  ;;  %v10330_v32 = vld [vmem:[#allocation9 + $0x858] sm:$0xf0]  ;;  %v13826_v36 = vld [vmem:[#allocation9 + $0x4e4] sm:$0xf]  ;;  %v13880_v41 = vld [vmem:[#allocation9 + $0x694] sm:$0xf] }
  0xe1   :  { %v572_v50 = vadd.f32 %v571_v44, %v274_v35  ;;  %v9706_v35 = vld [vmem:[#allocation9 + $0x378] sm:$0xf0]  ;;  %v10333_v40 = vor.u32 %v13934_v30, %v10330_v32  ;;  %v13928_v44 = vld [vmem:[#allocation9 + $0x814] sm:$0xf]  ;;  %v9901_v45 = vor.u32 %v13826_v36, %v9898_v37  ;;  %v275_v51 = vperm.slane %v15247_v19, 4 }
  0xe2   :  { %v603_v56 = vmax.f32 %v559_v43, 0.0  ;;  %v9709_v42 = vor.u32 %v13778_v33, %v9706_v35  ;;  %v10114_v43 = vld [vmem:[#allocation9 + $0x6a8] sm:$0xf0]  ;;  %v10042_v32 = vld [vmem:[#allocation9 + $0x618] sm:$0xf0] }
  0xe3   :  { %v604_v59 = vmax.f32 %v572_v50, 0.0  ;;  %2460 = vmatpush.bf16.msrb.mxu2 %v9805_v46  ;;  %v10306_v46 = vld [vmem:[#allocation9 + $0x828] sm:$0xf0]  ;;  %v10117_v53 = vor.u32 %v13880_v41, %v10114_v43  ;;  %v13910_v33 = vld [vmem:[#allocation9 + $0x784] sm:$0xf] }
  0xe4   :  { %v15259_v61 = vpack.c.bf16 %v603_v56, %v603_v56  ;;  %2473 = vmatpush.bf16.msrb.mxu3 %v9997_v52  ;;  %v9874_v50 = vld [vmem:[#allocation9 + $0x4c8] sm:$0xf0]  ;;  %v276_v52 = vperm.slane %v15247_v19, 5  ;;  %v10309_v54 = vor.u32 %v13928_v44, %v10306_v46  ;;  %v13874_v56 = vld [vmem:[#allocation9 + $0x664] sm:$0xf] }
  0xe5   :  { %v15261_v3 = vpack.c.bf16 %v604_v59, %v604_v59  ;;  %v9877_v59 = vor.u32 %v13820_v49, %v9874_v50  ;;  %v10093_v5 = vor.u32 %v13874_v56, %v10090_v57  ;;  %v10234_v35 = vld [vmem:[#allocation9 + $0x798] sm:$0xf0]  ;;  %v9832_v36 = vld [vmem:[#allocation9 + $0x458] sm:$0xf]  ;;  %v13812_v37 = vld [vmem:[#allocation9 + $0x46c] sm:$0xf0] }
  0xe6   :  { %2389 = vmatmul.bf16.vlgmr.msra.gmra.mxu0 %v15259_v61  ;;  %v13860_v41 = vld [vmem:[#allocation9 + $0x5ec] sm:$0xf0]  ;;  %v9400_v46 = vld [vmem:[#allocation9 + $0xf8] sm:$0xf]  ;;  %v10237_v48 = vor.u32 %v13910_v33, %v10234_v35  ;;  %v9833_v49 = vor.u32 %v13812_v37, %v9832_v36  ;;  %v10000_v56 = vld [vmem:[#allocation9 + $0x5a8] sm:$0xf] }
  0xe7   :  { %2402 = vmatmul.bf16.vlgmr.msra.gmra.mxu1 %v15261_v3  ;;  %2485 = vmatpush.bf16.msra.mxu0 %v10213_v60  ;;  %v560_v10 = vpop.f32.mrf.mxu2  ;;  %v10282_v60 = vld [vmem:[#allocation9 + $0x7f8] sm:$0xf0]  ;;  %v9592_v50 = vld [vmem:[#allocation9 + $0x278] sm:$0xf]  ;;  %v13854_v57 = vld [vmem:[#allocation9 + $0x5bc] sm:$0xf0] }
  0xe8   :  { %2498 = vmatpush.bf16.msra.mxu1 %v10405_v62  ;;  %v573_v12 = vpop.f32.mrf.mxu3  ;;  %2461 = vmatpush.bf16.msrb.mxu2 %v9781_v63  ;;  %v13766_v62 = vld [vmem:[#allocation9 + $0x304] sm:$0xf]  ;;  %v9658_v63 = vld [vmem:[#allocation9 + $0x318] sm:$0xf0]  ;;  %v10285_v10 = vor.u32 %v13922_v58, %v10282_v60  ;;  %v13698_v60 = vld [vmem:[#allocation9 + $0xdc] sm:$0xf0]  ;;  %v10001_v1 = vor.u32 %v13854_v57, %v10000_v56 }
  0xe9   :  { %2474 = vmatpush.bf16.msrb.mxu3 %v9973_v4  ;;  %v13764_v12 = vld [vmem:[#allocation9 + $0x2ec] sm:$0xf0]  ;;  %v9304_v36 = vld [vmem:[#allocation9 + $0x38] sm:$0xf] }
  0xea   :  { %v9641_v24 = vor.u32 %v13764_v12, %v9640_v8  ;;  %v9352_v8 = vld [vmem:[#allocation9 + $0x98] sm:$0xf]  ;;  %v13740_v12 = vld [vmem:[#allocation9 + $0x22c] sm:$0xf0] }
  0xeb   :  { %2486 = vmatpush.bf16.msra.mxu0 %v10189_v11  ;;  %v9661_v11 = vor.u32 %v13766_v62, %v9658_v63  ;;  %v9568_v63 = vld [vmem:[#allocation9 + $0x248] sm:$0xf]  ;;  %v13836_v33 = vld [vmem:[#allocation9 + $0x52c] sm:$0xf0]  ;;  %v10408_v56 = vld [vmem:[#allocation9 + $0x8d8] sm:$0xf] }
  0xec   :  { %2499 = vmatpush.bf16.msra.mxu1 %v10381_v13  ;;  %2462 = vmatpush.bf16.msrb.mxu2 %v9757_v14  ;;  %v13868_v13 = vld [vmem:[#allocation9 + $0x634] sm:$0xf]  ;;  %v10066_v14 = vld [vmem:[#allocation9 + $0x648] sm:$0xf0]  ;;  %v13680_v37 = vld [vmem:[#allocation9 + $0x4c] sm:$0xf0] }
  0xed   :  { %2475 = vmatpush.bf16.msrb.mxu3 %v9949_v18  ;;  %v10258_v18 = vld [vmem:[#allocation9 + $0x7c8] sm:$0xf0] }
  0xee   :  { %v10261_v30 = vor.u32 %v13916_v17, %v10258_v18  ;;  %v9952_v17 = vld [vmem:[#allocation9 + $0x548] sm:$0xf]  ;;  %v13842_v18 = vld [vmem:[#allocation9 + $0x55c] sm:$0xf0] }
  0xef   :  { %2487 = vmatpush.bf16.msra.mxu0 %v10165_v25  ;;  %v10069_v25 = vor.u32 %v13868_v13, %v10066_v14  ;;  %v9760_v14 = vld [vmem:[#allocation9 + $0x3c8] sm:$0xf] }
  0xf0   :  { %2500 = vmatpush.bf16.msra.mxu1 %v10357_v26  ;;  %2463 = vmatpush.bf16.msrb.mxu2 %v9733_v27  ;;  %v13710_v26 = vld [vmem:[#allocation9 + $0x13c] sm:$0xf0]  ;;  %v9616_v27 = vld [vmem:[#allocation9 + $0x2a8] sm:$0xf] }
  0xf1   :  { %2476 = vmatpush.bf16.msrb.mxu3 %v9925_v31  ;;  %v13862_v31 = vld [vmem:[#allocation9 + $0x604] sm:$0xf]  ;;  %v9617_v44 = vor.u32 %v13758_v28, %v9616_v27  ;;  %v9953_v27 = vor.u32 %v13842_v18, %v9952_v17  ;;  %v9736_v28 = vld [vmem:[#allocation9 + $0x398] sm:$0xf]  ;;  %v13761_v17 = vld [vmem:[#allocation9 + $0x2dc] sm:$0xf] }
  0xf2   :  { %v9642_v18 = vld [vmem:[#allocation9 + $0x2f0] sm:$0xf0] }
  0xf3   :  { %2488 = vmatpush.bf16.msra.mxu0 %v10141_v38 }
  0xf4   :  { %2501 = vmatpush.bf16.msra.mxu1 %v10333_v40  ;;  %2464 = vmatpush.bf16.msrb.mxu2 %v9709_v42  ;;  %v9425_v40 = vor.u32 %v13710_v26, %v9424_v22  ;;  %v10024_v42 = vld [vmem:[#allocation9 + $0x5d8] sm:$0xf]  ;;  %v13686_v22 = vld [vmem:[#allocation9 + $0x7c] sm:$0xf0] }
  0xf5   :  { %2477 = vmatpush.bf16.msrb.mxu3 %v9901_v45  ;;  %v10045_v45 = vor.u32 %v13862_v31, %v10042_v32  ;;  %v13734_v26 = vld [vmem:[#allocation9 + $0x1fc] sm:$0xf0]  ;;  %v9928_v32 = vld [vmem:[#allocation9 + $0x518] sm:$0xf] }
  0xf6   :  { %2441 = vmatmul.bf16.vlgmr.msrb.gmra.mxu0 %v15252_v34 }
  0xf7   :  { %v584_v0 = vpop.f32.mrf.mxu0  ;;  %2454 = vmatmul.bf16.vlgmr.msrb.gmra.mxu1 %v15255_v39  ;;  %2489 = vmatpush.bf16.msra.mxu0 %v10117_v53  ;;  %v9808_v53 = vld [vmem:[#allocation9 + $0x428] sm:$0xf] }
  0xf8   :  { %v585_v4 = vadd.f32 %v584_v0, %v275_v51  ;;  %v597_v19 = vpop.f32.mrf.mxu1  ;;  %2502 = vmatpush.bf16.msra.mxu1 %v10309_v54  ;;  %2465 = vmatpush.bf16.msrb.mxu2 %v9685_v55  ;;  %v13752_v51 = vld [vmem:[#allocation9 + $0x28c] sm:$0xf0]  ;;  %v13806_v54 = vld [vmem:[#allocation9 + $0x43c] sm:$0xf0]  ;;  %v9401_v55 = vor.u32 %v13704_v47, %v9400_v46  ;;  %v9904_v46 = vld [vmem:[#allocation9 + $0x4e8] sm:$0xf] }
  0xf9   :  { %v598_v9 = vadd.f32 %v597_v19, %v276_v52  ;;  %2478 = vmatpush.bf16.msrb.mxu3 %v9877_v59  ;;  %v10025_v52 = vor.u32 %v13860_v41, %v10024_v42  ;;  %v9593_v58 = vor.u32 %v13752_v51, %v9592_v50  ;;  %v9376_v59 = vld [vmem:[#allocation9 + $0xc8] sm:$0xf]  ;;  %v9809_v62 = vor.u32 %v13806_v54, %v9808_v53  ;;  %v13746_v0 = vld [vmem:[#allocation9 + $0x25c] sm:$0xf0]  ;;  %v13728_v42 = vld [vmem:[#allocation9 + $0x1cc] sm:$0xf0] }
  0xfa   :  { %v605_v15 = vmax.f32 %v585_v4, 0.0  ;;  %v13800_v4 = vld [vmem:[#allocation9 + $0x40c] sm:$0xf0]  ;;  %v9377_v19 = vor.u32 %v13698_v60, %v9376_v59  ;;  %v9569_v7 = vor.u32 %v13746_v0, %v9568_v63  ;;  %v9929_v41 = vor.u32 %v13836_v33, %v9928_v32  ;;  %v13830_v47 = vld [vmem:[#allocation9 + $0x4fc] sm:$0xf0] }
  0xfb   :  { %v606_v20 = vmax.f32 %v598_v9, 0.0  ;;  %2490 = vmatpush.bf16.msra.mxu0 %v10093_v5  ;;  %v9976_v5 = vld [vmem:[#allocation9 + $0x578] sm:$0xf]  ;;  %v13692_v9 = vld [vmem:[#allocation9 + $0xac] sm:$0xf0]  ;;  %v9905_v57 = vor.u32 %v13830_v47, %v9904_v46 }
  0xfc   :  { %v15269_v23 = vpack.c.bf16 %v605_v15, %v605_v15  ;;  %2503 = vmatpush.bf16.msra.mxu1 %v10285_v10  ;;  %2466 = vmatpush.bf16.msrb.mxu2 %v9661_v11  ;;  %v9785_v10 = vor.u32 %v13800_v4, %v9784_v2  ;;  %v9544_v11 = vld [vmem:[#allocation9 + $0x218] sm:$0xf]  ;;  %v9977_v13 = vor.u32 %v13848_v6, %v9976_v5  ;;  %v13794_v15 = vld [vmem:[#allocation9 + $0x3dc] sm:$0xf0]  ;;  %v9472_v51 = vld [vmem:[#allocation9 + $0x188] sm:$0xf] }
  0xfd   :  { %v15271_v29 = vpack.c.bf16 %v606_v20, %v606_v20  ;;  %2479 = vmatpush.bf16.msrb.mxu3 %v9853_v16  ;;  %v9353_v16 = vor.u32 %v13692_v9, %v9352_v8  ;;  %v9545_v20 = vor.u32 %v13740_v12, %v9544_v11  ;;  %v13674_v50 = vld [vmem:[#allocation9 + $0x1c] sm:$0xf0]  ;;  %v10216_v54 = vld [vmem:[#allocation9 + $0x758] sm:$0xf]  ;;  %v13776_v60 = vld [vmem:[#allocation9 + $0x34c] sm:$0xf0] }
  0xfe   :  { %2415 = vmatmul.bf16.vlgmr.msra.gmra.mxu2 %v15269_v23  ;;  %v9688_v59 = vld [vmem:[#allocation9 + $0x338] sm:$0xf]  ;;  %v13824_v0 = vld [vmem:[#allocation9 + $0x4cc] sm:$0xf0]  ;;  %v10192_v4 = vld [vmem:[#allocation9 + $0x728] sm:$0xf] }
  0xff   :  { %2428 = vmatmul.bf16.vlgmr.msra.gmra.mxu3 %v15271_v29  ;;  %v586_v38 = vpop.f32.mrf.mxu0  ;;  %2491 = vmatpush.bf16.msra.mxu0 %v10069_v25  ;;  %v9520_v25 = vld [vmem:[#allocation9 + $0x1e8] sm:$0xf]  ;;  %v9880_v63 = vld [vmem:[#allocation9 + $0x4b8] sm:$0xf]  ;;  %v9689_v5 = vor.u32 %v13776_v60, %v9688_v59  ;;  %v13902_v6 = vld [vmem:[#allocation9 + $0x73c] sm:$0xf0] }
 0x100   :  { %2511 = vmatpush.bf16.msra.mxu2 %v9449_v21  ;;  %v599_v43 = vpop.f32.mrf.mxu1  ;;  %2504 = vmatpush.bf16.msra.mxu1 %v10261_v30  ;;  %v9328_v21 = vld [vmem:[#allocation9 + $0x68] sm:$0xf]  ;;  %v13788_v30 = vld [vmem:[#allocation9 + $0x3ac] sm:$0xf0]  ;;  %v9521_v35 = vor.u32 %v13734_v26, %v9520_v25  ;;  %v13950_v8 = vld [vmem:[#allocation9 + $0x8bc] sm:$0xf0]  ;;  %v9881_v9 = vor.u32 %v13824_v0, %v9880_v63 }
 0x101   :  { %2524 = vmatpush.bf16.msra.mxu3 %v9641_v24  ;;  %v9761_v24 = vor.u32 %v13794_v15, %v9760_v14  ;;  %v9329_v31 = vor.u32 %v13686_v22, %v9328_v21  ;;  %v9737_v38 = vor.u32 %v13788_v30, %v9736_v28  ;;  %v9712_v43 = vld [vmem:[#allocation9 + $0x368] sm:$0xf]  ;;  %v13770_v11 = vld [vmem:[#allocation9 + $0x31c] sm:$0xf0]  ;;  %v13713_v14 = vld [vmem:[#allocation9 + $0x15c] sm:$0xf]  ;;  %v9645_v30 = vor.u32 %v13761_v17, %v9642_v18 }
 0x102   :  { %v9856_v12 = vld [vmem:[#allocation9 + $0x488] sm:$0xf]  ;;  %v9450_v15 = vld [vmem:[#allocation9 + $0x170] sm:$0xf0]  ;;  %v10168_v22 = vld [vmem:[#allocation9 + $0x6f8] sm:$0xf] }
 0x103   :  { %2492 = vmatpush.bf16.msra.mxu0 %v10045_v45  ;;  %v9305_v45 = vor.u32 %v13680_v37, %v9304_v36  ;;  %v9453_v26 = vor.u32 %v13713_v14, %v9450_v15  ;;  %v13944_v28 = vld [vmem:[#allocation9 + $0x88c] sm:$0xf0]  ;;  %v9426_v32 = vld [vmem:[#allocation9 + $0x140] sm:$0xf0]  ;;  %v9402_v46 = vld [vmem:[#allocation9 + $0x110] sm:$0xf0] }
 0x104   :  { %2512 = vmatpush.bf16.msra.mxu2 %v9425_v40  ;;  %2505 = vmatpush.bf16.msra.mxu1 %v10237_v48  ;;  %v9496_v40 = vld [vmem:[#allocation9 + $0x1b8] sm:$0xf]  ;;  %v9280_v48 = vld [vmem:[#allocation9 + $0x8] sm:$0xf]  ;;  %v9618_v36 = vld [vmem:[#allocation9 + $0x2c0] sm:$0xf0] }
 0x105   :  { %2525 = vmatpush.bf16.msra.mxu3 %v9617_v44  ;;  %v13782_v44 = vld [vmem:[#allocation9 + $0x37c] sm:$0xf0]  ;;  %v13743_v60 = vld [vmem:[#allocation9 + $0x24c] sm:$0xf]  ;;  %v10096_v0 = vld [vmem:[#allocation9 + $0x668] sm:$0xf] }
 0x106   :  { %2493 = vmatmul.bf16.vlgmr.msra.gmra.mxu0 %v15269_v23  ;;  %v9713_v53 = vor.u32 %v13782_v44, %v9712_v43  ;;  %v13938_v43 = vld [vmem:[#allocation9 + $0x85c] sm:$0xf0]  ;;  %v10264_v15 = vld [vmem:[#allocation9 + $0x7b8] sm:$0xf]  ;;  %v13683_v18 = vld [vmem:[#allocation9 + $0x6c] sm:$0xf] }
 0x107   :  { %2537 = vmatpush.bf16.msrb.mxu0 %v9833_v49  ;;  %2506 = vmatmul.bf16.vlgmr.msra.gmra.mxu1 %v15271_v29  ;;  %v9497_v49 = vor.u32 %v13728_v42, %v9496_v40  ;;  %v13890_v40 = vld [vmem:[#allocation9 + $0x6dc] sm:$0xf0] }
 0x108   :  { %2550 = vmatpush.bf16.msrb.mxu1 %v10025_v52  ;;  %2513 = vmatpush.bf16.msra.mxu2 %v9401_v55  ;;  %v13722_v52 = vld [vmem:[#allocation9 + $0x19c] sm:$0xf0]  ;;  %v13908_v55 = vld [vmem:[#allocation9 + $0x76c] sm:$0xf0] }
 0x109   :  { %2526 = vmatpush.bf16.msra.mxu3 %v9593_v58  ;;  %v13956_v58 = vld [vmem:[#allocation9 + $0x8ec] sm:$0xf0]  ;;  %v10217_v2 = vor.u32 %v13908_v55, %v10216_v54  ;;  %v10312_v54 = vld [vmem:[#allocation9 + $0x818] sm:$0xf] }
 0x10a   :  { %v13932_v55 = vld [vmem:[#allocation9 + $0x82c] sm:$0xf0] }
 0x10b   :  { %2538 = vmatpush.bf16.msrb.mxu0 %v9809_v62  ;;  %v9281_v62 = vor.u32 %v13674_v50, %v9280_v48  ;;  %v13749_v48 = vld [vmem:[#allocation9 + $0x27c] sm:$0xf]  ;;  %v10313_v63 = vor.u32 %v13932_v55, %v10312_v54  ;;  %v9282_v54 = vld [vmem:[#allocation9 + $0x20] sm:$0xf0]  ;;  %v13719_v55 = vld [vmem:[#allocation9 + $0x18c] sm:$0xf] }
 0x10c   :  { %2551 = vmatpush.bf16.msrb.mxu1 %v10001_v1  ;;  %2514 = vmatpush.bf16.msra.mxu2 %v9377_v19  ;;  %v9473_v1 = vor.u32 %v13722_v52, %v9472_v51  ;;  %v10409_v19 = vor.u32 %v13956_v58, %v10408_v56  ;;  %v10120_v51 = vld [vmem:[#allocation9 + $0x698] sm:$0xf]  ;;  %v13884_v52 = vld [vmem:[#allocation9 + $0x6ac] sm:$0xf0]  ;;  %v9378_v58 = vld [vmem:[#allocation9 + $0xe0] sm:$0xf0] }
 0x10d   :  { %2527 = vmatpush.bf16.msra.mxu3 %v9569_v7  ;;  %v10384_v7 = vld [vmem:[#allocation9 + $0x8a8] sm:$0xf]  ;;  %v10121_v59 = vor.u32 %v13884_v52, %v10120_v51  ;;  %v10002_v51 = vld [vmem:[#allocation9 + $0x5c0] sm:$0xf0] }
 0x10e   :  { %2467 = vmatmul.bf16.vlgmr.msrb.gmra.mxu2 %v15259_v61 }
 0x10f   :  { %2539 = vmatpush.bf16.msrb.mxu0 %v9785_v10  ;;  %2480 = vmatmul.bf16.vlgmr.msrb.gmra.mxu3 %v15261_v3  ;;  %v9664_v10 = vld [vmem:[#allocation9 + $0x308] sm:$0xf] }
 0x110   :  { %2552 = vmatpush.bf16.msrb.mxu1 %v9977_v13  ;;  %2515 = vmatpush.bf16.msra.mxu2 %v9353_v16  ;;  %v13818_v13 = vld [vmem:[#allocation9 + $0x49c] sm:$0xf0]  ;;  %v10193_v16 = vor.u32 %v13902_v6, %v10192_v4  ;;  %v9665_v21 = vor.u32 %v13770_v11, %v9664_v10  ;;  %v10288_v4 = vld [vmem:[#allocation9 + $0x7e8] sm:$0xf]  ;;  %v13689_v6 = vld [vmem:[#allocation9 + $0x9c] sm:$0xf] }
 0x111   :  { %2528 = vmatpush.bf16.msra.mxu3 %v9545_v20  ;;  %v10385_v20 = vor.u32 %v13950_v8, %v10384_v7  ;;  %v9857_v25 = vor.u32 %v13818_v13, %v9856_v12  ;;  %v9354_v7 = vld [vmem:[#allocation9 + $0xb0] sm:$0xf0]  ;;  %v10072_v12 = vld [vmem:[#allocation9 + $0x638] sm:$0xf]  ;;  %v13872_v13 = vld [vmem:[#allocation9 + $0x64c] sm:$0xf0] }
 0x112   :  { %v9546_v10 = vld [vmem:[#allocation9 + $0x230] sm:$0xf0]  ;;  %v9357_v14 = vor.u32 %v13689_v6, %v9354_v7 }
 0x113   :  { %2540 = vmatpush.bf16.msrb.mxu0 %v9761_v24  ;;  %v13896_v24 = vld [vmem:[#allocation9 + $0x70c] sm:$0xf0]  ;;  %v9978_v6 = vld [vmem:[#allocation9 + $0x590] sm:$0xf0] }
 0x114   :  { %2553 = vmatpush.bf16.msrb.mxu1 %v9953_v27  ;;  %2516 = vmatpush.bf16.msra.mxu2 %v9329_v31  ;;  %v10360_v27 = vld [vmem:[#allocation9 + $0x878] sm:$0xf]  ;;  %v13707_v31 = vld [vmem:[#allocation9 + $0x12c] sm:$0xf]  ;;  %v10169_v33 = vor.u32 %v13896_v24, %v10168_v22  ;;  %v9522_v24 = vld [vmem:[#allocation9 + $0x200] sm:$0xf0] }
 0x115   :  { %2529 = vmatpush.bf16.msra.mxu3 %v9521_v35  ;;  %v13755_v35 = vld [vmem:[#allocation9 + $0x2ac] sm:$0xf]  ;;  %v10361_v37 = vor.u32 %v13944_v28, %v10360_v27  ;;  %v9429_v42 = vor.u32 %v13707_v31, %v9426_v32  ;;  %v13866_v27 = vld [vmem:[#allocation9 + $0x61c] sm:$0xf0]  ;;  %v10240_v28 = vld [vmem:[#allocation9 + $0x788] sm:$0xf] }
 0x116   :  { %v9621_v44 = vor.u32 %v13755_v35, %v9618_v36  ;;  %v13731_v22 = vld [vmem:[#allocation9 + $0x1ec] sm:$0xf]  ;;  %v13809_v32 = vld [vmem:[#allocation9 + $0x45c] sm:$0xf] }
 0x117   :  { %2541 = vmatpush.bf16.msrb.mxu0 %v9737_v38  ;;  %v10144_v38 = vld [vmem:[#allocation9 + $0x6c8] sm:$0xf]  ;;  %v13857_v35 = vld [vmem:[#allocation9 + $0x5dc] sm:$0xf]  ;;  %v9525_v36 = vor.u32 %v13731_v22, %v9522_v24  ;;  %v10170_v22 = vld [vmem:[#allocation9 + $0x710] sm:$0xf0] }
 0x118   :  { %2554 = vmatpush.bf16.msrb.mxu1 %v9929_v41  ;;  %2517 = vmatpush.bf16.msra.mxu2 %v9305_v45  ;;  %v10336_v41 = vld [vmem:[#allocation9 + $0x848] sm:$0xf]  ;;  %v13701_v45 = vld [vmem:[#allocation9 + $0xfc] sm:$0xf]  ;;  %v10145_v47 = vor.u32 %v13890_v40, %v10144_v38  ;;  %v9306_v40 = vld [vmem:[#allocation9 + $0x50] sm:$0xf0] }
 0x119   :  { %2530 = vmatpush.bf16.msra.mxu3 %v9497_v49  ;;  %v9594_v49 = vld [vmem:[#allocation9 + $0x290] sm:$0xf0]  ;;  %v10337_v50 = vor.u32 %v13938_v43, %v10336_v41  ;;  %v13677_v38 = vld [vmem:[#allocation9 + $0x3c] sm:$0xf] }
 0x11a   :  { %v9597_v56 = vor.u32 %v13749_v48, %v9594_v49  ;;  %v13725_v41 = vld [vmem:[#allocation9 + $0x1bc] sm:$0xf]  ;;  %v9498_v43 = vld [vmem:[#allocation9 + $0x1d0] sm:$0xf0]  ;;  %v9309_v48 = vor.u32 %v13677_v38, %v9306_v40  ;;  %v9810_v49 = vld [vmem:[#allocation9 + $0x440] sm:$0xf0] }
 0x11b   :  { %2542 = vmatpush.bf16.msrb.mxu0 %v9713_v53  ;;  %v9405_v53 = vor.u32 %v13701_v45, %v9402_v46  ;;  %v13803_v46 = vld [vmem:[#allocation9 + $0x42c] sm:$0xf]  ;;  %v9501_v52 = vor.u32 %v13725_v41, %v9498_v43 }
 0x11c   :  { %2555 = vmatpush.bf16.msrb.mxu1 %v9905_v57  ;;  %2518 = vmatpush.bf16.msra.mxu2 %v9281_v62  ;;  %v13695_v57 = vld [vmem:[#allocation9 + $0xcc] sm:$0xf]  ;;  %v9570_v62 = vld [vmem:[#allocation9 + $0x260] sm:$0xf0] }
 0x11d   :  { %2531 = vmatpush.bf16.msra.mxu3 %v9473_v1  ;;  %v13878_v1 = vld [vmem:[#allocation9 + $0x67c] sm:$0xf0]  ;;  %v13935_v40 = vld [vmem:[#allocation9 + $0x84c] sm:$0xf] }
 0x11e   :  { %v10097_v8 = vor.u32 %v13878_v1, %v10096_v0  ;;  %v13797_v1 = vld [vmem:[#allocation9 + $0x3fc] sm:$0xf]  ;;  %v13779_v43 = vld [vmem:[#allocation9 + $0x36c] sm:$0xf] }
 0x11f   :  { %2543 = vmatpush.bf16.msrb.mxu0 %v9689_v5  ;;  %2519 = vmatmul.bf16.vlgmr.msra.gmra.mxu2 %v15252_v34  ;;  %v9573_v5 = vor.u32 %v13743_v60, %v9570_v62  ;;  %v13953_v60 = vld [vmem:[#allocation9 + $0x8dc] sm:$0xf]  ;;  %v10410_v62 = vld [vmem:[#allocation9 + $0x8f0] sm:$0xf0] }
 0x120   :  { %2563 = vmatpush.bf16.msrb.mxu2 %v10217_v2  ;;  %2556 = vmatpush.bf16.msrb.mxu1 %v9881_v9  ;;  %v9381_v2 = vor.u32 %v13695_v57, %v9378_v58  ;;  %v13737_v9 = vld [vmem:[#allocation9 + $0x21c] sm:$0xf]  ;;  %v10218_v58 = vld [vmem:[#allocation9 + $0x770] sm:$0xf0]  ;;  %v10413_v7 = vor.u32 %v13953_v60, %v10410_v62  ;;  %v13875_v62 = vld [vmem:[#allocation9 + $0x66c] sm:$0xf] }
 0x121   :  { %2576 = vmatpush.bf16.msrb.mxu3 %v10409_v19  ;;  %v13926_v19 = vld [vmem:[#allocation9 + $0x7fc] sm:$0xf0]  ;;  %v9549_v17 = vor.u32 %v13737_v9, %v9546_v10  ;;  %v13905_v57 = vld [vmem:[#allocation9 + $0x75c] sm:$0xf]  ;;  %v10194_v9 = vld [vmem:[#allocation9 + $0x740] sm:$0xf0] }
 0x122   :  { %2532 = vmatmul.bf16.vlgmr.msra.gmra.mxu3 %v15255_v39  ;;  %v10289_v11 = vor.u32 %v13926_v19, %v10288_v4  ;;  %v10221_v19 = vor.u32 %v13905_v57, %v10218_v58  ;;  %v13821_v58 = vld [vmem:[#allocation9 + $0x4bc] sm:$0xf] }
 0x123   :  { %2544 = vmatpush.bf16.msrb.mxu0 %v9665_v21  ;;  %v10073_v21 = vor.u32 %v13872_v13, %v10072_v12  ;;  %v10386_v12 = vld [vmem:[#allocation9 + $0x8c0] sm:$0xf0] }
 0x124   :  { %2564 = vmatpush.bf16.msrb.mxu2 %v10193_v16  ;;  %2557 = vmatpush.bf16.msrb.mxu1 %v9857_v25  ;;  %v13920_v16 = vld [vmem:[#allocation9 + $0x7cc] sm:$0xf0]  ;;  %v10048_v25 = vld [vmem:[#allocation9 + $0x608] sm:$0xf] }
 0x125   :  { %2577 = vmatpush.bf16.msrb.mxu3 %v10385_v20  ;;  %v9330_v20 = vld [vmem:[#allocation9 + $0x80] sm:$0xf0] }
 0x126   :  { %2545 = vmatmul.bf16.vlgmr.msrb.gmra.mxu0 %v15259_v61  ;;  %v9333_v31 = vor.u32 %v13683_v18, %v9330_v20  ;;  %v9954_v18 = vld [vmem:[#allocation9 + $0x560] sm:$0xf0] }
 0x127   :  { %2589 = vmatpush.bf16.msra.mxu0 %v9453_v26  ;;  %2558 = vmatmul.bf16.vlgmr.msrb.gmra.mxu1 %v15261_v3  ;;  %v10265_v26 = vor.u32 %v13920_v16, %v10264_v15  ;;  %v9762_v15 = vld [vmem:[#allocation9 + $0x3e0] sm:$0xf0] }
 0x128   :  { %2602 = vmatpush.bf16.msra.mxu1 %v9645_v30  ;;  %2565 = vmatpush.bf16.msrb.mxu2 %v10169_v33  ;;  %v13914_v30 = vld [vmem:[#allocation9 + $0x79c] sm:$0xf0]  ;;  %v9834_v33 = vld [vmem:[#allocation9 + $0x470] sm:$0xf0] }
 0x129   :  { %2578 = vmatpush.bf16.msrb.mxu3 %v10361_v37  ;;  %v10026_v37 = vld [vmem:[#allocation9 + $0x5f0] sm:$0xf0]  ;;  %v9837_v45 = vor.u32 %v13809_v32, %v9834_v33  ;;  %v13833_v32 = vld [vmem:[#allocation9 + $0x51c] sm:$0xf] }
 0x12a   :  { %v9930_v33 = vld [vmem:[#allocation9 + $0x530] sm:$0xf0] }
 0x12b   :  { %2590 = vmatpush.bf16.msra.mxu0 %v9429_v42  ;;  %v10049_v42 = vor.u32 %v13866_v27, %v10048_v25  ;;  %v13941_v25 = vld [vmem:[#allocation9 + $0x87c] sm:$0xf]  ;;  %v9933_v41 = vor.u32 %v13833_v32, %v9930_v33  ;;  %v10050_v32 = vld [vmem:[#allocation9 + $0x620] sm:$0xf0]  ;;  %v13911_v33 = vld [vmem:[#allocation9 + $0x78c] sm:$0xf] }
 0x12c   :  { %2603 = vmatpush.bf16.msra.mxu1 %v9621_v44  ;;  %2566 = vmatpush.bf16.msrb.mxu2 %v10145_v47  ;;  %v10241_v44 = vor.u32 %v13914_v30, %v10240_v28  ;;  %v10029_v47 = vor.u32 %v13857_v35, %v10026_v37  ;;  %v13785_v28 = vld [vmem:[#allocation9 + $0x39c] sm:$0xf]  ;;  %v9738_v30 = vld [vmem:[#allocation9 + $0x3b0] sm:$0xf0]  ;;  %v10146_v37 = vld [vmem:[#allocation9 + $0x6e0] sm:$0xf0] }
 0x12d   :  { %2579 = vmatpush.bf16.msrb.mxu3 %v10337_v50  ;;  %v13851_v50 = vld [vmem:[#allocation9 + $0x5ac] sm:$0xf]  ;;  %v9741_v38 = vor.u32 %v13785_v28, %v9738_v30  ;;  %v13759_v28 = vld [vmem:[#allocation9 + $0x2c4] sm:$0xf0] }
 0x12f   :  { %2591 = vmatpush.bf16.msra.mxu0 %v9405_v53  ;;  %v13671_v53 = vld [vmem:[#allocation9 + $0xc] sm:$0xf] }
 0x130   :  { %2604 = vmatpush.bf16.msra.mxu1 %v9597_v56  ;;  %2567 = vmatpush.bf16.msrb.mxu2 %v10121_v59  ;;  %v9474_v56 = vld [vmem:[#allocation9 + $0x1a0] sm:$0xf0]  ;;  %v9813_v59 = vor.u32 %v13803_v46, %v9810_v49  ;;  %v9285_v0 = vor.u32 %v13671_v53, %v9282_v54  ;;  %v13827_v46 = vld [vmem:[#allocation9 + $0x4ec] sm:$0xf]  ;;  %v13881_v49 = vld [vmem:[#allocation9 + $0x69c] sm:$0xf] }
 0x131   :  { %2580 = vmatpush.bf16.msrb.mxu3 %v10313_v63  ;;  %v10005_v63 = vor.u32 %v13851_v50, %v10002_v51  ;;  %v9477_v4 = vor.u32 %v13719_v55, %v9474_v56  ;;  %v10122_v50 = vld [vmem:[#allocation9 + $0x6b0] sm:$0xf0]  ;;  %v13773_v55 = vld [vmem:[#allocation9 + $0x33c] sm:$0xf] }
 0x132   :  { %v10314_v53 = vld [vmem:[#allocation9 + $0x830] sm:$0xf0]  ;;  %v10125_v57 = vor.u32 %v13881_v49, %v10122_v50  ;;  %v13753_v49 = vld [vmem:[#allocation9 + $0x294] sm:$0xf0] }
 0x133   :  { %2592 = vmatpush.bf16.msra.mxu0 %v9381_v2  ;;  %v9786_v2 = vld [vmem:[#allocation9 + $0x410] sm:$0xf0] }
 0x134   :  { %2605 = vmatpush.bf16.msra.mxu1 %v9573_v5  ;;  %2568 = vmatpush.bf16.msrb.mxu2 %v10097_v8  ;;  %v13845_v5 = vld [vmem:[#allocation9 + $0x57c] sm:$0xf]  ;;  %v13899_v8 = vld [vmem:[#allocation9 + $0x72c] sm:$0xf]  ;;  %v9789_v10 = vor.u32 %v13797_v1, %v9786_v2  ;;  %v9690_v56 = vld [vmem:[#allocation9 + $0x350] sm:$0xf0] }
 0x135   :  { %2581 = vmatpush.bf16.msrb.mxu3 %v10289_v11  ;;  %v13947_v11 = vld [vmem:[#allocation9 + $0x8ac] sm:$0xf]  ;;  %v9981_v13 = vor.u32 %v13845_v5, %v9978_v6  ;;  %v10197_v16 = vor.u32 %v13899_v8, %v10194_v9  ;;  %v10290_v2 = vld [vmem:[#allocation9 + $0x800] sm:$0xf0]  ;;  %v9456_v9 = vld [vmem:[#allocation9 + $0x160] sm:$0xf] }
 0x136   :  { %v10389_v20 = vor.u32 %v13947_v11, %v10386_v12  ;;  %v13923_v1 = vld [vmem:[#allocation9 + $0x7ec] sm:$0xf]  ;;  %v9666_v5 = vld [vmem:[#allocation9 + $0x320] sm:$0xf0]  ;;  %v9648_v11 = vld [vmem:[#allocation9 + $0x2e0] sm:$0xf] }
 0x137   :  { %2593 = vmatpush.bf16.msra.mxu0 %v9357_v14  ;;  %v13791_v14 = vld [vmem:[#allocation9 + $0x3cc] sm:$0xf]  ;;  %v10293_v12 = vor.u32 %v13923_v1, %v10290_v2  ;;  %v13801_v1 = vld [vmem:[#allocation9 + $0x414] sm:$0xf0]  ;;  %v15289_v2 = vld [vmem:[#allocation11] sm:$0x3f] }
 0x138   :  { %2606 = vmatpush.bf16.msra.mxu1 %v9549_v17  ;;  %2569 = vmatpush.bf16.msrb.mxu2 %v10073_v21  ;;  %v13839_v17 = vld [vmem:[#allocation9 + $0x54c] sm:$0xf]  ;;  %v13893_v21 = vld [vmem:[#allocation9 + $0x6fc] sm:$0xf]  ;;  %v9765_v24 = vor.u32 %v13791_v14, %v9762_v15  ;;  %v10074_v15 = vld [vmem:[#allocation9 + $0x650] sm:$0xf0] }
 0x139   :  { %2582 = vmatpush.bf16.msrb.mxu3 %v10265_v26  ;;  %v10362_v26 = vld [vmem:[#allocation9 + $0x890] sm:$0xf0]  ;;  %v9957_v27 = vor.u32 %v13839_v17, %v9954_v18  ;;  %v13815_v6 = vld [vmem:[#allocation9 + $0x48c] sm:$0xf]  ;;  %v13869_v14 = vld [vmem:[#allocation9 + $0x63c] sm:$0xf] }
 0x13a   :  { %v10365_v35 = vor.u32 %v13941_v25, %v10362_v26  ;;  %v13917_v17 = vld [vmem:[#allocation9 + $0x7bc] sm:$0xf]  ;;  %v10266_v18 = vld [vmem:[#allocation9 + $0x7d0] sm:$0xf0]  ;;  %v10077_v25 = vor.u32 %v13869_v14, %v10074_v15  ;;  %v13711_v26 = vld [vmem:[#allocation9 + $0x144] sm:$0xf0] }
 0x13b   :  { %2594 = vmatpush.bf16.msra.mxu0 %v9333_v31  ;;  %v10173_v31 = vor.u32 %v13893_v21, %v10170_v22  ;;  %v9432_v22 = vld [vmem:[#allocation9 + $0x130] sm:$0xf]  ;;  %v10269_v30 = vor.u32 %v13917_v17, %v10266_v18  ;;  %v13795_v15 = vld [vmem:[#allocation9 + $0x3e4] sm:$0xf0] }
 0x13c   :  { %2607 = vmatpush.bf16.msra.mxu1 %v9525_v36  ;;  %2570 = vmatpush.bf16.msrb.mxu2 %v10049_v42  ;;  %v13887_v36 = vld [vmem:[#allocation9 + $0x6cc] sm:$0xf]  ;;  %v10338_v42 = vld [vmem:[#allocation9 + $0x860] sm:$0xf0]  ;;  %v9768_v14 = vld [vmem:[#allocation9 + $0x3d0] sm:$0xf] }
 0x13d   :  { %2583 = vmatpush.bf16.msrb.mxu3 %v10241_v44  ;;  %v9714_v44 = vld [vmem:[#allocation9 + $0x380] sm:$0xf0]  ;;  %v9960_v17 = vld [vmem:[#allocation9 + $0x550] sm:$0xf]  ;;  %v13843_v18 = vld [vmem:[#allocation9 + $0x564] sm:$0xf0] }
 0x13e   :  { %v9717_v51 = vor.u32 %v13779_v43, %v9714_v44  ;;  %v9408_v44 = vld [vmem:[#allocation9 + $0x100] sm:$0xf] }
 0x13f   :  { %2595 = vmatpush.bf16.msra.mxu0 %v9309_v48  ;;  %2571 = vmatmul.bf16.vlgmr.msrb.gmra.mxu2 %v15269_v23  ;;  %v10341_v48 = vor.u32 %v13935_v40, %v10338_v42  ;;  %v10032_v40 = vld [vmem:[#allocation9 + $0x5e0] sm:$0xf]  ;;  %v13861_v42 = vld [vmem:[#allocation9 + $0x5f4] sm:$0xf0] }
 0x140   :  { %2615 = vmatpush.bf16.msra.mxu2 %v9837_v45  ;;  %2608 = vmatpush.bf16.msra.mxu1 %v9501_v52  ;;  %v10149_v45 = vor.u32 %v13887_v36, %v10146_v37  ;;  %v13929_v52 = vld [vmem:[#allocation9 + $0x81c] sm:$0xf]  ;;  %v9840_v36 = vld [vmem:[#allocation9 + $0x460] sm:$0xf]  ;;  %v13813_v37 = vld [vmem:[#allocation9 + $0x474] sm:$0xf0]  ;;  %v10033_v50 = vor.u32 %v13861_v42, %v10032_v40 }
 0x141   :  { %2628 = vmatpush.bf16.msra.mxu3 %v10029_v47  ;;  %v9906_v47 = vld [vmem:[#allocation9 + $0x500] sm:$0xf0]  ;;  %v10317_v60 = vor.u32 %v13929_v52, %v10314_v53  ;;  %v13807_v52 = vld [vmem:[#allocation9 + $0x444] sm:$0xf0]  ;;  %v9936_v40 = vld [vmem:[#allocation9 + $0x520] sm:$0xf] }
 0x142   :  { %2584 = vmatmul.bf16.vlgmr.msrb.gmra.mxu3 %v15271_v29  ;;  %v9909_v54 = vor.u32 %v13827_v46, %v9906_v47  ;;  %v9841_v47 = vor.u32 %v13813_v37, %v9840_v36  ;;  %v13789_v36 = vld [vmem:[#allocation9 + $0x3b4] sm:$0xf0] }
 0x143   :  { %2596 = vmatpush.bf16.msra.mxu0 %v9285_v0  ;;  %v9693_v0 = vor.u32 %v13773_v55, %v9690_v56  ;;  %v13855_v55 = vld [vmem:[#allocation9 + $0x5c4] sm:$0xf0]  ;;  %v13837_v42 = vld [vmem:[#allocation9 + $0x534] sm:$0xf0] }
 0x144   :  { %2616 = vmatpush.bf16.msra.mxu2 %v9813_v59  ;;  %2609 = vmatpush.bf16.msra.mxu1 %v9477_v4  ;;  %v9882_v59 = vld [vmem:[#allocation9 + $0x4d0] sm:$0xf0]  ;;  %v13767_v4 = vld [vmem:[#allocation9 + $0x30c] sm:$0xf] }
 0x145   :  { %2629 = vmatpush.bf16.msra.mxu3 %v10005_v63  ;;  %v10098_v63 = vld [vmem:[#allocation9 + $0x680] sm:$0xf0] }
 0x146   :  { %2597 = vmatmul.bf16.vlgmr.msra.gmra.mxu0 %v15252_v34  ;;  %v10101_v8 = vor.u32 %v13875_v62, %v10098_v63  ;;  %v13747_v62 = vld [vmem:[#allocation9 + $0x264] sm:$0xf0] }
 0x147   :  { %2641 = vmatpush.bf16.msrb.mxu0 %v10221_v19  ;;  %2610 = vmatmul.bf16.vlgmr.msra.gmra.mxu1 %v15255_v39  ;;  %v9885_v19 = vor.u32 %v13821_v58, %v9882_v59  ;;  %v13699_v58 = vld [vmem:[#allocation9 + $0xe4] sm:$0xf0] }
 0x148   :  { %2654 = vmatpush.bf16.msrb.mxu1 %v10413_v7  ;;  %2617 = vmatpush.bf16.msra.mxu2 %v9789_v10  ;;  %v9858_v7 = vld [vmem:[#allocation9 + $0x4a0] sm:$0xf0]  ;;  %v13717_v10 = vld [vmem:[#allocation9 + $0x174] sm:$0xf0] }
 0x149   :  { %2630 = vmatpush.bf16.msra.mxu3 %v9981_v13  ;;  %v13765_v13 = vld [vmem:[#allocation9 + $0x2f4] sm:$0xf0]  ;;  %v9457_v21 = vor.u32 %v13717_v10, %v9456_v9  ;;  %v903_v10 = vperm.slane %v15289_v2, 0 }
 0x14b   :  { %2642 = vmatpush.bf16.msrb.mxu0 %v10197_v16  ;;  %v9669_v16 = vor.u32 %v13767_v4, %v9666_v5  ;;  %v13849_v5 = vld [vmem:[#allocation9 + $0x594] sm:$0xf0] }
 0x14c   :  { %2655 = vmatpush.bf16.msrb.mxu1 %v10389_v20  ;;  %2618 = vmatpush.bf16.msra.mxu2 %v9765_v24  ;;  %v9861_v20 = vor.u32 %v13815_v6, %v9858_v7  ;;  %v9649_v24 = vor.u32 %v13765_v13, %v9648_v11  ;;  %v9360_v7 = vld [vmem:[#allocation9 + $0xa0] sm:$0xf] }
 0x14d   :  { %2631 = vmatpush.bf16.msra.mxu3 %v9957_v27  ;;  %v9624_v27 = vld [vmem:[#allocation9 + $0x2b0] sm:$0xf]  ;;  %v9552_v11 = vld [vmem:[#allocation9 + $0x220] sm:$0xf] }
 0x14f   :  { %2643 = vmatpush.bf16.msrb.mxu0 %v10173_v31  ;;  %v13863_v31 = vld [vmem:[#allocation9 + $0x60c] sm:$0xf] }
 0x150   :  { %2656 = vmatpush.bf16.msrb.mxu1 %v10365_v35  ;;  %2619 = vmatpush.bf16.msra.mxu2 %v9741_v38  ;;  %v10242_v35 = vld [vmem:[#allocation9 + $0x7a0] sm:$0xf0]  ;;  %v9433_v38 = vor.u32 %v13711_v26, %v9432_v22  ;;  %v10053_v43 = vor.u32 %v13863_v31, %v10050_v32  ;;  %v9336_v22 = vld [vmem:[#allocation9 + $0x70] sm:$0xf]  ;;  %v13735_v31 = vld [vmem:[#allocation9 + $0x204] sm:$0xf0] }
 0x151   :  { %2632 = vmatpush.bf16.msra.mxu3 %v9933_v41  ;;  %v9625_v41 = vor.u32 %v13759_v28, %v9624_v27  ;;  %v10245_v46 = vor.u32 %v13911_v33, %v10242_v35  ;;  %v9769_v28 = vor.u32 %v13795_v15, %v9768_v14  ;;  %v9961_v33 = vor.u32 %v13843_v18, %v9960_v17  ;;  %v9744_v35 = vld [vmem:[#allocation9 + $0x3a0] sm:$0xf]  ;;  %v10200_v17 = vld [vmem:[#allocation9 + $0x730] sm:$0xf] }
 0x153   :  { %2644 = vmatpush.bf16.msrb.mxu0 %v10149_v45  ;;  %v13705_v45 = vld [vmem:[#allocation9 + $0x114] sm:$0xf0] }
 0x154   :  { %2657 = vmatpush.bf16.msrb.mxu1 %v10341_v48  ;;  %2620 = vmatpush.bf16.msra.mxu2 %v9717_v51  ;;  %v9600_v48 = vld [vmem:[#allocation9 + $0x280] sm:$0xf]  ;;  %v9816_v51 = vld [vmem:[#allocation9 + $0x430] sm:$0xf]  ;;  %v9409_v53 = vor.u32 %v13705_v45, %v9408_v44  ;;  %v13681_v44 = vld [vmem:[#allocation9 + $0x54] sm:$0xf0] }
 0x155   :  { %2633 = vmatpush.bf16.msra.mxu3 %v9909_v54  ;;  %v10008_v54 = vld [vmem:[#allocation9 + $0x5b0] sm:$0xf]  ;;  %v9601_v56 = vor.u32 %v13753_v49, %v9600_v48  ;;  %v9817_v59 = vor.u32 %v13807_v52, %v9816_v51  ;;  %v13729_v48 = vld [vmem:[#allocation9 + $0x1d4] sm:$0xf0]  ;;  %v9937_v49 = vor.u32 %v13837_v42, %v9936_v40  ;;  %v13783_v51 = vld [vmem:[#allocation9 + $0x384] sm:$0xf0] }
 0x156   :  { %v10009_v63 = vor.u32 %v13855_v55, %v10008_v54  ;;  %v9912_v54 = vld [vmem:[#allocation9 + $0x4f0] sm:$0xf]  ;;  %v13831_v55 = vld [vmem:[#allocation9 + $0x504] sm:$0xf0]  ;;  %v10176_v42 = vld [vmem:[#allocation9 + $0x700] sm:$0xf] }
 0x157   :  { %2645 = vmatpush.bf16.msrb.mxu0 %v10125_v57  ;;  %v9384_v57 = vld [vmem:[#allocation9 + $0xd0] sm:$0xf] }
 0x158   :  { %2658 = vmatpush.bf16.msrb.mxu1 %v10317_v60  ;;  %2621 = vmatpush.bf16.msra.mxu2 %v9693_v0  ;;  %v9576_v60 = vld [vmem:[#allocation9 + $0x250] sm:$0xf]  ;;  %v9792_v0 = vld [vmem:[#allocation9 + $0x400] sm:$0xf]  ;;  %v9385_v4 = vor.u32 %v13699_v58, %v9384_v57 }
 0x159   :  { %2634 = vmatpush.bf16.msra.mxu3 %v9885_v19  ;;  %v9984_v19 = vld [vmem:[#allocation9 + $0x580] sm:$0xf]  ;;  %v9577_v6 = vor.u32 %v13747_v62, %v9576_v60  ;;  %v9793_v9 = vor.u32 %v13801_v1, %v9792_v0  ;;  %v9480_v60 = vld [vmem:[#allocation9 + $0x190] sm:$0xf]  ;;  %v13723_v62 = vld [vmem:[#allocation9 + $0x1a4] sm:$0xf0] }
 0x15a   :  { %v9985_v13 = vor.u32 %v13849_v5, %v9984_v19  ;;  %v13909_v19 = vld [vmem:[#allocation9 + $0x774] sm:$0xf0]  ;;  %v10416_v5 = vld [vmem:[#allocation9 + $0x8e0] sm:$0xf]  ;;  %v9481_v14 = vor.u32 %v13723_v62, %v9480_v60  ;;  %v10344_v62 = vld [vmem:[#allocation9 + $0x850] sm:$0xf] }
 0x15b   :  { %2646 = vmatpush.bf16.msrb.mxu0 %v10101_v8  ;;  %v13693_v8 = vld [vmem:[#allocation9 + $0xb4] sm:$0xf0] }
 0x15c   :  { %2659 = vmatpush.bf16.msrb.mxu1 %v10293_v12  ;;  %2622 = vmatpush.bf16.msra.mxu2 %v9669_v16  ;;  %v13741_v12 = vld [vmem:[#allocation9 + $0x234] sm:$0xf0]  ;;  %v9361_v16 = vor.u32 %v13693_v8, %v9360_v7  ;;  %v9913_v7 = vor.u32 %v13831_v55, %v9912_v54  ;;  %v13756_v55 = vld [vmem:[#allocation9 + $0x2b4] sm:$0xf] }
 0x15d   :  { %2635 = vmatpush.bf16.msra.mxu3 %v9861_v20  ;;  %v13957_v8 = vld [vmem:[#allocation9 + $0x8f4] sm:$0xf0] }
 0x15e   :  { %v10417_v18 = vor.u32 %v13957_v8, %v10416_v5  ;;  %v13750_v5 = vld [vmem:[#allocation9 + $0x284] sm:$0xf] }
 0x15f   :  { %2647 = vmatpush.bf16.msrb.mxu0 %v10077_v25  ;;  %2623 = vmatmul.bf16.vlgmr.msra.gmra.mxu2 %v15259_v61 }
 0x160   :  { %2667 = vmatpush.bf16.msrb.mxu2 %v9457_v21  ;;  %2660 = vmatpush.bf16.msrb.mxu1 %v10269_v30  ;;  %v9553_v21 = vor.u32 %v13741_v12, %v9552_v11  ;;  %v9528_v30 = vld [vmem:[#allocation9 + $0x1f0] sm:$0xf]  ;;  %v9888_v12 = vld [vmem:[#allocation9 + $0x4c0] sm:$0xf] }
 0x161   :  { %2680 = vmatpush.bf16.msrb.mxu3 %v9649_v24  ;;  %v2364_v20 = vpop.f32.mrf.mxu2  ;;  %v13687_v24 = vld [vmem:[#allocation9 + $0x84] sm:$0xf0] }
 0x162   :  { %2636 = vmatmul.bf16.vlgmr.msra.gmra.mxu3 %v15261_v3  ;;  %v2365_v25 = vadd.f32 %v2364_v20, %v903_v10  ;;  %v2377_v26 = vpop.f32.mrf.mxu3  ;;  %v13777_v10 = vld [vmem:[#allocation9 + $0x354] sm:$0xf0] }
 0x163   :  { %2648 = vmatpush.bf16.msrb.mxu0 %v10053_v43  ;;  %v2390_v27 = vpop.f32.mrf.mxu0  ;;  %v9312_v43 = vld [vmem:[#allocation9 + $0x40] sm:$0xf] }
 0x164   :  { %2668 = vmatpush.bf16.msrb.mxu2 %v9433_v38  ;;  %2661 = vmatpush.bf16.msrb.mxu1 %v10245_v46  ;;  %v2403_v32 = vpop.f32.mrf.mxu1  ;;  %v2378_v37 = vadd.f32 %v2377_v26, %v2365_v25  ;;  %v9337_v38 = vor.u32 %v13687_v24, %v9336_v22  ;;  %v9745_v46 = vor.u32 %v13789_v36, %v9744_v35  ;;  %v10392_v22 = vld [vmem:[#allocation9 + $0x8b0] sm:$0xf]  ;;  %v13951_v24 = vld [vmem:[#allocation9 + $0x8c4] sm:$0xf0]  ;;  %v13762_v35 = vld [vmem:[#allocation9 + $0x2e4] sm:$0xf] }
 0x165   :  { %2681 = vmatpush.bf16.msrb.mxu3 %v9625_v41  ;;  %v9529_v41 = vor.u32 %v13735_v31, %v9528_v30  ;;  %v9672_v26 = vld [vmem:[#allocation9 + $0x310] sm:$0xf]  ;;  %v13819_v30 = vld [vmem:[#allocation9 + $0x4a4] sm:$0xf0]  ;;  %v13714_v31 = vld [vmem:[#allocation9 + $0x164] sm:$0xf] }
 0x166   :  { %2649 = vmatmul.bf16.vlgmr.msrb.gmra.mxu0 %v15269_v23  ;;  %v2391_v45 = vadd.f32 %v2390_v27, %v2378_v37  ;;  %v13771_v27 = vld [vmem:[#allocation9 + $0x324] sm:$0xf0]  ;;  %v9650_v36 = vld [vmem:[#allocation9 + $0x2f8] sm:$0xf0] }
 0x167   :  { %2693 = vmatpush.bf16.msra.mxu0 %v9841_v47  ;;  %2662 = vmatmul.bf16.vlgmr.msrb.gmra.mxu1 %v15271_v29  ;;  %v9504_v47 = vld [vmem:[#allocation9 + $0x1c0] sm:$0xf]  ;;  %v9673_v40 = vor.u32 %v13771_v27, %v9672_v26 }
 0x168   :  { %2706 = vmatpush.bf16.msra.mxu1 %v10033_v50  ;;  %2669 = vmatpush.bf16.msrb.mxu2 %v9409_v53  ;;  %v9720_v50 = vld [vmem:[#allocation9 + $0x370] sm:$0xf]  ;;  %v15294_v52 = vadd.f32 %v2403_v32, %v2391_v45  ;;  %v9313_v53 = vor.u32 %v13681_v44, %v9312_v43  ;;  %v9505_v58 = vor.u32 %v13729_v48, %v9504_v47  ;;  %v9458_v32 = vld [vmem:[#allocation9 + $0x178] sm:$0xf0]  ;;  %v10368_v47 = vld [vmem:[#allocation9 + $0x880] sm:$0xf] }
 0x169   :  { %2682 = vmatpush.bf16.msrb.mxu3 %v9601_v56  ;;  %v9288_v56 = vld [vmem:[#allocation9 + $0x10] sm:$0xf]  ;;  %v2366_v57 = vpop.f32.mrf.mxu2  ;;  %v9721_v1 = vor.u32 %v13783_v51, %v9720_v50  ;;  %v13945_v48 = vld [vmem:[#allocation9 + $0x894] sm:$0xf0]  ;;  %v13708_v50 = vld [vmem:[#allocation9 + $0x134] sm:$0xf] }
 0x16a   :  { %v9434_v51 = vld [vmem:[#allocation9 + $0x148] sm:$0xf0]  ;;  %v10369_v57 = vor.u32 %v13945_v48, %v10368_v47  ;;  %v10272_v47 = vld [vmem:[#allocation9 + $0x7c0] sm:$0xf]  ;;  %v13921_v48 = vld [vmem:[#allocation9 + $0x7d4] sm:$0xf0] }
 0x16b   :  { %2694 = vmatpush.bf16.msra.mxu0 %v9817_v59  ;;  %v13675_v59 = vld [vmem:[#allocation9 + $0x24] sm:$0xf0]  ;;  %v2392_v0 = vpop.f32.mrf.mxu0  ;;  %v9437_v60 = vor.u32 %v13708_v50, %v9434_v51  ;;  %v13684_v50 = vld [vmem:[#allocation9 + $0x74] sm:$0xf]  ;;  %v9338_v51 = vld [vmem:[#allocation9 + $0x88] sm:$0xf0] }
 0x16c   :  { %2707 = vmatpush.bf16.msra.mxu1 %v10009_v63  ;;  %2670 = vmatpush.bf16.msrb.mxu2 %v9385_v4  ;;  %v2379_v63 = vpop.f32.mrf.mxu3  ;;  %v10224_v4 = vld [vmem:[#allocation9 + $0x760] sm:$0xf]  ;;  %v9289_v11 = vor.u32 %v13675_v59, %v9288_v56  ;;  %v9626_v56 = vld [vmem:[#allocation9 + $0x2c8] sm:$0xf0]  ;;  %v13891_v59 = vld [vmem:[#allocation9 + $0x6e4] sm:$0xf0] }
 0x16d   :  { %2683 = vmatpush.bf16.msrb.mxu3 %v9577_v6  ;;  %v2405_v6 = vpop.f32.mrf.mxu1  ;;  %v10225_v15 = vor.u32 %v13909_v19, %v10224_v4  ;;  %v13939_v63 = vld [vmem:[#allocation9 + $0x864] sm:$0xf0]  ;;  %v9629_v0 = vor.u32 %v13756_v55, %v9626_v56  ;;  %v9410_v4 = vld [vmem:[#allocation9 + $0x118] sm:$0xf0]  ;;  %v13732_v55 = vld [vmem:[#allocation9 + $0x1f4] sm:$0xf] }
 0x16e   :  { %v9602_v6 = vld [vmem:[#allocation9 + $0x298] sm:$0xf0]  ;;  %v10345_v8 = vor.u32 %v13939_v63, %v10344_v62  ;;  %v9530_v56 = vld [vmem:[#allocation9 + $0x208] sm:$0xf0]  ;;  %v13915_v62 = vld [vmem:[#allocation9 + $0x7a4] sm:$0xf0] }
 0x16f   :  { %2695 = vmatpush.bf16.msra.mxu0 %v9793_v9  ;;  %v9696_v9 = vld [vmem:[#allocation9 + $0x340] sm:$0xf] }
 0x170   :  { %2708 = vmatpush.bf16.msra.mxu1 %v9985_v13  ;;  %2671 = vmatpush.bf16.msrb.mxu2 %v9361_v16  ;;  %v13825_v13 = vld [vmem:[#allocation9 + $0x4d4] sm:$0xf0]  ;;  %v904_v16 = vperm.slane %v15289_v2, 1  ;;  %v9697_v20 = vor.u32 %v13777_v10, %v9696_v9  ;;  %v10128_v9 = vld [vmem:[#allocation9 + $0x6a0] sm:$0xf] }
 0x171   :  { %2684 = vmatpush.bf16.msrb.mxu3 %v9553_v21  ;;  %v13903_v21 = vld [vmem:[#allocation9 + $0x744] sm:$0xf0]  ;;  %v9889_v25 = vor.u32 %v13825_v13, %v9888_v12  ;;  %v13885_v10 = vld [vmem:[#allocation9 + $0x6b4] sm:$0xf0]  ;;  %v10320_v13 = vld [vmem:[#allocation9 + $0x820] sm:$0xf] }
 0x173   :  { %2696 = vmatpush.bf16.msra.mxu0 %v9769_v28  ;;  %v9864_v28 = vld [vmem:[#allocation9 + $0x490] sm:$0xf]  ;;  %v2442_v37 = vpop.f32.mrf.mxu0 }
 0x174   :  { %2709 = vmatpush.bf16.msra.mxu1 %v9961_v33  ;;  %2672 = vmatpush.bf16.msrb.mxu2 %v9337_v38  ;;  %v10201_v33 = vor.u32 %v13903_v21, %v10200_v17  ;;  %v10393_v38 = vor.u32 %v13951_v24, %v10392_v22  ;;  %v2443_v43 = vadd.f32 %v2442_v37, %v904_v16  ;;  %v13696_v16 = vld [vmem:[#allocation9 + $0xd4] sm:$0xf]  ;;  %v9386_v17 = vld [vmem:[#allocation9 + $0xe8] sm:$0xf0]  ;;  %v10104_v24 = vld [vmem:[#allocation9 + $0x670] sm:$0xf] }
 0x175   :  { %2685 = vmatpush.bf16.msrb.mxu3 %v9529_v41  ;;  %v13897_v41 = vld [vmem:[#allocation9 + $0x714] sm:$0xf0]  ;;  %v2455_v44 = vpop.f32.mrf.mxu1  ;;  %v9865_v45 = vor.u32 %v13819_v30, %v9864_v28  ;;  %v9578_v21 = vld [vmem:[#allocation9 + $0x268] sm:$0xf0]  ;;  %v9389_v27 = vor.u32 %v13696_v16, %v9386_v17  ;;  %v10296_v28 = vld [vmem:[#allocation9 + $0x7f0] sm:$0xf] }
 0x176   :  { %v10177_v54 = vor.u32 %v13897_v41, %v10176_v42  ;;  %v13927_v30 = vld [vmem:[#allocation9 + $0x804] sm:$0xf0]  ;;  %v13804_v16 = vld [vmem:[#allocation9 + $0x434] sm:$0xf] }
 0x177   :  { %2697 = vmatpush.bf16.msra.mxu0 %v9745_v46  ;;  %v9461_v46 = vor.u32 %v13714_v31, %v9458_v32 }
 0x178   :  { %2710 = vmatpush.bf16.msra.mxu1 %v9937_v49  ;;  %2673 = vmatpush.bf16.msrb.mxu2 %v9313_v53  ;;  %v9653_v49 = vor.u32 %v13762_v35, %v9650_v36  ;;  %v15299_v53 = vadd.f32 %v2455_v44, %v2443_v43  ;;  %v13690_v35 = vld [vmem:[#allocation9 + $0xa4] sm:$0xf]  ;;  %v9362_v36 = vld [vmem:[#allocation9 + $0xb8] sm:$0xf0]  ;;  %v10297_v43 = vor.u32 %v13927_v30, %v10296_v28  ;;  %v10080_v44 = vld [vmem:[#allocation9 + $0x640] sm:$0xf] }
 0x179   :  { %2686 = vmatpush.bf16.msrb.mxu3 %v9505_v58  ;;  %v10152_v58 = vld [vmem:[#allocation9 + $0x6d0] sm:$0xf]  ;;  %v13720_v28 = vld [vmem:[#allocation9 + $0x194] sm:$0xf]  ;;  %v9482_v30 = vld [vmem:[#allocation9 + $0x1a8] sm:$0xf0] }
 0x17a   :  { %v10153_v19 = vor.u32 %v13891_v59, %v10152_v58  ;;  %v10273_v58 = vor.u32 %v13921_v48, %v10272_v47  ;;  %v13867_v59 = vld [vmem:[#allocation9 + $0x624] sm:$0xf0]  ;;  %v9485_v47 = vor.u32 %v13720_v28, %v9482_v30  ;;  %v9914_v28 = vld [vmem:[#allocation9 + $0x508] sm:$0xf0] }
 0x17b   :  { %2698 = vmatpush.bf16.msra.mxu0 %v9721_v1  ;;  %v13702_v1 = vld [vmem:[#allocation9 + $0x104] sm:$0xf] }
 0x17c   :  { %2711 = vmatpush.bf16.msra.mxu1 %v9913_v7  ;;  %2674 = vmatpush.bf16.msrb.mxu2 %v9289_v11  ;;  %v2444_v7 = vpop.f32.mrf.mxu0  ;;  %v9413_v12 = vor.u32 %v13702_v1, %v9410_v4  ;;  %v13810_v1 = vld [vmem:[#allocation9 + $0x464] sm:$0xf]  ;;  %v9842_v4 = vld [vmem:[#allocation9 + $0x478] sm:$0xf0] }
 0x17d   :  { %2687 = vmatpush.bf16.msrb.mxu3 %v9481_v14  ;;  %v2457_v11 = vpop.f32.mrf.mxu1  ;;  %v13933_v14 = vld [vmem:[#allocation9 + $0x834] sm:$0xf0]  ;;  %v10034_v7 = vld [vmem:[#allocation9 + $0x5f8] sm:$0xf0] }
 0x17e   :  { %v10321_v22 = vor.u32 %v13933_v14, %v10320_v13  ;;  %v13726_v11 = vld [vmem:[#allocation9 + $0x1c4] sm:$0xf] }
 0x17f   :  { %2699 = vmatpush.bf16.msra.mxu0 %v9697_v20  ;;  %2675 = vmatmul.bf16.vlgmr.msrb.gmra.mxu2 %v15252_v34  ;;  %v13744_v20 = vld [vmem:[#allocation9 + $0x254] sm:$0xf] }
 0x180   :  { %2719 = vmatpush.bf16.msra.mxu2 %v10225_v15  ;;  %2712 = vmatpush.bf16.msra.mxu1 %v9889_v25  ;;  %v9605_v15 = vor.u32 %v13750_v5, %v9602_v6  ;;  %v13879_v25 = vld [vmem:[#allocation9 + $0x684] sm:$0xf0]  ;;  %v9533_v6 = vor.u32 %v13732_v55, %v9530_v56  ;;  %v10202_v55 = vld [vmem:[#allocation9 + $0x748] sm:$0xf0] }
 0x181   :  { %2732 = vmatpush.bf16.msra.mxu3 %v10417_v18  ;;  %v10129_v18 = vor.u32 %v13885_v10, %v10128_v9  ;;  %v2416_v26 = vpop.f32.mrf.mxu2  ;;  %v10105_v37 = vor.u32 %v13879_v25, %v10104_v24  ;;  %v9314_v9 = vld [vmem:[#allocation9 + $0x58] sm:$0xf0]  ;;  %v10010_v24 = vld [vmem:[#allocation9 + $0x5c8] sm:$0xf0] }
 0x182   :  { %2688 = vmatmul.bf16.vlgmr.msrb.gmra.mxu3 %v15255_v39  ;;  %v2417_v31 = vadd.f32 %v2416_v26, %v15294_v52  ;;  %v2429_v32 = vpop.f32.mrf.mxu3  ;;  %v9365_v52 = vor.u32 %v13690_v35, %v9362_v36  ;;  %v13672_v26 = vld [vmem:[#allocation9 + $0x14] sm:$0xf]  ;;  %v13954_v35 = vld [vmem:[#allocation9 + $0x8e4] sm:$0xf]  ;;  %v10418_v36 = vld [vmem:[#allocation9 + $0x8f8] sm:$0xf0] }
 0x183   :  { %2700 = vmatpush.bf16.msra.mxu0 %v9673_v40  ;;  %v9554_v40 = vld [vmem:[#allocation9 + $0x238] sm:$0xf0] }
 0x184   :  { %2720 = vmatpush.bf16.msra.mxu2 %v10201_v33  ;;  %2713 = vmatpush.bf16.msra.mxu1 %v9865_v45  ;;  %v9581_v33 = vor.u32 %v13744_v20, %v9578_v21  ;;  %v15304_v42 = vadd.f32 %v2429_v32, %v2417_v31  ;;  %v15306_v41 = vpop.f32.mrf.mxu0  ;;  %v13873_v45 = vld [vmem:[#allocation9 + $0x654] sm:$0xf0]  ;;  %v9818_v21 = vld [vmem:[#allocation9 + $0x448] sm:$0xf0]  ;;  %v13906_v31 = vld [vmem:[#allocation9 + $0x764] sm:$0xf] }
 0x185   :  { %2733 = vmatpush.bf16.msra.mxu3 %v10393_v38  ;;  %v13738_v38 = vld [vmem:[#allocation9 + $0x224] sm:$0xf]  ;;  %v10226_v32 = vld [vmem:[#allocation9 + $0x778] sm:$0xf0] }
 0x186   :  { %2701 = vmatmul.bf16.vlgmr.msra.gmra.mxu0 %v15259_v61  ;;  %v10229_v48 = vor.u32 %v13906_v31, %v10226_v32  ;;  %v13882_v31 = vld [vmem:[#allocation9 + $0x6a4] sm:$0xf]  ;;  %v10130_v32 = vld [vmem:[#allocation9 + $0x6b8] sm:$0xf0] }
 0x187   :  { %2745 = vmatpush.bf16.msrb.mxu0 %v9461_v46  ;;  %2714 = vmatmul.bf16.vlgmr.msra.gmra.mxu1 %v15261_v3  ;;  %v15308_v46 = vpop.f32.mrf.mxu1 }
 0x188   :  { %2758 = vmatpush.bf16.msrb.mxu1 %v9653_v49  ;;  %2721 = vmatpush.bf16.msra.mxu2 %v10177_v54  ;;  %v9557_v49 = vor.u32 %v13738_v38, %v9554_v40  ;;  %v10081_v54 = vor.u32 %v13873_v45, %v10080_v44  ;;  %v9794_v44 = vld [vmem:[#allocation9 + $0x418] sm:$0xf0] }
 0x189   :  { %2734 = vmatpush.bf16.msra.mxu3 %v10369_v57  ;;  %v10056_v57 = vld [vmem:[#allocation9 + $0x610] sm:$0xf]  ;;  %v2418_v63 = vpop.f32.mrf.mxu2 }
 0x18a   :  { %v2431_v5 = vpop.f32.mrf.mxu3  ;;  %v10057_v10 = vor.u32 %v13867_v59, %v10056_v57  ;;  %v10394_v59 = vld [vmem:[#allocation9 + $0x8c8] sm:$0xf0] }
 0x18b   :  { %2746 = vmatpush.bf16.msrb.mxu0 %v9437_v60  ;;  %v10248_v60 = vld [vmem:[#allocation9 + $0x790] sm:$0xf]  ;;  %v13894_v5 = vld [vmem:[#allocation9 + $0x704] sm:$0xf] }
 0x18c   :  { %2759 = vmatpush.bf16.msrb.mxu1 %v9629_v0  ;;  %2722 = vmatpush.bf16.msra.mxu2 %v10153_v19  ;;  %v9341_v0 = vor.u32 %v13684_v50, %v9338_v51  ;;  %v13858_v19 = vld [vmem:[#allocation9 + $0x5e4] sm:$0xf]  ;;  %v2496_v13 = vpop.f32.mrf.mxu0  ;;  %v10249_v14 = vor.u32 %v13915_v62, %v10248_v60  ;;  %v9986_v50 = vld [vmem:[#allocation9 + $0x598] sm:$0xf0]  ;;  %v10421_v51 = vor.u32 %v13954_v35, %v10418_v36  ;;  %v13792_v60 = vld [vmem:[#allocation9 + $0x3d4] sm:$0xf] }
 0x18d   :  { %2735 = vmatpush.bf16.msra.mxu3 %v10345_v8  ;;  %v13678_v8 = vld [vmem:[#allocation9 + $0x44] sm:$0xf]  ;;  %v9770_v62 = vld [vmem:[#allocation9 + $0x3e8] sm:$0xf0]  ;;  %v9746_v13 = vld [vmem:[#allocation9 + $0x3b8] sm:$0xf0] }
 0x18e   :  { %v9317_v20 = vor.u32 %v13678_v8, %v9314_v9  ;;  %v9773_v8 = vor.u32 %v13792_v60, %v9770_v62  ;;  %v13942_v9 = vld [vmem:[#allocation9 + $0x884] sm:$0xf]  ;;  %v10322_v36 = vld [vmem:[#allocation9 + $0x838] sm:$0xf0]  ;;  %v13816_v60 = vld [vmem:[#allocation9 + $0x494] sm:$0xf] }
 0x18f   :  { %2747 = vmatpush.bf16.msrb.mxu0 %v9413_v12  ;;  %v9506_v12 = vld [vmem:[#allocation9 + $0x1d8] sm:$0xf0]  ;;  %v2509_v17 = vpop.f32.mrf.mxu1  ;;  %v13930_v35 = vld [vmem:[#allocation9 + $0x824] sm:$0xf]  ;;  %v9866_v62 = vld [vmem:[#allocation9 + $0x4a8] sm:$0xf0] }
 0x190   :  { %2760 = vmatpush.bf16.msrb.mxu1 %v9605_v15  ;;  %2723 = vmatpush.bf16.msra.mxu2 %v10129_v18  ;;  %v9845_v15 = vor.u32 %v13810_v1, %v9842_v4  ;;  %v10037_v18 = vor.u32 %v13858_v19, %v10034_v7  ;;  %v9509_v25 = vor.u32 %v13726_v11, %v9506_v12  ;;  %v13840_v1 = vld [vmem:[#allocation9 + $0x554] sm:$0xf]  ;;  %v9962_v4 = vld [vmem:[#allocation9 + $0x568] sm:$0xf0]  ;;  %v13786_v12 = vld [vmem:[#allocation9 + $0x3a4] sm:$0xf] }
 0x191   :  { %2736 = vmatpush.bf16.msra.mxu3 %v10321_v22  ;;  %v13852_v22 = vld [vmem:[#allocation9 + $0x5b4] sm:$0xf]  ;;  %v9965_v11 = vor.u32 %v13840_v1, %v9962_v4  ;;  %v9938_v17 = vld [vmem:[#allocation9 + $0x538] sm:$0xf0]  ;;  %v11144_v4 = vld [vmem:[#allocation12 + $0x5a0] sm:$0xf] }
 0x192   :  { %v10013_v38 = vor.u32 %v13852_v22, %v10010_v24  ;;  %v10346_v22 = vld [vmem:[#allocation9 + $0x868] sm:$0xf0]  ;;  %v13780_v24 = vld [vmem:[#allocation9 + $0x374] sm:$0xf] }
 0x193   :  { %2748 = vmatpush.bf16.msrb.mxu0 %v9389_v27  ;;  %v9290_v27 = vld [vmem:[#allocation9 + $0x28] sm:$0xf0]  ;;  %v14048_v1 = vld [vmem:[#allocation12 + $0x2cc] sm:$0xf0] }
 0x194   :  { %2761 = vmatpush.bf16.msrb.mxu1 %v9581_v33  ;;  %2724 = vmatpush.bf16.msra.mxu2 %v10105_v37  ;;  %v9821_v33 = vor.u32 %v13804_v16, %v9818_v21  ;;  %v2468_v37 = vpop.f32.mrf.mxu2  ;;  %v9293_v40 = vor.u32 %v13672_v26, %v9290_v27  ;;  %v13834_v16 = vld [vmem:[#allocation9 + $0x524] sm:$0xf]  ;;  %v13936_v21 = vld [vmem:[#allocation9 + $0x854] sm:$0xf] }
 0x195   :  { %2737 = vmatpush.bf16.msra.mxu3 %v10297_v43  ;;  %v13798_v43 = vld [vmem:[#allocation9 + $0x404] sm:$0xf]  ;;  %v2469_v45 = vadd.f32 %v2468_v37, %v15299_v53  ;;  %v13828_v27 = vld [vmem:[#allocation9 + $0x4f4] sm:$0xf]  ;;  %v10349_v30 = vor.u32 %v13936_v21, %v10346_v22 }
 0x196   :  { %v9797_v57 = vor.u32 %v13798_v43, %v9794_v44  ;;  %v13774_v43 = vld [vmem:[#allocation9 + $0x344] sm:$0xf]  ;;  %v9698_v44 = vld [vmem:[#allocation9 + $0x358] sm:$0xf0]  ;;  %v14132_v21 = vld [vmem:[#allocation12 + $0x56c] sm:$0xf0] }
 0x197   :  { %2749 = vmatpush.bf16.msrb.mxu0 %v9365_v52  ;;  %v2481_v52 = vpop.f32.mrf.mxu3 }
 0x198   :  { %2762 = vmatpush.bf16.msrb.mxu1 %v9557_v49  ;;  %2725 = vmatpush.bf16.msra.mxu2 %v10081_v54  ;;  %v13846_v49 = vld [vmem:[#allocation9 + $0x584] sm:$0xf]  ;;  %v13900_v54 = vld [vmem:[#allocation9 + $0x734] sm:$0xf]  ;;  %v2482_v56 = vadd.f32 %v2481_v52, %v2469_v45 }
 0x199   :  { %2738 = vmatpush.bf16.msra.mxu3 %v10273_v58  ;;  %v13948_v58 = vld [vmem:[#allocation9 + $0x8b4] sm:$0xf]  ;;  %v9989_v53 = vor.u32 %v13846_v49, %v9986_v50  ;;  %v9890_v49 = vld [vmem:[#allocation9 + $0x4d8] sm:$0xf0]  ;;  %v10325_v50 = vor.u32 %v13930_v35, %v10322_v36  ;;  %v10664_v36 = vld [vmem:[#allocation12 + $0x1e0] sm:$0xf] }
 0x19a   :  { %v2495_v63 = vadd.f32 %v15306_v41, %v2482_v56  ;;  %v10397_v19 = vor.u32 %v13948_v58, %v10394_v59  ;;  %v13924_v56 = vld [vmem:[#allocation9 + $0x7f4] sm:$0xf] }
 0x19b   :  { %2750 = vmatpush.bf16.msrb.mxu0 %v9341_v0  ;;  %v10205_v0 = vor.u32 %v13900_v54, %v10202_v55  ;;  %v10106_v54 = vld [vmem:[#allocation9 + $0x688] sm:$0xf0]  ;;  %v9701_v55 = vor.u32 %v13774_v43, %v9698_v44  ;;  %v13768_v58 = vld [vmem:[#allocation9 + $0x314] sm:$0xf] }
 0x19c   :  { %2763 = vmatpush.bf16.msrb.mxu1 %v9533_v6  ;;  %2726 = vmatpush.bf16.msra.mxu2 %v10057_v10  ;;  %v10178_v6 = vld [vmem:[#allocation9 + $0x718] sm:$0xf0]  ;;  %v15315_v7 = vadd.f32 %v15308_v46, %v2495_v63  ;;  %v2470_v41 = vpop.f32.mrf.mxu2 }
 0x19d   :  { %2739 = vmatpush.bf16.msra.mxu3 %v10249_v14  ;;  %v10370_v10 = vld [vmem:[#allocation9 + $0x898] sm:$0xf0] }
 0x19e   :  { %v10373_v46 = vor.u32 %v13942_v9, %v10370_v10  ;;  %v13918_v10 = vld [vmem:[#allocation9 + $0x7c4] sm:$0xf]  ;;  %v10274_v41 = vld [vmem:[#allocation9 + $0x7d8] sm:$0xf0] }
 0x19f   :  { %2751 = vmatpush.bf16.msrb.mxu0 %v9317_v20  ;;  %2727 = vmatmul.bf16.vlgmr.msra.gmra.mxu2 %v15269_v23  ;;  %v2483_v14 = vpop.f32.mrf.mxu3  ;;  %v9749_v20 = vor.u32 %v13786_v12, %v9746_v13  ;;  %v9869_v13 = vor.u32 %v13816_v60, %v9866_v62  ;;  %v10277_v22 = vor.u32 %v13918_v10, %v10274_v41  ;;  %v11000_v60 = vld [vmem:[#allocation12 + $0x480] sm:$0xf]  ;;  %v14108_v62 = vld [vmem:[#allocation12 + $0x4ac] sm:$0xf0] }
 0x1a0   :  { %2771 = vmatpush.bf16.msrb.mxu2 %v9845_v15  ;;  %2764 = vmatpush.bf16.msrb.mxu1 %v9509_v25  ;;  %v10181_v15 = vor.u32 %v13894_v5, %v10178_v6  ;;  %v9722_v25 = vld [vmem:[#allocation9 + $0x388] sm:$0xf0]  ;;  %v14144_v5 = vld [vmem:[#allocation12 + $0x5cc] sm:$0xf0]  ;;  %v13870_v6 = vld [vmem:[#allocation9 + $0x644] sm:$0xf] }
 0x1a1   :  { %2784 = vmatpush.bf16.msrb.mxu3 %v10037_v18  ;;  %v13888_v18 = vld [vmem:[#allocation9 + $0x6d4] sm:$0xf]  ;;  %v10952_v10 = vld [vmem:[#allocation12 + $0x420] sm:$0xf] }
 0x1a2   :  { %2740 = vmatmul.bf16.vlgmr.msra.gmra.mxu3 %v15271_v29  ;;  %v14096_v41 = vld [vmem:[#allocation12 + $0x44c] sm:$0xf0] }
 0x1a3   :  { %2752 = vmatpush.bf16.msrb.mxu0 %v9293_v40  ;;  %v15319_v37 = vpop.f32.mrf.mxu0  ;;  %v9917_v40 = vor.u32 %v13828_v27, %v9914_v28  ;;  %v11528_v27 = vld [vmem:[#allocation12 + $0x8a0] sm:$0xf]  ;;  %v14240_v28 = vld [vmem:[#allocation12 + $0x8cc] sm:$0xf0] }
 0x1a4   :  { %2772 = vmatpush.bf16.msrb.mxu2 %v9821_v33  ;;  %2765 = vmatpush.bf16.msrb.mxu1 %v9485_v47  ;;  %v9725_v33 = vor.u32 %v13780_v24, %v9722_v25  ;;  %v15323_v45 = vpop.f32.mrf.mxu1  ;;  %v10133_v47 = vor.u32 %v13882_v31, %v10130_v32  ;;  %v10058_v24 = vld [vmem:[#allocation9 + $0x628] sm:$0xf0]  ;;  %v13912_v25 = vld [vmem:[#allocation9 + $0x794] sm:$0xf]  ;;  %v11912_v31 = vld [vmem:[#allocation12 + $0xba0] sm:$0xf]  ;;  %v11529_v44 = vor.u32 %v14240_v28, %v11528_v27 }
 0x1a5   :  { %2785 = vmatpush.bf16.msrb.mxu3 %v10013_v38  ;;  %v15321_v38 = vpop.f32.mrf.mxu2  ;;  %v14336_v32 = vld [vmem:[#allocation12 + $0xbcc] sm:$0xf0] }
 0x1a6   :  { %2753 = vmatmul.bf16.vlgmr.msrb.gmra.mxu0 %v15252_v34  ;;  %v10154_v34 = vld [vmem:[#allocation9 + $0x6e8] sm:$0xf0] }
 0x1a7   :  { %2797 = vmatpush.bf16.msra.mxu0 %v10229_v48  ;;  %2766 = vmatmul.bf16.vlgmr.msrb.gmra.mxu1 %v15255_v39  ;;  %v9941_v39 = vor.u32 %v13834_v16, %v9938_v17  ;;  %v10157_v26 = vor.u32 %v13888_v18, %v10154_v34  ;;  %v15325_v52 = vpop.f32.mrf.mxu3  ;;  %v13822_v48 = vld [vmem:[#allocation9 + $0x4c4] sm:$0xf]  ;;  %v14036_v34 = vld [vmem:[#allocation12 + $0x26c] sm:$0xf0] }
 0x1a8   :  { %2810 = vmatpush.bf16.msra.mxu1 %v10421_v51  ;;  %2773 = vmatpush.bf16.msrb.mxu2 %v9797_v57  ;;  %v13876_v51 = vld [vmem:[#allocation9 + $0x674] sm:$0xf]  ;;  %v10298_v57 = vld [vmem:[#allocation9 + $0x808] sm:$0xf0]  ;;  %v9893_v59 = vor.u32 %v13822_v48, %v9890_v49  ;;  %v11480_v49 = vld [vmem:[#allocation12 + $0x840] sm:$0xf] }
 0x1a9   :  { %2786 = vmatpush.bf16.msrb.mxu3 %v9989_v53  ;;  %v9674_v53 = vld [vmem:[#allocation9 + $0x328] sm:$0xf0]  ;;  %v10109_v63 = vor.u32 %v13876_v51, %v10106_v54  ;;  %v14120_v48 = vld [vmem:[#allocation12 + $0x50c] sm:$0xf0]  ;;  %v11913_v51 = vor.u32 %v14336_v32, %v11912_v31 }
 0x1aa   :  { %v9677_v9 = vor.u32 %v13768_v58, %v9674_v53  ;;  %v13976_v31 = vld [vmem:[#allocation12 + $0x8c] sm:$0xf0] }
 0x1ab   :  { %2798 = vmatpush.bf16.msra.mxu0 %v10205_v0  ;;  %v10760_v0 = vld [vmem:[#allocation12 + $0x2a0] sm:$0xf] }
 0x1ac   :  { %2811 = vmatpush.bf16.msra.mxu1 %v10397_v19  ;;  %2774 = vmatpush.bf16.msrb.mxu2 %v9773_v8  ;;  %v10301_v19 = vor.u32 %v13924_v56, %v10298_v57  ;;  %v10082_v8 = vld [vmem:[#allocation9 + $0x658] sm:$0xf0]  ;;  %v10761_v14 = vor.u32 %v14048_v1, %v10760_v0  ;;  %v2561_v16 = vpop.f32.mrf.mxu1  ;;  %v14324_v56 = vld [vmem:[#allocation12 + $0xb6c] sm:$0xf0]  ;;  %v905_v57 = vperm.slane %v15289_v2, 2 }
 0x1ad   :  { %2787 = vmatpush.bf16.msrb.mxu3 %v9965_v11  ;;  %v2548_v11 = vpop.f32.mrf.mxu0  ;;  %v2522_v12 = vpop.f32.mrf.mxu2  ;;  %v10085_v18 = vor.u32 %v13870_v6, %v10082_v8  ;;  %v14312_v2 = vld [vmem:[#allocation12 + $0xb0c] sm:$0xf0]  ;;  %v10568_v6 = vld [vmem:[#allocation12 + $0x120] sm:$0xf] }
 0x1ae   :  { %v14000_v8 = vld [vmem:[#allocation12 + $0x14c] sm:$0xf0]  ;;  %v11384_v11 = vld [vmem:[#allocation12 + $0x780] sm:$0xf] }
 0x1af   :  { %2799 = vmatpush.bf16.msra.mxu0 %v10181_v15  ;;  %v10712_v15 = vld [vmem:[#allocation12 + $0x240] sm:$0xf]  ;;  %v2535_v17 = vpop.f32.mrf.mxu3  ;;  %v14204_v12 = vld [vmem:[#allocation12 + $0x7ac] sm:$0xf0] }
 0x1b0   :  { %2812 = vmatpush.bf16.msra.mxu1 %v10373_v46  ;;  %2775 = vmatpush.bf16.msrb.mxu2 %v9749_v20  ;;  %v11145_v46 = vor.u32 %v14144_v5, %v11144_v4  ;;  %v11096_v20 = vld [vmem:[#allocation12 + $0x540] sm:$0xf]  ;;  %v11001_v5 = vor.u32 %v14108_v62, %v11000_v60  ;;  %v13988_v17 = vld [vmem:[#allocation12 + $0xec] sm:$0xf0] }
 0x1b1   :  { %2788 = vmatpush.bf16.msrb.mxu3 %v9941_v39  ;;  %v13864_v39 = vld [vmem:[#allocation9 + $0x614] sm:$0xf]  ;;  %v11816_v4 = vld [vmem:[#allocation12 + $0xae0] sm:$0xf] }
 0x1b2   :  { %v10061_v35 = vor.u32 %v13864_v39, %v10058_v24  ;;  %v10520_v16 = vld [vmem:[#allocation12 + $0xc0] sm:$0xf]  ;;  %v14168_v62 = vld [vmem:[#allocation12 + $0x68c] sm:$0xf0] }
 0x1b3   :  { %2800 = vmatpush.bf16.msra.mxu0 %v10157_v26  ;;  %v10250_v26 = vld [vmem:[#allocation9 + $0x7a8] sm:$0xf0]  ;;  %v10521_v39 = vor.u32 %v13988_v17, %v10520_v16  ;;  %v11720_v24 = vld [vmem:[#allocation12 + $0xa20] sm:$0xf]  ;;  %v11146_v17 = vld [vmem:[#allocation12 + $0x5d0] sm:$0xf0] }
 0x1b4   :  { %2813 = vmatpush.bf16.msra.mxu1 %v10349_v30  ;;  %2776 = vmatpush.bf16.msrb.mxu2 %v9725_v33  ;;  %v10713_v30 = vor.u32 %v14036_v34, %v10712_v15  ;;  %v11097_v33 = vor.u32 %v14132_v21, %v11096_v20  ;;  %v10253_v43 = vor.u32 %v13912_v25, %v10250_v26  ;;  %v14300_v15 = vld [vmem:[#allocation12 + $0xaac] sm:$0xf0]  ;;  %v11336_v20 = vld [vmem:[#allocation12 + $0x720] sm:$0xf] }
 0x1b5   :  { %2789 = vmatpush.bf16.msrb.mxu3 %v9917_v40  ;;  %v14024_v40 = vld [vmem:[#allocation12 + $0x20c] sm:$0xf0]  ;;  %v11240_v60 = vld [vmem:[#allocation12 + $0x660] sm:$0xf] }
 0x1b6   :  { %v10665_v54 = vor.u32 %v14024_v40, %v10664_v36  ;;  %v14084_v34 = vld [vmem:[#allocation12 + $0x3ec] sm:$0xf0]  ;;  %v10856_v36 = vld [vmem:[#allocation12 + $0x360] sm:$0xf] }
 0x1b7   :  { %2801 = vmatpush.bf16.msra.mxu0 %v10133_v47  ;;  %v11048_v47 = vld [vmem:[#allocation12 + $0x4e0] sm:$0xf]  ;;  %v14192_v21 = vld [vmem:[#allocation12 + $0x74c] sm:$0xf0] }
 0x1b8   :  { %2814 = vmatpush.bf16.msra.mxu1 %v10325_v50  ;;  %2777 = vmatpush.bf16.msrb.mxu2 %v9701_v55  ;;  %v14228_v50 = vld [vmem:[#allocation12 + $0x86c] sm:$0xf0]  ;;  %v11864_v55 = vld [vmem:[#allocation12 + $0xb40] sm:$0xf]  ;;  %v11049_v58 = vor.u32 %v14120_v48, %v11048_v47 }
 0x1b9   :  { %2790 = vmatpush.bf16.msrb.mxu3 %v9893_v59  ;;  %v10616_v59 = vld [vmem:[#allocation12 + $0x180] sm:$0xf]  ;;  %v11481_v53 = vor.u32 %v14228_v50, %v11480_v49  ;;  %v11865_v0 = vor.u32 %v14324_v56, %v11864_v55  ;;  %v14288_v25 = vld [vmem:[#allocation12 + $0xa4c] sm:$0xf0] }
 0x1ba   :  { %v14072_v40 = vld [vmem:[#allocation12 + $0x38c] sm:$0xf0]  ;;  %v11721_v47 = vor.u32 %v14288_v25, %v11720_v24  ;;  %v11672_v48 = vld [vmem:[#allocation12 + $0x9c0] sm:$0xf]  ;;  %v14030_v25 = vld [vmem:[#allocation12 + $0x244] sm:$0xf] }
 0x1bb   :  { %2802 = vmatpush.bf16.msra.mxu0 %v10109_v63  ;;  %v14216_v63 = vld [vmem:[#allocation12 + $0x80c] sm:$0xf0]  ;;  %v10808_v56 = vld [vmem:[#allocation12 + $0x300] sm:$0xf] }
 0x1bc   :  { %2815 = vmatpush.bf16.msra.mxu1 %v10301_v19  ;;  %2778 = vmatpush.bf16.msrb.mxu2 %v9677_v9  ;;  %v2521_v19 = vadd.f32 %v15321_v38, %v905_v57  ;;  %v14276_v49 = vld [vmem:[#allocation12 + $0x9ec] sm:$0xf0] }
 0x1bd   :  { %2791 = vmatpush.bf16.msrb.mxu3 %v9869_v13  ;;  %v10569_v13 = vor.u32 %v14000_v8, %v10568_v6  ;;  %v13964_v55 = vld [vmem:[#allocation12 + $0x2c] sm:$0xf0]  ;;  %v2824_v6 = vmax.f32 %v15315_v7, 0.0  ;;  %v14138_v7 = vld [vmem:[#allocation12 + $0x5a4] sm:$0xf] }
 0x1be   :  { %v2534_v38 = vadd.f32 %v15325_v52, %v2521_v19 }
 0x1bf   :  { %2803 = vmatpush.bf16.msra.mxu0 %v10085_v18  ;;  %2779 = vmatmul.bf16.vlgmr.msrb.gmra.mxu2 %v15259_v61  ;;  %v14012_v61 = vld [vmem:[#allocation12 + $0x1ac] sm:$0xf0]  ;;  %v10904_v18 = vld [vmem:[#allocation12 + $0x3c0] sm:$0xf] }
 0x1c0   :  { %6319 = vmatpush.bf16.msra.mxu2 %v10761_v14  ;;  %2816 = vmatpush.bf16.msra.mxu1 %v10277_v22  ;;  %v10617_v1 = vor.u32 %v14012_v61, %v10616_v59  ;;  %v11768_v14 = vld [vmem:[#allocation12 + $0xa80] sm:$0xf]  ;;  %v2547_v26 = vadd.f32 %v15319_v37, %v2534_v38  ;;  %v10905_v28 = vor.u32 %v14084_v34, %v10904_v18  ;;  %v14432_v61 = vld [vmem:[#allocation12 + $0xecc] sm:$0xf0] }
 0x1c1   :  { %6332 = vmatpush.bf16.msra.mxu3 %v11145_v46  ;;  %v11385_v46 = vor.u32 %v14204_v12, %v11384_v11  ;;  %v11769_v22 = vor.u32 %v14300_v15, %v11768_v14  ;;  %v12296_v59 = vld [vmem:[#allocation12 + $0xea0] sm:$0xf]  ;;  %v14420_v11 = vld [vmem:[#allocation12 + $0xe6c] sm:$0xf0]  ;;  %v14042_v14 = vld [vmem:[#allocation12 + $0x2a4] sm:$0xf]  ;;  %v15344_v18 = vpack.c.bf16 %v2824_v6, %v2824_v6 }
 0x1c2   :  { %2792 = vmatmul.bf16.vlgmr.msrb.gmra.mxu3 %v15261_v3  ;;  %v11432_v3 = vld [vmem:[#allocation12 + $0x7e0] sm:$0xf]  ;;  %v2572_v52 = vpop.f32.mrf.mxu2  ;;  %v2560_v50 = vadd.f32 %v15323_v45, %v2547_v26  ;;  %v2823_v45 = vmax.f32 %v15304_v42, 0.0  ;;  %v10762_v42 = vld [vmem:[#allocation12 + $0x2d0] sm:$0xf0] }
 0x1c3   :  { %2804 = vmatpush.bf16.msra.mxu0 %v10061_v35  ;;  %v11433_v9 = vor.u32 %v14216_v63, %v11432_v3  ;;  %v15335_v27 = vpop.f32.mrf.mxu0  ;;  %v11337_v35 = vor.u32 %v14192_v21, %v11336_v20  ;;  %v11673_v3 = vor.u32 %v14276_v49, %v11672_v48  ;;  %v11576_v38 = vld [vmem:[#allocation12 + $0x900] sm:$0xf]  ;;  %v14408_v21 = vld [vmem:[#allocation12 + $0xe0c] sm:$0xf0]  ;;  %v10714_v26 = vld [vmem:[#allocation12 + $0x270] sm:$0xf0] }
 0x1c4   :  { %6320 = vmatpush.bf16.msra.mxu2 %v10713_v30  ;;  %2817 = vmatpush.bf16.msra.mxu1 %v10253_v43  ;;  %v10472_v30 = vld [vmem:[#allocation12 + $0x60] sm:$0xf]  ;;  %v15342_v16 = vpack.c.bf16 %v2823_v45, %v2823_v45  ;;  %v14114_v49 = vld [vmem:[#allocation12 + $0x4e4] sm:$0xf]  ;;  %v10570_v45 = vld [vmem:[#allocation12 + $0x150] sm:$0xf0] }
 0x1c5   :  { %6333 = vmatpush.bf16.msra.mxu3 %v11097_v33  ;;  %v2585_v32 = vpop.f32.mrf.mxu3  ;;  %v15337_v33 = vpop.f32.mrf.mxu1  ;;  %v11288_v43 = vld [vmem:[#allocation12 + $0x6c0] sm:$0xf]  ;;  %v10473_v37 = vor.u32 %v13976_v31, %v10472_v30  ;;  %v11098_v30 = vld [vmem:[#allocation12 + $0x570] sm:$0xf0] }
 0x1c6   :  { %2805 = vmatmul.bf16.vlgmr.msra.gmra.mxu0 %v15269_v23  ;;  %v11817_v23 = vor.u32 %v14312_v2, %v11816_v4  ;;  %v12200_v20 = vld [vmem:[#allocation12 + $0xde0] sm:$0xf] }
 0x1c7   :  { %6345 = vmatpush.bf16.msrb.mxu0 %v11529_v44  ;;  %2818 = vmatmul.bf16.vlgmr.msra.gmra.mxu1 %v15271_v29  ;;  %v10953_v29 = vor.u32 %v14096_v41, %v10952_v10  ;;  %v14180_v44 = vld [vmem:[#allocation12 + $0x6ec] sm:$0xf0]  ;;  %v11241_v10 = vor.u32 %v14168_v62, %v11240_v60  ;;  %v12248_v41 = vld [vmem:[#allocation12 + $0xe40] sm:$0xf]  ;;  %v12201_v31 = vor.u32 %v14408_v21, %v12200_v20  ;;  %v11002_v60 = vld [vmem:[#allocation12 + $0x4b0] sm:$0xf0] }
 0x1c8   :  { %6358 = vmatpush.bf16.msrb.mxu1 %v11913_v51  ;;  %6321 = vmatpush.bf16.msra.mxu2 %v10665_v54  ;;  %v10857_v51 = vor.u32 %v14072_v40, %v10856_v36  ;;  %v10424_v54 = vld [vmem:[#allocation12] sm:$0xf]  ;;  %v11289_v57 = vor.u32 %v14180_v44, %v11288_v43  ;;  %v10717_v40 = vor.u32 %v14030_v25, %v10714_v26  ;;  %v14018_v43 = vld [vmem:[#allocation12 + $0x1e4] sm:$0xf]  ;;  %v10666_v44 = vld [vmem:[#allocation12 + $0x210] sm:$0xf0] }
 0x1c9   :  { %6334 = vmatpush.bf16.msra.mxu3 %v11049_v58  ;;  %v14060_v58 = vld [vmem:[#allocation12 + $0x32c] sm:$0xf0]  ;;  %v10425_v63 = vor.u32 %v13964_v55, %v10424_v54  ;;  %v12104_v54 = vld [vmem:[#allocation12 + $0xd20] sm:$0xf]  ;;  %v13970_v20 = vld [vmem:[#allocation12 + $0x64] sm:$0xf] }
 0x1ca   :  { %v2574_v4 = vpop.f32.mrf.mxu2  ;;  %v10809_v19 = vor.u32 %v14060_v58, %v10808_v56  ;;  %v14384_v55 = vld [vmem:[#allocation12 + $0xd4c] sm:$0xf0]  ;;  %v10669_v56 = vor.u32 %v14018_v43, %v10666_v44  ;;  %v10618_v58 = vld [vmem:[#allocation12 + $0x1b0] sm:$0xf0]  ;;  %v14234_v21 = vld [vmem:[#allocation12 + $0x8a4] sm:$0xf] }
 0x1cb   :  { %6346 = vmatpush.bf16.msrb.mxu0 %v11481_v53  ;;  %v2573_v53 = vadd.f32 %v2572_v52, %v2560_v50  ;;  %v2600_v2 = vpop.f32.mrf.mxu0  ;;  %v11149_v52 = vor.u32 %v14138_v7, %v11146_v17  ;;  %v11050_v50 = vld [vmem:[#allocation12 + $0x510] sm:$0xf0]  ;;  %v12105_v62 = vor.u32 %v14384_v55, %v12104_v54  ;;  %v11960_v7 = vld [vmem:[#allocation12 + $0xc00] sm:$0xf]  ;;  %v14348_v17 = vld [vmem:[#allocation12 + $0xc2c] sm:$0xf0] }
 0x1cc   :  { %6359 = vmatpush.bf16.msrb.mxu1 %v11865_v0  ;;  %6322 = vmatpush.bf16.msra.mxu2 %v10617_v1  ;;  %v11624_v0 = vld [vmem:[#allocation12 + $0x960] sm:$0xf]  ;;  %v14264_v1 = vld [vmem:[#allocation12 + $0x98c] sm:$0xf0]  ;;  %v13958_v43 = vld [vmem:[#allocation12 + $0x4] sm:$0xf] }
 0x1cd   :  { %6335 = vmatpush.bf16.msra.mxu3 %v11001_v5  ;;  %v12297_v5 = vor.u32 %v14432_v61, %v12296_v59  ;;  %v2587_v8 = vpop.f32.mrf.mxu3  ;;  %v2586_v12 = vadd.f32 %v2585_v32, %v2573_v53  ;;  %v11625_v15 = vor.u32 %v14264_v1, %v11624_v0  ;;  %v12152_v32 = vld [vmem:[#allocation12 + $0xd80] sm:$0xf]  ;;  %v11053_v59 = vor.u32 %v14114_v49, %v11050_v50  ;;  %v14102_v53 = vld [vmem:[#allocation12 + $0x484] sm:$0xf]  ;;  %v14528_v26 = vld [vmem:[#allocation12 + $0x11cc] sm:$0xf0] }
 0x1ce   :  { %v13994_v1 = vld [vmem:[#allocation12 + $0x124] sm:$0xf]  ;;  %v11005_v4 = vor.u32 %v14102_v53, %v11002_v60  ;;  %v12680_v25 = vld [vmem:[#allocation12 + $0x11a0] sm:$0xf]  ;;  %v10426_v44 = vld [vmem:[#allocation12 + $0x30] sm:$0xf0] }
 0x1cf   :  { %6347 = vmatpush.bf16.msrb.mxu0 %v11433_v9  ;;  %v2613_v9 = vpop.f32.mrf.mxu1  ;;  %v14222_v54 = vld [vmem:[#allocation12 + $0x844] sm:$0xf]  ;;  %v11482_v55 = vld [vmem:[#allocation12 + $0x870] sm:$0xf0] }
 0x1d0   :  { %6360 = vmatpush.bf16.msrb.mxu1 %v11817_v23  ;;  %6323 = vmatpush.bf16.msra.mxu2 %v10569_v13  ;;  %v11192_v23 = vld [vmem:[#allocation12 + $0x600] sm:$0xf]  ;;  %v14156_v13 = vld [vmem:[#allocation12 + $0x62c] sm:$0xf0]  ;;  %v12298_v53 = vld [vmem:[#allocation12 + $0xed0] sm:$0xf0] }
 0x1d1   :  { %6336 = vmatpush.bf16.msra.mxu3 %v10953_v29  ;;  %v14252_v29 = vld [vmem:[#allocation12 + $0x92c] sm:$0xf0]  ;;  %v11193_v34 = vor.u32 %v14156_v13, %v11192_v23  ;;  %v12008_v9 = vld [vmem:[#allocation12 + $0xc60] sm:$0xf]  ;;  %v10573_v23 = vor.u32 %v13994_v1, %v10570_v45  ;;  %v13982_v13 = vld [vmem:[#allocation12 + $0xc4] sm:$0xf]  ;;  %v10429_v45 = vor.u32 %v13958_v43, %v10426_v44 }
 0x1d2   :  { %v11577_v24 = vor.u32 %v14252_v29, %v11576_v38  ;;  %v14078_v38 = vld [vmem:[#allocation12 + $0x3c4] sm:$0xf]  ;;  %v12682_v1 = vld [vmem:[#allocation12 + $0x11d0] sm:$0xf0] }
 0x1d3   :  { %6348 = vmatpush.bf16.msrb.mxu0 %v11385_v46  ;;  %v12249_v46 = vor.u32 %v14420_v11, %v12248_v41  ;;  %v14054_v60 = vld [vmem:[#allocation12 + $0x304] sm:$0xf]  ;;  %v11290_v43 = vld [vmem:[#allocation12 + $0x6f0] sm:$0xf0] }
 0x1d4   :  { %6361 = vmatpush.bf16.msrb.mxu1 %v11769_v22  ;;  %6324 = vmatpush.bf16.msra.mxu2 %v10521_v39  ;;  %v2825_v22 = vmax.f32 %v2586_v12, 0.0  ;;  %v10765_v39 = vor.u32 %v14042_v14, %v10762_v42  ;;  %v10522_v14 = vld [vmem:[#allocation12 + $0xf0] sm:$0xf0] }
 0x1d5   :  { %6337 = vmatpush.bf16.msra.mxu3 %v10905_v28  ;;  %v14126_v28 = vld [vmem:[#allocation12 + $0x544] sm:$0xf] }
 0x1d6   :  { %v15348_v36 = vpack.c.bf16 %v2825_v22, %v2825_v22  ;;  %v11530_v22 = vld [vmem:[#allocation12 + $0x8d0] sm:$0xf0] }
 0x1d7   :  { %6349 = vmatpush.bf16.msrb.mxu0 %v11337_v35  ;;  %v14396_v35 = vld [vmem:[#allocation12 + $0xdac] sm:$0xf0] }
 0x1d8   :  { %6362 = vmatpush.bf16.msrb.mxu1 %v11721_v47  ;;  %6325 = vmatpush.bf16.msra.mxu2 %v10473_v37  ;;  %v11101_v47 = vor.u32 %v14126_v28, %v11098_v30  ;;  %v15350_v37 = vld [vmem:[#allocation11] sm:$0x3f]  ;;  %v14066_v28 = vld [vmem:[#allocation12 + $0x364] sm:$0xf]  ;;  %v10858_v30 = vld [vmem:[#allocation12 + $0x390] sm:$0xf0] }
 0x1d9   :  { %6338 = vmatpush.bf16.msra.mxu3 %v10857_v51  ;;  %v906_v48 = vperm.slane %v15350_v37, 3  ;;  %v12153_v51 = vor.u32 %v14396_v35, %v12152_v32  ;;  %v12681_v32 = vor.u32 %v14528_v26, %v12680_v25  ;;  %v12154_v25 = vld [vmem:[#allocation12 + $0xdb0] sm:$0xf0] }
 0x1db   :  { %6350 = vmatpush.bf16.msrb.mxu0 %v11289_v57  ;;  %v14006_v57 = vld [vmem:[#allocation12 + $0x184] sm:$0xf]  ;;  %v2599_v61 = vadd.f32 %v15335_v27, %v906_v48 }
 0x1dc   :  { %6363 = vmatpush.bf16.msrb.mxu1 %v11673_v3  ;;  %6326 = vmatpush.bf16.msra.mxu2 %v10425_v63  ;;  %v12056_v3 = vld [vmem:[#allocation12 + $0xcc0] sm:$0xf]  ;;  %v14372_v63 = vld [vmem:[#allocation12 + $0xcec] sm:$0xf0]  ;;  %v10621_v0 = vor.u32 %v14006_v57, %v10618_v58  ;;  %v10861_v57 = vor.u32 %v14066_v28, %v10858_v30  ;;  %v12538_v30 = vld [vmem:[#allocation12 + $0x10b0] sm:$0xf0] }
 0x1dd   :  { %6339 = vmatpush.bf16.msra.mxu3 %v10809_v19  ;;  %v2612_v2 = vadd.f32 %v15337_v33, %v2599_v61  ;;  %v14090_v19 = vld [vmem:[#allocation12 + $0x424] sm:$0xf]  ;;  %v12057_v6 = vor.u32 %v14372_v63, %v12056_v3  ;;  %v10906_v33 = vld [vmem:[#allocation12 + $0x3f0] sm:$0xf0]  ;;  %v12632_v58 = vld [vmem:[#allocation12 + $0x1140] sm:$0xf]  ;;  %v11485_v63 = vor.u32 %v14222_v54, %v11482_v55 }
 0x1de   :  { %v12490_v54 = vld [vmem:[#allocation12 + $0x1050] sm:$0xf0]  ;;  %v12440_v55 = vld [vmem:[#allocation12 + $0xfc0] sm:$0xf] }
 0x1df   :  { %6351 = vmatpush.bf16.msrb.mxu0 %v11241_v10  ;;  %6327 = vmatmul.bf16.vlgmr.msra.gmra.mxu2 %v15342_v16  ;;  %v14360_v10 = vld [vmem:[#allocation12 + $0xc8c] sm:$0xf0] }
 0x1e0   :  { %6371 = vmatpush.bf16.msrb.mxu2 %v12297_v5  ;;  %6364 = vmatpush.bf16.msrb.mxu1 %v11625_v15  ;;  %v10954_v5 = vld [vmem:[#allocation12 + $0x450] sm:$0xf0]  ;;  %v12009_v29 = vor.u32 %v14360_v10, %v12008_v9  ;;  %v12584_v9 = vld [vmem:[#allocation12 + $0x10e0] sm:$0xf]  ;;  %v14504_v10 = vld [vmem:[#allocation12 + $0x110c] sm:$0xf0] }
 0x1e1   :  { %6340 = vmatmul.bf16.vlgmr.msra.gmra.mxu3 %v15344_v18  ;;  %v10957_v15 = vor.u32 %v14090_v19, %v10954_v5  ;;  %v14414_v5 = vld [vmem:[#allocation12 + $0xe44] sm:$0xf] }
 0x1e2   :  { %v2624_v8 = vpop.f32.mrf.mxu2  ;;  %6384 = vmatpush.bf16.msrb.mxu3 %v12681_v32  ;;  %v14480_v32 = vld [vmem:[#allocation12 + $0x104c] sm:$0xf0] }
 0x1e3   :  { %6352 = vmatpush.bf16.msrb.mxu0 %v11193_v34  ;;  %v2650_v27 = vpop.f32.mrf.mxu0  ;;  %v2625_v41 = vadd.f32 %v2624_v8, %v2612_v2  ;;  %v10525_v34 = vor.u32 %v13982_v13, %v10522_v14  ;;  %v11434_v2 = vld [vmem:[#allocation12 + $0x810] sm:$0xf0]  ;;  %v14198_v13 = vld [vmem:[#allocation12 + $0x784] sm:$0xf] }
 0x1e4   :  { %6372 = vmatpush.bf16.msrb.mxu2 %v12249_v46  ;;  %6365 = vmatpush.bf16.msrb.mxu1 %v11577_v24  ;;  %v2663_v12 = vpop.f32.mrf.mxu1  ;;  %v10909_v24 = vor.u32 %v14078_v38, %v10906_v33  ;;  %v12250_v8 = vld [vmem:[#allocation12 + $0xe70] sm:$0xf0] }
 0x1e5   :  { %v2637_v11 = vpop.f32.mrf.mxu3  ;;  %v11386_v14 = vld [vmem:[#allocation12 + $0x7b0] sm:$0xf0] }
 0x1e6   :  { %6353 = vmatmul.bf16.vlgmr.msrb.gmra.mxu0 %v15348_v36  ;;  %v2638_v42 = vadd.f32 %v2637_v11, %v2625_v41  ;;  %v14510_v11 = vld [vmem:[#allocation12 + $0x1144] sm:$0xf]  ;;  %v12202_v38 = vld [vmem:[#allocation12 + $0xe10] sm:$0xf0] }
 0x1e7   :  { %6397 = vmatpush.bf16.msra.mxu0 %v10765_v39  ;;  %v10474_v39 = vld [vmem:[#allocation12 + $0x90] sm:$0xf0] }
 0x1e8   :  { %6410 = vmatpush.bf16.msra.mxu1 %v11149_v52  ;;  %6373 = vmatpush.bf16.msrb.mxu2 %v12201_v31  ;;  %v2651_v46 = vadd.f32 %v2650_v27, %v2638_v42  ;;  %v11961_v31 = vor.u32 %v14348_v17, %v11960_v7  ;;  %v14402_v42 = vld [vmem:[#allocation12 + $0xde4] sm:$0xf]  ;;  %v14492_v7 = vld [vmem:[#allocation12 + $0x10ac] sm:$0xf0]  ;;  %v11389_v17 = vor.u32 %v14198_v13, %v11386_v14  ;;  %v12394_v14 = vld [vmem:[#allocation12 + $0xf90] sm:$0xf0] }
 0x1ea   :  { %v2664_v52 = vadd.f32 %v2663_v12, %v2651_v46  ;;  %v2626_v35 = vpop.f32.mrf.mxu2  ;;  %v12634_v12 = vld [vmem:[#allocation12 + $0x1170] sm:$0xf0]  ;;  %v14498_v46 = vld [vmem:[#allocation12 + $0x10e4] sm:$0xf] }
 0x1eb   :  { %6398 = vmatpush.bf16.msra.mxu0 %v10717_v40  ;;  %v2652_v40 = vpop.f32.mrf.mxu0  ;;  %v12637_v33 = vor.u32 %v14510_v11, %v12634_v12  ;;  %v12010_v11 = vld [vmem:[#allocation12 + $0xc90] sm:$0xf0] }
 0x1ec   :  { %6411 = vmatpush.bf16.msra.mxu1 %v11101_v47  ;;  %6374 = vmatpush.bf16.msrb.mxu2 %v12153_v51  ;;  %v11533_v47 = vor.u32 %v14234_v21, %v11530_v22  ;;  %v2826_v48 = vmax.f32 %v2664_v52, 0.0  ;;  %v2665_v50 = vpop.f32.mrf.mxu1  ;;  %v10477_v51 = vor.u32 %v13970_v20, %v10474_v39  ;;  %v14186_v21 = vld [vmem:[#allocation12 + $0x724] sm:$0xf]  ;;  %v11338_v22 = vld [vmem:[#allocation12 + $0x750] sm:$0xf0]  ;;  %v12205_v39 = vor.u32 %v14402_v42, %v12202_v38 }
 0x1ed   :  { %v2639_v49 = vpop.f32.mrf.mxu3  ;;  %v14486_v52 = vld [vmem:[#allocation12 + $0x1084] sm:$0xf]  ;;  %v11341_v28 = vor.u32 %v14186_v21, %v11338_v22  ;;  %v14444_v42 = vld [vmem:[#allocation12 + $0xf2c] sm:$0xf0]  ;;  %v11962_v22 = vld [vmem:[#allocation12 + $0xc30] sm:$0xf0] }
 0x1ee   :  { %v15356_v61 = vpack.c.bf16 %v2826_v48, %v2826_v48  ;;  %v14174_v40 = vld [vmem:[#allocation12 + $0x6c4] sm:$0xf]  ;;  %v12106_v48 = vld [vmem:[#allocation12 + $0xd50] sm:$0xf0]  ;;  %v12541_v49 = vor.u32 %v14486_v52, %v12538_v30 }
 0x1ef   :  { %6399 = vmatpush.bf16.msra.mxu0 %v10669_v56  ;;  %v14426_v56 = vld [vmem:[#allocation12 + $0xea4] sm:$0xf] }
 0x1f0   :  { %6412 = vmatpush.bf16.msra.mxu1 %v11053_v59  ;;  %6375 = vmatpush.bf16.msrb.mxu2 %v12105_v62  ;;  %v14516_v59 = vld [vmem:[#allocation12 + $0x116c] sm:$0xf0]  ;;  %v10810_v62 = vld [vmem:[#allocation12 + $0x330] sm:$0xf0]  ;;  %v12301_v19 = vor.u32 %v14426_v56, %v12298_v53  ;;  %v14474_v50 = vld [vmem:[#allocation12 + $0x1024] sm:$0xf] }
 0x1f1   :  { %v12633_v3 = vor.u32 %v14516_v59, %v12632_v58  ;;  %6366 = vmatmul.bf16.vlgmr.msrb.gmra.mxu1 %v15356_v61  ;;  %v14468_v56 = vld [vmem:[#allocation12 + $0xfec] sm:$0xf0]  ;;  %v14162_v53 = vld [vmem:[#allocation12 + $0x664] sm:$0xf] }
 0x1f2   :  { %v12441_v59 = vor.u32 %v14468_v56, %v12440_v55  ;;  %v14342_v21 = vld [vmem:[#allocation12 + $0xc04] sm:$0xf]  ;;  %v14325_v56 = vld [vmem:[#allocation12 + $0xb74] sm:$0xf0] }
 0x1f3   :  { %6400 = vmatpush.bf16.msra.mxu0 %v10621_v0  ;;  %v14522_v0 = vld [vmem:[#allocation12 + $0x11a4] sm:$0xf]  ;;  %6385 = vmatpush.bf16.msrb.mxu3 %v12633_v3 }
 0x1f4   :  { %6413 = vmatpush.bf16.msra.mxu1 %v11005_v4  ;;  %6376 = vmatpush.bf16.msrb.mxu2 %v12057_v6  ;;  %v14210_v4 = vld [vmem:[#allocation12 + $0x7e4] sm:$0xf]  ;;  %v10813_v6 = vor.u32 %v14054_v60, %v10810_v62  ;;  %v12685_v27 = vor.u32 %v14522_v0, %v12682_v1  ;;  %v11242_v60 = vld [vmem:[#allocation12 + $0x690] sm:$0xf0] }
 0x1f5   :  { %v11437_v41 = vor.u32 %v14210_v4, %v11434_v2  ;;  %v14366_v0 = vld [vmem:[#allocation12 + $0xcc4] sm:$0xf]  ;;  %v12058_v1 = vld [vmem:[#allocation12 + $0xcf0] sm:$0xf0]  ;;  %v11245_v2 = vor.u32 %v14162_v53, %v11242_v60 }
 0x1f6   :  { %v14462_v4 = vld [vmem:[#allocation12 + $0xfc4] sm:$0xf]  ;;  %v11818_v53 = vld [vmem:[#allocation12 + $0xb10] sm:$0xf0] }
 0x1f7   :  { %6401 = vmatpush.bf16.msra.mxu0 %v10573_v23  ;;  %v12585_v23 = vor.u32 %v14504_v10, %v12584_v9  ;;  %v11194_v9 = vld [vmem:[#allocation12 + $0x630] sm:$0xf0]  ;;  %v12061_v10 = vor.u32 %v14366_v0, %v12058_v1  ;;  %v14438_v52 = vld [vmem:[#allocation12 + $0xf04] sm:$0xf]  ;;  %v11440_v0 = vld [vmem:[#allocation12 + $0x7e8] sm:$0xf] }
 0x1f8   :  { %6414 = vmatpush.bf16.msra.mxu1 %v10957_v15  ;;  %6377 = vmatpush.bf16.msrb.mxu2 %v12009_v29  ;;  %v12253_v15 = vor.u32 %v14414_v5, %v12250_v8  ;;  %v12536_v29 = vld [vmem:[#allocation12 + $0x1080] sm:$0xf]  ;;  %v14318_v30 = vld [vmem:[#allocation12 + $0xb44] sm:$0xf]  ;;  %v14217_v1 = vld [vmem:[#allocation12 + $0x814] sm:$0xf0] }
 0x1f9   :  { %6386 = vmatpush.bf16.msrb.mxu3 %v12585_v23  ;;  %v12537_v20 = vor.u32 %v14492_v7, %v12536_v29  ;;  %v12392_v5 = vld [vmem:[#allocation12 + $0xf60] sm:$0xf]  ;;  %v14450_v23 = vld [vmem:[#allocation12 + $0xf64] sm:$0xf] }
 0x1fa   :  { %v14330_v7 = vld [vmem:[#allocation12 + $0xba4] sm:$0xf] }
 0x1fb   :  { %6402 = vmatpush.bf16.msra.mxu0 %v10525_v34  ;;  %v12586_v34 = vld [vmem:[#allocation12 + $0x1110] sm:$0xf0] }
 0x1fc   :  { %6415 = vmatpush.bf16.msra.mxu1 %v10909_v24  ;;  %6378 = vmatpush.bf16.msrb.mxu2 %v11961_v31  ;;  %v14390_v24 = vld [vmem:[#allocation12 + $0xd84] sm:$0xf]  ;;  %v12589_v26 = vor.u32 %v14498_v46, %v12586_v34  ;;  %v12488_v31 = vld [vmem:[#allocation12 + $0x1020] sm:$0xf] }
 0x1fd   :  { %6387 = vmatpush.bf16.msrb.mxu3 %v12537_v20  ;;  %v12489_v35 = vor.u32 %v14480_v32, %v12488_v31  ;;  %v12157_v44 = vor.u32 %v14390_v24, %v12154_v25  ;;  %v11536_v24 = vld [vmem:[#allocation12 + $0x8a8] sm:$0xf]  ;;  %v14241_v25 = vld [vmem:[#allocation12 + $0x8d4] sm:$0xf0]  ;;  %v11866_v31 = vld [vmem:[#allocation12 + $0xb70] sm:$0xf0] }
 0x1fe   :  { %v907_v32 = vperm.slane %v15350_v37, 4 }
 0x1ff   :  { %6403 = vmatpush.bf16.msra.mxu0 %v10477_v51  ;;  %v11293_v51 = vor.u32 %v14174_v40, %v11290_v43  ;;  %v14337_v40 = vld [vmem:[#allocation12 + $0xbd4] sm:$0xf0]  ;;  %v11869_v43 = vor.u32 %v14318_v30, %v11866_v31  ;;  %v14258_v31 = vld [vmem:[#allocation12 + $0x964] sm:$0xf] }
 0x200   :  { %6423 = vmatpush.bf16.msra.mxu2 %v11533_v47  ;;  %6416 = vmatpush.bf16.msra.mxu1 %v10861_v57  ;;  %v14378_v47 = vld [vmem:[#allocation12 + $0xd24] sm:$0xf]  ;;  %v14181_v30 = vld [vmem:[#allocation12 + $0x6f4] sm:$0xf0] }
 0x201   :  { %6388 = vmatpush.bf16.msrb.mxu3 %v12489_v35  ;;  %v11920_v35 = vld [vmem:[#allocation12 + $0xba8] sm:$0xf] }
 0x202   :  { %v15360_v57 = vpop.f32.mrf.mxu2 }
 0x203   :  { %6404 = vmatpush.bf16.msra.mxu0 %v10429_v45  ;;  %v15362_v58 = vpop.f32.mrf.mxu0  ;;  %v12493_v45 = vor.u32 %v14474_v50, %v12490_v54  ;;  %v14229_v50 = vld [vmem:[#allocation12 + $0x874] sm:$0xf0]  ;;  %v11872_v54 = vld [vmem:[#allocation12 + $0xb48] sm:$0xf]  ;;  %v2677_v55 = vadd.f32 %v15360_v57, %v907_v32  ;;  %v11626_v32 = vld [vmem:[#allocation12 + $0x990] sm:$0xf0] }
 0x204   :  { %6424 = vmatpush.bf16.msra.mxu2 %v11485_v63  ;;  %6417 = vmatpush.bf16.msra.mxu1 %v10813_v6  ;;  %v15367_v3 = vpop.f32.mrf.mxu1  ;;  %v12109_v63 = vor.u32 %v14378_v47, %v12106_v48  ;;  %v14456_v6 = vld [vmem:[#allocation12 + $0xf8c] sm:$0xf0]  ;;  %v11537_v47 = vor.u32 %v14241_v25, %v11536_v24  ;;  %v10768_v25 = vld [vmem:[#allocation12 + $0x2a8] sm:$0xf] }
 0x205   :  { %v15365_v62 = vpop.f32.mrf.mxu3  ;;  %6389 = vmatpush.bf16.msrb.mxu3 %v12441_v59  ;;  %v12393_v8 = vor.u32 %v14456_v6, %v12392_v5  ;;  %v14306_v59 = vld [vmem:[#allocation12 + $0xae4] sm:$0xf]  ;;  %v11770_v6 = vld [vmem:[#allocation12 + $0xab0] sm:$0xf0] }
 0x206   :  { %6405 = vmatmul.bf16.vlgmr.msra.gmra.mxu0 %v15342_v16  ;;  %v11821_v60 = vor.u32 %v14306_v59, %v11818_v53  ;;  %v14294_v5 = vld [vmem:[#allocation12 + $0xa84] sm:$0xf]  ;;  %v11578_v53 = vld [vmem:[#allocation12 + $0x930] sm:$0xf0] }
 0x207   :  { %6449 = vmatpush.bf16.msrb.mxu0 %v12301_v19  ;;  %6418 = vmatmul.bf16.vlgmr.msra.gmra.mxu1 %v15344_v18  ;;  %v12442_v19 = vld [vmem:[#allocation12 + $0xff0] sm:$0xf0]  ;;  %v11773_v57 = vor.u32 %v14294_v5, %v11770_v6  ;;  %v14246_v59 = vld [vmem:[#allocation12 + $0x904] sm:$0xf]  ;;  %v10672_v6 = vld [vmem:[#allocation12 + $0x1e8] sm:$0xf] }
 0x208   :  { %6462 = vmatpush.bf16.msrb.mxu1 %v12685_v27  ;;  %6425 = vmatpush.bf16.msra.mxu2 %v11437_v41  ;;  %v14150_v27 = vld [vmem:[#allocation12 + $0x604] sm:$0xf]  ;;  %v12445_v12 = vor.u32 %v14462_v4, %v12442_v19  ;;  %v11824_v4 = vld [vmem:[#allocation12 + $0xae8] sm:$0xf]  ;;  %v14313_v19 = vld [vmem:[#allocation12 + $0xb14] sm:$0xf0] }
 0x209   :  { %v14354_v41 = vld [vmem:[#allocation12 + $0xc64] sm:$0xf]  ;;  %6390 = vmatpush.bf16.msrb.mxu3 %v12393_v8  ;;  %v11197_v13 = vor.u32 %v14150_v27, %v11194_v9  ;;  %v11441_v8 = vor.u32 %v14217_v1, %v11440_v0  ;;  %v11392_v27 = vld [vmem:[#allocation12 + $0x788] sm:$0xf]  ;;  %v14205_v9 = vld [vmem:[#allocation12 + $0x7b4] sm:$0xf0] }
 0x20a   :  { %v2678_v38 = vpop.f32.mrf.mxu2  ;;  %v12013_v20 = vor.u32 %v14354_v41, %v12010_v11  ;;  %v11776_v41 = vld [vmem:[#allocation12 + $0xa88] sm:$0xf]  ;;  %v14265_v1 = vld [vmem:[#allocation12 + $0x994] sm:$0xf0] }
 0x20b   :  { %6450 = vmatpush.bf16.msrb.mxu0 %v12253_v15  ;;  %v12344_v15 = vld [vmem:[#allocation12 + $0xf00] sm:$0xf]  ;;  %v11632_v0 = vld [vmem:[#allocation12 + $0x968] sm:$0xf] }
 0x20c   :  { %6463 = vmatpush.bf16.msrb.mxu1 %v12637_v33  ;;  %6426 = vmatpush.bf16.msra.mxu2 %v11389_v17  ;;  %v2704_v33 = vpop.f32.mrf.mxu0  ;;  %v12345_v29 = vor.u32 %v14444_v42, %v12344_v15  ;;  %v11914_v17 = vld [vmem:[#allocation12 + $0xbd0] sm:$0xf0]  ;;  %v2717_v34 = vpop.f32.mrf.mxu1  ;;  %v11344_v15 = vld [vmem:[#allocation12 + $0x728] sm:$0xf]  ;;  %v14193_v42 = vld [vmem:[#allocation12 + $0x754] sm:$0xf0] }
 0x20d   :  { %v2691_v46 = vpop.f32.mrf.mxu3  ;;  %v11728_v33 = vld [vmem:[#allocation12 + $0xa28] sm:$0xf]  ;;  %v11345_v24 = vor.u32 %v14193_v42, %v11344_v15  ;;  %v14013_v15 = vld [vmem:[#allocation12 + $0x1b4] sm:$0xf0] }
 0x20e   :  { %6391 = vmatpush.bf16.msrb.mxu3 %v12345_v29  ;;  %v11674_v46 = vld [vmem:[#allocation12 + $0x9f0] sm:$0xf0] }
 0x20f   :  { %6451 = vmatpush.bf16.msrb.mxu0 %v12205_v39  ;;  %v11917_v39 = vor.u32 %v14330_v7, %v11914_v17  ;;  %v14289_v7 = vld [vmem:[#allocation12 + $0xa54] sm:$0xf0]  ;;  %v14270_v17 = vld [vmem:[#allocation12 + $0x9c4] sm:$0xf] }
 0x210   :  { %6464 = vmatpush.bf16.msrb.mxu1 %v12589_v26  ;;  %6427 = vmatpush.bf16.msra.mxu2 %v11341_v28  ;;  %v12397_v26 = vor.u32 %v14450_v23, %v12394_v14  ;;  %v12346_v28 = vld [vmem:[#allocation12 + $0xf30] sm:$0xf0]  ;;  %v14282_v23 = vld [vmem:[#allocation12 + $0xa24] sm:$0xf] }
 0x211   :  { %v12349_v48 = vor.u32 %v14438_v52, %v12346_v28  ;;  %v11296_v52 = vld [vmem:[#allocation12 + $0x6c8] sm:$0xf]  ;;  %v11729_v28 = vor.u32 %v14289_v7, %v11728_v33  ;;  %v10722_v33 = vld [vmem:[#allocation12 + $0x278] sm:$0xf0] }
 0x212   :  { %6436 = vmatpush.bf16.msra.mxu3 %v11917_v39 }
 0x213   :  { %6452 = vmatpush.bf16.msrb.mxu0 %v12157_v44  ;;  %v11965_v44 = vor.u32 %v14342_v21, %v11962_v22 }
 0x214   :  { %6465 = vmatpush.bf16.msrb.mxu1 %v12541_v49  ;;  %6428 = vmatpush.bf16.msra.mxu2 %v11293_v51  ;;  %v11488_v49 = vld [vmem:[#allocation12 + $0x848] sm:$0xf]  ;;  %v11921_v51 = vor.u32 %v14337_v40, %v11920_v35  ;;  %v14277_v40 = vld [vmem:[#allocation12 + $0x9f4] sm:$0xf0] }
 0x215   :  { %v11680_v35 = vld [vmem:[#allocation12 + $0x9c8] sm:$0xf] }
 0x216   :  { %6437 = vmatpush.bf16.msra.mxu3 %v11869_v43  ;;  %v11629_v43 = vor.u32 %v14258_v31, %v11626_v32  ;;  %v10480_v31 = vld [vmem:[#allocation12 + $0x68] sm:$0xf]  ;;  %v13977_v32 = vld [vmem:[#allocation12 + $0x94] sm:$0xf0] }
 0x217   :  { %6453 = vmatpush.bf16.msrb.mxu0 %v12109_v63  ;;  %v11489_v63 = vor.u32 %v14229_v50, %v11488_v49  ;;  %v10720_v49 = vld [vmem:[#allocation12 + $0x248] sm:$0xf]  ;;  %v14037_v50 = vld [vmem:[#allocation12 + $0x274] sm:$0xf0] }
 0x218   :  { %6466 = vmatpush.bf16.msrb.mxu1 %v12493_v45  ;;  %6429 = vmatpush.bf16.msra.mxu2 %v11245_v2  ;;  %v11873_v45 = vor.u32 %v14325_v56, %v11872_v54  ;;  %v2690_v2 = vadd.f32 %v15365_v62, %v2677_v55  ;;  %v11393_v62 = vor.u32 %v14205_v9, %v11392_v27  ;;  %v14169_v55 = vld [vmem:[#allocation12 + $0x694] sm:$0xf0]  ;;  %v14043_v9 = vld [vmem:[#allocation12 + $0x2ac] sm:$0xf] }
 0x219   :  { %v11681_v56 = vor.u32 %v14277_v40, %v11680_v35  ;;  %v14157_v27 = vld [vmem:[#allocation12 + $0x634] sm:$0xf0]  ;;  %v13995_v40 = vld [vmem:[#allocation12 + $0x12c] sm:$0xf] }
 0x21a   :  { %6438 = vmatpush.bf16.msra.mxu3 %v11821_v60  ;;  %v2703_v11 = vadd.f32 %v15362_v58, %v2690_v2  ;;  %v11677_v58 = vor.u32 %v14270_v17, %v11674_v46  ;;  %v10576_v17 = vld [vmem:[#allocation12 + $0x128] sm:$0xf]  ;;  %v14001_v46 = vld [vmem:[#allocation12 + $0x154] sm:$0xf0] }
 0x21b   :  { %6454 = vmatpush.bf16.msrb.mxu0 %v12061_v10  ;;  %v11825_v10 = vor.u32 %v14313_v19, %v11824_v4  ;;  %v10721_v19 = vor.u32 %v14037_v50, %v10720_v49  ;;  %v10481_v50 = vor.u32 %v13977_v32, %v10480_v31  ;;  %v14397_v32 = vld [vmem:[#allocation12 + $0xdb4] sm:$0xf0] }
 0x21c   :  { %6467 = vmatpush.bf16.msrb.mxu1 %v12445_v12  ;;  %6430 = vmatpush.bf16.msra.mxu2 %v11197_v13  ;;  %v14301_v12 = vld [vmem:[#allocation12 + $0xab4] sm:$0xf0]  ;;  %v11722_v13 = vld [vmem:[#allocation12 + $0xa50] sm:$0xf0]  ;;  %v2716_v29 = vadd.f32 %v15367_v3, %v2703_v11  ;;  %v11584_v11 = vld [vmem:[#allocation12 + $0x908] sm:$0xf] }
 0x21d   :  { %v11725_v14 = vor.u32 %v14282_v23, %v11722_v13  ;;  %v11777_v38 = vor.u32 %v14301_v12, %v11776_v41  ;;  %v10770_v41 = vld [vmem:[#allocation12 + $0x2d8] sm:$0xf0]  ;;  %v14253_v12 = vld [vmem:[#allocation12 + $0x934] sm:$0xf0] }
 0x21e   :  { %6439 = vmatpush.bf16.msra.mxu3 %v11773_v57  ;;  %v14025_v57 = vld [vmem:[#allocation12 + $0x214] sm:$0xf0]  ;;  %v11585_v42 = vor.u32 %v14253_v12, %v11584_v11  ;;  %v11154_v11 = vld [vmem:[#allocation12 + $0x5d8] sm:$0xf0] }
 0x21f   :  { %6455 = vmatpush.bf16.msrb.mxu0 %v12013_v20  ;;  %v10673_v23 = vor.u32 %v14025_v57, %v10672_v6  ;;  %v12256_v6 = vld [vmem:[#allocation12 + $0xe48] sm:$0xf]  ;;  %v14421_v57 = vld [vmem:[#allocation12 + $0xe74] sm:$0xf0] }
 0x220   :  { %6468 = vmatpush.bf16.msrb.mxu1 %v12397_v26  ;;  %v14049_v26 = vld [vmem:[#allocation12 + $0x2d4] sm:$0xf0] }
 0x222   :  { %6440 = vmatpush.bf16.msra.mxu3 %v11725_v14  ;;  %v2728_v34 = vpop.f32.mrf.mxu2  ;;  %v10773_v14 = vor.u32 %v14043_v9, %v10770_v41  ;;  %v14139_v41 = vld [vmem:[#allocation12 + $0x5ac] sm:$0xf] }
 0x223   :  { %6456 = vmatpush.bf16.msrb.mxu0 %v11965_v44  ;;  %v15374_v20 = vpop.f32.mrf.mxu0  ;;  %v2729_v21 = vadd.f32 %v2728_v34, %v2716_v29  ;;  %v908_v34 = vperm.slane %v15350_v37, 5 }
 0x224   :  { %6469 = vmatpush.bf16.msrb.mxu1 %v12349_v48  ;;  %v15376_v39 = vpop.f32.mrf.mxu1  ;;  %v11297_v48 = vor.u32 %v14181_v30, %v11296_v52 }
 0x225   :  { %v2741_v22 = vpop.f32.mrf.mxu3  ;;  %v2755_v52 = vadd.f32 %v15374_v20, %v908_v34  ;;  %v10434_v34 = vld [vmem:[#allocation12 + $0x38] sm:$0xf0] }
 0x226   :  { %6441 = vmatpush.bf16.msra.mxu3 %v11677_v58  ;;  %v2742_v3 = vadd.f32 %v2741_v22, %v2729_v21  ;;  %v14019_v58 = vld [vmem:[#allocation12 + $0x1ec] sm:$0xf]  ;;  %v10674_v21 = vld [vmem:[#allocation12 + $0x218] sm:$0xf0]  ;;  %v10577_v22 = vor.u32 %v14001_v46, %v10576_v17  ;;  %v14409_v17 = vld [vmem:[#allocation12 + $0xe14] sm:$0xf0] }
 0x227   :  { %6501 = vmatpush.bf16.msra.mxu0 %v11537_v47  ;;  %v10769_v47 = vor.u32 %v14049_v26, %v10768_v25  ;;  %v10528_v25 = vld [vmem:[#allocation12 + $0xc8] sm:$0xf]  ;;  %v13989_v26 = vld [vmem:[#allocation12 + $0xf4] sm:$0xf0]  ;;  %v2768_v35 = vadd.f32 %v15376_v39, %v2755_v52  ;;  %v13959_v46 = vld [vmem:[#allocation12 + $0xc] sm:$0xf] }
 0x228   :  { %6514 = vmatpush.bf16.msra.mxu1 %v11921_v51  ;;  %v2827_v44 = vmax.f32 %v2742_v3, 0.0  ;;  %v11248_v51 = vld [vmem:[#allocation12 + $0x668] sm:$0xf]  ;;  %v10626_v3 = vld [vmem:[#allocation12 + $0x1b8] sm:$0xf0]  ;;  %v10529_v30 = vor.u32 %v13989_v26, %v10528_v25  ;;  %v10437_v52 = vor.u32 %v13959_v46, %v10434_v34 }
 0x229   :  { %v11249_v5 = vor.u32 %v14169_v55, %v11248_v51  ;;  %v10432_v55 = vld [vmem:[#allocation12 + $0x8] sm:$0xf]  ;;  %v12114_v46 = vld [vmem:[#allocation12 + $0xd58] sm:$0xf0] }
 0x22a   :  { %6442 = vmatpush.bf16.msra.mxu3 %v11629_v43  ;;  %v15378_v54 = vpack.c.bf16 %v2827_v44, %v2827_v44  ;;  %v2730_v60 = vpop.f32.mrf.mxu2  ;;  %v10578_v43 = vld [vmem:[#allocation12 + $0x158] sm:$0xf0] }
 0x22b   :  { %6502 = vmatpush.bf16.msra.mxu0 %v11489_v63  ;;  %v2756_v63 = vpop.f32.mrf.mxu0  ;;  %v10581_v51 = vor.u32 %v13995_v40, %v10578_v43  ;;  %v14433_v60 = vld [vmem:[#allocation12 + $0xed4] sm:$0xf0]  ;;  %v11058_v40 = vld [vmem:[#allocation12 + $0x518] sm:$0xf0]  ;;  %v14415_v43 = vld [vmem:[#allocation12 + $0xe4c] sm:$0xf] }
 0x22c   :  { %6515 = vmatpush.bf16.msra.mxu1 %v11873_v45  ;;  %v11581_v45 = vor.u32 %v14246_v59, %v11578_v53  ;;  %v2769_v2 = vpop.f32.mrf.mxu1  ;;  %6379 = vmatmul.bf16.vlgmr.msrb.gmra.mxu2 %v15378_v54  ;;  %v12304_v59 = vld [vmem:[#allocation12 + $0xea8] sm:$0xf]  ;;  %v13983_v63 = vld [vmem:[#allocation12 + $0xcc] sm:$0xf] }
 0x22d   :  { %v2743_v4 = vpop.f32.mrf.mxu3  ;;  %6457 = vmatmul.bf16.vlgmr.msrb.gmra.mxu0 %v15378_v54  ;;  %6475 = vmatpush.bf16.msrb.mxu2 %v10769_v47  ;;  %v11152_v2 = vld [vmem:[#allocation12 + $0x5a8] sm:$0xf] }
 0x22e   :  { %6443 = vmatpush.bf16.msra.mxu3 %v11581_v45  ;;  %v12305_v45 = vor.u32 %v14433_v60, %v12304_v59  ;;  %v14103_v59 = vld [vmem:[#allocation12 + $0x48c] sm:$0xf] }
 0x22f   :  { %6503 = vmatpush.bf16.msra.mxu0 %v11441_v8  ;;  %v11200_v8 = vld [vmem:[#allocation12 + $0x608] sm:$0xf]  ;;  %v14403_v60 = vld [vmem:[#allocation12 + $0xdec] sm:$0xf] }
 0x230   :  { %6516 = vmatpush.bf16.msra.mxu1 %v11825_v10  ;;  %v11633_v10 = vor.u32 %v14265_v1, %v11632_v0  ;;  %v11201_v13 = vor.u32 %v14157_v27, %v11200_v8  ;;  %v10530_v0 = vld [vmem:[#allocation12 + $0xf8] sm:$0xf0]  ;;  %v13971_v8 = vld [vmem:[#allocation12 + $0x6c] sm:$0xf] }
 0x231   :  { %6476 = vmatpush.bf16.msrb.mxu2 %v10721_v19  ;;  %v10533_v4 = vor.u32 %v13983_v63, %v10530_v0  ;;  %v14145_v19 = vld [vmem:[#allocation12 + $0x5d4] sm:$0xf0]  ;;  %v12210_v63 = vld [vmem:[#allocation12 + $0xe18] sm:$0xf0] }
 0x233   :  { %6504 = vmatpush.bf16.msra.mxu0 %v11393_v62  ;;  %v10624_v62 = vld [vmem:[#allocation12 + $0x188] sm:$0xf] }
 0x234   :  { %6517 = vmatpush.bf16.msra.mxu1 %v11777_v38  ;;  %v14031_v38 = vld [vmem:[#allocation12 + $0x24c] sm:$0xf]  ;;  %v10625_v29 = vor.u32 %v14013_v15, %v10624_v62  ;;  %v12257_v62 = vor.u32 %v14421_v57, %v12256_v6  ;;  %v11104_v15 = vld [vmem:[#allocation12 + $0x548] sm:$0xf]  ;;  %v14373_v6 = vld [vmem:[#allocation12 + $0xcf4] sm:$0xf0] }
 0x235   :  { %6477 = vmatpush.bf16.msrb.mxu2 %v10673_v23  ;;  %v10725_v7 = vor.u32 %v14031_v38, %v10722_v33  ;;  %v14091_v57 = vld [vmem:[#allocation12 + $0x42c] sm:$0xf] }
 0x237   :  { %6505 = vmatpush.bf16.msra.mxu0 %v11345_v24  ;;  %v10677_v24 = vor.u32 %v14019_v58, %v10674_v21  ;;  %v14127_v58 = vld [vmem:[#allocation12 + $0x54c] sm:$0xf]  ;;  %v11106_v21 = vld [vmem:[#allocation12 + $0x578] sm:$0xf0] }
 0x238   :  { %6518 = vmatpush.bf16.msra.mxu1 %v11729_v28  ;;  %v14007_v28 = vld [vmem:[#allocation12 + $0x18c] sm:$0xf] }
 0x239   :  { %6478 = vmatpush.bf16.msrb.mxu2 %v10625_v29  ;;  %v10629_v37 = vor.u32 %v14007_v28, %v10626_v3  ;;  %v11157_v29 = vor.u32 %v14139_v41, %v11154_v11  ;;  %v11109_v28 = vor.u32 %v14127_v58, %v11106_v21  ;;  %v11056_v3 = vld [vmem:[#allocation12 + $0x4e8] sm:$0xf] }
 0x23b   :  { %6506 = vmatpush.bf16.msra.mxu0 %v11297_v48 }
 0x23c   :  { %6519 = vmatpush.bf16.msra.mxu1 %v11681_v56  ;;  %6431 = vmatmul.bf16.vlgmr.msra.gmra.mxu2 %v15348_v36  ;;  %v13965_v56 = vld [vmem:[#allocation12 + $0x34] sm:$0xf0] }
 0x23d   :  { %6479 = vmatpush.bf16.msrb.mxu2 %v10577_v22  ;;  %v10433_v39 = vor.u32 %v13965_v56, %v10432_v55  ;;  %v14427_v22 = vld [vmem:[#allocation12 + $0xeac] sm:$0xf]  ;;  %v14385_v56 = vld [vmem:[#allocation12 + $0xd54] sm:$0xf0] }
 0x23f   :  { %6507 = vmatpush.bf16.msra.mxu0 %v11249_v5 }
 0x240   :  { %6520 = vmatpush.bf16.msra.mxu1 %v11633_v10  ;;  %v10482_v10 = vld [vmem:[#allocation12 + $0x98] sm:$0xf0] }
 0x241   :  { %6480 = vmatpush.bf16.msrb.mxu2 %v10529_v30  ;;  %v10485_v33 = vor.u32 %v13971_v8, %v10482_v10  ;;  %v14121_v30 = vld [vmem:[#allocation12 + $0x514] sm:$0xf0]  ;;  %v10962_v8 = vld [vmem:[#allocation12 + $0x458] sm:$0xf0] }
 0x242   :  { %v2780_v44 = vpop.f32.mrf.mxu2 }
 0x243   :  { %6508 = vmatpush.bf16.msra.mxu0 %v11201_v13  ;;  %v2806_v47 = vpop.f32.mrf.mxu0  ;;  %v2781_v48 = vadd.f32 %v2780_v44, %v2768_v35  ;;  %v14115_v35 = vld [vmem:[#allocation12 + $0x4ec] sm:$0xf]  ;;  %v12258_v44 = vld [vmem:[#allocation12 + $0xe78] sm:$0xf0] }
 0x244   :  { %6521 = vmatpush.bf16.msra.mxu1 %v11585_v42  ;;  %v2819_v49 = vpop.f32.mrf.mxu1  ;;  %v14133_v42 = vld [vmem:[#allocation12 + $0x574] sm:$0xf0]  ;;  %v12261_v55 = vor.u32 %v14415_v43, %v12258_v44  ;;  %v12066_v43 = vld [vmem:[#allocation12 + $0xcf8] sm:$0xf0] }
 0x245   :  { %v2793_v20 = vpop.f32.mrf.mxu3  ;;  %6481 = vmatpush.bf16.msrb.mxu2 %v10481_v50  ;;  %v11105_v25 = vor.u32 %v14133_v42, %v11104_v15  ;;  %v14109_v50 = vld [vmem:[#allocation12 + $0x4b4] sm:$0xf0]  ;;  %v14079_v42 = vld [vmem:[#allocation12 + $0x3cc] sm:$0xf] }
 0x246   :  { %6509 = vmatmul.bf16.vlgmr.msra.gmra.mxu0 %v15348_v36  ;;  %v2794_v53 = vadd.f32 %v2793_v20, %v2781_v48  ;;  %v11061_v20 = vor.u32 %v14115_v35, %v11058_v40  ;;  %v14361_v15 = vld [vmem:[#allocation12 + $0xc94] sm:$0xf0]  ;;  %v11538_v35 = vld [vmem:[#allocation12 + $0x8d8] sm:$0xf0]  ;;  %v14367_v40 = vld [vmem:[#allocation12 + $0xccc] sm:$0xf] }
 0x247   :  { %6553 = vmatpush.bf16.msrb.mxu0 %v10773_v14  ;;  %v11153_v14 = vor.u32 %v14145_v19, %v11152_v2  ;;  %v14097_v2 = vld [vmem:[#allocation12 + $0x454] sm:$0xf0]  ;;  %v12064_v19 = vld [vmem:[#allocation12 + $0xcc8] sm:$0xf] }
 0x248   :  { %v2807_v1 = vadd.f32 %v2806_v47, %v2794_v53  ;;  %v11057_v47 = vor.u32 %v14121_v30, %v11056_v3  ;;  %v11010_v53 = vld [vmem:[#allocation12 + $0x4b8] sm:$0xf0]  ;;  %v12065_v11 = vor.u32 %v14373_v6, %v12064_v19  ;;  %v14523_v6 = vld [vmem:[#allocation12 + $0x11ac] sm:$0xf] }
 0x249   :  { %6482 = vmatpush.bf16.msrb.mxu2 %v10433_v39 }
 0x24a   :  { %v2820_v5 = vadd.f32 %v2819_v49, %v2807_v1  ;;  %v2782_v27 = vpop.f32.mrf.mxu2  ;;  %v11008_v49 = vld [vmem:[#allocation12 + $0x488] sm:$0xf]  ;;  %v15393_v1 = vld [vmem:[#allocation14] sm:$0xff] }
 0x24b   :  { %6554 = vmatpush.bf16.msrb.mxu0 %v10725_v7  ;;  %v2808_v9 = vpop.f32.mrf.mxu0  ;;  %v12208_v7 = vld [vmem:[#allocation12 + $0xde8] sm:$0xf]  ;;  %v11009_v0 = vor.u32 %v14109_v50, %v11008_v49  ;;  %v14391_v27 = vld [vmem:[#allocation12 + $0xd8c] sm:$0xf]  ;;  %v3415_v10 = vperm.slane %v15393_v1, 0 }
 0x24c   :  { %v2828_v12 = vmax.f32 %v2820_v5, 0.0  ;;  %v2821_v13 = vpop.f32.mrf.mxu1  ;;  %6483 = vmatmul.bf16.vlgmr.msrb.gmra.mxu2 %v15342_v16  ;;  %v12209_v26 = vor.u32 %v14409_v17, %v12208_v7  ;;  %v12213_v5 = vor.u32 %v14403_v60, %v12210_v63  ;;  %v12162_v9 = vld [vmem:[#allocation12 + $0xdb8] sm:$0xf0]  ;;  %v14379_v17 = vld [vmem:[#allocation12 + $0xd2c] sm:$0xf] }
 0x24d   :  { %v2795_v23 = vpop.f32.mrf.mxu3  ;;  %6527 = vmatpush.bf16.msra.mxu2 %v12305_v45  ;;  %v11013_v45 = vor.u32 %v14103_v59, %v11010_v53  ;;  %v14085_v13 = vld [vmem:[#allocation12 + $0x3f4] sm:$0xf0]  ;;  %v12117_v30 = vor.u32 %v14379_v17, %v12114_v46  ;;  %v12069_v59 = vor.u32 %v14367_v40, %v12066_v43  ;;  %v12688_v53 = vld [vmem:[#allocation12 + $0x11a8] sm:$0xf]  ;;  %v14223_v63 = vld [vmem:[#allocation12 + $0x84c] sm:$0xf] }
 0x24e   :  { %v15387_v38 = vpack.c.bf16 %v2828_v12, %v2828_v12  ;;  %v10965_v12 = vor.u32 %v14091_v57, %v10962_v8  ;;  %v10912_v23 = vld [vmem:[#allocation12 + $0x3c8] sm:$0xf]  ;;  %v14061_v50 = vld [vmem:[#allocation12 + $0x334] sm:$0xf0]  ;;  %v12690_v57 = vld [vmem:[#allocation12 + $0x11d8] sm:$0xf0] }
 0x24f   :  { %6555 = vmatpush.bf16.msrb.mxu0 %v10677_v24  ;;  %v12306_v24 = vld [vmem:[#allocation12 + $0xed8] sm:$0xf0]  ;;  %v10913_v21 = vor.u32 %v14085_v13, %v10912_v23  ;;  %v14529_v60 = vld [vmem:[#allocation12 + $0x11d4] sm:$0xf0]  ;;  %v12693_v13 = vor.u32 %v14523_v6, %v12690_v57  ;;  %v14187_v43 = vld [vmem:[#allocation12 + $0x72c] sm:$0xf] }
 0x250   :  { %6392 = vmatmul.bf16.vlgmr.msrb.gmra.mxu3 %v15387_v38  ;;  %6470 = vmatmul.bf16.vlgmr.msrb.gmra.mxu1 %v15387_v38  ;;  %v12309_v31 = vor.u32 %v14427_v22, %v12306_v24  ;;  %v10864_v22 = vld [vmem:[#allocation12 + $0x368] sm:$0xf]  ;;  %v11442_v23 = vld [vmem:[#allocation12 + $0x818] sm:$0xf0] }
 0x251   :  { %6488 = vmatpush.bf16.msrb.mxu3 %v11153_v14  ;;  %6528 = vmatpush.bf16.msra.mxu2 %v12257_v62  ;;  %v12016_v14 = vld [vmem:[#allocation12 + $0xc68] sm:$0xf]  ;;  %v12165_v62 = vor.u32 %v14391_v27, %v12162_v9  ;;  %v12689_v27 = vor.u32 %v14529_v60, %v12688_v53  ;;  %v14481_v60 = vld [vmem:[#allocation12 + $0x1054] sm:$0xf0] }
 0x252   :  { %6566 = vmatpush.bf16.msrb.mxu1 %v11157_v29  ;;  %v12017_v24 = vor.u32 %v14361_v15, %v12016_v14  ;;  %v12640_v9 = vld [vmem:[#allocation12 + $0x1148] sm:$0xf]  ;;  %v14343_v14 = vld [vmem:[#allocation12 + $0xc0c] sm:$0xf] }
 0x253   :  { %6556 = vmatpush.bf16.msrb.mxu0 %v10629_v37  ;;  %v12160_v37 = vld [vmem:[#allocation12 + $0xd88] sm:$0xf]  ;;  %v14511_v15 = vld [vmem:[#allocation12 + $0x114c] sm:$0xf] }
 0x254   :  { %v12161_v48 = vor.u32 %v14397_v32, %v12160_v37  ;;  %v14067_v37 = vld [vmem:[#allocation12 + $0x36c] sm:$0xf]  ;;  %v12496_v53 = vld [vmem:[#allocation12 + $0x1028] sm:$0xf] }
 0x255   :  { %6489 = vmatpush.bf16.msrb.mxu3 %v11105_v25  ;;  %6529 = vmatpush.bf16.msra.mxu2 %v12209_v26  ;;  %v14073_v26 = vld [vmem:[#allocation12 + $0x394] sm:$0xf0]  ;;  %v14235_v32 = vld [vmem:[#allocation12 + $0x8ac] sm:$0xf]  ;;  %v12497_v6 = vor.u32 %v14481_v60, %v12496_v53  ;;  %v14170_v53 = vld [vmem:[#allocation12 + $0x69c] sm:$0xf0] }
 0x256   :  { %6567 = vmatpush.bf16.msrb.mxu1 %v11109_v28  ;;  %v14349_v28 = vld [vmem:[#allocation12 + $0xc34] sm:$0xf0]  ;;  %v11928_v60 = vld [vmem:[#allocation12 + $0xbb0] sm:$0xf] }
 0x257   :  { %6557 = vmatpush.bf16.msrb.mxu0 %v10581_v51  ;;  %v12112_v51 = vld [vmem:[#allocation12 + $0xd28] sm:$0xf] }
 0x258   :  { %v12113_v39 = vor.u32 %v14385_v56, %v12112_v51  ;;  %v14055_v51 = vld [vmem:[#allocation12 + $0x30c] sm:$0xf]  ;;  %v11541_v56 = vor.u32 %v14235_v32, %v11538_v35  ;;  %v14493_v32 = vld [vmem:[#allocation12 + $0x10b4] sm:$0xf0] }
 0x259   :  { %6490 = vmatpush.bf16.msrb.mxu3 %v11057_v47  ;;  %6530 = vmatpush.bf16.msra.mxu2 %v12161_v48  ;;  %v10865_v47 = vor.u32 %v14073_v26, %v10864_v22  ;;  %v10816_v48 = vld [vmem:[#allocation12 + $0x308] sm:$0xf]  ;;  %v14499_v26 = vld [vmem:[#allocation12 + $0x10ec] sm:$0xf] }
 0x25a   :  { %6568 = vmatpush.bf16.msrb.mxu1 %v11061_v20 }
 0x25b   :  { %6558 = vmatpush.bf16.msrb.mxu0 %v10533_v4  ;;  %v10960_v4 = vld [vmem:[#allocation12 + $0x428] sm:$0xf] }
 0x25c   :  { %v10961_v41 = vor.u32 %v14097_v2, %v10960_v4  ;;  %v14355_v4 = vld [vmem:[#allocation12 + $0xc6c] sm:$0xf]  ;;  %v12018_v2 = vld [vmem:[#allocation12 + $0xc98] sm:$0xf0] }
 0x25d   :  { %6491 = vmatpush.bf16.msrb.mxu3 %v11009_v0  ;;  %6531 = vmatpush.bf16.msra.mxu2 %v12113_v39 }
 0x25e   :  { %6569 = vmatpush.bf16.msrb.mxu1 %v11013_v45  ;;  %v11490_v45 = vld [vmem:[#allocation12 + $0x878] sm:$0xf0] }
 0x25f   :  { %6559 = vmatpush.bf16.msrb.mxu0 %v10485_v33  ;;  %v10914_v33 = vld [vmem:[#allocation12 + $0x3f8] sm:$0xf0] }
 0x260   :  { %6444 = vmatmul.bf16.vlgmr.msra.gmra.mxu3 %v15356_v61  ;;  %6522 = vmatmul.bf16.vlgmr.msra.gmra.mxu1 %v15356_v61  ;;  %v10917_v25 = vor.u32 %v14079_v42, %v10914_v33  ;;  %v12642_v42 = vld [vmem:[#allocation12 + $0x1178] sm:$0xf0]  ;;  %v11544_v33 = vld [vmem:[#allocation12 + $0x8b0] sm:$0xf] }
 0x261   :  { %6492 = vmatpush.bf16.msrb.mxu3 %v10961_v41  ;;  %6532 = vmatpush.bf16.msra.mxu2 %v12065_v11  ;;  %v12021_v41 = vor.u32 %v14355_v4, %v12018_v2  ;;  %v14517_v11 = vld [vmem:[#allocation12 + $0x1174] sm:$0xf0]  ;;  %v14475_v4 = vld [vmem:[#allocation12 + $0x102c] sm:$0xf]  ;;  %v12498_v2 = vld [vmem:[#allocation12 + $0x1058] sm:$0xf0] }
 0x262   :  { %v6328_v29 = vpop.f32.mrf.mxu2  ;;  %6570 = vmatpush.bf16.msrb.mxu1 %v10965_v12  ;;  %v14211_v12 = vld [vmem:[#allocation12 + $0x7ec] sm:$0xf] }
 0x263   :  { %6560 = vmatpush.bf16.msrb.mxu0 %v10437_v52  ;;  %v6354_v7 = vpop.f32.mrf.mxu0  ;;  %v6329_v34 = vadd.f32 %v6328_v29, %v3415_v10  ;;  %v11968_v52 = vld [vmem:[#allocation12 + $0xc08] sm:$0xf]  ;;  %v11493_v10 = vor.u32 %v14223_v63, %v11490_v45  ;;  %v14242_v29 = vld [vmem:[#allocation12 + $0x8dc] sm:$0xf0]  ;;  %v11445_v17 = vor.u32 %v14211_v12, %v11442_v23  ;;  %v11298_v45 = vld [vmem:[#allocation12 + $0x6f8] sm:$0xf0] }
 0x264   :  { %v6341_v58 = vpop.f32.mrf.mxu3  ;;  %v11969_v20 = vor.u32 %v14349_v28, %v11968_v52  ;;  %v11545_v22 = vor.u32 %v14242_v29, %v11544_v33  ;;  %v12594_v52 = vld [vmem:[#allocation12 + $0x1118] sm:$0xf0]  ;;  %v11496_v28 = vld [vmem:[#allocation12 + $0x850] sm:$0xf]  ;;  %v12400_v29 = vld [vmem:[#allocation12 + $0xf68] sm:$0xf] }
 0x265   :  { %v6342_v3 = vadd.f32 %v6341_v58, %v6329_v34  ;;  %6493 = vmatpush.bf16.msrb.mxu3 %v10913_v21  ;;  %6533 = vmatpush.bf16.msra.mxu2 %v12017_v24  ;;  %v12592_v34 = vld [vmem:[#allocation12 + $0x10e8] sm:$0xf]  ;;  %v14505_v58 = vld [vmem:[#allocation12 + $0x1114] sm:$0xf0]  ;;  %v12645_v21 = vor.u32 %v14511_v15, %v12642_v42  ;;  %v14199_v24 = vld [vmem:[#allocation12 + $0x78c] sm:$0xf]  ;;  %v12597_v35 = vor.u32 %v14499_v26, %v12594_v52 }
 0x266   :  { %6561 = vmatmul.bf16.vlgmr.msrb.gmra.mxu0 %v15342_v16  ;;  %6571 = vmatpush.bf16.msrb.mxu1 %v10917_v25  ;;  %v11394_v25 = vld [vmem:[#allocation12 + $0x7b8] sm:$0xf0]  ;;  %v3416_v42 = vperm.slane %v15393_v1, 1  ;;  %v11304_v52 = vld [vmem:[#allocation12 + $0x6d0] sm:$0xf] }
 0x267   :  { %6605 = vmatpush.bf16.msra.mxu0 %v12309_v31  ;;  %v10866_v31 = vld [vmem:[#allocation12 + $0x398] sm:$0xf0]  ;;  %v15398_v44 = vadd.f32 %v6354_v7, %v6342_v3  ;;  %v12641_v7 = vor.u32 %v14517_v11, %v12640_v9  ;;  %v14230_v3 = vld [vmem:[#allocation12 + $0x87c] sm:$0xf0]  ;;  %v14463_v11 = vld [vmem:[#allocation12 + $0xfcc] sm:$0xf] }
 0x268   :  { %v10869_v49 = vor.u32 %v14067_v37, %v10866_v31  ;;  %v11397_v37 = vor.u32 %v14199_v24, %v11394_v25  ;;  %v12544_v31 = vld [vmem:[#allocation12 + $0x1088] sm:$0xf]  ;;  %v11497_v40 = vor.u32 %v14230_v3, %v11496_v28  ;;  %v12450_v23 = vld [vmem:[#allocation12 + $0xff8] sm:$0xf0]  ;;  %v10776_v24 = vld [vmem:[#allocation12 + $0x2b0] sm:$0xf] }
 0x269   :  { %6494 = vmatpush.bf16.msrb.mxu3 %v10865_v47  ;;  %6534 = vmatpush.bf16.msra.mxu2 %v11969_v20  ;;  %v11346_v47 = vld [vmem:[#allocation12 + $0x758] sm:$0xf0]  ;;  %v14050_v25 = vld [vmem:[#allocation12 + $0x2dc] sm:$0xf0]  ;;  %v12352_v3 = vld [vmem:[#allocation12 + $0xf08] sm:$0xf] }
 0x26a   :  { %v6330_v0 = vpop.f32.mrf.mxu2  ;;  %6572 = vmatpush.bf16.msrb.mxu1 %v10869_v49  ;;  %v12546_v20 = vld [vmem:[#allocation12 + $0x10b8] sm:$0xf0]  ;;  %v11448_v49 = vld [vmem:[#allocation12 + $0x7f0] sm:$0xf]  ;;  %v14182_v28 = vld [vmem:[#allocation12 + $0x6fc] sm:$0xf0] }
 0x26b   :  { %6606 = vmatpush.bf16.msra.mxu0 %v12261_v55  ;;  %v10818_v55 = vld [vmem:[#allocation12 + $0x338] sm:$0xf0]  ;;  %v6356_v39 = vpop.f32.mrf.mxu0 }
 0x26c   :  { %v6343_v19 = vpop.f32.mrf.mxu3  ;;  %v10821_v8 = vor.u32 %v14055_v51, %v10818_v55  ;;  %6535 = vmatmul.bf16.vlgmr.msra.gmra.mxu2 %v15378_v54  ;;  %v12545_v55 = vor.u32 %v14493_v32, %v12544_v31  ;;  %v14175_v39 = vld [vmem:[#allocation12 + $0x6cc] sm:$0xf]  ;;  %v10777_v32 = vor.u32 %v14050_v25, %v10776_v24  ;;  %v11778_v25 = vld [vmem:[#allocation12 + $0xab8] sm:$0xf0] }
 0x26d   :  { %6579 = vmatpush.bf16.msrb.mxu2 %v11541_v56  ;;  %v11400_v19 = vld [vmem:[#allocation12 + $0x790] sm:$0xf]  ;;  %v11301_v57 = vor.u32 %v14175_v39, %v11298_v45  ;;  %v14295_v24 = vld [vmem:[#allocation12 + $0xa8c] sm:$0xf] }
 0x26e   :  { %6573 = vmatpush.bf16.msrb.mxu1 %v10821_v8  ;;  %v6367_v51 = vpop.f32.mrf.mxu1  ;;  %v12448_v8 = vld [vmem:[#allocation12 + $0xfc8] sm:$0xf] }
 0x26f   :  { %6607 = vmatpush.bf16.msra.mxu0 %v12213_v5  ;;  %v10817_v5 = vor.u32 %v14061_v50, %v10816_v48  ;;  %v14487_v48 = vld [vmem:[#allocation12 + $0x108c] sm:$0xf]  ;;  %v14218_v50 = vld [vmem:[#allocation12 + $0x81c] sm:$0xf0]  ;;  %v15405_v56 = vadd.f32 %v6367_v51, %v15398_v44  ;;  %v14469_v44 = vld [vmem:[#allocation12 + $0xff4] sm:$0xf0] }
 0x270   :  { %v12549_v63 = vor.u32 %v14487_v48, %v12546_v20  ;;  %v11449_v0 = vor.u32 %v14218_v50, %v11448_v49  ;;  %v12449_v15 = vor.u32 %v14469_v44, %v12448_v8  ;;  %v11305_v20 = vor.u32 %v14182_v28, %v11304_v52  ;;  %v10728_v49 = vld [vmem:[#allocation12 + $0x250] sm:$0xf]  ;;  %v14038_v50 = vld [vmem:[#allocation12 + $0x27c] sm:$0xf0] }
 0x271   :  { %6495 = vmatpush.bf16.msrb.mxu3 %v10817_v5  ;;  %6580 = vmatpush.bf16.msrb.mxu2 %v11493_v10  ;;  %v14206_v5 = vld [vmem:[#allocation12 + $0x7bc] sm:$0xf0]  ;;  %v14163_v10 = vld [vmem:[#allocation12 + $0x66c] sm:$0xf]  ;;  %v11256_v51 = vld [vmem:[#allocation12 + $0x670] sm:$0xf] }
 0x272   :  { %6618 = vmatpush.bf16.msra.mxu1 %v12693_v13  ;;  %v11401_v9 = vor.u32 %v14206_v5, %v11400_v19  ;;  %v11352_v13 = vld [vmem:[#allocation12 + $0x730] sm:$0xf]  ;;  %v11874_v19 = vld [vmem:[#allocation12 + $0xb78] sm:$0xf0]  ;;  %v11257_v5 = vor.u32 %v14170_v53, %v11256_v51  ;;  %v14026_v8 = vld [vmem:[#allocation12 + $0x21c] sm:$0xf0] }
 0x273   :  { %6608 = vmatpush.bf16.msra.mxu0 %v12165_v62  ;;  %v11970_v62 = vld [vmem:[#allocation12 + $0xc38] sm:$0xf0]  ;;  %6574 = vmatmul.bf16.vlgmr.msrb.gmra.mxu1 %v15344_v18  ;;  %v11208_v44 = vld [vmem:[#allocation12 + $0x610] sm:$0xf]  ;;  %v14002_v28 = vld [vmem:[#allocation12 + $0x15c] sm:$0xf0] }
 0x274   :  { %v11973_v46 = vor.u32 %v14343_v14, %v11970_v62  ;;  %6496 = vmatmul.bf16.vlgmr.msrb.gmra.mxu3 %v15344_v18  ;;  %v14194_v14 = vld [vmem:[#allocation12 + $0x75c] sm:$0xf0]  ;;  %v10584_v52 = vld [vmem:[#allocation12 + $0x130] sm:$0xf]  ;;  %v10634_v53 = vld [vmem:[#allocation12 + $0x1c0] sm:$0xf0] }
 0x275   :  { %6540 = vmatpush.bf16.msra.mxu3 %v12689_v27  ;;  %6581 = vmatpush.bf16.msrb.mxu2 %v11445_v17  ;;  %v12501_v27 = vor.u32 %v14475_v4, %v12498_v2  ;;  %v12453_v17 = vor.u32 %v14463_v11, %v12450_v23  ;;  %v10729_v4 = vor.u32 %v14038_v50, %v10728_v49  ;;  %v14319_v2 = vld [vmem:[#allocation12 + $0xb4c] sm:$0xf]  ;;  %v14044_v11 = vld [vmem:[#allocation12 + $0x2b4] sm:$0xf]  ;;  %v11736_v50 = vld [vmem:[#allocation12 + $0xa30] sm:$0xf] }
 0x276   :  { %6619 = vmatpush.bf16.msra.mxu1 %v12645_v21  ;;  %v6369_v62 = vpop.f32.mrf.mxu1  ;;  %v14451_v21 = vld [vmem:[#allocation12 + $0xf6c] sm:$0xf]  ;;  %v14290_v51 = vld [vmem:[#allocation12 + $0xa5c] sm:$0xf0] }
 0x277   :  { %6609 = vmatpush.bf16.msra.mxu0 %v12117_v30  ;;  %v12593_v30 = vor.u32 %v14505_v58, %v12592_v34  ;;  %v14151_v34 = vld [vmem:[#allocation12 + $0x60c] sm:$0xf]  ;;  %v11202_v58 = vld [vmem:[#allocation12 + $0x638] sm:$0xf0] }
 0x278   :  { %v11205_v1 = vor.u32 %v14151_v34, %v11202_v58  ;;  %v14032_v58 = vld [vmem:[#allocation12 + $0x254] sm:$0xf] }
 0x279   :  { %6541 = vmatpush.bf16.msra.mxu3 %v12641_v7  ;;  %6582 = vmatpush.bf16.msrb.mxu2 %v11397_v37  ;;  %v14457_v7 = vld [vmem:[#allocation12 + $0xf94] sm:$0xf0]  ;;  %v14439_v37 = vld [vmem:[#allocation12 + $0xf0c] sm:$0xf] }
 0x27a   :  { %6620 = vmatpush.bf16.msra.mxu1 %v12597_v35  ;;  %v12401_v26 = vor.u32 %v14457_v7, %v12400_v29  ;;  %v12354_v35 = vld [vmem:[#allocation12 + $0xf38] sm:$0xf0] }
 0x27b   :  { %6610 = vmatpush.bf16.msra.mxu0 %v12069_v59  ;;  %v11349_v59 = vor.u32 %v14187_v43, %v11346_v47  ;;  %v11922_v43 = vld [vmem:[#allocation12 + $0xbd8] sm:$0xf0]  ;;  %v12357_v45 = vor.u32 %v14439_v37, %v12354_v35  ;;  %v11781_v37 = vor.u32 %v14295_v24, %v11778_v25  ;;  %v10585_v35 = vor.u32 %v14002_v28, %v10584_v52  ;;  %v11160_v24 = vld [vmem:[#allocation12 + $0x5b0] sm:$0xf]  ;;  %v14146_v25 = vld [vmem:[#allocation12 + $0x5dc] sm:$0xf0] }
 0x27c   :  { %v12264_v52 = vld [vmem:[#allocation12 + $0xe50] sm:$0xf]  ;;  %v14422_v28 = vld [vmem:[#allocation12 + $0xe7c] sm:$0xf0] }
 0x27d   :  { %6542 = vmatpush.bf16.msra.mxu3 %v12593_v30  ;;  %6583 = vmatpush.bf16.msrb.mxu2 %v11349_v59  ;;  %v14445_v30 = vld [vmem:[#allocation12 + $0xf34] sm:$0xf0] }
 0x27e   :  { %6621 = vmatpush.bf16.msra.mxu1 %v12549_v63  ;;  %v12353_v59 = vor.u32 %v14445_v30, %v12352_v3  ;;  %v14338_v63 = vld [vmem:[#allocation12 + $0xbdc] sm:$0xf0]  ;;  %v11784_v3 = vld [vmem:[#allocation12 + $0xa90] sm:$0xf] }
 0x27f   :  { %6611 = vmatpush.bf16.msra.mxu0 %v12021_v41  ;;  %v11250_v41 = vld [vmem:[#allocation12 + $0x698] sm:$0xf0]  ;;  %v14302_v30 = vld [vmem:[#allocation12 + $0xabc] sm:$0xf0] }
 0x280   :  { %v11253_v33 = vor.u32 %v14163_v10, %v11250_v41  ;;  %v14326_v10 = vld [vmem:[#allocation12 + $0xb7c] sm:$0xf0]  ;;  %v11877_v41 = vor.u32 %v14319_v2, %v11874_v19 }
 0x281   :  { %6543 = vmatpush.bf16.msra.mxu3 %v12545_v55  ;;  %6584 = vmatpush.bf16.msrb.mxu2 %v11301_v57  ;;  %v10680_v57 = vld [vmem:[#allocation12 + $0x1f0] sm:$0xf]  ;;  %v13978_v2 = vld [vmem:[#allocation12 + $0x9c] sm:$0xf0] }
 0x282   :  { %6622 = vmatpush.bf16.msra.mxu1 %v12501_v27  ;;  %v14158_v27 = vld [vmem:[#allocation12 + $0x63c] sm:$0xf0]  ;;  %v10681_v23 = vor.u32 %v14026_v8, %v10680_v57  ;;  %v13996_v8 = vld [vmem:[#allocation12 + $0x134] sm:$0xf] }
 0x283   :  { %6612 = vmatpush.bf16.msra.mxu0 %v11973_v46  ;;  %v6406_v12 = vpop.f32.mrf.mxu0  ;;  %v11353_v46 = vor.u32 %v14194_v14, %v11352_v13  ;;  %v14307_v13 = vld [vmem:[#allocation12 + $0xaec] sm:$0xf]  ;;  %v11826_v14 = vld [vmem:[#allocation12 + $0xb18] sm:$0xf0]  ;;  %v11209_v62 = vor.u32 %v14158_v27, %v11208_v44  ;;  %v10586_v44 = vld [vmem:[#allocation12 + $0x160] sm:$0xf0] }
 0x284   :  { %v6407_v47 = vadd.f32 %v6406_v12, %v3416_v42  ;;  %v6419_v55 = vpop.f32.mrf.mxu1  ;;  %v10778_v12 = vld [vmem:[#allocation12 + $0x2e0] sm:$0xf0]  ;;  %v10632_v42 = vld [vmem:[#allocation12 + $0x190] sm:$0xf]  ;;  %v11829_v34 = vor.u32 %v14307_v13, %v11826_v14  ;;  %v10589_v13 = vor.u32 %v13996_v8, %v10586_v44  ;;  %v14266_v14 = vld [vmem:[#allocation12 + $0x99c] sm:$0xf0] }
 0x285   :  { %6544 = vmatpush.bf16.msra.mxu3 %v12497_v6  ;;  %6585 = vmatpush.bf16.msrb.mxu2 %v11253_v33  ;;  %v11929_v6 = vor.u32 %v14338_v63, %v11928_v60  ;;  %v14014_v33 = vld [vmem:[#allocation12 + $0x1bc] sm:$0xf0]  ;;  %v10781_v7 = vor.u32 %v14044_v11, %v10778_v12  ;;  %v14271_v63 = vld [vmem:[#allocation12 + $0x9cc] sm:$0xf]  ;;  %v10440_v11 = vld [vmem:[#allocation12 + $0x10] sm:$0xf] }
 0x286   :  { %6613 = vmatmul.bf16.vlgmr.msra.gmra.mxu0 %v15378_v54  ;;  %6623 = vmatpush.bf16.msra.mxu1 %v12453_v17  ;;  %v11832_v17 = vld [vmem:[#allocation12 + $0xaf0] sm:$0xf]  ;;  %v13966_v12 = vld [vmem:[#allocation12 + $0x3c] sm:$0xf0]  ;;  %v14116_v44 = vld [vmem:[#allocation12 + $0x4f4] sm:$0xf] }
 0x287   :  { %6657 = vmatpush.bf16.msrb.mxu0 %v11545_v22  ;;  %v12402_v22 = vld [vmem:[#allocation12 + $0xf98] sm:$0xf0] }
 0x288   :  { %v12405_v31 = vor.u32 %v14451_v21, %v12402_v22  ;;  %v10730_v21 = vld [vmem:[#allocation12 + $0x280] sm:$0xf0]  ;;  %v10633_v22 = vor.u32 %v14014_v33, %v10632_v42  ;;  %v13984_v33 = vld [vmem:[#allocation12 + $0xd4] sm:$0xf] }
 0x289   :  { %6545 = vmatpush.bf16.msra.mxu3 %v12449_v15  ;;  %6586 = vmatpush.bf16.msrb.mxu2 %v11205_v1  ;;  %v10733_v1 = vor.u32 %v14032_v58, %v10730_v21 }
 0x28a   :  { %6624 = vmatpush.bf16.msra.mxu1 %v12405_v31  ;;  %v14020_v31 = vld [vmem:[#allocation12 + $0x1f4] sm:$0xf] }
 0x28b   :  { %6658 = vmatpush.bf16.msrb.mxu0 %v11497_v40  ;;  %v14331_v40 = vld [vmem:[#allocation12 + $0xbac] sm:$0xf]  ;;  %v6408_v48 = vpop.f32.mrf.mxu0 }
 0x28c   :  { %v11925_v39 = vor.u32 %v14331_v40, %v11922_v43  ;;  %6587 = vmatmul.bf16.vlgmr.msrb.gmra.mxu2 %v15348_v36  ;;  %v6421_v29 = vpop.f32.mrf.mxu1  ;;  %v14283_v40 = vld [vmem:[#allocation12 + $0xa2c] sm:$0xf]  ;;  %v11730_v43 = vld [vmem:[#allocation12 + $0xa58] sm:$0xf0]  ;;  %v10536_v48 = vld [vmem:[#allocation12 + $0xd0] sm:$0xf] }
 0x28d   :  { %6546 = vmatpush.bf16.msra.mxu3 %v12401_v26  ;;  %6631 = vmatpush.bf16.msra.mxu2 %v10777_v32  ;;  %v10682_v32 = vld [vmem:[#allocation12 + $0x220] sm:$0xf0] }
 0x28e   :  { %6625 = vmatpush.bf16.msra.mxu1 %v12357_v45  ;;  %v10685_v49 = vor.u32 %v14020_v31, %v10682_v32  ;;  %v11737_v45 = vor.u32 %v14290_v51, %v11736_v50  ;;  %v10538_v29 = vld [vmem:[#allocation12 + $0x100] sm:$0xf0]  ;;  %v11161_v32 = vor.u32 %v14146_v25, %v11160_v24  ;;  %v14410_v50 = vld [vmem:[#allocation12 + $0xe1c] sm:$0xf0]  ;;  %v13960_v51 = vld [vmem:[#allocation12 + $0x14] sm:$0xf] }
 0x28f   :  { %6659 = vmatpush.bf16.msrb.mxu0 %v11449_v0  ;;  %v15408_v0 = vadd.f32 %v6419_v55, %v6407_v47  ;;  %v11785_v47 = vor.u32 %v14302_v30, %v11784_v3  ;;  %v11733_v55 = vor.u32 %v14283_v40, %v11730_v43  ;;  %v10490_v30 = vld [vmem:[#allocation12 + $0xa0] sm:$0xf0]  ;;  %v12265_v40 = vor.u32 %v14422_v28, %v12264_v52  ;;  %v11112_v43 = vld [vmem:[#allocation12 + $0x550] sm:$0xf] }
 0x290   :  { %v11162_v31 = vld [vmem:[#allocation12 + $0x5e0] sm:$0xf0]  ;;  %v12072_v25 = vld [vmem:[#allocation12 + $0xcd0] sm:$0xf] }
 0x291   :  { %6547 = vmatpush.bf16.msra.mxu3 %v12353_v59  ;;  %6632 = vmatpush.bf16.msra.mxu2 %v10729_v4  ;;  %v14008_v59 = vld [vmem:[#allocation12 + $0x194] sm:$0xf]  ;;  %v10488_v4 = vld [vmem:[#allocation12 + $0x70] sm:$0xf] }
 0x292   :  { %6670 = vmatpush.bf16.msrb.mxu1 %v11929_v6  ;;  %v10637_v19 = vor.u32 %v14008_v59, %v10634_v53  ;;  %v14278_v6 = vld [vmem:[#allocation12 + $0x9fc] sm:$0xf0]  ;;  %v10489_v27 = vor.u32 %v13978_v2, %v10488_v4  ;;  %v14128_v59 = vld [vmem:[#allocation12 + $0x554] sm:$0xf]  ;;  %v11114_v53 = vld [vmem:[#allocation12 + $0x580] sm:$0xf0] }
 0x293   :  { %6660 = vmatpush.bf16.msrb.mxu0 %v11401_v9  ;;  %v11880_v9 = vld [vmem:[#allocation12 + $0xb50] sm:$0xf]  ;;  %6626 = vmatmul.bf16.vlgmr.msra.gmra.mxu1 %v15387_v38  ;;  %v14122_v2 = vld [vmem:[#allocation12 + $0x51c] sm:$0xf0] }
 0x294   :  { %v11881_v15 = vor.u32 %v14326_v10, %v11880_v9  ;;  %6548 = vmatmul.bf16.vlgmr.msra.gmra.mxu3 %v15387_v38  ;;  %v14259_v9 = vld [vmem:[#allocation12 + $0x96c] sm:$0xf]  ;;  %v11634_v10 = vld [vmem:[#allocation12 + $0x998] sm:$0xf0]  ;;  %v11064_v4 = vld [vmem:[#allocation12 + $0x4f0] sm:$0xf] }
 0x295   :  { %6592 = vmatpush.bf16.msrb.mxu3 %v11925_v39  ;;  %6633 = vmatpush.bf16.msra.mxu2 %v10681_v23  ;;  %v11682_v39 = vld [vmem:[#allocation12 + $0x9f8] sm:$0xf0]  ;;  %v11640_v23 = vld [vmem:[#allocation12 + $0x970] sm:$0xf]  ;;  %v11637_v42 = vor.u32 %v14259_v9, %v11634_v10  ;;  %v11065_v10 = vor.u32 %v14122_v2, %v11064_v4  ;;  %v14350_v2 = vld [vmem:[#allocation12 + $0xc3c] sm:$0xf0] }
 0x296   :  { %6671 = vmatpush.bf16.msrb.mxu1 %v11881_v15  ;;  %v11685_v57 = vor.u32 %v14271_v63, %v11682_v39  ;;  %v14434_v15 = vld [vmem:[#allocation12 + $0xedc] sm:$0xf0]  ;;  %v11641_v58 = vor.u32 %v14266_v14, %v11640_v23  ;;  %v14428_v63 = vld [vmem:[#allocation12 + $0xeb4] sm:$0xf]  ;;  %v12314_v39 = vld [vmem:[#allocation12 + $0xee0] sm:$0xf0] }
 0x297   :  { %6661 = vmatpush.bf16.msrb.mxu0 %v11353_v46  ;;  %v14314_v46 = vld [vmem:[#allocation12 + $0xb1c] sm:$0xf0]  ;;  %v12317_v8 = vor.u32 %v14428_v63, %v12314_v39  ;;  %v11016_v23 = vld [vmem:[#allocation12 + $0x490] sm:$0xf] }
 0x298   :  { %v11833_v26 = vor.u32 %v14314_v46, %v11832_v17  ;;  %v14247_v17 = vld [vmem:[#allocation12 + $0x90c] sm:$0xf]  ;;  %v11586_v46 = vld [vmem:[#allocation12 + $0x938] sm:$0xf0]  ;;  %v14074_v63 = vld [vmem:[#allocation12 + $0x39c] sm:$0xf0] }
 0x299   :  { %6593 = vmatpush.bf16.msrb.mxu3 %v11877_v41  ;;  %6634 = vmatpush.bf16.msra.mxu2 %v10633_v22  ;;  %v14254_v22 = vld [vmem:[#allocation12 + $0x93c] sm:$0xf0]  ;;  %v11589_v3 = vor.u32 %v14247_v17, %v11586_v46  ;;  %v14404_v17 = vld [vmem:[#allocation12 + $0xdf4] sm:$0xf]  ;;  %v12218_v46 = vld [vmem:[#allocation12 + $0xe20] sm:$0xf0] }
 0x29a   :  { %6672 = vmatpush.bf16.msrb.mxu1 %v11833_v26  ;;  %v10541_v26 = vor.u32 %v13984_v33, %v10538_v29  ;;  %v14104_v33 = vld [vmem:[#allocation12 + $0x494] sm:$0xf]  ;;  %v11018_v29 = vld [vmem:[#allocation12 + $0x4c0] sm:$0xf0]  ;;  %v12221_v28 = vor.u32 %v14404_v17, %v12218_v46  ;;  %v11976_v4 = vld [vmem:[#allocation12 + $0xc10] sm:$0xf] }
 0x29b   :  { %6662 = vmatpush.bf16.msrb.mxu0 %v11305_v20  ;;  %v13990_v20 = vld [vmem:[#allocation12 + $0xfc] sm:$0xf0]  ;;  %v11021_v24 = vor.u32 %v14104_v33, %v11018_v29  ;;  %v11498_v17 = vld [vmem:[#allocation12 + $0x880] sm:$0xf0]  ;;  %v14356_v46 = vld [vmem:[#allocation12 + $0xc74] sm:$0xf] }
 0x29c   :  { %v10537_v60 = vor.u32 %v13990_v20, %v10536_v48  ;;  %v14530_v33 = vld [vmem:[#allocation12 + $0x11dc] sm:$0xf0] }
 0x29d   :  { %6594 = vmatpush.bf16.msrb.mxu3 %v11829_v34  ;;  %6635 = vmatpush.bf16.msra.mxu2 %v10585_v35  ;;  %v11592_v34 = vld [vmem:[#allocation12 + $0x910] sm:$0xf] }
 0x29e   :  { %6673 = vmatpush.bf16.msrb.mxu1 %v11785_v47  ;;  %v11593_v35 = vor.u32 %v14254_v22, %v11592_v34  ;;  %v14134_v47 = vld [vmem:[#allocation12 + $0x57c] sm:$0xf0] }
 0x29f   :  { %6663 = vmatpush.bf16.msrb.mxu0 %v11257_v5  ;;  %v11688_v5 = vld [vmem:[#allocation12 + $0x9d0] sm:$0xf] }
 0x2a0   :  { %v11689_v41 = vor.u32 %v14278_v6, %v11688_v5  ;;  %v11117_v5 = vor.u32 %v14128_v59, %v11114_v53  ;;  %v12168_v6 = vld [vmem:[#allocation12 + $0xd90] sm:$0xf]  ;;  %v12122_v59 = vld [vmem:[#allocation12 + $0xd60] sm:$0xf0] }
 0x2a1   :  { %6595 = vmatpush.bf16.msrb.mxu3 %v11781_v37  ;;  %6636 = vmatpush.bf16.msra.mxu2 %v10537_v60  ;;  %v14140_v37 = vld [vmem:[#allocation12 + $0x5b4] sm:$0xf]  ;;  %v11113_v60 = vor.u32 %v14134_v47, %v11112_v43  ;;  %v14086_v43 = vld [vmem:[#allocation12 + $0x3fc] sm:$0xf0] }
 0x2a2   :  { %6674 = vmatpush.bf16.msrb.mxu1 %v11737_v45  ;;  %v11165_v20 = vor.u32 %v14140_v37, %v11162_v31  ;;  %v14392_v31 = vld [vmem:[#allocation12 + $0xd94] sm:$0xf] }
 0x2a3   :  { %6664 = vmatpush.bf16.msrb.mxu0 %v11209_v62  ;;  %v12312_v62 = vld [vmem:[#allocation12 + $0xeb0] sm:$0xf] }
 0x2a4   :  { %v12313_v21 = vor.u32 %v14434_v15, %v12312_v62  ;;  %v12120_v62 = vld [vmem:[#allocation12 + $0xd30] sm:$0xf]  ;;  %v14386_v15 = vld [vmem:[#allocation12 + $0xd5c] sm:$0xf0] }
 0x2a5   :  { %6596 = vmatpush.bf16.msrb.mxu3 %v11733_v55  ;;  %6637 = vmatpush.bf16.msra.mxu2 %v10489_v27  ;;  %v10442_v55 = vld [vmem:[#allocation12 + $0x40] sm:$0xf0]  ;;  %v12121_v34 = vor.u32 %v14386_v15, %v12120_v62 }
 0x2a6   :  { %6665 = vmatmul.bf16.vlgmr.msrb.gmra.mxu0 %v15348_v36  ;;  %6675 = vmatpush.bf16.msrb.mxu1 %v11689_v41  ;;  %v11066_v27 = vld [vmem:[#allocation12 + $0x520] sm:$0xf0]  ;;  %v14416_v41 = vld [vmem:[#allocation12 + $0xe54] sm:$0xf] }
 0x2a7   :  { %6709 = vmatpush.bf16.msra.mxu0 %v10781_v7  ;;  %v10441_v7 = vor.u32 %v13966_v12, %v10440_v11  ;;  %v12266_v11 = vld [vmem:[#allocation12 + $0xe80] sm:$0xf0]  ;;  %v11069_v14 = vor.u32 %v14116_v44, %v11066_v27 }
 0x2a8   :  { %v10826_v15 = vld [vmem:[#allocation12 + $0x340] sm:$0xf0] }
 0x2a9   :  { %6597 = vmatpush.bf16.msrb.mxu3 %v11685_v57  ;;  %6638 = vmatpush.bf16.msra.mxu2 %v10441_v7  ;;  %v14398_v57 = vld [vmem:[#allocation12 + $0xdbc] sm:$0xf0] }
 0x2aa   :  { %6676 = vmatpush.bf16.msrb.mxu1 %v11641_v58  ;;  %v15417_v9 = vpop.f32.mrf.mxu0  ;;  %v12169_v12 = vor.u32 %v14398_v57, %v12168_v6  ;;  %v10968_v58 = vld [vmem:[#allocation12 + $0x430] sm:$0xf]  ;;  %v10874_v6 = vld [vmem:[#allocation12 + $0x3a0] sm:$0xf0]  ;;  %v14236_v57 = vld [vmem:[#allocation12 + $0x8b4] sm:$0xf] }
 0x2ab   :  { %6710 = vmatpush.bf16.msra.mxu0 %v10733_v1  ;;  %v13972_v1 = vld [vmem:[#allocation12 + $0x74] sm:$0xf] }
 0x2ac   :  { %v10493_v48 = vor.u32 %v13972_v1, %v10490_v30  ;;  %6639 = vmatmul.bf16.vlgmr.msra.gmra.mxu2 %v15342_v16  ;;  %v14092_v1 = vld [vmem:[#allocation12 + $0x434] sm:$0xf] }
 0x2ad   :  { %6598 = vmatpush.bf16.msrb.mxu3 %v11637_v42  ;;  %6683 = vmatpush.bf16.msrb.mxu2 %v12313_v21  ;;  %v12269_v42 = vor.u32 %v14416_v41, %v12266_v11  ;;  %v14098_v21 = vld [vmem:[#allocation12 + $0x45c] sm:$0xf0]  ;;  %v12074_v41 = vld [vmem:[#allocation12 + $0xd00] sm:$0xf0]  ;;  %v11977_v11 = vor.u32 %v14350_v2, %v11976_v4 }
 0x2ae   :  { %6677 = vmatpush.bf16.msrb.mxu1 %v11593_v35  ;;  %v10969_v37 = vor.u32 %v14098_v21, %v10968_v58  ;;  %v12026_v58 = vld [vmem:[#allocation12 + $0xca0] sm:$0xf0]  ;;  %v14524_v21 = vld [vmem:[#allocation12 + $0x11b4] sm:$0xf] }
 0x2af   :  { %6711 = vmatpush.bf16.msra.mxu0 %v10685_v49  ;;  %v12216_v49 = vld [vmem:[#allocation12 + $0xdf0] sm:$0xf]  ;;  %v6380_v22 = vpop.f32.mrf.mxu2  ;;  %v12602_v4 = vld [vmem:[#allocation12 + $0x1120] sm:$0xf0] }
 0x2b0   :  { %v12217_v45 = vor.u32 %v14410_v50, %v12216_v49  ;;  %v15421_v52 = vadd.f32 %v6380_v22, %v15405_v56  ;;  %v14080_v56 = vld [vmem:[#allocation12 + $0x3d4] sm:$0xf]  ;;  %v10922_v50 = vld [vmem:[#allocation12 + $0x400] sm:$0xf0] }
 0x2b1   :  { %6599 = vmatpush.bf16.msrb.mxu3 %v11589_v3  ;;  %6684 = vmatpush.bf16.msrb.mxu2 %v12265_v40  ;;  %v10970_v3 = vld [vmem:[#allocation12 + $0x460] sm:$0xf0]  ;;  %v10920_v40 = vld [vmem:[#allocation12 + $0x3d0] sm:$0xf] }
 0x2b2   :  { %6722 = vmatpush.bf16.msra.mxu1 %v11165_v20  ;;  %v6460_v30 = vpop.f32.mrf.mxu0  ;;  %v10973_v47 = vor.u32 %v14092_v1, %v10970_v3  ;;  %v14362_v20 = vld [vmem:[#allocation12 + $0xc9c] sm:$0xf0]  ;;  %v12698_v22 = vld [vmem:[#allocation12 + $0x11e0] sm:$0xf0]  ;;  %v12648_v1 = vld [vmem:[#allocation12 + $0x1150] sm:$0xf] }
 0x2b3   :  { %6712 = vmatpush.bf16.msra.mxu0 %v10637_v19  ;;  %v10445_v19 = vor.u32 %v13960_v51, %v10442_v55  ;;  %6678 = vmatmul.bf16.vlgmr.msrb.gmra.mxu1 %v15356_v61  ;;  %v10921_v51 = vor.u32 %v14086_v43, %v10920_v40  ;;  %v14380_v55 = vld [vmem:[#allocation12 + $0xd34] sm:$0xf]  ;;  %v14518_v3 = vld [vmem:[#allocation12 + $0x117c] sm:$0xf0] }
 0x2b4   :  { %6600 = vmatmul.bf16.vlgmr.msrb.gmra.mxu3 %v15356_v61  ;;  %v14344_v40 = vld [vmem:[#allocation12 + $0xc14] sm:$0xf] }
 0x2b5   :  { %6644 = vmatpush.bf16.msra.mxu3 %v11161_v32  ;;  %6685 = vmatpush.bf16.msrb.mxu2 %v12217_v45  ;;  %v12170_v32 = vld [vmem:[#allocation12 + $0xdc0] sm:$0xf0]  ;;  %v10925_v45 = vor.u32 %v14080_v56, %v10922_v50  ;;  %v11552_v56 = vld [vmem:[#allocation12 + $0x8b8] sm:$0xf]  ;;  %v14243_v50 = vld [vmem:[#allocation12 + $0x8e4] sm:$0xf0] }
 0x2b6   :  { %6723 = vmatpush.bf16.msra.mxu1 %v11117_v5  ;;  %v12173_v49 = vor.u32 %v14392_v31, %v12170_v32  ;;  %v12125_v5 = vor.u32 %v14380_v55, %v12122_v59  ;;  %v12701_v31 = vor.u32 %v14524_v21, %v12698_v22  ;;  %v14212_v32 = vld [vmem:[#allocation12 + $0x7f4] sm:$0xf]  ;;  %v14506_v55 = vld [vmem:[#allocation12 + $0x111c] sm:$0xf0]  ;;  %v12506_v22 = vld [vmem:[#allocation12 + $0x1060] sm:$0xf0] }
 0x2b7   :  { %6713 = vmatpush.bf16.msra.mxu0 %v10589_v13  ;;  %v14110_v13 = vld [vmem:[#allocation12 + $0x4bc] sm:$0xf0]  ;;  %v6382_v39 = vpop.f32.mrf.mxu2  ;;  %v14476_v21 = vld [vmem:[#allocation12 + $0x1034] sm:$0xf] }
 0x2b8   :  { %v11017_v7 = vor.u32 %v14110_v13, %v11016_v23  ;;  %v14062_v23 = vld [vmem:[#allocation12 + $0x33c] sm:$0xf0]  ;;  %v14056_v13 = vld [vmem:[#allocation12 + $0x314] sm:$0xf]  ;;  %v11553_v39 = vor.u32 %v14243_v50, %v11552_v56  ;;  %v11360_v50 = vld [vmem:[#allocation12 + $0x738] sm:$0xf] }
 0x2b9   :  { %6645 = vmatpush.bf16.msra.mxu3 %v11113_v60  ;;  %6686 = vmatpush.bf16.msrb.mxu2 %v12169_v12  ;;  %v10872_v60 = vld [vmem:[#allocation12 + $0x370] sm:$0xf] }
 0x2ba   :  { %6724 = vmatpush.bf16.msra.mxu1 %v11069_v14  ;;  %v10873_v27 = vor.u32 %v14074_v63, %v10872_v60  ;;  %v10824_v12 = vld [vmem:[#allocation12 + $0x310] sm:$0xf]  ;;  %v14200_v60 = vld [vmem:[#allocation12 + $0x794] sm:$0xf]  ;;  %v11402_v63 = vld [vmem:[#allocation12 + $0x7c0] sm:$0xf0] }
 0x2bb   :  { %6714 = vmatpush.bf16.msra.mxu0 %v10541_v26  ;;  %v14374_v26 = vld [vmem:[#allocation12 + $0xcfc] sm:$0xf0] }
 0x2bc   :  { %v12073_v35 = vor.u32 %v14374_v26, %v12072_v25  ;;  %v10829_v26 = vor.u32 %v14056_v13, %v10826_v15  ;;  %v12554_v13 = vld [vmem:[#allocation12 + $0x10c0] sm:$0xf0]  ;;  %v11456_v15 = vld [vmem:[#allocation12 + $0x7f8] sm:$0xf] }
 0x2bd   :  { %6646 = vmatpush.bf16.msra.mxu3 %v11065_v10  ;;  %6687 = vmatpush.bf16.msrb.mxu2 %v12121_v34  ;;  %v14368_v10 = vld [vmem:[#allocation12 + $0xcd4] sm:$0xf]  ;;  %v10825_v34 = vor.u32 %v14062_v23, %v10824_v12 }
 0x2be   :  { %6725 = vmatpush.bf16.msra.mxu1 %v11021_v24  ;;  %v12077_v29 = vor.u32 %v14368_v10, %v12074_v41  ;;  %v14188_v41 = vld [vmem:[#allocation12 + $0x734] sm:$0xf] }
 0x2bf   :  { %6715 = vmatpush.bf16.msra.mxu0 %v10493_v48  ;;  %v12024_v48 = vld [vmem:[#allocation12 + $0xc70] sm:$0xf]  ;;  %v6432_v25 = vpop.f32.mrf.mxu2  ;;  %v14488_v23 = vld [vmem:[#allocation12 + $0x1094] sm:$0xf] }
 0x2c0   :  { %v12025_v53 = vor.u32 %v14362_v20, %v12024_v48  ;;  %v15426_v30 = vadd.f32 %v6432_v25, %v15408_v0  ;;  %v14512_v48 = vld [vmem:[#allocation12 + $0x1154] sm:$0xf]  ;;  %v12650_v20 = vld [vmem:[#allocation12 + $0x1180] sm:$0xf0]  ;;  %v11408_v25 = vld [vmem:[#allocation12 + $0x798] sm:$0xf] }
 0x2c1   :  { %6647 = vmatpush.bf16.msra.mxu3 %v11017_v7  ;;  %6688 = vmatpush.bf16.msrb.mxu2 %v12073_v35  ;;  %v14224_v7 = vld [vmem:[#allocation12 + $0x854] sm:$0xf]  ;;  %v11450_v35 = vld [vmem:[#allocation12 + $0x820] sm:$0xf0] }
 0x2c2   :  { %6726 = vmatpush.bf16.msra.mxu1 %v10973_v47  ;;  %v11978_v47 = vld [vmem:[#allocation12 + $0xc40] sm:$0xf0]  ;;  %v11453_v0 = vor.u32 %v14212_v32, %v11450_v35  ;;  %v12509_v32 = vor.u32 %v14476_v21, %v12506_v22  ;;  %v14164_v35 = vld [vmem:[#allocation12 + $0x674] sm:$0xf]  ;;  %v11936_v21 = vld [vmem:[#allocation12 + $0xbb8] sm:$0xf] }
 0x2c3   :  { %6716 = vmatpush.bf16.msra.mxu0 %v10445_v19  ;;  %v14068_v19 = vld [vmem:[#allocation12 + $0x374] sm:$0xf]  ;;  %v15423_v44 = vpop.f32.mrf.mxu0  ;;  %v11981_v59 = vor.u32 %v14344_v40, %v11978_v47  ;;  %v11258_v40 = vld [vmem:[#allocation12 + $0x6a0] sm:$0xf0]  ;;  %v14339_v22 = vld [vmem:[#allocation12 + $0xbe4] sm:$0xf0] }
 0x2c4   :  { %v10877_v14 = vor.u32 %v14068_v19, %v10874_v6  ;;  %v11504_v19 = vld [vmem:[#allocation12 + $0x858] sm:$0xf] }
 0x2c5   :  { %6648 = vmatpush.bf16.msra.mxu3 %v10969_v37  ;;  %6689 = vmatpush.bf16.msrb.mxu2 %v12025_v53  ;;  %v12029_v37 = vor.u32 %v14356_v46, %v12026_v58  ;;  %v12653_v53 = vor.u32 %v14512_v48, %v12650_v20  ;;  %v14176_v46 = vld [vmem:[#allocation12 + $0x6d4] sm:$0xf]  ;;  %v12458_v20 = vld [vmem:[#allocation12 + $0x1000] sm:$0xf0] }
 0x2c6   :  { %6717 = vmatmul.bf16.vlgmr.msra.gmra.mxu0 %v15342_v16  ;;  %6727 = vmatpush.bf16.msra.mxu1 %v10925_v45  ;;  %v14500_v45 = vld [vmem:[#allocation12 + $0x10f4] sm:$0xf] }
 0x2c7   :  { %6761 = vmatpush.bf16.msrb.mxu0 %v12317_v8  ;;  %v11546_v8 = vld [vmem:[#allocation12 + $0x8e0] sm:$0xf0]  ;;  %v6434_v6 = vpop.f32.mrf.mxu2  ;;  %v12605_v10 = vor.u32 %v14500_v45, %v12602_v4  ;;  %v14464_v48 = vld [vmem:[#allocation12 + $0xfd4] sm:$0xf] }
 0x2c8   :  { %v11549_v62 = vor.u32 %v14236_v57, %v11546_v8  ;;  %v11405_v57 = vor.u32 %v14200_v60, %v11402_v63  ;;  %v12552_v8 = vld [vmem:[#allocation12 + $0x1090] sm:$0xf]  ;;  %v12461_v60 = vor.u32 %v14464_v48, %v12458_v20  ;;  %v14152_v63 = vld [vmem:[#allocation12 + $0x614] sm:$0xf]  ;;  %v12410_v4 = vld [vmem:[#allocation12 + $0xfa0] sm:$0xf0] }
 0x2c9   :  { %6649 = vmatpush.bf16.msra.mxu3 %v10921_v51  ;;  %6690 = vmatpush.bf16.msrb.mxu2 %v11977_v11  ;;  %v12600_v51 = vld [vmem:[#allocation12 + $0x10f0] sm:$0xf]  ;;  %v11354_v11 = vld [vmem:[#allocation12 + $0x760] sm:$0xf0]  ;;  %v11312_v6 = vld [vmem:[#allocation12 + $0x6d8] sm:$0xf] }
 0x2ca   :  { %6728 = vmatpush.bf16.msra.mxu1 %v10877_v14  ;;  %v12601_v2 = vor.u32 %v14506_v55, %v12600_v51  ;;  %v11261_v55 = vor.u32 %v14164_v35, %v11258_v40  ;;  %v10688_v35 = vld [vmem:[#allocation12 + $0x1f8] sm:$0xf]  ;;  %v14027_v40 = vld [vmem:[#allocation12 + $0x224] sm:$0xf0] }
 0x2cb   :  { %6762 = vmatpush.bf16.msrb.mxu0 %v12269_v42  ;;  %v12696_v42 = vld [vmem:[#allocation12 + $0x11b0] sm:$0xf]  ;;  %v6512_v43 = vpop.f32.mrf.mxu0  ;;  %v14159_v48 = vld [vmem:[#allocation12 + $0x644] sm:$0xf0]  ;;  %v11888_v20 = vld [vmem:[#allocation12 + $0xb58] sm:$0xf] }
 0x2cc   :  { %v12697_v24 = vor.u32 %v14530_v33, %v12696_v42  ;;  %6691 = vmatmul.bf16.vlgmr.msrb.gmra.mxu2 %v15378_v54  ;;  %v14219_v42 = vld [vmem:[#allocation12 + $0x824] sm:$0xf0]  ;;  %v11357_v33 = vor.u32 %v14188_v41, %v11354_v11  ;;  %v14446_v41 = vld [vmem:[#allocation12 + $0xf3c] sm:$0xf0]  ;;  %v14440_v11 = vld [vmem:[#allocation12 + $0xf14] sm:$0xf] }
 0x2cd   :  { %6650 = vmatpush.bf16.msra.mxu3 %v10873_v27  ;;  %6735 = vmatpush.bf16.msra.mxu2 %v11549_v62  ;;  %v14494_v27 = vld [vmem:[#allocation12 + $0x10bc] sm:$0xf0]  ;;  %v15431_v14 = vpop.f32.mrf.mxu1  ;;  %v11457_v58 = vor.u32 %v14219_v42, %v11456_v15  ;;  %v14332_v15 = vld [vmem:[#allocation12 + $0xbb4] sm:$0xf]  ;;  %v11930_v42 = vld [vmem:[#allocation12 + $0xbe0] sm:$0xf0] }
 0x2ce   :  { %6729 = vmatpush.bf16.msra.mxu1 %v10829_v26  ;;  %v12553_v62 = vor.u32 %v14494_v27, %v12552_v8  ;;  %v14207_v26 = vld [vmem:[#allocation12 + $0x7c4] sm:$0xf0] }
 0x2cf   :  { %6763 = vmatpush.bf16.msrb.mxu0 %v12221_v28  ;;  %v11501_v28 = vor.u32 %v14224_v7, %v11498_v17  ;;  %v14482_v7 = vld [vmem:[#allocation12 + $0x105c] sm:$0xf0]  ;;  %v12557_v17 = vor.u32 %v14488_v23, %v12554_v13  ;;  %v11409_v47 = vor.u32 %v14207_v26, %v11408_v25  ;;  %v11933_v25 = vor.u32 %v14332_v15, %v11930_v42 }
 0x2d0   :  { %v15451_v15 = vld [vmem:[#allocation14] sm:$0xff] }
 0x2d1   :  { %6651 = vmatpush.bf16.msra.mxu3 %v10825_v34  ;;  %6736 = vmatpush.bf16.msra.mxu2 %v11501_v28  ;;  %v11306_v34 = vld [vmem:[#allocation12 + $0x700] sm:$0xf0]  ;;  %v15434_v28 = vpop.f32.mrf.mxu2 }
 0x2d2   :  { %6774 = vmatpush.bf16.msrb.mxu1 %v12701_v31 }
 0x2d3   :  { %6764 = vmatpush.bf16.msrb.mxu0 %v12173_v49  ;;  %v12649_v49 = vor.u32 %v14518_v3, %v12648_v1  ;;  %6730 = vmatmul.bf16.vlgmr.msra.gmra.mxu1 %v15344_v18  ;;  %v11309_v1 = vor.u32 %v14176_v46, %v11306_v34  ;;  %v12456_v3 = vld [vmem:[#allocation12 + $0xfd0] sm:$0xf]  ;;  %v6393_v31 = vpop.f32.mrf.mxu3 }
 0x2d4   :  { %6652 = vmatmul.bf16.vlgmr.msra.gmra.mxu3 %v15344_v18  ;;  %v15437_v43 = vadd.f32 %v6393_v31, %v15421_v52  ;;  %v14452_v52 = vld [vmem:[#allocation12 + $0xf74] sm:$0xf] }
 0x2d5   :  { %6696 = vmatpush.bf16.msrb.mxu3 %v12697_v24  ;;  %6737 = vmatpush.bf16.msra.mxu2 %v11453_v0  ;;  %v14195_v0 = vld [vmem:[#allocation12 + $0x764] sm:$0xf0]  ;;  %v12413_v23 = vor.u32 %v14452_v52, %v12410_v4 }
 0x2d6   :  { %6775 = vmatpush.bf16.msrb.mxu1 %v12653_v53  ;;  %v14458_v53 = vld [vmem:[#allocation12 + $0xf9c] sm:$0xf0]  ;;  %v11361_v45 = vor.u32 %v14195_v0, %v11360_v50  ;;  %v14045_v50 = vld [vmem:[#allocation12 + $0x2bc] sm:$0xf]  ;;  %v10786_v0 = vld [vmem:[#allocation12 + $0x2e8] sm:$0xf0] }
 0x2d7   :  { %6765 = vmatpush.bf16.msrb.mxu0 %v12125_v5  ;;  %v14231_v5 = vld [vmem:[#allocation12 + $0x884] sm:$0xf0] }
 0x2d8   :  { %v11505_v12 = vor.u32 %v14231_v5, %v11504_v19  ;;  %v14051_v19 = vld [vmem:[#allocation12 + $0x2e4] sm:$0xf0] }
 0x2d9   :  { %6697 = vmatpush.bf16.msrb.mxu3 %v12649_v49  ;;  %6738 = vmatpush.bf16.msra.mxu2 %v11405_v57  ;;  %v6473_v49 = vpop.f32.mrf.mxu1  ;;  %v14183_v57 = vld [vmem:[#allocation12 + $0x704] sm:$0xf0]  ;;  %v6486_v8 = vpop.f32.mrf.mxu2 }
 0x2da   :  { %6776 = vmatpush.bf16.msrb.mxu1 %v12605_v10  ;;  %v12360_v10 = vld [vmem:[#allocation12 + $0xf10] sm:$0xf]  ;;  %v14327_v49 = vld [vmem:[#allocation12 + $0xb84] sm:$0xf0] }
 0x2db   :  { %6766 = vmatpush.bf16.msrb.mxu0 %v12077_v29  ;;  %v12504_v29 = vld [vmem:[#allocation12 + $0x1030] sm:$0xf]  ;;  %v12361_v34 = vor.u32 %v14446_v41, %v12360_v10  ;;  %v11889_v52 = vor.u32 %v14327_v49, %v11888_v20  ;;  %v14015_v4 = vld [vmem:[#allocation12 + $0x1c4] sm:$0xf0]  ;;  %v10738_v10 = vld [vmem:[#allocation12 + $0x288] sm:$0xf0] }
 0x2dc   :  { %v12505_v24 = vor.u32 %v14482_v7, %v12504_v29  ;;  %v10736_v29 = vld [vmem:[#allocation12 + $0x258] sm:$0xf]  ;;  %v14039_v7 = vld [vmem:[#allocation12 + $0x284] sm:$0xf0]  ;;  %v14296_v41 = vld [vmem:[#allocation12 + $0xa94] sm:$0xf] }
 0x2dd   :  { %6698 = vmatpush.bf16.msrb.mxu3 %v12601_v2  ;;  %6739 = vmatpush.bf16.msra.mxu2 %v11357_v33  ;;  %v10784_v2 = vld [vmem:[#allocation12 + $0x2b8] sm:$0xf]  ;;  %v11313_v33 = vor.u32 %v14183_v57, %v11312_v6  ;;  %v14315_v6 = vld [vmem:[#allocation12 + $0xb24] sm:$0xf0] }
 0x2de   :  { %6777 = vmatpush.bf16.msrb.mxu1 %v12557_v17  ;;  %v10785_v13 = vor.u32 %v14051_v19, %v10784_v2  ;;  %v11264_v17 = vld [vmem:[#allocation12 + $0x678] sm:$0xf]  ;;  %v10789_v19 = vor.u32 %v14045_v50, %v10786_v0  ;;  %v11690_v50 = vld [vmem:[#allocation12 + $0xa00] sm:$0xf0] }
 0x2df   :  { %6767 = vmatpush.bf16.msrb.mxu0 %v12029_v37  ;;  %v14470_v37 = vld [vmem:[#allocation12 + $0xffc] sm:$0xf0] }
 0x2e0   :  { %v12457_v56 = vor.u32 %v14470_v37, %v12456_v3  ;;  %v14320_v3 = vld [vmem:[#allocation12 + $0xb54] sm:$0xf]  ;;  %v11882_v37 = vld [vmem:[#allocation12 + $0xb80] sm:$0xf0] }
 0x2e1   :  { %6699 = vmatpush.bf16.msrb.mxu3 %v12553_v62  ;;  %6740 = vmatpush.bf16.msra.mxu2 %v11309_v1  ;;  %v12362_v62 = vld [vmem:[#allocation12 + $0xf40] sm:$0xf0]  ;;  %v15441_v46 = vpop.f32.mrf.mxu1  ;;  %v10737_v1 = vor.u32 %v14039_v7, %v10736_v29  ;;  %v14303_v29 = vld [vmem:[#allocation12 + $0xac4] sm:$0xf0] }
 0x2e2   :  { %6778 = vmatpush.bf16.msrb.mxu1 %v12509_v32  ;;  %v12365_v26 = vor.u32 %v14440_v11, %v12362_v62  ;;  %v11937_v32 = vor.u32 %v14339_v22, %v11936_v21  ;;  %v11786_v11 = vld [vmem:[#allocation12 + $0xac0] sm:$0xf0]  ;;  %v14003_v62 = vld [vmem:[#allocation12 + $0x164] sm:$0xf0]  ;;  %v14284_v21 = vld [vmem:[#allocation12 + $0xa34] sm:$0xf] }
 0x2e3   :  { %6768 = vmatpush.bf16.msrb.mxu0 %v11981_v59  ;;  %v15439_v51 = vpop.f32.mrf.mxu0  ;;  %v12408_v59 = vld [vmem:[#allocation12 + $0xf70] sm:$0xf]  ;;  %v11789_v7 = vor.u32 %v14296_v41, %v11786_v11  ;;  %v11738_v22 = vld [vmem:[#allocation12 + $0xa60] sm:$0xf0]  ;;  %v11648_v41 = vld [vmem:[#allocation12 + $0x978] sm:$0xf] }
 0x2e4   :  { %v12409_v5 = vor.u32 %v14458_v53, %v12408_v59  ;;  %v10689_v59 = vor.u32 %v14027_v40, %v10688_v35  ;;  %v14308_v53 = vld [vmem:[#allocation12 + $0xaf4] sm:$0xf]  ;;  %v11741_v40 = vor.u32 %v14284_v21, %v11738_v22 }
 0x2e5   :  { %6700 = vmatpush.bf16.msrb.mxu3 %v12505_v24  ;;  %6741 = vmatpush.bf16.msra.mxu2 %v11261_v55 }
 0x2e6   :  { %6769 = vmatmul.bf16.vlgmr.msrb.gmra.mxu0 %v15378_v54  ;;  %6779 = vmatpush.bf16.msrb.mxu1 %v12461_v60  ;;  %v11834_v60 = vld [vmem:[#allocation12 + $0xb20] sm:$0xf0] }
 0x2e7   :  { %6813 = vmatpush.bf16.msra.mxu0 %v11553_v39  ;;  %v11210_v39 = vld [vmem:[#allocation12 + $0x640] sm:$0xf0]  ;;  %v11837_v8 = vor.u32 %v14308_v53, %v11834_v60  ;;  %v11696_v60 = vld [vmem:[#allocation12 + $0x9d8] sm:$0xf] }
 0x2e8   :  { %v11213_v27 = vor.u32 %v14152_v63, %v11210_v39 }
 0x2e9   :  { %6701 = vmatpush.bf16.msrb.mxu3 %v12457_v56  ;;  %v11885_v56 = vor.u32 %v14320_v3, %v11882_v37  ;;  %v6525_v2 = vpop.f32.mrf.mxu1  ;;  %v11744_v37 = vld [vmem:[#allocation12 + $0xa38] sm:$0xf] }
 0x2ea   :  { %6742 = vmatpush.bf16.msra.mxu2 %v11213_v27  ;;  %6780 = vmatpush.bf16.msrb.mxu1 %v12413_v23  ;;  %v14033_v27 = vld [vmem:[#allocation12 + $0x25c] sm:$0xf] }
 0x2eb   :  { %6814 = vmatpush.bf16.msra.mxu0 %v11505_v12  ;;  %v6395_v12 = vpop.f32.mrf.mxu3  ;;  %v6564_v24 = vpop.f32.mrf.mxu0  ;;  %v10741_v42 = vor.u32 %v14033_v27, %v10738_v10  ;;  %v10448_v10 = vld [vmem:[#allocation12 + $0x18] sm:$0xf] }
 0x2ed   :  { %6702 = vmatpush.bf16.msrb.mxu3 %v12409_v5  ;;  %6743 = vmatmul.bf16.vlgmr.msra.gmra.mxu2 %v15348_v36  ;;  %v11840_v5 = vld [vmem:[#allocation12 + $0xaf8] sm:$0xf] }
 0x2ee   :  { %6787 = vmatpush.bf16.msrb.mxu2 %v10785_v13  ;;  %6781 = vmatpush.bf16.msrb.mxu1 %v12365_v26  ;;  %v11841_v23 = vor.u32 %v14315_v6, %v11840_v5  ;;  %v10592_v13 = vld [vmem:[#allocation12 + $0x138] sm:$0xf]  ;;  %v13991_v26 = vld [vmem:[#allocation12 + $0x104] sm:$0xf0]  ;;  %v14260_v6 = vld [vmem:[#allocation12 + $0x974] sm:$0xf] }
 0x2ef   :  { %6815 = vmatpush.bf16.msra.mxu0 %v11457_v58  ;;  %v14171_v58 = vld [vmem:[#allocation12 + $0x6a4] sm:$0xf0]  ;;  %v6536_v0 = vpop.f32.mrf.mxu2 }
 0x2f0   :  { %v11265_v31 = vor.u32 %v14171_v58, %v11264_v17  ;;  %v14021_v17 = vld [vmem:[#allocation12 + $0x1fc] sm:$0xf]  ;;  %v10593_v58 = vor.u32 %v14003_v62, %v10592_v13  ;;  %v14435_v13 = vld [vmem:[#allocation12 + $0xee4] sm:$0xf0] }
 0x2f1   :  { %6703 = vmatpush.bf16.msrb.mxu3 %v12361_v34  ;;  %6782 = vmatmul.bf16.vlgmr.msrb.gmra.mxu1 %v15387_v38  ;;  %v10690_v34 = vld [vmem:[#allocation12 + $0x228] sm:$0xf0]  ;;  %v6575_v35 = vpop.f32.mrf.mxu1 }
 0x2f2   :  { %6788 = vmatpush.bf16.msrb.mxu2 %v10737_v1  ;;  %6826 = vmatpush.bf16.msra.mxu1 %v11937_v32  ;;  %v10693_v3 = vor.u32 %v14021_v17, %v10690_v34  ;;  %v3417_v32 = vperm.slane %v15451_v15, 2  ;;  %v14248_v17 = vld [vmem:[#allocation12 + $0x914] sm:$0xf]  ;;  %v11594_v34 = vld [vmem:[#allocation12 + $0x940] sm:$0xf0] }
 0x2f3   :  { %6816 = vmatpush.bf16.msra.mxu0 %v11409_v47  ;;  %v11216_v47 = vld [vmem:[#allocation12 + $0x618] sm:$0xf]  ;;  %v6445_v55 = vpop.f32.mrf.mxu3 }
 0x2f4   :  { %v6446_v63 = vadd.f32 %v6445_v55, %v15426_v30  ;;  %v11217_v39 = vor.u32 %v14159_v48, %v11216_v47  ;;  %6704 = vmatmul.bf16.vlgmr.msrb.gmra.mxu3 %v15387_v38  ;;  %v14009_v47 = vld [vmem:[#allocation12 + $0x19c] sm:$0xf]  ;;  %v10642_v48 = vld [vmem:[#allocation12 + $0x1c8] sm:$0xf0]  ;;  %v10496_v55 = vld [vmem:[#allocation12 + $0x78] sm:$0xf] }
 0x2f5   :  { %6748 = vmatpush.bf16.msra.mxu3 %v11933_v25  ;;  %v10544_v25 = vld [vmem:[#allocation12 + $0xd8] sm:$0xf]  ;;  %v10645_v53 = vor.u32 %v14009_v47, %v10642_v48  ;;  %v11170_v47 = vld [vmem:[#allocation12 + $0x5e8] sm:$0xf0] }
 0x2f6   :  { %v6459_v57 = vadd.f32 %v15417_v9, %v6446_v63  ;;  %6789 = vmatpush.bf16.msrb.mxu2 %v10689_v59  ;;  %6827 = vmatpush.bf16.msra.mxu1 %v11889_v52  ;;  %v3418_v9 = vperm.slane %v15451_v15, 3  ;;  %v10545_v49 = vor.u32 %v13991_v26, %v10544_v25  ;;  %v13979_v59 = vld [vmem:[#allocation12 + $0xa4] sm:$0xf0]  ;;  %v11168_v25 = vld [vmem:[#allocation12 + $0x5b8] sm:$0xf] }
 0x2f7   :  { %6817 = vmatpush.bf16.msra.mxu0 %v11361_v45  ;;  %v10640_v45 = vld [vmem:[#allocation12 + $0x198] sm:$0xf]  ;;  %v14279_v63 = vld [vmem:[#allocation12 + $0xa04] sm:$0xf0]  ;;  %v10497_v5 = vor.u32 %v13979_v59, %v10496_v55 }
 0x2f8   :  { %v10641_v30 = vor.u32 %v14015_v4, %v10640_v45  ;;  %v15449_v12 = vadd.f32 %v15431_v14, %v6459_v57  ;;  %v6563_v1 = vadd.f32 %v15439_v51, %v3418_v9  ;;  %v13997_v45 = vld [vmem:[#allocation12 + $0x13c] sm:$0xf]  ;;  %v10594_v4 = vld [vmem:[#allocation12 + $0x168] sm:$0xf0]  ;;  %v11642_v57 = vld [vmem:[#allocation12 + $0x9a0] sm:$0xf0]  ;;  %v11697_v27 = vor.u32 %v14279_v63, %v11696_v60 }
 0x2f9   :  { %6749 = vmatpush.bf16.msra.mxu3 %v11885_v56  ;;  %v14272_v56 = vld [vmem:[#allocation12 + $0x9d4] sm:$0xf]  ;;  %v10597_v11 = vor.u32 %v13997_v45, %v10594_v4  ;;  %v6577_v9 = vpop.f32.mrf.mxu1  ;;  %v14147_v26 = vld [vmem:[#allocation12 + $0x5e4] sm:$0xf0]  ;;  %v11120_v55 = vld [vmem:[#allocation12 + $0x558] sm:$0xf] }
 0x2fa   :  { %6790 = vmatpush.bf16.msrb.mxu2 %v10641_v30  ;;  %6828 = vmatpush.bf16.msra.mxu1 %v11841_v23  ;;  %v15457_v20 = vadd.f32 %v6575_v35, %v6563_v1  ;;  %v11693_v52 = vor.u32 %v14272_v56, %v11690_v50  ;;  %v13967_v30 = vld [vmem:[#allocation12 + $0x44] sm:$0xf0]  ;;  %v12320_v23 = vld [vmem:[#allocation12 + $0xeb8] sm:$0xf]  ;;  %v10498_v35 = vld [vmem:[#allocation12 + $0xa8] sm:$0xf0]  ;;  %v11169_v50 = vor.u32 %v14147_v26, %v11168_v25 }
 0x2fb   :  { %6818 = vmatpush.bf16.msra.mxu0 %v11313_v33  ;;  %v11792_v33 = vld [vmem:[#allocation12 + $0xa98] sm:$0xf]  ;;  %v6447_v14 = vpop.f32.mrf.mxu3  ;;  %v12321_v22 = vor.u32 %v14435_v13, %v12320_v23  ;;  %v14135_v59 = vld [vmem:[#allocation12 + $0x584] sm:$0xf0]  ;;  %v14129_v45 = vld [vmem:[#allocation12 + $0x55c] sm:$0xf] }
 0x2fc   :  { %v11793_v24 = vor.u32 %v14303_v29, %v11792_v33  ;;  %v13985_v33 = vld [vmem:[#allocation12 + $0xdc] sm:$0xf]  ;;  %v10546_v29 = vld [vmem:[#allocation12 + $0x108] sm:$0xf0]  ;;  %v11600_v14 = vld [vmem:[#allocation12 + $0x918] sm:$0xf] }
 0x2fd   :  { %6750 = vmatpush.bf16.msra.mxu3 %v11837_v8  ;;  %v12224_v63 = vld [vmem:[#allocation12 + $0xdf8] sm:$0xf]  ;;  %v11122_v4 = vld [vmem:[#allocation12 + $0x588] sm:$0xf0]  ;;  %v14117_v23 = vld [vmem:[#allocation12 + $0x4fc] sm:$0xf] }
 0x2fe   :  { %6791 = vmatpush.bf16.msrb.mxu2 %v10593_v58  ;;  %6829 = vmatpush.bf16.msra.mxu1 %v11793_v24  ;;  %v6538_v58 = vpop.f32.mrf.mxu2  ;;  %v14255_v24 = vld [vmem:[#allocation12 + $0x944] sm:$0xf0]  ;;  %v11074_v13 = vld [vmem:[#allocation12 + $0x528] sm:$0xf0]  ;;  %v14417_v9 = vld [vmem:[#allocation12 + $0xe5c] sm:$0xf] }
 0x2ff   :  { %6819 = vmatpush.bf16.msra.mxu0 %v11265_v31  ;;  %v14291_v31 = vld [vmem:[#allocation12 + $0xa64] sm:$0xf0]  ;;  %v14405_v25 = vld [vmem:[#allocation12 + $0xdfc] sm:$0xf]  ;;  %v12226_v26 = vld [vmem:[#allocation12 + $0xe28] sm:$0xf0] }
 0x300   :  { %v11745_v51 = vor.u32 %v14291_v31, %v11744_v37  ;;  %v14423_v37 = vld [vmem:[#allocation12 + $0xe84] sm:$0xf0]  ;;  %v13973_v31 = vld [vmem:[#allocation12 + $0x7c] sm:$0xf] }
 0x301   :  { %6751 = vmatpush.bf16.msra.mxu3 %v11789_v7  ;;  %v10449_v7 = vor.u32 %v13967_v30, %v10448_v10  ;;  %v11125_v30 = vor.u32 %v14129_v45, %v11122_v4  ;;  %v14081_v45 = vld [vmem:[#allocation12 + $0x3dc] sm:$0xf]  ;;  %v10930_v4 = vld [vmem:[#allocation12 + $0x408] sm:$0xf0] }
 0x302   :  { %6792 = vmatpush.bf16.msrb.mxu2 %v10545_v49  ;;  %6830 = vmatpush.bf16.msra.mxu1 %v11745_v51  ;;  %v11601_v51 = vor.u32 %v14255_v24, %v11600_v14  ;;  %v14387_v14 = vld [vmem:[#allocation12 + $0xd64] sm:$0xf0] }
 0x303   :  { %6820 = vmatpush.bf16.msra.mxu0 %v11217_v39  ;;  %v6485_v39 = vadd.f32 %v15434_v28, %v3417_v32  ;;  %v15460_v2 = vpop.f32.mrf.mxu0  ;;  %v14267_v28 = vld [vmem:[#allocation12 + $0x9a4] sm:$0xf0]  ;;  %v11597_v32 = vor.u32 %v14248_v17, %v11594_v34  ;;  %v11077_v17 = vor.u32 %v14117_v23, %v11074_v13  ;;  %v12128_v34 = vld [vmem:[#allocation12 + $0xd38] sm:$0xf] }
 0x304   :  { %v11649_v21 = vor.u32 %v14267_v28, %v11648_v41  ;;  %v12176_v41 = vld [vmem:[#allocation12 + $0xd98] sm:$0xf] }
 0x305   :  { %6752 = vmatpush.bf16.msra.mxu3 %v11741_v40  ;;  %v14141_v40 = vld [vmem:[#allocation12 + $0x5bc] sm:$0xf] }
 0x306   :  { %6821 = vmatmul.bf16.vlgmr.msra.gmra.mxu0 %v15348_v36  ;;  %6793 = vmatpush.bf16.msrb.mxu2 %v10497_v5  ;;  %v11173_v60 = vor.u32 %v14141_v40, %v11170_v47  ;;  %v14429_v5 = vld [vmem:[#allocation12 + $0xebc] sm:$0xf]  ;;  %v10978_v47 = vld [vmem:[#allocation12 + $0x468] sm:$0xf0] }
 0x307   :  { %6865 = vmatpush.bf16.msrb.mxu0 %v10789_v19  ;;  %v6497_v19 = vpop.f32.mrf.mxu3  ;;  %6831 = vmatpush.bf16.msra.mxu1 %v11697_v27  ;;  %v14123_v27 = vld [vmem:[#allocation12 + $0x524] sm:$0xf0]  ;;  %v14093_v40 = vld [vmem:[#allocation12 + $0x43c] sm:$0xf] }
 0x308   :  { %v6498_v8 = vadd.f32 %v6497_v19, %v6485_v39  ;;  %v14411_v39 = vld [vmem:[#allocation12 + $0xe24] sm:$0xf0]  ;;  %v11121_v19 = vor.u32 %v14135_v59, %v11120_v55  ;;  %v10928_v55 = vld [vmem:[#allocation12 + $0x3d8] sm:$0xf] }
 0x309   :  { %6753 = vmatpush.bf16.msra.mxu3 %v11693_v52  ;;  %v13961_v52 = vld [vmem:[#allocation12 + $0x1c] sm:$0xf]  ;;  %v14087_v59 = vld [vmem:[#allocation12 + $0x404] sm:$0xf0] }
 0x30a   :  { %v6511_v62 = vadd.f32 %v15423_v44, %v6498_v8  ;;  %v10549_v44 = vor.u32 %v13985_v33, %v10546_v29  ;;  %6794 = vmatpush.bf16.msrb.mxu2 %v10449_v7  ;;  %v11072_v8 = vld [vmem:[#allocation12 + $0x4f8] sm:$0xf]  ;;  %v14111_v7 = vld [vmem:[#allocation12 + $0x4c4] sm:$0xf0] }
 0x30b   :  { %6866 = vmatpush.bf16.msrb.mxu0 %v10741_v42  ;;  %v11645_v42 = vor.u32 %v14260_v6, %v11642_v57  ;;  %v6616_v49 = vpop.f32.mrf.mxu0  ;;  %6832 = vmatpush.bf16.msra.mxu1 %v11649_v21  ;;  %v12322_v6 = vld [vmem:[#allocation12 + $0xee8] sm:$0xf0]  ;;  %v12225_v57 = vor.u32 %v14411_v39, %v12224_v63  ;;  %v11024_v29 = vld [vmem:[#allocation12 + $0x498] sm:$0xf]  ;;  %v14105_v21 = vld [vmem:[#allocation12 + $0x49c] sm:$0xf] }
 0x30c   :  { %v6524_v1 = vadd.f32 %v15441_v46, %v6511_v62  ;;  %v12325_v28 = vor.u32 %v14429_v5, %v12322_v6  ;;  %v11073_v62 = vor.u32 %v14123_v27, %v11072_v8  ;;  %v11025_v24 = vor.u32 %v14111_v7, %v11024_v29  ;;  %v12032_v63 = vld [vmem:[#allocation12 + $0xc78] sm:$0xf]  ;;  %v14363_v39 = vld [vmem:[#allocation12 + $0xca4] sm:$0xf0]  ;;  %v14381_v5 = vld [vmem:[#allocation12 + $0xd3c] sm:$0xf] }
 0x30d   :  { %6754 = vmatpush.bf16.msra.mxu3 %v11645_v42  ;;  %6795 = vmatmul.bf16.vlgmr.msrb.gmra.mxu2 %v15342_v16  ;;  %v12274_v42 = vld [vmem:[#allocation12 + $0xe88] sm:$0xf0]  ;;  %v10880_v8 = vld [vmem:[#allocation12 + $0x378] sm:$0xf]  ;;  %v14075_v27 = vld [vmem:[#allocation12 + $0x3a4] sm:$0xf0] }
 0x30e   :  { %v15464_v48 = vadd.f32 %v6536_v0, %v6524_v1  ;;  %6839 = vmatpush.bf16.msra.mxu2 %v12321_v22  ;;  %v10450_v0 = vld [vmem:[#allocation12 + $0x48] sm:$0xf0]  ;;  %v12277_v58 = vor.u32 %v14417_v9, %v12274_v42  ;;  %v12129_v1 = vor.u32 %v14387_v14, %v12128_v34  ;;  %v14237_v9 = vld [vmem:[#allocation12 + $0x8bc] sm:$0xf]  ;;  %v10832_v14 = vld [vmem:[#allocation12 + $0x318] sm:$0xf] }
 0x30f   :  { %6867 = vmatpush.bf16.msrb.mxu0 %v10693_v3  ;;  %v12272_v3 = vld [vmem:[#allocation12 + $0xe58] sm:$0xf]  ;;  %v6499_v56 = vpop.f32.mrf.mxu3  ;;  %6833 = vmatpush.bf16.msra.mxu1 %v11601_v51  ;;  %v10453_v10 = vor.u32 %v13961_v52, %v10450_v0  ;;  %v11026_v22 = vld [vmem:[#allocation12 + $0x4c8] sm:$0xf0]  ;;  %v14369_v29 = vld [vmem:[#allocation12 + $0xcdc] sm:$0xf] }
 0x310   :  { %v12273_v46 = vor.u32 %v14423_v37, %v12272_v3  ;;  %v14099_v3 = vld [vmem:[#allocation12 + $0x464] sm:$0xf0]  ;;  %v11029_v37 = vor.u32 %v14105_v21, %v11026_v22  ;;  %v14393_v56 = vld [vmem:[#allocation12 + $0xd9c] sm:$0xf]  ;;  %v15470_v51 = vpop.f32.mrf.mxu1  ;;  %v12130_v6 = vld [vmem:[#allocation12 + $0xd68] sm:$0xf0] }
 0x311   :  { %6755 = vmatpush.bf16.msra.mxu3 %v11597_v32  ;;  %v14375_v32 = vld [vmem:[#allocation12 + $0xd04] sm:$0xf0]  ;;  %v12133_v13 = vor.u32 %v14381_v5, %v12130_v6  ;;  %v11554_v42 = vld [vmem:[#allocation12 + $0x8e8] sm:$0xf0]  ;;  %v14057_v21 = vld [vmem:[#allocation12 + $0x31c] sm:$0xf] }
 0x312   :  { %6840 = vmatpush.bf16.msra.mxu2 %v12273_v46  ;;  %6834 = vmatmul.bf16.vlgmr.msra.gmra.mxu1 %v15356_v61  ;;  %v12082_v7 = vld [vmem:[#allocation12 + $0xd08] sm:$0xf0] }
 0x313   :  { %6868 = vmatpush.bf16.msrb.mxu0 %v10645_v53  ;;  %v10501_v53 = vor.u32 %v13973_v31, %v10498_v35  ;;  %6878 = vmatpush.bf16.msrb.mxu1 %v11173_v60  ;;  %v12080_v31 = vld [vmem:[#allocation12 + $0xcd8] sm:$0xf]  ;;  %v12229_v35 = vor.u32 %v14405_v25, %v12226_v26  ;;  %v10981_v60 = vor.u32 %v14093_v40, %v10978_v47  ;;  %v10834_v25 = vld [vmem:[#allocation12 + $0x348] sm:$0xf0]  ;;  %v14525_v40 = vld [vmem:[#allocation12 + $0x11bc] sm:$0xf] }
 0x314   :  { %6756 = vmatmul.bf16.vlgmr.msra.gmra.mxu3 %v15356_v61  ;;  %v12081_v46 = vor.u32 %v14375_v32, %v12080_v31  ;;  %v12704_v26 = vld [vmem:[#allocation12 + $0x11b8] sm:$0xf]  ;;  %v14357_v31 = vld [vmem:[#allocation12 + $0xc7c] sm:$0xf]  ;;  %v12706_v47 = vld [vmem:[#allocation12 + $0x11e8] sm:$0xf0] }
 0x315   :  { %6800 = vmatpush.bf16.msrb.mxu3 %v11169_v50  ;;  %v12178_v50 = vld [vmem:[#allocation12 + $0xdc8] sm:$0xf0] }
 0x316   :  { %6841 = vmatpush.bf16.msra.mxu2 %v12225_v57  ;;  %v12181_v0 = vor.u32 %v14393_v56, %v12178_v50  ;;  %v12033_v57 = vor.u32 %v14363_v39, %v12032_v63  ;;  %v12709_v63 = vor.u32 %v14525_v40, %v12706_v47  ;;  %v14213_v39 = vld [vmem:[#allocation12 + $0x7fc] sm:$0xf]  ;;  %v12658_v5 = vld [vmem:[#allocation12 + $0x1188] sm:$0xf0] }
 0x317   :  { %6869 = vmatpush.bf16.msrb.mxu0 %v10597_v11  ;;  %v14399_v11 = vld [vmem:[#allocation12 + $0xdc4] sm:$0xf0]  ;;  %6879 = vmatpush.bf16.msrb.mxu1 %v11125_v30  ;;  %v6549_v30 = vpop.f32.mrf.mxu3  ;;  %v11314_v40 = vld [vmem:[#allocation12 + $0x708] sm:$0xf0] }
 0x318   :  { %v12177_v33 = vor.u32 %v14399_v11, %v12176_v41  ;;  %v10933_v41 = vor.u32 %v14081_v45, %v10930_v4  ;;  %v11984_v11 = vld [vmem:[#allocation12 + $0xc18] sm:$0xf]  ;;  %v15478_v23 = vadd.f32 %v6549_v30, %v15464_v48  ;;  %v11557_v48 = vor.u32 %v14237_v9, %v11554_v42  ;;  %v14345_v45 = vld [vmem:[#allocation12 + $0xc1c] sm:$0xf]  ;;  %v11986_v4 = vld [vmem:[#allocation12 + $0xc48] sm:$0xf0] }
 0x319   :  { %6801 = vmatpush.bf16.msrb.mxu3 %v11121_v19  ;;  %v10929_v19 = vor.u32 %v14087_v59, %v10928_v55  ;;  %v12656_v59 = vld [vmem:[#allocation12 + $0x1158] sm:$0xf]  ;;  %v14501_v9 = vld [vmem:[#allocation12 + $0x10fc] sm:$0xf]  ;;  %v12610_v42 = vld [vmem:[#allocation12 + $0x1128] sm:$0xf0] }
 0x31a   :  { %6842 = vmatpush.bf16.msra.mxu2 %v12177_v33  ;;  %v10881_v33 = vor.u32 %v14075_v27, %v10880_v8  ;;  %v14244_v8 = vld [vmem:[#allocation12 + $0x8ec] sm:$0xf0]  ;;  %v12608_v30 = vld [vmem:[#allocation12 + $0x10f8] sm:$0xf] }
 0x31b   :  { %6870 = vmatpush.bf16.msrb.mxu0 %v10549_v44  ;;  %v10976_v44 = vld [vmem:[#allocation12 + $0x438] sm:$0xf]  ;;  %6880 = vmatpush.bf16.msrb.mxu1 %v11077_v17  ;;  %v6629_v17 = vpop.f32.mrf.mxu1 }
 0x31c   :  { %v10977_v49 = vor.u32 %v14099_v3, %v10976_v44  ;;  %v12085_v44 = vor.u32 %v14369_v29, %v12082_v7  ;;  %v14225_v3 = vld [vmem:[#allocation12 + $0x85c] sm:$0xf]  ;;  %v11512_v29 = vld [vmem:[#allocation12 + $0x860] sm:$0xf]  ;;  %v14232_v7 = vld [vmem:[#allocation12 + $0x88c] sm:$0xf0] }
 0x31d   :  { %6802 = vmatpush.bf16.msrb.mxu3 %v11073_v62  ;;  %v10882_v62 = vld [vmem:[#allocation12 + $0x3a8] sm:$0xf0] }
 0x31e   :  { %6843 = vmatpush.bf16.msra.mxu2 %v12129_v1  ;;  %v14531_v1 = vld [vmem:[#allocation12 + $0x11e4] sm:$0xf0] }
 0x31f   :  { %6871 = vmatpush.bf16.msrb.mxu0 %v10501_v53  ;;  %6881 = vmatpush.bf16.msrb.mxu1 %v11029_v37  ;;  %v6588_v53 = vpop.f32.mrf.mxu2  ;;  %v11506_v37 = vld [vmem:[#allocation12 + $0x888] sm:$0xf0]  ;;  %v6551_v50 = vpop.f32.mrf.mxu3 }
 0x320   :  { %v15473_v52 = vadd.f32 %v6588_v53, %v15457_v20  ;;  %v14351_v20 = vld [vmem:[#allocation12 + $0xc44] sm:$0xf0]  ;;  %v11509_v55 = vor.u32 %v14225_v3, %v11506_v37  ;;  %v12512_v37 = vld [vmem:[#allocation12 + $0x1038] sm:$0xf] }
 0x321   :  { %6803 = vmatpush.bf16.msrb.mxu3 %v11025_v24  ;;  %v11985_v34 = vor.u32 %v14351_v20, %v11984_v11  ;;  %v14519_v53 = vld [vmem:[#allocation12 + $0x1184] sm:$0xf0]  ;;  %v11989_v11 = vor.u32 %v14345_v45, %v11986_v4  ;;  %v14165_v45 = vld [vmem:[#allocation12 + $0x67c] sm:$0xf]  ;;  %v11266_v4 = vld [vmem:[#allocation12 + $0x6a8] sm:$0xf0] }
 0x322   :  { %6844 = vmatpush.bf16.msra.mxu2 %v12081_v46  ;;  %v10837_v46 = vor.u32 %v14057_v21, %v10834_v25  ;;  %v12657_v6 = vor.u32 %v14519_v53, %v12656_v59  ;;  %v14189_v21 = vld [vmem:[#allocation12 + $0x73c] sm:$0xf]  ;;  %v12562_v25 = vld [vmem:[#allocation12 + $0x10c8] sm:$0xf0] }
 0x323   :  { %6872 = vmatpush.bf16.msrb.mxu0 %v10453_v10  ;;  %v15475_v10 = vpop.f32.mrf.mxu0  ;;  %6882 = vmatpush.bf16.msrb.mxu1 %v10981_v60 }
 0x325   :  { %6804 = vmatpush.bf16.msrb.mxu3 %v10977_v49  ;;  %v12705_v49 = vor.u32 %v14531_v1, %v12704_v26  ;;  %v11464_v1 = vld [vmem:[#allocation12 + $0x800] sm:$0xf] }
 0x326   :  { %6873 = vmatmul.bf16.vlgmr.msrb.gmra.mxu0 %v15342_v16  ;;  %6845 = vmatpush.bf16.msra.mxu2 %v12033_v57  ;;  %v11560_v57 = vld [vmem:[#allocation12 + $0x8c0] sm:$0xf] }
 0x327   :  { %6917 = vmatpush.bf16.msra.mxu0 %v12325_v28  ;;  %v14069_v28 = vld [vmem:[#allocation12 + $0x37c] sm:$0xf]  ;;  %6883 = vmatpush.bf16.msrb.mxu1 %v10933_v41  ;;  %v6590_v22 = vpop.f32.mrf.mxu2  ;;  %v14507_v41 = vld [vmem:[#allocation12 + $0x1124] sm:$0xf0] }
 0x328   :  { %v10885_v24 = vor.u32 %v14069_v28, %v10882_v62  ;;  %v14201_v28 = vld [vmem:[#allocation12 + $0x79c] sm:$0xf]  ;;  %v11561_v62 = vor.u32 %v14244_v8, %v11560_v57  ;;  %v11362_v22 = vld [vmem:[#allocation12 + $0x768] sm:$0xf0]  ;;  %v11368_v8 = vld [vmem:[#allocation12 + $0x740] sm:$0xf] }
 0x329   :  { %6805 = vmatpush.bf16.msrb.mxu3 %v10929_v19  ;;  %v14513_v19 = vld [vmem:[#allocation12 + $0x115c] sm:$0xf]  ;;  %v11365_v3 = vor.u32 %v14189_v21, %v11362_v22  ;;  %v14184_v21 = vld [vmem:[#allocation12 + $0x70c] sm:$0xf0] }
 0x32a   :  { %6846 = vmatpush.bf16.msra.mxu2 %v11985_v34  ;;  %v12661_v20 = vor.u32 %v14513_v19, %v12658_v5  ;;  %v12560_v34 = vld [vmem:[#allocation12 + $0x1098] sm:$0xf]  ;;  %v14465_v5 = vld [vmem:[#allocation12 + $0xfdc] sm:$0xf] }
 0x32b   :  { %6918 = vmatpush.bf16.msra.mxu0 %v12277_v58  ;;  %v14063_v58 = vld [vmem:[#allocation12 + $0x344] sm:$0xf0]  ;;  %v6668_v56 = vpop.f32.mrf.mxu0  ;;  %6884 = vmatpush.bf16.msrb.mxu1 %v10885_v24  ;;  %v11513_v24 = vor.u32 %v14232_v7, %v11512_v29  ;;  %v12418_v7 = vld [vmem:[#allocation12 + $0xfa8] sm:$0xf0] }
 0x32c   :  { %v10833_v32 = vor.u32 %v14063_v58, %v10832_v14  ;;  %v14495_v14 = vld [vmem:[#allocation12 + $0x10c4] sm:$0xf0]  ;;  %v12613_v58 = vor.u32 %v14501_v9, %v12610_v42  ;;  %v12514_v56 = vld [vmem:[#allocation12 + $0x1068] sm:$0xf0]  ;;  %v14453_v42 = vld [vmem:[#allocation12 + $0xf7c] sm:$0xf] }
 0x32d   :  { %6806 = vmatpush.bf16.msrb.mxu3 %v10881_v33  ;;  %6847 = vmatmul.bf16.vlgmr.msra.gmra.mxu2 %v15378_v54  ;;  %v12609_v33 = vor.u32 %v14507_v41, %v12608_v30  ;;  %v12561_v26 = vor.u32 %v14495_v14, %v12560_v34  ;;  %v11269_v30 = vor.u32 %v14165_v45, %v11266_v4  ;;  %v12416_v41 = vld [vmem:[#allocation12 + $0xf78] sm:$0xf]  ;;  %v11218_v9 = vld [vmem:[#allocation12 + $0x648] sm:$0xf0]  ;;  %v14052_v34 = vld [vmem:[#allocation12 + $0x2ec] sm:$0xf0] }
 0x32e   :  { %6891 = vmatpush.bf16.msrb.mxu2 %v11557_v48  ;;  %v14489_v48 = vld [vmem:[#allocation12 + $0x109c] sm:$0xf]  ;;  %v11890_v4 = vld [vmem:[#allocation12 + $0xb88] sm:$0xf0] }
 0x32f   :  { %6919 = vmatpush.bf16.msra.mxu0 %v12229_v35  ;;  %v12034_v35 = vld [vmem:[#allocation12 + $0xca8] sm:$0xf0]  ;;  %6885 = vmatpush.bf16.msrb.mxu1 %v10837_v46  ;;  %v11416_v46 = vld [vmem:[#allocation12 + $0x7a0] sm:$0xf] }
 0x330   :  { %v12037_v60 = vor.u32 %v14357_v31, %v12034_v35  ;;  %v14483_v31 = vld [vmem:[#allocation12 + $0x1064] sm:$0xf0]  ;;  %v14177_v35 = vld [vmem:[#allocation12 + $0x6dc] sm:$0xf]  ;;  %v15484_v59 = vpop.f32.mrf.mxu1 }
 0x331   :  { %6807 = vmatpush.bf16.msrb.mxu3 %v10833_v32  ;;  %v12565_v32 = vor.u32 %v14489_v48, %v12562_v25  ;;  %v12513_v50 = vor.u32 %v14483_v31, %v12512_v37  ;;  %v11317_v53 = vor.u32 %v14177_v35, %v11314_v40  ;;  %v12368_v25 = vld [vmem:[#allocation12 + $0xf18] sm:$0xf]  ;;  %v12370_v37 = vld [vmem:[#allocation12 + $0xf48] sm:$0xf0]  ;;  %v14333_v31 = vld [vmem:[#allocation12 + $0xbbc] sm:$0xf] }
 0x332   :  { %6892 = vmatpush.bf16.msrb.mxu2 %v11509_v55  ;;  %6886 = vmatmul.bf16.vlgmr.msrb.gmra.mxu1 %v15344_v18  ;;  %v14208_v55 = vld [vmem:[#allocation12 + $0x7cc] sm:$0xf0] }
 0x333   :  { %6920 = vmatpush.bf16.msra.mxu0 %v12181_v0  ;;  %v11458_v0 = vld [vmem:[#allocation12 + $0x828] sm:$0xf0]  ;;  %6930 = vmatpush.bf16.msra.mxu1 %v12709_v63  ;;  %v14471_v63 = vld [vmem:[#allocation12 + $0x1004] sm:$0xf0]  ;;  %v11417_v19 = vor.u32 %v14208_v55, %v11416_v46  ;;  %v11944_v46 = vld [vmem:[#allocation12 + $0xbc0] sm:$0xf] }
 0x334   :  { %v11461_v27 = vor.u32 %v14213_v39, %v11458_v0  ;;  %6808 = vmatmul.bf16.vlgmr.msrb.gmra.mxu3 %v15344_v18  ;;  %v15486_v39 = vpop.f32.mrf.mxu2  ;;  %v14340_v55 = vld [vmem:[#allocation12 + $0xbec] sm:$0xf0] }
 0x335   :  { %6852 = vmatpush.bf16.msra.mxu3 %v12705_v49  ;;  %v14477_v49 = vld [vmem:[#allocation12 + $0x103c] sm:$0xf] }
 0x336   :  { %6893 = vmatpush.bf16.msrb.mxu2 %v11461_v27  ;;  %v12517_v0 = vor.u32 %v14477_v49, %v12514_v56  ;;  %v14196_v27 = vld [vmem:[#allocation12 + $0x76c] sm:$0xf0]  ;;  %v11272_v49 = vld [vmem:[#allocation12 + $0x680] sm:$0xf] }
 0x337   :  { %6921 = vmatpush.bf16.msra.mxu0 %v12133_v13  ;;  %v11410_v13 = vld [vmem:[#allocation12 + $0x7c8] sm:$0xf0]  ;;  %6931 = vmatpush.bf16.msra.mxu1 %v12661_v20  ;;  %v11369_v29 = vor.u32 %v14196_v27, %v11368_v8  ;;  %v11224_v8 = vld [vmem:[#allocation12 + $0x620] sm:$0xf]  ;;  %v14160_v27 = vld [vmem:[#allocation12 + $0x64c] sm:$0xf0] }
 0x338   :  { %v11413_v17 = vor.u32 %v14201_v28, %v11410_v13  ;;  %v6601_v28 = vpop.f32.mrf.mxu3 }
 0x339   :  { %6853 = vmatpush.bf16.msra.mxu3 %v12657_v6  ;;  %v12466_v6 = vld [vmem:[#allocation12 + $0x1008] sm:$0xf0] }
 0x33a   :  { %6894 = vmatpush.bf16.msrb.mxu2 %v11413_v17  ;;  %v12469_v13 = vor.u32 %v14465_v5, %v12466_v6  ;;  %v10792_v17 = vld [vmem:[#allocation12 + $0x2c0] sm:$0xf]  ;;  %v11945_v5 = vor.u32 %v14340_v55, %v11944_v46 }
 0x33b   :  { %6922 = vmatpush.bf16.msra.mxu0 %v12085_v44  ;;  %v14220_v44 = vld [vmem:[#allocation12 + $0x82c] sm:$0xf0]  ;;  %6932 = vmatpush.bf16.msra.mxu1 %v12613_v58  ;;  %v11320_v58 = vld [vmem:[#allocation12 + $0x6e0] sm:$0xf] }
 0x33c   :  { %v11465_v47 = vor.u32 %v14220_v44, %v11464_v1  ;;  %v14441_v1 = vld [vmem:[#allocation12 + $0xf1c] sm:$0xf]  ;;  %v6642_v44 = vpop.f32.mrf.mxu2  ;;  %v11321_v40 = vor.u32 %v14184_v21, %v11320_v58  ;;  %v10696_v6 = vld [vmem:[#allocation12 + $0x200] sm:$0xf]  ;;  %v14316_v58 = vld [vmem:[#allocation12 + $0xb2c] sm:$0xf0] }
 0x33d   :  { %6854 = vmatpush.bf16.msra.mxu3 %v12609_v33  ;;  %v6602_v33 = vadd.f32 %v6601_v28, %v15473_v52  ;;  %v12421_v52 = vor.u32 %v14453_v42, %v12418_v7  ;;  %v14046_v28 = vld [vmem:[#allocation12 + $0x2c4] sm:$0xf]  ;;  %v11842_v42 = vld [vmem:[#allocation12 + $0xb28] sm:$0xf0]  ;;  %v10648_v7 = vld [vmem:[#allocation12 + $0x1a0] sm:$0xf] }
 0x33e   :  { %6895 = vmatpush.bf16.msrb.mxu2 %v11365_v3  ;;  %v10793_v3 = vor.u32 %v14052_v34, %v10792_v17  ;;  %v14016_v17 = vld [vmem:[#allocation12 + $0x1cc] sm:$0xf0]  ;;  %v10600_v44 = vld [vmem:[#allocation12 + $0x140] sm:$0xf] }
 0x33f   :  { %6923 = vmatpush.bf16.msra.mxu0 %v12037_v60  ;;  %v12464_v60 = vld [vmem:[#allocation12 + $0xfd8] sm:$0xf]  ;;  %6933 = vmatpush.bf16.msra.mxu1 %v12565_v32  ;;  %v6615_v22 = vadd.f32 %v15460_v2, %v6602_v33  ;;  %v11938_v32 = vld [vmem:[#allocation12 + $0xbe8] sm:$0xf0]  ;;  %v14040_v2 = vld [vmem:[#allocation12 + $0x28c] sm:$0xf0]  ;;  %v11225_v33 = vor.u32 %v14160_v27, %v11224_v8 }
 0x340   :  { %v12465_v57 = vor.u32 %v14471_v63, %v12464_v60  ;;  %v6603_v63 = vpop.f32.mrf.mxu3  ;;  %v10552_v55 = vld [vmem:[#allocation12 + $0xe0] sm:$0xf]  ;;  %v14273_v8 = vld [vmem:[#allocation12 + $0x9dc] sm:$0xf]  ;;  %v11698_v27 = vld [vmem:[#allocation12 + $0xa08] sm:$0xf0] }
 0x341   :  { %6855 = vmatpush.bf16.msra.mxu3 %v12561_v26  ;;  %v14447_v26 = vld [vmem:[#allocation12 + $0xf44] sm:$0xf0]  ;;  %v15493_v35 = vadd.f32 %v15470_v51, %v6615_v22  ;;  %v14321_v51 = vld [vmem:[#allocation12 + $0xb5c] sm:$0xf]  ;;  %v14034_v22 = vld [vmem:[#allocation12 + $0x264] sm:$0xf] }
 0x342   :  { %6896 = vmatpush.bf16.msrb.mxu2 %v11317_v53  ;;  %v12369_v56 = vor.u32 %v14447_v26, %v12368_v25  ;;  %v11941_v53 = vor.u32 %v14333_v31, %v11938_v32  ;;  %v14297_v25 = vld [vmem:[#allocation12 + $0xa9c] sm:$0xf]  ;;  %v11794_v26 = vld [vmem:[#allocation12 + $0xac8] sm:$0xf0]  ;;  %v14304_v31 = vld [vmem:[#allocation12 + $0xacc] sm:$0xf0] }
 0x343   :  { %6924 = vmatpush.bf16.msra.mxu0 %v11989_v11  ;;  %v14459_v11 = vld [vmem:[#allocation12 + $0xfa4] sm:$0xf0]  ;;  %v15488_v20 = vpop.f32.mrf.mxu0  ;;  %6934 = vmatpush.bf16.msra.mxu1 %v12517_v0  ;;  %v12373_v0 = vor.u32 %v14441_v1, %v12370_v37  ;;  %v11800_v37 = vld [vmem:[#allocation12 + $0xaa0] sm:$0xf]  ;;  %v3420_v32 = vperm.slane %v15451_v15, 5 }
 0x344   :  { %v12417_v14 = vor.u32 %v14459_v11, %v12416_v41  ;;  %v14328_v41 = vld [vmem:[#allocation12 + $0xb8c] sm:$0xf0]  ;;  %v11893_v11 = vor.u32 %v14321_v51, %v11890_v4  ;;  %v11801_v46 = vor.u32 %v14304_v31, %v11800_v37  ;;  %v11752_v63 = vld [vmem:[#allocation12 + $0xa40] sm:$0xf]  ;;  %v14010_v4 = vld [vmem:[#allocation12 + $0x1a4] sm:$0xf] }
 0x345   :  { %6856 = vmatpush.bf16.msra.mxu3 %v12513_v50  ;;  %v14172_v50 = vld [vmem:[#allocation12 + $0x6ac] sm:$0xf0]  ;;  %v10554_v37 = vld [vmem:[#allocation12 + $0x110] sm:$0xf0] }
 0x346   :  { %6925 = vmatmul.bf16.vlgmr.msra.gmra.mxu0 %v15378_v54  ;;  %6897 = vmatpush.bf16.msrb.mxu2 %v11269_v30  ;;  %v11896_v30 = vld [vmem:[#allocation12 + $0xb60] sm:$0xf] }
 0x347   :  { %6969 = vmatpush.bf16.msrb.mxu0 %v11561_v62  ;;  %v14153_v62 = vld [vmem:[#allocation12 + $0x61c] sm:$0xf]  ;;  %6935 = vmatpush.bf16.msra.mxu1 %v12469_v13  ;;  %v10794_v13 = vld [vmem:[#allocation12 + $0x2f0] sm:$0xf0] }
 0x348   :  { %v11221_v48 = vor.u32 %v14153_v62, %v11218_v9  ;;  %v14309_v9 = vld [vmem:[#allocation12 + $0xafc] sm:$0xf]  ;;  %v10797_v34 = vor.u32 %v14046_v28, %v10794_v13  ;;  %v10504_v28 = vld [vmem:[#allocation12 + $0x80] sm:$0xf]  ;;  %v13980_v13 = vld [vmem:[#allocation12 + $0xac] sm:$0xf0] }
 0x349   :  { %6857 = vmatpush.bf16.msra.mxu3 %v12465_v57  ;;  %v14028_v57 = vld [vmem:[#allocation12 + $0x22c] sm:$0xf0]  ;;  %v11845_v21 = vor.u32 %v14309_v9, %v11842_v42  ;;  %v11701_v42 = vor.u32 %v14273_v8, %v11698_v27 }
 0x34a   :  { %6898 = vmatpush.bf16.msrb.mxu2 %v11221_v48  ;;  %v10697_v62 = vor.u32 %v14028_v57, %v10696_v6  ;;  %v10649_v48 = vor.u32 %v14016_v17, %v10648_v7  ;;  %v14280_v9 = vld [vmem:[#allocation12 + $0xa0c] sm:$0xf0]  ;;  %v10505_v7 = vor.u32 %v13980_v13, %v10504_v28  ;;  %v14261_v17 = vld [vmem:[#allocation12 + $0x97c] sm:$0xf] }
 0x34b   :  { %6970 = vmatpush.bf16.msrb.mxu0 %v11513_v24  ;;  %v6681_v24 = vpop.f32.mrf.mxu1  ;;  %v6720_v60 = vpop.f32.mrf.mxu0  ;;  %6936 = vmatpush.bf16.msra.mxu1 %v12421_v52  ;;  %v14004_v52 = vld [vmem:[#allocation12 + $0x16c] sm:$0xf0] }
 0x34c   :  { %v10746_v24 = vld [vmem:[#allocation12 + $0x290] sm:$0xf0] }
 0x34d   :  { %6858 = vmatpush.bf16.msra.mxu3 %v12417_v14  ;;  %6899 = vmatmul.bf16.vlgmr.msrb.gmra.mxu2 %v15348_v36  ;;  %v11848_v14 = vld [vmem:[#allocation12 + $0xb00] sm:$0xf] }
 0x34e   :  { %6943 = vmatpush.bf16.msra.mxu2 %v10793_v3  ;;  %v11849_v1 = vor.u32 %v14316_v58, %v11848_v14  ;;  %v10749_v3 = vor.u32 %v14034_v22, %v10746_v24  ;;  %v10456_v22 = vld [vmem:[#allocation12 + $0x20] sm:$0xf]  ;;  %v13968_v24 = vld [vmem:[#allocation12 + $0x4c] sm:$0xf0] }
 0x34f   :  { %6971 = vmatpush.bf16.msrb.mxu0 %v11465_v47  ;;  %v10744_v47 = vld [vmem:[#allocation12 + $0x260] sm:$0xf]  ;;  %6937 = vmatpush.bf16.msra.mxu1 %v12373_v0  ;;  %v14292_v0 = vld [vmem:[#allocation12 + $0xa6c] sm:$0xf0] }
 0x350   :  { %v10745_v45 = vor.u32 %v14040_v2, %v10744_v47  ;;  %v14022_v47 = vld [vmem:[#allocation12 + $0x204] sm:$0xf]  ;;  %v10698_v2 = vld [vmem:[#allocation12 + $0x230] sm:$0xf0] }
 0x351   :  { %6859 = vmatpush.bf16.msra.mxu3 %v12369_v56  ;;  %v14285_v56 = vld [vmem:[#allocation12 + $0xa3c] sm:$0xf]  ;;  %v10701_v60 = vor.u32 %v14022_v47, %v10698_v2  ;;  %v11602_v2 = vld [vmem:[#allocation12 + $0x948] sm:$0xf0] }
 0x352   :  { %6944 = vmatpush.bf16.msra.mxu2 %v10745_v45  ;;  %6938 = vmatmul.bf16.vlgmr.msra.gmra.mxu1 %v15387_v38  ;;  %v6719_v45 = vadd.f32 %v15488_v20, %v3420_v32  ;;  %v14249_v47 = vld [vmem:[#allocation12 + $0x91c] sm:$0xf] }
 0x353   :  { %6972 = vmatpush.bf16.msrb.mxu0 %v11417_v19  ;;  %v11273_v19 = vor.u32 %v14172_v50, %v11272_v49  ;;  %6982 = vmatpush.bf16.msrb.mxu1 %v11945_v5  ;;  %v10601_v49 = vor.u32 %v14004_v52, %v10600_v44  ;;  %v11746_v50 = vld [vmem:[#allocation12 + $0xa68] sm:$0xf0]  ;;  %v3419_v5 = vperm.slane %v15451_v15, 4  ;;  %v6731_v6 = vpop.f32.mrf.mxu1  ;;  %v10602_v15 = vld [vmem:[#allocation12 + $0x170] sm:$0xf0] }
 0x354   :  { %6860 = vmatmul.bf16.vlgmr.msra.gmra.mxu3 %v15387_v38  ;;  %v11749_v51 = vor.u32 %v14285_v56, %v11746_v50  ;;  %v12328_v44 = vld [vmem:[#allocation12 + $0xec0] sm:$0xf]  ;;  %v14436_v52 = vld [vmem:[#allocation12 + $0xeec] sm:$0xf0] }
 0x355   :  { %6904 = vmatpush.bf16.msrb.mxu3 %v11941_v53  ;;  %v13992_v53 = vld [vmem:[#allocation12 + $0x10c] sm:$0xf0] }
 0x356   :  { %6945 = vmatpush.bf16.msra.mxu2 %v10697_v62  ;;  %v10553_v57 = vor.u32 %v13992_v53, %v10552_v55  ;;  %v11704_v62 = vld [vmem:[#allocation12 + $0x9e0] sm:$0xf]  ;;  %v14256_v55 = vld [vmem:[#allocation12 + $0x94c] sm:$0xf0] }
 0x357   :  { %6973 = vmatpush.bf16.msrb.mxu0 %v11369_v29  ;;  %v11897_v29 = vor.u32 %v14328_v41, %v11896_v30  ;;  %v15502_v30 = vadd.f32 %v6731_v6, %v6719_v45  ;;  %v6692_v41 = vpop.f32.mrf.mxu2  ;;  %v6653_v58 = vpop.f32.mrf.mxu3  ;;  %v11176_v53 = vld [vmem:[#allocation12 + $0x5c0] sm:$0xf]  ;;  %v14424_v45 = vld [vmem:[#allocation12 + $0xe8c] sm:$0xf0]  ;;  %v11178_v6 = vld [vmem:[#allocation12 + $0x5f0] sm:$0xf0] }
 0x359   :  { %6905 = vmatpush.bf16.msrb.mxu3 %v11893_v11  ;;  %6983 = vmatpush.bf16.msrb.mxu1 %v11897_v29  ;;  %v11753_v11 = vor.u32 %v14292_v0, %v11752_v63  ;;  %v6641_v29 = vadd.f32 %v15486_v39, %v3419_v5  ;;  %v12280_v0 = vld [vmem:[#allocation12 + $0xe60] sm:$0xf]  ;;  %v14142_v5 = vld [vmem:[#allocation12 + $0x5c4] sm:$0xf] }
 0x35a   :  { %6946 = vmatpush.bf16.msra.mxu2 %v10649_v48  ;;  %v11656_v48 = vld [vmem:[#allocation12 + $0x980] sm:$0xf]  ;;  %v12281_v13 = vor.u32 %v14424_v45, %v12280_v0 }
 0x35b   :  { %6974 = vmatpush.bf16.msrb.mxu0 %v11321_v40  ;;  %v11797_v40 = vor.u32 %v14297_v25, %v11794_v26  ;;  %v6654_v25 = vadd.f32 %v6653_v58, %v6641_v29  ;;  %v6733_v32 = vpop.f32.mrf.mxu1  ;;  %v10458_v29 = vld [vmem:[#allocation12 + $0x50] sm:$0xf0]  ;;  %v10984_v45 = vld [vmem:[#allocation12 + $0x440] sm:$0xf] }
 0x35c   :  { %v12330_v58 = vld [vmem:[#allocation12 + $0xef0] sm:$0xf0] }
 0x35d   :  { %6906 = vmatpush.bf16.msrb.mxu3 %v11845_v21  ;;  %6984 = vmatpush.bf16.msrb.mxu1 %v11849_v1  ;;  %v11705_v21 = vor.u32 %v14280_v9, %v11704_v62  ;;  %v14268_v1 = vld [vmem:[#allocation12 + $0x9ac] sm:$0xf0]  ;;  %v6667_v31 = vadd.f32 %v15475_v10, %v6654_v25 }
 0x35e   :  { %6947 = vmatpush.bf16.msra.mxu2 %v10601_v49  ;;  %v11608_v49 = vld [vmem:[#allocation12 + $0x920] sm:$0xf]  ;;  %v11657_v50 = vor.u32 %v14268_v1, %v11656_v48  ;;  %v14136_v62 = vld [vmem:[#allocation12 + $0x58c] sm:$0xf0] }
 0x35f   :  { %6975 = vmatpush.bf16.msrb.mxu0 %v11273_v19  ;;  %v10650_v19 = vld [vmem:[#allocation12 + $0x1d0] sm:$0xf0]  ;;  %v6694_v56 = vpop.f32.mrf.mxu2  ;;  %v6680_v10 = vadd.f32 %v15484_v59, %v6667_v31  ;;  %v11609_v28 = vor.u32 %v14256_v55, %v11608_v49  ;;  %v11181_v59 = vor.u32 %v14142_v5, %v11178_v6  ;;  %v14400_v1 = vld [vmem:[#allocation12 + $0xdcc] sm:$0xf0]  ;;  %v12136_v49 = vld [vmem:[#allocation12 + $0xd40] sm:$0xf] }
 0x360   :  { %v10653_v20 = vor.u32 %v14010_v4, %v10650_v19  ;;  %v11605_v4 = vor.u32 %v14249_v47, %v11602_v2  ;;  %v10506_v19 = vld [vmem:[#allocation12 + $0xb0] sm:$0xf0]  ;;  %v14112_v47 = vld [vmem:[#allocation12 + $0x4cc] sm:$0xf0]  ;;  %v14094_v6 = vld [vmem:[#allocation12 + $0x444] sm:$0xf] }
 0x361   :  { %6907 = vmatpush.bf16.msrb.mxu3 %v11797_v40  ;;  %6985 = vmatpush.bf16.msrb.mxu1 %v11801_v46  ;;  %v10457_v40 = vor.u32 %v13968_v24, %v10456_v22  ;;  %v12329_v46 = vor.u32 %v14436_v52, %v12328_v44  ;;  %v15509_v8 = vadd.f32 %v6692_v41, %v6680_v10  ;;  %v14130_v41 = vld [vmem:[#allocation12 + $0x564] sm:$0xf]  ;;  %v11080_v22 = vld [vmem:[#allocation12 + $0x500] sm:$0xf]  ;;  %v14124_v24 = vld [vmem:[#allocation12 + $0x52c] sm:$0xf0] }
 0x362   :  { %6948 = vmatpush.bf16.msra.mxu2 %v10553_v57  ;;  %v14118_v52 = vld [vmem:[#allocation12 + $0x504] sm:$0xf]  ;;  %v12282_v31 = vld [vmem:[#allocation12 + $0xe90] sm:$0xf0]  ;;  %v14388_v56 = vld [vmem:[#allocation12 + $0xd6c] sm:$0xf0] }
 0x363   :  { %6976 = vmatpush.bf16.msrb.mxu0 %v11225_v33  ;;  %v13998_v33 = vld [vmem:[#allocation12 + $0x144] sm:$0xf]  ;;  %v15505_v14 = vpop.f32.mrf.mxu0  ;;  %v11034_v55 = vld [vmem:[#allocation12 + $0x4d0] sm:$0xf0]  ;;  %v12137_v0 = vor.u32 %v14388_v56, %v12136_v49 }
 0x364   :  { %v10605_v26 = vor.u32 %v13998_v33, %v10602_v15  ;;  %v14412_v33 = vld [vmem:[#allocation12 + $0xe2c] sm:$0xf0]  ;;  %v13962_v15 = vld [vmem:[#allocation12 + $0x24] sm:$0xf] }
 0x365   :  { %6908 = vmatpush.bf16.msrb.mxu3 %v11749_v51  ;;  %6986 = vmatpush.bf16.msrb.mxu1 %v11753_v11  ;;  %v13974_v51 = vld [vmem:[#allocation12 + $0x84] sm:$0xf]  ;;  %v6655_v11 = vpop.f32.mrf.mxu3  ;;  %v10461_v48 = vor.u32 %v13962_v15, %v10458_v29  ;;  %v14364_v15 = vld [vmem:[#allocation12 + $0xcac] sm:$0xf0] }
 0x366   :  { %6977 = vmatmul.bf16.vlgmr.msrb.gmra.mxu0 %v15348_v36  ;;  %6949 = vmatpush.bf16.msra.mxu2 %v10505_v7  ;;  %v10509_v9 = vor.u32 %v13974_v51, %v10506_v19  ;;  %v11130_v7 = vld [vmem:[#allocation12 + $0x590] sm:$0xf0]  ;;  %v14100_v51 = vld [vmem:[#allocation12 + $0x46c] sm:$0xf0]  ;;  %v14394_v11 = vld [vmem:[#allocation12 + $0xda4] sm:$0xf] }
 0x367   :  { %7021 = vmatpush.bf16.msra.mxu0 %v10797_v34  ;;  %v11650_v34 = vld [vmem:[#allocation12 + $0x9a8] sm:$0xf0]  ;;  %v11133_v25 = vor.u32 %v14130_v41, %v11130_v7  ;;  %v14376_v19 = vld [vmem:[#allocation12 + $0xd0c] sm:$0xf0]  ;;  %v14082_v7 = vld [vmem:[#allocation12 + $0x3e4] sm:$0xf] }
 0x368   :  { %v11653_v39 = vor.u32 %v14261_v17, %v11650_v34  ;;  %v14430_v34 = vld [vmem:[#allocation12 + $0xec4] sm:$0xf] }
 0x369   :  { %6909 = vmatpush.bf16.msrb.mxu3 %v11701_v42  ;;  %6987 = vmatpush.bf16.msrb.mxu1 %v11705_v21  ;;  %v12232_v42 = vld [vmem:[#allocation12 + $0xe00] sm:$0xf]  ;;  %v12333_v44 = vor.u32 %v14430_v34, %v12330_v58  ;;  %v14382_v58 = vld [vmem:[#allocation12 + $0xd44] sm:$0xf] }
 0x36a   :  { %6950 = vmatpush.bf16.msra.mxu2 %v10457_v40  ;;  %v12233_v21 = vor.u32 %v14412_v33, %v12232_v42  ;;  %v11032_v40 = vld [vmem:[#allocation12 + $0x4a0] sm:$0xf] }
 0x36b   :  { %7022 = vmatpush.bf16.msra.mxu0 %v10749_v3  ;;  %v13986_v3 = vld [vmem:[#allocation12 + $0xe4] sm:$0xf]  ;;  %v6772_v27 = vpop.f32.mrf.mxu0  ;;  %v12040_v33 = vld [vmem:[#allocation12 + $0xc80] sm:$0xf] }
 0x36c   :  { %v10557_v63 = vor.u32 %v13986_v3, %v10554_v37  ;;  %v11081_v3 = vor.u32 %v14124_v24, %v11080_v22  ;;  %v14418_v37 = vld [vmem:[#allocation12 + $0xe64] sm:$0xf]  ;;  %v10985_v27 = vor.u32 %v14100_v51, %v10984_v45  ;;  %v12041_v22 = vor.u32 %v14364_v15, %v12040_v33  ;;  %v10888_v24 = vld [vmem:[#allocation12 + $0x380] sm:$0xf]  ;;  %v14532_v45 = vld [vmem:[#allocation12 + $0x11ec] sm:$0xf0] }
 0x36d   :  { %6910 = vmatpush.bf16.msrb.mxu3 %v11653_v39  ;;  %6988 = vmatpush.bf16.msrb.mxu1 %v11657_v50  ;;  %v11082_v39 = vld [vmem:[#allocation12 + $0x530] sm:$0xf0]  ;;  %v12285_v50 = vor.u32 %v14418_v37, %v12282_v31  ;;  %v14238_v31 = vld [vmem:[#allocation12 + $0x8c4] sm:$0xf] }
 0x36e   :  { %6995 = vmatpush.bf16.msrb.mxu2 %v12329_v46  ;;  %v11085_v2 = vor.u32 %v14118_v52, %v11082_v39  ;;  %v14106_v46 = vld [vmem:[#allocation12 + $0x4a4] sm:$0xf]  ;;  %v10890_v37 = vld [vmem:[#allocation12 + $0x3b0] sm:$0xf0] }
 0x36f   :  { %7023 = vmatpush.bf16.msra.mxu0 %v10701_v60  ;;  %v14148_v60 = vld [vmem:[#allocation12 + $0x5ec] sm:$0xf0]  ;;  %6951 = vmatmul.bf16.vlgmr.msra.gmra.mxu2 %v15342_v16  ;;  %v11037_v10 = vor.u32 %v14106_v46, %v11034_v55  ;;  %v14070_v52 = vld [vmem:[#allocation12 + $0x384] sm:$0xf] }
 0x370   :  { %v11177_v57 = vor.u32 %v14148_v60, %v11176_v53  ;;  %v11033_v53 = vor.u32 %v14112_v47, %v11032_v40  ;;  %v14406_v60 = vld [vmem:[#allocation12 + $0xe04] sm:$0xf]  ;;  %v14064_v46 = vld [vmem:[#allocation12 + $0x34c] sm:$0xf0] }
 0x371   :  { %6911 = vmatpush.bf16.msrb.mxu3 %v11605_v4  ;;  %6989 = vmatpush.bf16.msrb.mxu1 %v11609_v28  ;;  %v12088_v4 = vld [vmem:[#allocation12 + $0xce0] sm:$0xf]  ;;  %v12186_v28 = vld [vmem:[#allocation12 + $0xdd0] sm:$0xf0]  ;;  %v14370_v47 = vld [vmem:[#allocation12 + $0xce4] sm:$0xf] }
 0x372   :  { %6996 = vmatpush.bf16.msrb.mxu2 %v12281_v13  ;;  %v15515_v13 = vpop.f32.mrf.mxu1  ;;  %v12189_v41 = vor.u32 %v14394_v11, %v12186_v28  ;;  %v14058_v55 = vld [vmem:[#allocation12 + $0x324] sm:$0xf] }
 0x373   :  { %7024 = vmatpush.bf16.msra.mxu0 %v10653_v20  ;;  %v11128_v20 = vld [vmem:[#allocation12 + $0x560] sm:$0xf] }
 0x374   :  { %v11129_v17 = vor.u32 %v14136_v62, %v11128_v20  ;;  %6912 = vmatmul.bf16.vlgmr.msrb.gmra.mxu3 %v15356_v61  ;;  %6990 = vmatmul.bf16.vlgmr.msrb.gmra.mxu1 %v15356_v61  ;;  %v12089_v20 = vor.u32 %v14376_v19, %v12088_v4  ;;  %v10936_v62 = vld [vmem:[#allocation12 + $0x3e0] sm:$0xf]  ;;  %v11514_v4 = vld [vmem:[#allocation12 + $0x890] sm:$0xf0]  ;;  %v14358_v19 = vld [vmem:[#allocation12 + $0xc84] sm:$0xf] }
 0x375   :  { %6956 = vmatpush.bf16.msra.mxu3 %v11177_v57  ;;  %7034 = vmatpush.bf16.msra.mxu1 %v11181_v59  ;;  %v10986_v57 = vld [vmem:[#allocation12 + $0x470] sm:$0xf0]  ;;  %v6744_v59 = vpop.f32.mrf.mxu2 }
 0x376   :  { %6997 = vmatpush.bf16.msrb.mxu2 %v12233_v21  ;;  %v10989_v42 = vor.u32 %v14094_v6, %v10986_v57  ;;  %v15518_v29 = vadd.f32 %v6744_v59, %v15502_v30  ;;  %v12138_v21 = vld [vmem:[#allocation12 + $0xd70] sm:$0xf0]  ;;  %v14352_v30 = vld [vmem:[#allocation12 + $0xc4c] sm:$0xf0]  ;;  %v14526_v57 = vld [vmem:[#allocation12 + $0x11c4] sm:$0xf] }
 0x377   :  { %7025 = vmatpush.bf16.msra.mxu0 %v10605_v26  ;;  %v12184_v26 = vld [vmem:[#allocation12 + $0xda0] sm:$0xf]  ;;  %v12042_v6 = vld [vmem:[#allocation12 + $0xcb0] sm:$0xf0] }
 0x378   :  { %v12185_v32 = vor.u32 %v14400_v1, %v12184_v26  ;;  %v6705_v26 = vpop.f32.mrf.mxu3  ;;  %v12664_v59 = vld [vmem:[#allocation12 + $0x1160] sm:$0xf]  ;;  %v12045_v33 = vor.u32 %v14358_v19, %v12042_v6 }
 0x379   :  { %6957 = vmatpush.bf16.msra.mxu3 %v11129_v17  ;;  %7035 = vmatpush.bf16.msra.mxu1 %v11133_v25  ;;  %v10938_v17 = vld [vmem:[#allocation12 + $0x410] sm:$0xf0]  ;;  %v15523_v39 = vadd.f32 %v6705_v26, %v15509_v8  ;;  %v12520_v19 = vld [vmem:[#allocation12 + $0x1040] sm:$0xf] }
 0x37a   :  { %6998 = vmatpush.bf16.msrb.mxu2 %v12185_v32  ;;  %v10941_v1 = vor.u32 %v14082_v7, %v10938_v17  ;;  %v11562_v32 = vld [vmem:[#allocation12 + $0x8f0] sm:$0xf0]  ;;  %v6785_v49 = vpop.f32.mrf.mxu1  ;;  %v14346_v17 = vld [vmem:[#allocation12 + $0xc24] sm:$0xf] }
 0x37b   :  { %7026 = vmatpush.bf16.msra.mxu0 %v10557_v63  ;;  %v12234_v63 = vld [vmem:[#allocation12 + $0xe30] sm:$0xf0]  ;;  %v11565_v8 = vor.u32 %v14238_v31, %v11562_v32  ;;  %v14502_v32 = vld [vmem:[#allocation12 + $0x1104] sm:$0xf]  ;;  %v14233_v49 = vld [vmem:[#allocation12 + $0x894] sm:$0xf0] }
 0x37c   :  { %v12237_v5 = vor.u32 %v14406_v60, %v12234_v63  ;;  %v10893_v60 = vor.u32 %v14070_v52, %v10890_v37  ;;  %v10842_v63 = vld [vmem:[#allocation12 + $0x350] sm:$0xf0] }
 0x37d   :  { %6958 = vmatpush.bf16.msra.mxu3 %v11081_v3  ;;  %7036 = vmatpush.bf16.msra.mxu1 %v11085_v2  ;;  %v12141_v3 = vor.u32 %v14382_v58, %v12138_v21  ;;  %v12090_v2 = vld [vmem:[#allocation12 + $0xd10] sm:$0xf0]  ;;  %v14514_v58 = vld [vmem:[#allocation12 + $0x1164] sm:$0xf] }
 0x37e   :  { %6999 = vmatpush.bf16.msrb.mxu2 %v12137_v0  ;;  %v12712_v0 = vld [vmem:[#allocation12 + $0x11c0] sm:$0xf]  ;;  %v12093_v51 = vor.u32 %v14370_v47, %v12090_v2  ;;  %v11466_v7 = vld [vmem:[#allocation12 + $0x830] sm:$0xf0]  ;;  %v11520_v2 = vld [vmem:[#allocation12 + $0x868] sm:$0xf] }
 0x37f   :  { %7027 = vmatpush.bf16.msra.mxu0 %v10509_v9  ;;  %v14088_v9 = vld [vmem:[#allocation12 + $0x40c] sm:$0xf0]  ;;  %v12713_v11 = vor.u32 %v14532_v45, %v12712_v0  ;;  %v12666_v21 = vld [vmem:[#allocation12 + $0x1190] sm:$0xf0] }
 0x380   :  { %v10937_v34 = vor.u32 %v14088_v9, %v10936_v62  ;;  %v10845_v62 = vor.u32 %v14058_v55, %v10842_v63  ;;  %v12669_v52 = vor.u32 %v14514_v58, %v12666_v21  ;;  %v11418_v37 = vld [vmem:[#allocation12 + $0x7d0] sm:$0xf0]  ;;  %v14490_v63 = vld [vmem:[#allocation12 + $0x10a4] sm:$0xf] }
 0x381   :  { %6959 = vmatpush.bf16.msra.mxu3 %v11033_v53  ;;  %7037 = vmatpush.bf16.msra.mxu1 %v11037_v10  ;;  %v6746_v53 = vpop.f32.mrf.mxu2  ;;  %v14226_v10 = vld [vmem:[#allocation12 + $0x864] sm:$0xf]  ;;  %v12570_v0 = vld [vmem:[#allocation12 + $0x10d0] sm:$0xf0] }
 0x382   :  { %7000 = vmatpush.bf16.msrb.mxu2 %v12089_v20  ;;  %v6707_v20 = vpop.f32.mrf.mxu3  ;;  %v11517_v9 = vor.u32 %v14226_v10, %v11514_v4  ;;  %v14190_v53 = vld [vmem:[#allocation12 + $0x744] sm:$0xf]  ;;  %v14221_v10 = vld [vmem:[#allocation12 + $0x834] sm:$0xf0]  ;;  %v12573_v6 = vor.u32 %v14490_v63, %v12570_v0  ;;  %v11274_v58 = vld [vmem:[#allocation12 + $0x6b0] sm:$0xf0] }
 0x383   :  { %7028 = vmatpush.bf16.msra.mxu0 %v10461_v48  ;;  %v14076_v48 = vld [vmem:[#allocation12 + $0x3ac] sm:$0xf0]  ;;  %v15520_v25 = vpop.f32.mrf.mxu0  ;;  %v12522_v20 = vld [vmem:[#allocation12 + $0x1070] sm:$0xf0] }
 0x384   :  { %v10889_v40 = vor.u32 %v14076_v48, %v10888_v24  ;;  %v11568_v24 = vld [vmem:[#allocation12 + $0x8c8] sm:$0xf]  ;;  %v14245_v48 = vld [vmem:[#allocation12 + $0x8f4] sm:$0xf0] }
 0x385   :  { %6960 = vmatpush.bf16.msra.mxu3 %v10985_v27  ;;  %7038 = vmatpush.bf16.msra.mxu1 %v10989_v42  ;;  %v12714_v27 = vld [vmem:[#allocation12 + $0x11f0] sm:$0xf0]  ;;  %v14520_v42 = vld [vmem:[#allocation12 + $0x118c] sm:$0xf0]  ;;  %v11569_v31 = vor.u32 %v14245_v48, %v11568_v24 }
 0x386   :  { %7029 = vmatmul.bf16.vlgmr.msra.gmra.mxu0 %v15342_v16  ;;  %7001 = vmatpush.bf16.msrb.mxu2 %v12041_v22  ;;  %v12717_v15 = vor.u32 %v14526_v57, %v12714_v27  ;;  %v12665_v22 = vor.u32 %v14520_v42, %v12664_v59  ;;  %v14178_v57 = vld [vmem:[#allocation12 + $0x6e4] sm:$0xf]  ;;  %v11322_v27 = vld [vmem:[#allocation12 + $0x710] sm:$0xf0]  ;;  %v14209_v59 = vld [vmem:[#allocation12 + $0x7d4] sm:$0xf0] }
 0x387   :  { %7073 = vmatpush.bf16.msrb.mxu0 %v12333_v44  ;;  %v11992_v44 = vld [vmem:[#allocation12 + $0xc20] sm:$0xf]  ;;  %v12474_v24 = vld [vmem:[#allocation12 + $0x1010] sm:$0xf0] }
 0x388   :  { %v11993_v56 = vor.u32 %v14352_v30, %v11992_v44  ;;  %v14508_v44 = vld [vmem:[#allocation12 + $0x112c] sm:$0xf0] }
 0x389   :  { %6961 = vmatpush.bf16.msra.mxu3 %v10937_v34  ;;  %7039 = vmatpush.bf16.msra.mxu1 %v10941_v1  ;;  %v11994_v34 = vld [vmem:[#allocation12 + $0xc50] sm:$0xf0]  ;;  %v12616_v1 = vld [vmem:[#allocation12 + $0x1100] sm:$0xf] }
 0x38a   :  { %7002 = vmatpush.bf16.msrb.mxu2 %v11993_v56  ;;  %v11997_v30 = vor.u32 %v14346_v17, %v11994_v34  ;;  %v12617_v47 = vor.u32 %v14508_v44, %v12616_v1  ;;  %v14166_v34 = vld [vmem:[#allocation12 + $0x684] sm:$0xf]  ;;  %v14197_v1 = vld [vmem:[#allocation12 + $0x774] sm:$0xf0] }
 0x38b   :  { %7074 = vmatpush.bf16.msrb.mxu0 %v12285_v50  ;;  %v10840_v50 = vld [vmem:[#allocation12 + $0x320] sm:$0xf]  ;;  %v6824_v28 = vpop.f32.mrf.mxu0  ;;  %v11277_v44 = vor.u32 %v14166_v34, %v11274_v58 }
 0x38c   :  { %v14478_v28 = vld [vmem:[#allocation12 + $0x1044] sm:$0xf] }
 0x38d   :  { %6962 = vmatpush.bf16.msra.mxu3 %v10889_v40  ;;  %7040 = vmatpush.bf16.msra.mxu1 %v10893_v60  ;;  %v12618_v40 = vld [vmem:[#allocation12 + $0x1130] sm:$0xf0]  ;;  %v12525_v17 = vor.u32 %v14478_v28, %v12522_v20  ;;  %v10752_v28 = vld [vmem:[#allocation12 + $0x268] sm:$0xf] }
 0x38e   :  { %7047 = vmatpush.bf16.msra.mxu2 %v11565_v8  ;;  %v12621_v55 = vor.u32 %v14502_v32, %v12618_v40  ;;  %v11370_v60 = vld [vmem:[#allocation12 + $0x770] sm:$0xf0]  ;;  %v11521_v8 = vor.u32 %v14233_v49, %v11520_v2  ;;  %v14154_v32 = vld [vmem:[#allocation12 + $0x624] sm:$0xf]  ;;  %v11280_v20 = vld [vmem:[#allocation12 + $0x688] sm:$0xf] }
 0x38f   :  { %7075 = vmatpush.bf16.msrb.mxu0 %v12237_v5  ;;  %v10841_v5 = vor.u32 %v14064_v46, %v10840_v50  ;;  %7003 = vmatmul.bf16.vlgmr.msrb.gmra.mxu2 %v15378_v54  ;;  %v12568_v50 = vld [vmem:[#allocation12 + $0x10a0] sm:$0xf]  ;;  %v14496_v46 = vld [vmem:[#allocation12 + $0x10cc] sm:$0xf0]  ;;  %v11373_v4 = vor.u32 %v14190_v53, %v11370_v60  ;;  %v15529_v42 = vpop.f32.mrf.mxu1  ;;  %v11226_v40 = vld [vmem:[#allocation12 + $0x650] sm:$0xf0] }
 0x390   :  { %v12569_v45 = vor.u32 %v14496_v46, %v12568_v50  ;;  %v10800_v50 = vld [vmem:[#allocation12 + $0x2c8] sm:$0xf]  ;;  %v14053_v46 = vld [vmem:[#allocation12 + $0x2f4] sm:$0xf0]  ;;  %v11229_v0 = vor.u32 %v14154_v32, %v11226_v40  ;;  %v10802_v32 = vld [vmem:[#allocation12 + $0x2f8] sm:$0xf0] }
 0x391   :  { %6963 = vmatpush.bf16.msra.mxu3 %v10841_v5  ;;  %7041 = vmatpush.bf16.msra.mxu1 %v10845_v62  ;;  %v14484_v5 = vld [vmem:[#allocation12 + $0x106c] sm:$0xf0]  ;;  %v11328_v53 = vld [vmem:[#allocation12 + $0x6e8] sm:$0xf]  ;;  %v14185_v60 = vld [vmem:[#allocation12 + $0x714] sm:$0xf0] }
 0x392   :  { %7048 = vmatpush.bf16.msra.mxu2 %v11517_v9  ;;  %v12521_v62 = vor.u32 %v14484_v5, %v12520_v19  ;;  %v11424_v9 = vld [vmem:[#allocation12 + $0x7a8] sm:$0xf]  ;;  %v10801_v19 = vor.u32 %v14053_v46, %v10800_v50  ;;  %v12378_v5 = vld [vmem:[#allocation12 + $0xf50] sm:$0xf0]  ;;  %v14017_v46 = vld [vmem:[#allocation12 + $0x1d4] sm:$0xf0] }
 0x393   :  { %7076 = vmatpush.bf16.msrb.mxu0 %v12189_v41  ;;  %v14214_v41 = vld [vmem:[#allocation12 + $0x804] sm:$0xf]  ;;  %v11425_v21 = vor.u32 %v14209_v59, %v11424_v9  ;;  %v14173_v9 = vld [vmem:[#allocation12 + $0x6b4] sm:$0xf0]  ;;  %v11952_v59 = vld [vmem:[#allocation12 + $0xbc8] sm:$0xf] }
 0x394   :  { %v11469_v26 = vor.u32 %v14214_v41, %v11466_v7  ;;  %6964 = vmatmul.bf16.vlgmr.msra.gmra.mxu3 %v15344_v18  ;;  %7042 = vmatmul.bf16.vlgmr.msra.gmra.mxu1 %v15344_v18  ;;  %v14472_v41 = vld [vmem:[#allocation12 + $0x100c] sm:$0xf0]  ;;  %v15531_v7 = vpop.f32.mrf.mxu2  ;;  %v10656_v50 = vld [vmem:[#allocation12 + $0x1a8] sm:$0xf] }
 0x395   :  { %7008 = vmatpush.bf16.msrb.mxu3 %v12713_v11  ;;  %7086 = vmatpush.bf16.msrb.mxu1 %v12717_v15  ;;  %v12472_v15 = vld [vmem:[#allocation12 + $0xfe0] sm:$0xf] }
 0x396   :  { %7049 = vmatpush.bf16.msra.mxu2 %v11469_v26  ;;  %v12473_v48 = vor.u32 %v14472_v41, %v12472_v15  ;;  %v11376_v26 = vld [vmem:[#allocation12 + $0x748] sm:$0xf] }
 0x397   :  { %7077 = vmatpush.bf16.msrb.mxu0 %v12141_v3  ;;  %v14202_v3 = vld [vmem:[#allocation12 + $0x7a4] sm:$0xf]  ;;  %v11377_v49 = vor.u32 %v14197_v1, %v11376_v26  ;;  %v6837_v63 = vpop.f32.mrf.mxu1  ;;  %v14029_v26 = vld [vmem:[#allocation12 + $0x234] sm:$0xf0]  ;;  %v11232_v1 = vld [vmem:[#allocation12 + $0x628] sm:$0xf] }
 0x398   :  { %v11421_v56 = vor.u32 %v14202_v3, %v11418_v37  ;;  %v6757_v37 = vpop.f32.mrf.mxu3  ;;  %v14035_v63 = vld [vmem:[#allocation12 + $0x26c] sm:$0xf] }
 0x399   :  { %7009 = vmatpush.bf16.msrb.mxu3 %v12665_v22  ;;  %7087 = vmatpush.bf16.msrb.mxu1 %v12669_v52  ;;  %v14466_v22 = vld [vmem:[#allocation12 + $0xfe4] sm:$0xf]  ;;  %v14460_v52 = vld [vmem:[#allocation12 + $0xfac] sm:$0xf0]  ;;  %v6758_v2 = vadd.f32 %v6757_v37, %v15518_v29 }
 0x39a   :  { %7050 = vmatpush.bf16.msra.mxu2 %v11421_v56  ;;  %v12426_v56 = vld [vmem:[#allocation12 + $0xfb0] sm:$0xf0] }
 0x39b   :  { %7078 = vmatpush.bf16.msrb.mxu0 %v12093_v51  ;;  %v11472_v51 = vld [vmem:[#allocation12 + $0x808] sm:$0xf] }
 0x39c   :  { %v11473_v11 = vor.u32 %v14221_v10, %v11472_v51  ;;  %v14448_v51 = vld [vmem:[#allocation12 + $0xf4c] sm:$0xf0]  ;;  %v14442_v10 = vld [vmem:[#allocation12 + $0xf24] sm:$0xf] }
 0x39d   :  { %7010 = vmatpush.bf16.msrb.mxu3 %v12617_v47  ;;  %7088 = vmatpush.bf16.msrb.mxu1 %v12621_v55  ;;  %v14454_v47 = vld [vmem:[#allocation12 + $0xf84] sm:$0xf]  ;;  %v12381_v34 = vor.u32 %v14442_v10, %v12378_v5  ;;  %v11802_v10 = vld [vmem:[#allocation12 + $0xad0] sm:$0xf0] }
 0x39e   :  { %7051 = vmatpush.bf16.msra.mxu2 %v11373_v4  ;;  %v6798_v4 = vpop.f32.mrf.mxu2  ;;  %v12429_v29 = vor.u32 %v14454_v47, %v12426_v56  ;;  %v14310_v47 = vld [vmem:[#allocation12 + $0xb04] sm:$0xf] }
 0x39f   :  { %7079 = vmatpush.bf16.msrb.mxu0 %v12045_v33  ;;  %v11325_v33 = vor.u32 %v14178_v57, %v11322_v27  ;;  %v11946_v57 = vld [vmem:[#allocation12 + $0xbf0] sm:$0xf0] }
 0x3a1   :  { %7011 = vmatpush.bf16.msrb.mxu3 %v12569_v45  ;;  %7089 = vmatpush.bf16.msrb.mxu1 %v12573_v6  ;;  %v12376_v45 = vld [vmem:[#allocation12 + $0xf20] sm:$0xf]  ;;  %v14334_v6 = vld [vmem:[#allocation12 + $0xbc4] sm:$0xf] }
 0x3a2   :  { %7052 = vmatpush.bf16.msra.mxu2 %v11325_v33  ;;  %v14341_v33 = vld [vmem:[#allocation12 + $0xbf4] sm:$0xf0]  ;;  %v11949_v15 = vor.u32 %v14334_v6, %v11946_v57  ;;  %v11808_v6 = vld [vmem:[#allocation12 + $0xaa8] sm:$0xf] }
 0x3a3   :  { %7080 = vmatpush.bf16.msrb.mxu0 %v11997_v30  ;;  %v12424_v30 = vld [vmem:[#allocation12 + $0xf80] sm:$0xf]  ;;  %v15533_v3 = vpop.f32.mrf.mxu0  ;;  %v14305_v57 = vld [vmem:[#allocation12 + $0xad4] sm:$0xf0] }
 0x3a4   :  { %v12425_v55 = vor.u32 %v14460_v52, %v12424_v30  ;;  %v11904_v30 = vld [vmem:[#allocation12 + $0xb68] sm:$0xf]  ;;  %v14329_v52 = vld [vmem:[#allocation12 + $0xb94] sm:$0xf0] }
 0x3a5   :  { %7012 = vmatpush.bf16.msrb.mxu3 %v12521_v62  ;;  %7090 = vmatpush.bf16.msrb.mxu1 %v12525_v17  ;;  %v12377_v62 = vor.u32 %v14448_v51, %v12376_v45  ;;  %v6759_v17 = vpop.f32.mrf.mxu3  ;;  %v11905_v56 = vor.u32 %v14329_v52, %v11904_v30  ;;  %v10657_v45 = vor.u32 %v14017_v46, %v10656_v50  ;;  %v14298_v51 = vld [vmem:[#allocation12 + $0xaa4] sm:$0xf]  ;;  %v11706_v52 = vld [vmem:[#allocation12 + $0xa10] sm:$0xf0]  ;;  %v13999_v50 = vld [vmem:[#allocation12 + $0x14c] sm:$0xf] }
 0x3a6   :  { %7081 = vmatmul.bf16.vlgmr.msrb.gmra.mxu0 %v15378_v54  ;;  %7053 = vmatpush.bf16.msra.mxu2 %v11277_v44  ;;  %v14161_v44 = vld [vmem:[#allocation12 + $0x654] sm:$0xf0]  ;;  %v14274_v30 = vld [vmem:[#allocation12 + $0x9e4] sm:$0xf]  ;;  %v10610_v46 = vld [vmem:[#allocation12 + $0x178] sm:$0xf0] }
 0x3a7   :  { %7125 = vmatpush.bf16.msra.mxu0 %v11569_v31  ;;  %v12477_v31 = vor.u32 %v14466_v22, %v12474_v24  ;;  %v11281_v22 = vor.u32 %v14173_v9, %v11280_v20  ;;  %v11953_v24 = vor.u32 %v14341_v33, %v11952_v59  ;;  %v14023_v20 = vld [vmem:[#allocation12 + $0x20c] sm:$0xf]  ;;  %v14286_v59 = vld [vmem:[#allocation12 + $0xa44] sm:$0xf]  ;;  %v11754_v33 = vld [vmem:[#allocation12 + $0xa70] sm:$0xf0] }
 0x3a8   :  { %v13993_v17 = vld [vmem:[#allocation12 + $0x114] sm:$0xf0] }
 0x3a9   :  { %7013 = vmatpush.bf16.msrb.mxu3 %v12473_v48  ;;  %7091 = vmatpush.bf16.msrb.mxu1 %v12477_v31  ;;  %v10704_v48 = vld [vmem:[#allocation12 + $0x208] sm:$0xf]  ;;  %v14047_v31 = vld [vmem:[#allocation12 + $0x2cc] sm:$0xf] }
 0x3aa   :  { %7054 = vmatpush.bf16.msra.mxu2 %v11229_v0  ;;  %v10705_v40 = vor.u32 %v14029_v26, %v10704_v48  ;;  %v10754_v0 = vld [vmem:[#allocation12 + $0x298] sm:$0xf0] }
 0x3ab   :  { %7126 = vmatpush.bf16.msra.mxu0 %v11521_v8  ;;  %v6771_v8 = vadd.f32 %v15505_v14, %v6758_v2  ;;  %v14041_v14 = vld [vmem:[#allocation12 + $0x294] sm:$0xf0]  ;;  %v6876_v41 = vpop.f32.mrf.mxu0  ;;  %v11850_v2 = vld [vmem:[#allocation12 + $0xb30] sm:$0xf0]  ;;  %v10757_v5 = vor.u32 %v14035_v63, %v10754_v0  ;;  %v10658_v48 = vld [vmem:[#allocation12 + $0x1d8] sm:$0xf0] }
 0x3ac   :  { %v10753_v58 = vor.u32 %v14041_v14, %v10752_v28  ;;  %v11805_v14 = vor.u32 %v14298_v51, %v11802_v10  ;;  %v10560_v41 = vld [vmem:[#allocation12 + $0xe8] sm:$0xf]  ;;  %v13969_v10 = vld [vmem:[#allocation12 + $0x54] sm:$0xf0] }
 0x3ad   :  { %v15538_v27 = vadd.f32 %v15515_v13, %v6771_v8  ;;  %7014 = vmatpush.bf16.msrb.mxu3 %v12425_v55  ;;  %7092 = vmatpush.bf16.msrb.mxu1 %v12429_v29  ;;  %v14322_v13 = vld [vmem:[#allocation12 + $0xb64] sm:$0xf]  ;;  %v10805_v55 = vor.u32 %v14047_v31, %v10802_v32  ;;  %v11853_v8 = vor.u32 %v14310_v47, %v11850_v2  ;;  %v10608_v29 = vld [vmem:[#allocation12 + $0x148] sm:$0xf]  ;;  %v13981_v47 = vld [vmem:[#allocation12 + $0xb4] sm:$0xf0] }
 0x3ae   :  { %7099 = vmatpush.bf16.msrb.mxu2 %v10801_v19  ;;  %v14005_v19 = vld [vmem:[#allocation12 + $0x174] sm:$0xf0]  ;;  %v10464_v51 = vld [vmem:[#allocation12 + $0x28] sm:$0xf] }
 0x3af   :  { %7127 = vmatpush.bf16.msra.mxu0 %v11473_v11  ;;  %v11329_v11 = vor.u32 %v14185_v60, %v11328_v53  ;;  %7055 = vmatmul.bf16.vlgmr.msra.gmra.mxu2 %v15348_v36  ;;  %v11856_v53 = vld [vmem:[#allocation12 + $0xb08] sm:$0xf]  ;;  %v14317_v60 = vld [vmem:[#allocation12 + $0xb34] sm:$0xf0]  ;;  %v10609_v9 = vor.u32 %v14005_v19, %v10608_v29  ;;  %v10613_v19 = vor.u32 %v13999_v50, %v10610_v46 }
 0x3b0   :  { %v11857_v4 = vor.u32 %v14317_v60, %v11856_v53  ;;  %v6848_v31 = vpop.f32.mrf.mxu2  ;;  %v14262_v60 = vld [vmem:[#allocation12 + $0x984] sm:$0xf]  ;;  %v12240_v46 = vld [vmem:[#allocation12 + $0xe08] sm:$0xf] }
 0x3b1   :  { %7015 = vmatpush.bf16.msrb.mxu3 %v12377_v62  ;;  %7093 = vmatpush.bf16.msrb.mxu1 %v12381_v34  ;;  %v10706_v62 = vld [vmem:[#allocation12 + $0x238] sm:$0xf0] }
 0x3b2   :  { %7100 = vmatpush.bf16.msrb.mxu2 %v10753_v58  ;;  %v10709_v34 = vor.u32 %v14023_v20, %v10706_v62  ;;  %v11760_v58 = vld [vmem:[#allocation12 + $0xa48] sm:$0xf]  ;;  %v10465_v62 = vor.u32 %v13969_v10, %v10464_v51  ;;  %v12338_v51 = vld [vmem:[#allocation12 + $0xef8] sm:$0xf0] }
 0x3b3   :  { %7128 = vmatpush.bf16.msra.mxu0 %v11425_v21  ;;  %v11898_v21 = vld [vmem:[#allocation12 + $0xb90] sm:$0xf0] }
 0x3b4   :  { %v11901_v37 = vor.u32 %v14322_v13, %v11898_v21  ;;  %7016 = vmatmul.bf16.vlgmr.msrb.gmra.mxu3 %v15387_v38  ;;  %7094 = vmatmul.bf16.vlgmr.msrb.gmra.mxu1 %v15387_v38  ;;  %v14293_v13 = vld [vmem:[#allocation12 + $0xa74] sm:$0xf0] }
 0x3b5   :  { %7060 = vmatpush.bf16.msra.mxu3 %v11949_v15  ;;  %7138 = vmatpush.bf16.msra.mxu1 %v11953_v24  ;;  %v11809_v15 = vor.u32 %v14305_v57, %v11808_v6  ;;  %v14011_v24 = vld [vmem:[#allocation12 + $0x1ac] sm:$0xf]  ;;  %v11761_v32 = vor.u32 %v14293_v13, %v11760_v58  ;;  %v12336_v6 = vld [vmem:[#allocation12 + $0xec8] sm:$0xf]  ;;  %v14437_v57 = vld [vmem:[#allocation12 + $0xef4] sm:$0xf0] }
 0x3b6   :  { %7101 = vmatpush.bf16.msrb.mxu2 %v10705_v40  ;;  %v10512_v40 = vld [vmem:[#allocation12 + $0x88] sm:$0xf]  ;;  %v10661_v2 = vor.u32 %v14011_v24, %v10658_v48  ;;  %v14149_v13 = vld [vmem:[#allocation12 + $0x5f4] sm:$0xf0]  ;;  %v13975_v48 = vld [vmem:[#allocation12 + $0x8c] sm:$0xf] }
 0x3b7   :  { %7129 = vmatpush.bf16.msra.mxu0 %v11377_v49  ;;  %v11233_v49 = vor.u32 %v14161_v44, %v11232_v1  ;;  %v6887_v1 = vpop.f32.mrf.mxu1  ;;  %v10561_v44 = vor.u32 %v13993_v17, %v10560_v41  ;;  %v10513_v53 = vor.u32 %v13981_v47, %v10512_v40  ;;  %v6809_v0 = vpop.f32.mrf.mxu3  ;;  %v12337_v17 = vor.u32 %v14437_v57, %v12336_v6  ;;  %v11184_v58 = vld [vmem:[#allocation12 + $0x5c8] sm:$0xf]  ;;  %v14425_v24 = vld [vmem:[#allocation12 + $0xe94] sm:$0xf0] }
 0x3b8   :  { %v12192_v6 = vld [vmem:[#allocation12 + $0xda8] sm:$0xf]  ;;  %v14401_v57 = vld [vmem:[#allocation12 + $0xdd4] sm:$0xf0] }
 0x3b9   :  { %7061 = vmatpush.bf16.msra.mxu3 %v11901_v37  ;;  %7139 = vmatpush.bf16.msra.mxu1 %v11905_v56  ;;  %v11709_v56 = vor.u32 %v14274_v30, %v11706_v52  ;;  %v11186_v30 = vld [vmem:[#allocation12 + $0x5f8] sm:$0xf0]  ;;  %v11185_v52 = vor.u32 %v14149_v13, %v11184_v58  ;;  %v14107_v58 = vld [vmem:[#allocation12 + $0x4ac] sm:$0xf] }
 0x3ba   :  { %7102 = vmatpush.bf16.msrb.mxu2 %v10657_v45  ;;  %v11042_v13 = vld [vmem:[#allocation12 + $0x4d8] sm:$0xf0] }
 0x3bb   :  { %7130 = vmatpush.bf16.msra.mxu0 %v11329_v11  ;;  %v14781_v11 = vld [vmem:[#allocation14] sm:$0xff] }
 0x3bc   :  { %v3422_v28 = vperm.slane %v14781_v11, 7  ;;  %v3421_v26 = vperm.slane %v14781_v11, 6  ;;  %v13987_v11 = vld [vmem:[#allocation12 + $0xec] sm:$0xf] }
 0x3bd   :  { %7062 = vmatpush.bf16.msra.mxu3 %v11853_v8  ;;  %7140 = vmatpush.bf16.msra.mxu1 %v11857_v4  ;;  %v11658_v8 = vld [vmem:[#allocation12 + $0x9b0] sm:$0xf0]  ;;  %v11664_v4 = vld [vmem:[#allocation12 + $0x988] sm:$0xf] }
 0x3be   :  { %v6875_v21 = vadd.f32 %v15533_v3, %v3422_v28  ;;  %7103 = vmatpush.bf16.msrb.mxu2 %v10609_v9  ;;  %v11712_v3 = vld [vmem:[#allocation12 + $0x9e8] sm:$0xf]  ;;  %v10562_v28 = vld [vmem:[#allocation12 + $0x118] sm:$0xf0]  ;;  %v14250_v9 = vld [vmem:[#allocation12 + $0x924] sm:$0xf] }
 0x3bf   :  { %7131 = vmatpush.bf16.msra.mxu0 %v11281_v22  ;;  %v11757_v22 = vor.u32 %v14286_v59, %v11754_v33  ;;  %v6889_v20 = vpop.f32.mrf.mxu1  ;;  %v11610_v59 = vld [vmem:[#allocation12 + $0x950] sm:$0xf0]  ;;  %v11616_v33 = vld [vmem:[#allocation12 + $0x928] sm:$0xf]  ;;  %v6811_v47 = vpop.f32.mrf.mxu3 }
 0x3c0   :  { %v15545_v37 = vadd.f32 %v6887_v1, %v6875_v21  ;;  %v10565_v21 = vor.u32 %v13987_v11, %v10562_v28  ;;  %v10514_v1 = vld [vmem:[#allocation12 + $0xb8] sm:$0xf0]  ;;  %v14119_v11 = vld [vmem:[#allocation12 + $0x50c] sm:$0xf] }
 0x3c1   :  { %7063 = vmatpush.bf16.msra.mxu3 %v11805_v14  ;;  %7141 = vmatpush.bf16.msra.mxu1 %v11809_v15  ;;  %v6850_v15 = vpop.f32.mrf.mxu2  ;;  %v10517_v50 = vor.u32 %v13975_v48, %v10514_v1  ;;  %v11090_v28 = vld [vmem:[#allocation12 + $0x538] sm:$0xf0]  ;;  %v14419_v20 = vld [vmem:[#allocation12 + $0xe6c] sm:$0xf]  ;;  %v11045_v1 = vor.u32 %v14107_v58, %v11042_v13  ;;  %v10848_v58 = vld [vmem:[#allocation12 + $0x328] sm:$0xf] }
 0x3c2   :  { %7104 = vmatpush.bf16.msrb.mxu2 %v10561_v44  ;;  %v14143_v44 = vld [vmem:[#allocation12 + $0x5cc] sm:$0xf]  ;;  %v11093_v15 = vor.u32 %v14119_v11, %v11090_v28  ;;  %v10994_v47 = vld [vmem:[#allocation12 + $0x478] sm:$0xf0]  ;;  %v12000_v11 = vld [vmem:[#allocation12 + $0xc28] sm:$0xf] }
 0x3c3   :  { %7132 = vmatpush.bf16.msra.mxu0 %v11233_v49  ;;  %v14281_v49 = vld [vmem:[#allocation12 + $0xa14] sm:$0xf0]  ;;  %v15548_v63 = vpop.f32.mrf.mxu0  ;;  %v14071_v28 = vld [vmem:[#allocation12 + $0x38c] sm:$0xf] }
 0x3c4   :  { %v11713_v45 = vor.u32 %v14281_v49, %v11712_v3  ;;  %v11136_v49 = vld [vmem:[#allocation12 + $0x568] sm:$0xf]  ;;  %v14065_v13 = vld [vmem:[#allocation12 + $0x354] sm:$0xf0] }
 0x3c5   :  { %7064 = vmatpush.bf16.msra.mxu3 %v11757_v22  ;;  %7142 = vmatpush.bf16.msra.mxu1 %v11761_v32  ;;  %v12288_v22 = vld [vmem:[#allocation12 + $0xe68] sm:$0xf] }
 0x3c6   :  { %7133 = vmatmul.bf16.vlgmr.msra.gmra.mxu0 %v15348_v36  ;;  %7105 = vmatpush.bf16.msrb.mxu2 %v10513_v53  ;;  %v12289_v3 = vor.u32 %v14425_v24, %v12288_v22  ;;  %v13963_v53 = vld [vmem:[#allocation12 + $0x2c] sm:$0xf]  ;;  %v12242_v24 = vld [vmem:[#allocation12 + $0xe38] sm:$0xf0] }
 0x3c7   :  { %7177 = vmatpush.bf16.msrb.mxu0 %v10805_v55  ;;  %v6797_v55 = vadd.f32 %v15531_v7, %v3421_v26  ;;  %v11661_v7 = vor.u32 %v14262_v60, %v11658_v8  ;;  %v11613_v26 = vor.u32 %v14250_v9, %v11610_v59  ;;  %v10466_v60 = vld [vmem:[#allocation12 + $0x58] sm:$0xf0]  ;;  %v12193_v9 = vor.u32 %v14401_v57, %v12192_v6  ;;  %v11040_v59 = vld [vmem:[#allocation12 + $0x4a8] sm:$0xf]  ;;  %v14407_v22 = vld [vmem:[#allocation12 + $0xe0c] sm:$0xf] }
 0x3c8   :  { %v11138_v8 = vld [vmem:[#allocation12 + $0x598] sm:$0xf0] }
 0x3c9   :  { %v6810_v29 = vadd.f32 %v6809_v0, %v6797_v55  ;;  %7065 = vmatpush.bf16.msra.mxu3 %v11709_v56  ;;  %7143 = vmatpush.bf16.msra.mxu1 %v11713_v45  ;;  %v14137_v56 = vld [vmem:[#allocation12 + $0x594] sm:$0xf0]  ;;  %v14431_v45 = vld [vmem:[#allocation12 + $0xecc] sm:$0xf] }
 0x3ca   :  { %7106 = vmatpush.bf16.msrb.mxu2 %v10465_v62  ;;  %v14413_v55 = vld [vmem:[#allocation12 + $0xe34] sm:$0xf0]  ;;  %v11137_v0 = vor.u32 %v14137_v56, %v11136_v49  ;;  %v12290_v62 = vld [vmem:[#allocation12 + $0xe98] sm:$0xf0] }
 0x3cb   :  { %7178 = vmatpush.bf16.msrb.mxu0 %v10757_v5  ;;  %v14269_v5 = vld [vmem:[#allocation12 + $0x9b4] sm:$0xf0]  ;;  %v6823_v14 = vadd.f32 %v15520_v25, %v6810_v29  ;;  %v6928_v40 = vpop.f32.mrf.mxu0  ;;  %v12241_v10 = vor.u32 %v14413_v55, %v12240_v46  ;;  %v12194_v49 = vld [vmem:[#allocation12 + $0xdd8] sm:$0xf0] }
 0x3cc   :  { %v11665_v41 = vor.u32 %v14269_v5, %v11664_v4  ;;  %v11088_v4 = vld [vmem:[#allocation12 + $0x508] sm:$0xf]  ;;  %v14125_v29 = vld [vmem:[#allocation12 + $0x534] sm:$0xf0]  ;;  %v14095_v40 = vld [vmem:[#allocation12 + $0x44c] sm:$0xf] }
 0x3cd   :  { %v6836_v25 = vadd.f32 %v15529_v42, %v6823_v14  ;;  %7066 = vmatpush.bf16.msra.mxu3 %v11661_v7  ;;  %v11189_v42 = vor.u32 %v14143_v44, %v11186_v30  ;;  %7107 = vmatmul.bf16.vlgmr.msrb.gmra.mxu2 %v15342_v16  ;;  %v12341_v7 = vor.u32 %v14431_v45, %v12338_v51  ;;  %v12096_v44 = vld [vmem:[#allocation12 + $0xce8] sm:$0xf]  ;;  %v14377_v30 = vld [vmem:[#allocation12 + $0xd14] sm:$0xf0]  ;;  %v10946_v45 = vld [vmem:[#allocation12 + $0x418] sm:$0xf0] }
 0x3ce   :  { %7144 = vmatpush.bf16.msra.mxu1 %v11665_v41  ;;  %7151 = vmatpush.bf16.msra.mxu2 %v12337_v17  ;;  %v11089_v14 = vor.u32 %v14125_v29, %v11088_v4  ;;  %v12144_v41 = vld [vmem:[#allocation12 + $0xd48] sm:$0xf]  ;;  %v14389_v17 = vld [vmem:[#allocation12 + $0xd74] sm:$0xf0]  ;;  %v10997_v55 = vor.u32 %v14095_v40, %v10994_v47  ;;  %v12146_v4 = vld [vmem:[#allocation12 + $0xd78] sm:$0xf0]  ;;  %v10849_v40 = vor.u32 %v14065_v13, %v10848_v58 }
 0x3cf   :  { %7179 = vmatpush.bf16.msrb.mxu0 %v10709_v34  ;;  %v14257_v34 = vld [vmem:[#allocation12 + $0x954] sm:$0xf0]  ;;  %v15552_v32 = vadd.f32 %v6848_v31, %v6836_v25  ;;  %v14131_v31 = vld [vmem:[#allocation12 + $0x56c] sm:$0xf]  ;;  %v12145_v48 = vor.u32 %v14389_v17, %v12144_v41  ;;  %v10992_v25 = vld [vmem:[#allocation12 + $0x448] sm:$0xf]  ;;  %v15558_v56 = vpop.f32.mrf.mxu1 }
 0x3d0   :  { %v11141_v5 = vor.u32 %v14131_v31, %v11138_v8  ;;  %v6900_v46 = vpop.f32.mrf.mxu2  ;;  %v12098_v41 = vld [vmem:[#allocation12 + $0xd18] sm:$0xf0]  ;;  %v12576_v13 = vld [vmem:[#allocation12 + $0x10a8] sm:$0xf] }
 0x3d1   :  { %7067 = vmatpush.bf16.msra.mxu3 %v11613_v26  ;;  %v14101_v26 = vld [vmem:[#allocation12 + $0x474] sm:$0xf0]  ;;  %v15561_v31 = vadd.f32 %v6900_v46, %v15545_v37  ;;  %v12050_v47 = vld [vmem:[#allocation12 + $0xcb8] sm:$0xf0] }
 0x3d2   :  { %7152 = vmatpush.bf16.msra.mxu2 %v12289_v3  ;;  %v14395_v3 = vld [vmem:[#allocation12 + $0xdac] sm:$0xf]  ;;  %v14353_v37 = vld [vmem:[#allocation12 + $0xc54] sm:$0xf0] }
 0x3d3   :  { %7180 = vmatpush.bf16.msrb.mxu0 %v10661_v2  ;;  %v11617_v2 = vor.u32 %v14257_v34, %v11616_v33  ;;  %v14113_v33 = vld [vmem:[#allocation12 + $0x4d4] sm:$0xf0]  ;;  %v12293_v34 = vor.u32 %v14419_v20, %v12290_v62  ;;  %v12197_v8 = vor.u32 %v14395_v3, %v12194_v49  ;;  %v10898_v62 = vld [vmem:[#allocation12 + $0x3b8] sm:$0xf0] }
 0x3d4   :  { %7068 = vmatmul.bf16.vlgmr.msra.gmra.mxu3 %v15356_v61  ;;  %v12722_v3 = vld [vmem:[#allocation12 + $0x11f8] sm:$0xf0] }
 0x3d5   :  { %7112 = vmatpush.bf16.msrb.mxu3 %v11185_v52  ;;  %7145 = vmatpush.bf16.msra.mxu1 %v11617_v2  ;;  %v12245_v52 = vor.u32 %v14407_v22, %v12242_v24  ;;  %v10993_v2 = vor.u32 %v14101_v26, %v10992_v25  ;;  %v10901_v24 = vor.u32 %v14071_v28, %v10898_v62  ;;  %v12720_v25 = vld [vmem:[#allocation12 + $0x11c8] sm:$0xf]  ;;  %v14533_v26 = vld [vmem:[#allocation12 + $0x11f4] sm:$0xf0]  ;;  %v14203_v62 = vld [vmem:[#allocation12 + $0x7ac] sm:$0xf] }
 0x3d6   :  { %7153 = vmatpush.bf16.msra.mxu2 %v12241_v10  ;;  %v14383_v10 = vld [vmem:[#allocation12 + $0xd4c] sm:$0xf]  ;;  %v12721_v49 = vor.u32 %v14533_v26, %v12720_v25  ;;  %v12578_v26 = vld [vmem:[#allocation12 + $0x10d8] sm:$0xf0] }
 0x3d7   :  { %7181 = vmatpush.bf16.msrb.mxu0 %v10613_v19  ;;  %v10469_v19 = vor.u32 %v13963_v53, %v10466_v60  ;;  %v12048_v53 = vld [vmem:[#allocation12 + $0xc88] sm:$0xf]  ;;  %v14365_v60 = vld [vmem:[#allocation12 + $0xcb4] sm:$0xf0]  ;;  %v6861_v57 = vpop.f32.mrf.mxu3  ;;  %v12149_v20 = vor.u32 %v14383_v10, %v12146_v4  ;;  %v6941_v17 = vpop.f32.mrf.mxu1  ;;  %v12002_v10 = vld [vmem:[#allocation12 + $0xc58] sm:$0xf0] }
 0x3d8   :  { %7146 = vmatmul.bf16.vlgmr.msra.gmra.mxu1 %v15356_v61  ;;  %v12049_v29 = vor.u32 %v14365_v60, %v12048_v53  ;;  %v6902_v22 = vpop.f32.mrf.mxu2  ;;  %v14521_v53 = vld [vmem:[#allocation12 + $0x1194] sm:$0xf0]  ;;  %v14515_v4 = vld [vmem:[#allocation12 + $0x116c] sm:$0xf] }
 0x3d9   :  { %7190 = vmatpush.bf16.msrb.mxu1 %v11189_v42  ;;  %7113 = vmatpush.bf16.msrb.mxu3 %v11137_v0  ;;  %v14089_v42 = vld [vmem:[#allocation12 + $0x414] sm:$0xf0]  ;;  %v14083_v0 = vld [vmem:[#allocation12 + $0x3ec] sm:$0xf] }
 0x3da   :  { %7154 = vmatpush.bf16.msra.mxu2 %v12193_v9  ;;  %v14239_v9 = vld [vmem:[#allocation12 + $0x8cc] sm:$0xf] }
 0x3db   :  { %7182 = vmatpush.bf16.msrb.mxu0 %v10565_v21  ;;  %v11041_v21 = vor.u32 %v14113_v33, %v11040_v59  ;;  %v11570_v59 = vld [vmem:[#allocation12 + $0x8f8] sm:$0xf0]  ;;  %v12904_v17 = vld [vmem:[#allocation15 + $0x160] sm:$0xf] }
 0x3dc   :  { %v14491_v25 = vld [vmem:[#allocation12 + $0x10ac] sm:$0xf] }
 0x3dd   :  { %7191 = vmatpush.bf16.msrb.mxu1 %v11141_v5  ;;  %7114 = vmatpush.bf16.msrb.mxu3 %v11089_v14  ;;  %v14077_v5 = vld [vmem:[#allocation12 + $0x3b4] sm:$0xf0]  ;;  %v15566_v14 = vadd.f32 %v6861_v57, %v15552_v32  ;;  %v11573_v32 = vor.u32 %v14239_v9, %v11570_v59  ;;  %v14581_v57 = vld [vmem:[#allocation15 + $0x174] sm:$0xf0]  ;;  %v11426_v9 = vld [vmem:[#allocation12 + $0x7d8] sm:$0xf0] }
 0x3de   :  { %7155 = vmatpush.bf16.msra.mxu2 %v12145_v48  ;;  %v10850_v48 = vld [vmem:[#allocation12 + $0x358] sm:$0xf0]  ;;  %v11429_v58 = vor.u32 %v14203_v62, %v11426_v9 }
 0x3df   :  { %7183 = vmatpush.bf16.msrb.mxu0 %v10517_v50  ;;  %v10944_v50 = vld [vmem:[#allocation12 + $0x3e8] sm:$0xf] }
 0x3e0   :  { %v10945_v51 = vor.u32 %v14089_v42, %v10944_v50  ;;  %v6863_v50 = vpop.f32.mrf.mxu3 }
 0x3e1   :  { %7192 = vmatpush.bf16.msrb.mxu1 %v11093_v15  ;;  %7115 = vmatpush.bf16.msrb.mxu3 %v11041_v21  ;;  %v14371_v15 = vld [vmem:[#allocation12 + $0xcec] sm:$0xf]  ;;  %v12530_v50 = vld [vmem:[#allocation12 + $0x1078] sm:$0xf0] }
 0x3e2   :  { %v14059_v21 = vld [vmem:[#allocation12 + $0x32c] sm:$0xf] }
 0x3e3   :  { %7184 = vmatpush.bf16.msrb.mxu0 %v10469_v19  ;;  %v10896_v19 = vld [vmem:[#allocation12 + $0x388] sm:$0xf]  ;;  %v15563_v6 = vpop.f32.mrf.mxu0  ;;  %v10853_v42 = vor.u32 %v14059_v21, %v10850_v48  ;;  %v14497_v21 = vld [vmem:[#allocation12 + $0x10d4] sm:$0xf0] }
 0x3e4   :  { %v10897_v33 = vor.u32 %v14077_v5, %v10896_v19  ;;  %v12912_v5 = vld [vmem:[#allocation15 + $0x170] sm:$0xf] }
 0x3e5   :  { %7193 = vmatpush.bf16.msrb.mxu1 %v11045_v1  ;;  %7116 = vmatpush.bf16.msrb.mxu3 %v10993_v2  ;;  %v12101_v1 = vor.u32 %v14371_v15, %v12098_v41  ;;  %v14527_v2 = vld [vmem:[#allocation12 + $0x11cc] sm:$0xf]  ;;  %v12913_v59 = vor.u32 %v14581_v57, %v12912_v5  ;;  %v12626_v15 = vld [vmem:[#allocation12 + $0x1138] sm:$0xf0] }
 0x3e6   :  { %7185 = vmatmul.bf16.vlgmr.msrb.gmra.mxu0 %v15342_v16  ;;  %v12097_v16 = vor.u32 %v14377_v30, %v12096_v44  ;;  %v14227_v44 = vld [vmem:[#allocation12 + $0x86c] sm:$0xf]  ;;  %v11522_v30 = vld [vmem:[#allocation12 + $0x898] sm:$0xf0] }
 0x3e7   :  { %7229 = vmatpush.bf16.msra.mxu0 %v12341_v7  ;;  %v10949_v7 = vor.u32 %v14083_v0, %v10946_v45  ;;  %v11525_v46 = vor.u32 %v14227_v44, %v11522_v30  ;;  %v14215_v0 = vld [vmem:[#allocation12 + $0x80c] sm:$0xf]  ;;  %v11474_v45 = vld [vmem:[#allocation12 + $0x838] sm:$0xf0]  ;;  %v14577_v44 = vld [vmem:[#allocation15 + $0x154] sm:$0xf0] }
 0x3e8   :  { %7156 = vmatpush.bf16.msra.mxu2 %v12097_v16  ;;  %v12880_v57 = vld [vmem:[#allocation15 + $0x130] sm:$0xf] }
 0x3e9   :  { %7194 = vmatpush.bf16.msrb.mxu1 %v10997_v55  ;;  %7117 = vmatpush.bf16.msrb.mxu3 %v10945_v51  ;;  %v12672_v55 = vld [vmem:[#allocation12 + $0x1168] sm:$0xf]  ;;  %v14347_v51 = vld [vmem:[#allocation12 + $0xc2c] sm:$0xf] }
 0x3ea   :  { %v12673_v19 = vor.u32 %v14521_v53, %v12672_v55  ;;  %v12005_v28 = vor.u32 %v14347_v51, %v12002_v10  ;;  %v14575_v55 = vld [vmem:[#allocation15 + $0x144] sm:$0xf0]  ;;  %v14167_v51 = vld [vmem:[#allocation12 + $0x68c] sm:$0xf]  ;;  %v11282_v10 = vld [vmem:[#allocation12 + $0x6b8] sm:$0xf0] }
 0x3eb   :  { %7230 = vmatpush.bf16.msra.mxu0 %v12293_v34  ;;  %v12001_v34 = vor.u32 %v14353_v37, %v12000_v11  ;;  %v6980_v16 = vpop.f32.mrf.mxu0  ;;  %v12624_v11 = vld [vmem:[#allocation12 + $0x1108] sm:$0xf]  ;;  %v14509_v37 = vld [vmem:[#allocation12 + $0x1134] sm:$0xf0] }
 0x3ec   :  { %7157 = vmatpush.bf16.msra.mxu2 %v12049_v29  ;;  %v12674_v29 = vld [vmem:[#allocation12 + $0x1198] sm:$0xf0]  ;;  %v12625_v41 = vor.u32 %v14509_v37, %v12624_v11  ;;  %v14479_v16 = vld [vmem:[#allocation12 + $0x104c] sm:$0xf]  ;;  %v11285_v11 = vor.u32 %v14167_v51, %v11282_v10  ;;  %v12432_v37 = vld [vmem:[#allocation12 + $0xf88] sm:$0xf] }
 0x3ed   :  { %7195 = vmatpush.bf16.msrb.mxu1 %v10949_v7  ;;  %7118 = vmatpush.bf16.msrb.mxu3 %v10897_v33  ;;  %v11477_v7 = vor.u32 %v14215_v0, %v11474_v45  ;;  %v14503_v33 = vld [vmem:[#allocation12 + $0x110c] sm:$0xf]  ;;  %v12533_v45 = vor.u32 %v14479_v16, %v12530_v50  ;;  %v12864_v16 = vld [vmem:[#allocation15 + $0x110] sm:$0xf] }
 0x3ee   :  { %v12629_v22 = vor.u32 %v14503_v33, %v12626_v15  ;;  %v11234_v33 = vld [vmem:[#allocation12 + $0x658] sm:$0xf0]  ;;  %v14455_v15 = vld [vmem:[#allocation12 + $0xf8c] sm:$0xf] }
 0x3ef   :  { %7231 = vmatpush.bf16.msra.mxu0 %v12245_v52  ;;  %v14359_v52 = vld [vmem:[#allocation12 + $0xc8c] sm:$0xf]  ;;  %v11906_v10 = vld [vmem:[#allocation12 + $0xb98] sm:$0xf0] }
 0x3f0   :  { %7158 = vmatpush.bf16.msra.mxu2 %v12001_v34  ;;  %v12053_v60 = vor.u32 %v14359_v52, %v12050_v47  ;;  %v14579_v34 = vld [vmem:[#allocation15 + $0x164] sm:$0xf0]  ;;  %v12528_v52 = vld [vmem:[#allocation12 + $0x1048] sm:$0xf]  ;;  %v12581_v47 = vor.u32 %v14491_v25, %v12578_v26 }
 0x3f1   :  { %7196 = vmatpush.bf16.msrb.mxu1 %v10901_v24  ;;  %7119 = vmatpush.bf16.msrb.mxu3 %v10849_v40  ;;  %v14191_v24 = vld [vmem:[#allocation12 + $0x74c] sm:$0xf]  ;;  %v12905_v48 = vor.u32 %v14579_v34, %v12904_v17  ;;  %v14485_v40 = vld [vmem:[#allocation12 + $0x1074] sm:$0xf0]  ;;  %v15572_v53 = vpop.f32.mrf.mxu1  ;;  %v12434_v34 = vld [vmem:[#allocation12 + $0xfb8] sm:$0xf0] }
 0x3f2   :  { %v15574_v0 = vpop.f32.mrf.mxu2  ;;  %v12384_v26 = vld [vmem:[#allocation12 + $0xf28] sm:$0xf] }
 0x3f3   :  { %7232 = vmatpush.bf16.msra.mxu0 %v12197_v8  ;;  %v12725_v8 = vor.u32 %v14527_v2, %v12722_v3  ;;  %7159 = vmatmul.bf16.vlgmr.msra.gmra.mxu2 %v15378_v54  ;;  %v14179_v2 = vld [vmem:[#allocation12 + $0x6ec] sm:$0xf]  ;;  %v11330_v3 = vld [vmem:[#allocation12 + $0x718] sm:$0xf0] }
 0x3f4   :  { %7203 = vmatpush.bf16.msrb.mxu2 %v11573_v32  ;;  %7120 = vmatmul.bf16.vlgmr.msrb.gmra.mxu3 %v15344_v18  ;;  %v11378_v32 = vld [vmem:[#allocation12 + $0x778] sm:$0xf0] }
 0x3f5   :  { %7164 = vmatpush.bf16.msra.mxu3 %v12721_v49  ;;  %7197 = vmatpush.bf16.msrb.mxu1 %v10853_v42  ;;  %v11381_v30 = vor.u32 %v14191_v24, %v11378_v32  ;;  %v12529_v42 = vor.u32 %v14485_v40, %v12528_v52  ;;  %v14571_v24 = vld [vmem:[#allocation15 + $0x124] sm:$0xf0]  ;;  %v12386_v52 = vld [vmem:[#allocation12 + $0xf58] sm:$0xf0]  ;;  %v14335_v40 = vld [vmem:[#allocation12 + $0xbcc] sm:$0xf] }
 0x3f7   :  { %7233 = vmatpush.bf16.msra.mxu0 %v12149_v20  ;;  %v12677_v20 = vor.u32 %v14515_v4, %v12674_v29  ;;  %v14467_v29 = vld [vmem:[#allocation12 + $0xfec] sm:$0xf]  ;;  %v6913_v62 = vpop.f32.mrf.mxu3 }
 0x3f8   :  { %7204 = vmatpush.bf16.msrb.mxu2 %v11525_v46  ;;  %7198 = vmatmul.bf16.vlgmr.msrb.gmra.mxu1 %v15344_v18  ;;  %v12896_v18 = vld [vmem:[#allocation15 + $0x150] sm:$0xf]  ;;  %v12888_v46 = vld [vmem:[#allocation15 + $0x140] sm:$0xf] }
 0x3f9   :  { %7242 = vmatpush.bf16.msra.mxu1 %v12725_v8  ;;  %7165 = vmatpush.bf16.msra.mxu3 %v12673_v19  ;;  %v12897_v49 = vor.u32 %v14577_v44, %v12896_v18  ;;  %v14473_v8 = vld [vmem:[#allocation12 + $0x1014] sm:$0xf0]  ;;  %v12889_v4 = vor.u32 %v14575_v55, %v12888_v46  ;;  %v12482_v19 = vld [vmem:[#allocation12 + $0x1018] sm:$0xf0]  ;;  %v14443_v18 = vld [vmem:[#allocation12 + $0xf2c] sm:$0xf] }
 0x3fa   :  { %v12485_v9 = vor.u32 %v14467_v29, %v12482_v19  ;;  %v6954_v44 = vpop.f32.mrf.mxu2  ;;  %v12976_v46 = vld [vmem:[#allocation15 + $0x1f0] sm:$0xf]  ;;  %v14597_v55 = vld [vmem:[#allocation15 + $0x1f4] sm:$0xf0] }
 0x3fb   :  { %7234 = vmatpush.bf16.msra.mxu0 %v12101_v1  ;;  %v12577_v1 = vor.u32 %v14497_v21, %v12576_v13  ;;  %v14549_v13 = vld [vmem:[#allocation15 + $0x74] sm:$0xf0]  ;;  %v12977_v29 = vor.u32 %v14597_v55, %v12976_v46  ;;  %v12768_v19 = vld [vmem:[#allocation15 + $0x50] sm:$0xf]  ;;  %v12744_v55 = vld [vmem:[#allocation15 + $0x20] sm:$0xf] }
 0x3fc   :  { %7205 = vmatpush.bf16.msrb.mxu2 %v11477_v7  ;;  %v14573_v7 = vld [vmem:[#allocation15 + $0x134] sm:$0xf0]  ;;  %v12752_v44 = vld [vmem:[#allocation15 + $0x30] sm:$0xf] }
 0x3fd   :  { %7243 = vmatpush.bf16.msra.mxu1 %v12677_v20  ;;  %7166 = vmatpush.bf16.msra.mxu3 %v12625_v41  ;;  %v6914_v41 = vadd.f32 %v6913_v62, %v15561_v31  ;;  %v12881_v17 = vor.u32 %v14573_v7, %v12880_v57  ;;  %v12437_v31 = vor.u32 %v14455_v15, %v12434_v34  ;;  %v12856_v57 = vld [vmem:[#allocation15 + $0x100] sm:$0xf]  ;;  %v14567_v7 = vld [vmem:[#allocation15 + $0x104] sm:$0xf0]  ;;  %v13168_v62 = vld [vmem:[#allocation15 + $0x370] sm:$0xf] }
 0x3fe   :  { %v11858_v15 = vld [vmem:[#allocation12 + $0xb38] sm:$0xf0]  ;;  %v12760_v34 = vld [vmem:[#allocation15 + $0x40] sm:$0xf] }
 0x3ff   :  { %7235 = vmatpush.bf16.msra.mxu0 %v12053_v60  ;;  %v12480_v60 = vld [vmem:[#allocation12 + $0xfe8] sm:$0xf]  ;;  %v6927_v32 = vadd.f32 %v15548_v63, %v6914_v41  ;;  %v14547_v63 = vld [vmem:[#allocation15 + $0x64] sm:$0xf0]  ;;  %v12857_v41 = vor.u32 %v14567_v7, %v12856_v57  ;;  %v14275_v57 = vld [vmem:[#allocation12 + $0x9ec] sm:$0xf] }
 0x400   :  { %7206 = vmatpush.bf16.msrb.mxu2 %v11429_v58  ;;  %v12481_v5 = vor.u32 %v14473_v8, %v12480_v60  ;;  %v12784_v58 = vld [vmem:[#allocation15 + $0x70] sm:$0xf]  ;;  %v6915_v8 = vpop.f32.mrf.mxu3 }
 0x401   :  { %7244 = vmatpush.bf16.msra.mxu1 %v12629_v22  ;;  %7167 = vmatpush.bf16.msra.mxu3 %v12577_v1  ;;  %v12872_v22 = vld [vmem:[#allocation15 + $0x120] sm:$0xf]  ;;  %v14449_v1 = vld [vmem:[#allocation12 + $0xf54] sm:$0xf0]  ;;  %v12944_v8 = vld [vmem:[#allocation15 + $0x1b0] sm:$0xf] }
 0x402   :  { %v12385_v50 = vor.u32 %v14449_v1, %v12384_v26  ;;  %v14299_v26 = vld [vmem:[#allocation12 + $0xaac] sm:$0xf]  ;;  %v11810_v1 = vld [vmem:[#allocation12 + $0xad8] sm:$0xf0] }
 0x403   :  { %7236 = vmatpush.bf16.msra.mxu0 %v12005_v28  ;;  %v14461_v28 = vld [vmem:[#allocation12 + $0xfb4] sm:$0xf0]  ;;  %v15576_v20 = vpop.f32.mrf.mxu0  ;;  %v11714_v7 = vld [vmem:[#allocation12 + $0xa18] sm:$0xf0] }
 0x404   :  { %7207 = vmatpush.bf16.msrb.mxu2 %v11381_v30  ;;  %v12433_v21 = vor.u32 %v14461_v28, %v12432_v37  ;;  %v12785_v30 = vor.u32 %v14549_v13, %v12784_v58  ;;  %v14595_v37 = vld [vmem:[#allocation15 + $0x1e4] sm:$0xf0] }
 0x405   :  { %7245 = vmatpush.bf16.msra.mxu1 %v12581_v47  ;;  %7168 = vmatpush.bf16.msra.mxu3 %v12529_v42  ;;  %v11954_v47 = vld [vmem:[#allocation12 + $0xbf8] sm:$0xf0]  ;;  %v14569_v42 = vld [vmem:[#allocation15 + $0x114] sm:$0xf0]  ;;  %v14543_v58 = vld [vmem:[#allocation15 + $0x44] sm:$0xf0] }
 0x406   :  { %7237 = vmatmul.bf16.vlgmr.msra.gmra.mxu0 %v15378_v54  ;;  %v11333_v54 = vor.u32 %v14179_v2, %v11330_v3  ;;  %v15581_v2 = vadd.f32 %v15558_v56, %v6927_v32  ;;  %v12873_v3 = vor.u32 %v14571_v24, %v12872_v22  ;;  %v14323_v56 = vld [vmem:[#allocation12 + $0xb6c] sm:$0xf]  ;;  %v14593_v22 = vld [vmem:[#allocation15 + $0x1d4] sm:$0xf0] }
 0x407   :  { %8463 = vmatpush.bf16.msrb.mxu0 %v12913_v59  ;;  %v14155_v59 = vld [vmem:[#allocation12 + $0x62c] sm:$0xf]  ;;  %v11909_v28 = vor.u32 %v14323_v56, %v11906_v10 }
 0x408   :  { %7208 = vmatpush.bf16.msrb.mxu2 %v11333_v54  ;;  %v11237_v25 = vor.u32 %v14155_v59, %v11234_v33  ;;  %v11957_v54 = vor.u32 %v14335_v40, %v11954_v47  ;;  %v14311_v33 = vld [vmem:[#allocation12 + $0xb0c] sm:$0xf]  ;;  %v14591_v40 = vld [vmem:[#allocation15 + $0x1c4] sm:$0xf0] }
 0x409   :  { %7246 = vmatpush.bf16.msra.mxu1 %v12533_v45  ;;  %7169 = vmatpush.bf16.msra.mxu3 %v12481_v5  ;;  %v12389_v45 = vor.u32 %v14443_v18, %v12386_v52  ;;  %v14545_v5 = vld [vmem:[#allocation15 + $0x54] sm:$0xf0]  ;;  %v11861_v24 = vor.u32 %v14311_v33, %v11858_v15  ;;  %v13160_v32 = vld [vmem:[#allocation15 + $0x360] sm:$0xf]  ;;  %v14587_v33 = vld [vmem:[#allocation15 + $0x1a4] sm:$0xf0]  ;;  %v11717_v15 = vor.u32 %v14275_v57, %v11714_v7 }
 0x40a   :  { %v12769_v59 = vor.u32 %v14545_v5, %v12768_v19  ;;  %v13144_v10 = vld [vmem:[#allocation15 + $0x340] sm:$0xf]  ;;  %v7258_v7 = vmax.f32 %v15493_v35, 0.0  ;;  %v14659_v35 = vld [vmem:[#allocation15 + $0x3e4] sm:$0xf0] }
 0x40b   :  { %8464 = vmatpush.bf16.msrb.mxu0 %v12905_v48  ;;  %v6993_v48 = vpop.f32.mrf.mxu1  ;;  %v7032_v60 = vpop.f32.mrf.mxu0 }
 0x40c   :  { %7209 = vmatpush.bf16.msrb.mxu2 %v11285_v11  ;;  %v12968_v11 = vld [vmem:[#allocation15 + $0x1e0] sm:$0xf]  ;;  %v14643_v48 = vld [vmem:[#allocation15 + $0x364] sm:$0xf0] }
 0x40d   :  { %7247 = vmatpush.bf16.msra.mxu1 %v12485_v9  ;;  %7170 = vmatpush.bf16.msra.mxu3 %v12433_v21  ;;  %v14645_v9 = vld [vmem:[#allocation15 + $0x374] sm:$0xf0]  ;;  %v12960_v21 = vld [vmem:[#allocation15 + $0x1d0] sm:$0xf]  ;;  %v13161_v52 = vor.u32 %v14643_v48, %v13160_v32  ;;  %v12728_v32 = vld [vmem:[#allocation15] sm:$0xf] }
 0x40e   :  { %v13169_v13 = vor.u32 %v14645_v9, %v13168_v62  ;;  %v12961_v18 = vor.u32 %v14593_v22, %v12960_v21  ;;  %v12736_v62 = vld [vmem:[#allocation15 + $0x10] sm:$0xf]  ;;  %v14537_v9 = vld [vmem:[#allocation15 + $0x14] sm:$0xf0]  ;;  %v14535_v48 = vld [vmem:[#allocation15 + $0x4] sm:$0xf0] }
 0x40f   :  { %8465 = vmatpush.bf16.msrb.mxu0 %v12897_v49  ;;  %v12776_v49 = vld [vmem:[#allocation15 + $0x60] sm:$0xf] }
 0x410   :  { %7210 = vmatpush.bf16.msrb.mxu2 %v11237_v25  ;;  %v12777_v51 = vor.u32 %v14547_v63, %v12776_v49  ;;  %v12761_v25 = vor.u32 %v14543_v58, %v12760_v34  ;;  %v13152_v49 = vld [vmem:[#allocation15 + $0x350] sm:$0xf]  ;;  %v14641_v63 = vld [vmem:[#allocation15 + $0x354] sm:$0xf0]  ;;  %v12737_v58 = vor.u32 %v14537_v9, %v12736_v62 }
 0x411   :  { %7248 = vmatpush.bf16.msra.mxu1 %v12437_v31  ;;  %7171 = vmatpush.bf16.msra.mxu3 %v12385_v50  ;;  %v14287_v50 = vld [vmem:[#allocation12 + $0xa4c] sm:$0xf]  ;;  %v13153_v60 = vor.u32 %v14641_v63, %v13152_v49  ;;  %v12729_v49 = vor.u32 %v14535_v48, %v12728_v32  ;;  %v14561_v32 = vld [vmem:[#allocation15 + $0xd4] sm:$0xf0]  ;;  %v15611_v48 = vpack.c.bf16 %v7258_v7, %v7258_v7  ;;  %v12992_v7 = vld [vmem:[#allocation15 + $0x210] sm:$0xf] }
 0x412   :  { %v14251_v63 = vld [vmem:[#allocation12 + $0x92c] sm:$0xf] }
 0x413   :  { %8466 = vmatpush.bf16.msrb.mxu0 %v12889_v4  ;;  %v12865_v4 = vor.u32 %v14569_v42, %v12864_v16  ;;  %7211 = vmatmul.bf16.vlgmr.msrb.gmra.mxu2 %v15348_v36  ;;  %v7257_v36 = vmax.f32 %v15478_v23, 0.0  ;;  %v14541_v23 = vld [vmem:[#allocation15 + $0x34] sm:$0xf0]  ;;  %v11762_v42 = vld [vmem:[#allocation12 + $0xa78] sm:$0xf0]  ;;  %v7043_v19 = vpop.f32.mrf.mxu1 }
 0x414   :  { %8437 = vmatpush.bf16.msra.mxu2 %v12785_v30  ;;  %7172 = vmatmul.bf16.vlgmr.msra.gmra.mxu3 %v15387_v38  ;;  %v15589_v30 = vld [vmem:[#allocation14 + $0x8] sm:$0xf]  ;;  %v12753_v16 = vor.u32 %v14541_v23, %v12752_v44  ;;  %v11765_v56 = vor.u32 %v14287_v50, %v11762_v42  ;;  %v13040_v44 = vld [vmem:[#allocation15 + $0x270] sm:$0xf]  ;;  %v14613_v23 = vld [vmem:[#allocation15 + $0x274] sm:$0xf0] }
 0x415   :  { %7216 = vmatpush.bf16.msrb.mxu3 %v11957_v54  ;;  %7249 = vmatpush.bf16.msra.mxu1 %v12389_v45  ;;  %v15587_v31 = vpack.c.bf16 %v7257_v36, %v7257_v36  ;;  %v3424_v47 = vperm.slane %v15589_v30, 1  ;;  %v14539_v54 = vld [vmem:[#allocation15 + $0x24] sm:$0xf0]  ;;  %v14589_v45 = vld [vmem:[#allocation15 + $0x1b4] sm:$0xf0] }
 0x416   :  { %v12745_v5 = vor.u32 %v14539_v54, %v12744_v55  ;;  %v14263_v36 = vld [vmem:[#allocation12 + $0x98c] sm:$0xf]  ;;  %v13041_v55 = vor.u32 %v14613_v23, %v13040_v44  ;;  %v14583_v54 = vld [vmem:[#allocation15 + $0x184] sm:$0xf0]  ;;  %v7261_v44 = vmax.f32 %v15566_v14, 0.0 }
 0x417   :  { %8467 = vmatpush.bf16.msrb.mxu0 %v12881_v17  ;;  %v12969_v17 = vor.u32 %v14595_v37, %v12968_v11  ;;  %v15597_v37 = vpop.f32.mrf.mxu2  ;;  %v6965_v22 = vpop.f32.mrf.mxu3  ;;  %v12920_v50 = vld [vmem:[#allocation15 + $0x180] sm:$0xf]  ;;  %v13216_v23 = vld [vmem:[#allocation15 + $0x3d0] sm:$0xf] }
 0x418   :  { %8438 = vmatpush.bf16.msra.mxu2 %v12777_v51  ;;  %7250 = vmatmul.bf16.vlgmr.msra.gmra.mxu1 %v15387_v38  ;;  %v12952_v38 = vld [vmem:[#allocation15 + $0x1c0] sm:$0xf]  ;;  %v7031_v51 = vadd.f32 %v15576_v20, %v3424_v47  ;;  %v12921_v9 = vor.u32 %v14583_v54, %v12920_v50  ;;  %v14655_v50 = vld [vmem:[#allocation15 + $0x3c4] sm:$0xf0] }
 0x419   :  { %8476 = vmatpush.bf16.msrb.mxu1 %v12977_v29  ;;  %7217 = vmatpush.bf16.msrb.mxu3 %v11909_v28  ;;  %v12953_v46 = vor.u32 %v14591_v40, %v12952_v38  ;;  %v3423_v29 = vperm.slane %v15589_v30, 0  ;;  %v12945_v28 = vor.u32 %v14589_v45, %v12944_v8  ;;  %v13128_v38 = vld [vmem:[#allocation15 + $0x320] sm:$0xf]  ;;  %v14635_v40 = vld [vmem:[#allocation15 + $0x324] sm:$0xf0] }
 0x41a   :  { %v15595_v11 = vadd.f32 %v7043_v19, %v7031_v51  ;;  %v14565_v8 = vld [vmem:[#allocation15 + $0xf4] sm:$0xf0]  ;;  %v13032_v45 = vld [vmem:[#allocation15 + $0x260] sm:$0xf]  ;;  %v14611_v51 = vld [vmem:[#allocation15 + $0x264] sm:$0xf0] }
 0x41b   :  { %8468 = vmatpush.bf16.msrb.mxu0 %v12873_v3  ;;  %v11813_v3 = vor.u32 %v14299_v26, %v11810_v1  ;;  %v6953_v34 = vadd.f32 %v15574_v0, %v3423_v29  ;;  %v7255_v0 = vmax.f32 %v15437_v43, 0.0  ;;  %v13129_v43 = vor.u32 %v14635_v40, %v13128_v38  ;;  %v13232_v29 = vld [vmem:[#allocation15 + $0x3f0] sm:$0xf]  ;;  %v14661_v19 = vld [vmem:[#allocation15 + $0x3f4] sm:$0xf0] }
 0x41c   :  { %8439 = vmatpush.bf16.msra.mxu2 %v12769_v59  ;;  %v12936_v59 = vld [vmem:[#allocation15 + $0x1a0] sm:$0xf] }
 0x41d   :  { %8477 = vmatpush.bf16.msrb.mxu1 %v12969_v17  ;;  %7218 = vmatpush.bf16.msrb.mxu3 %v11861_v24  ;;  %v14637_v17 = vld [vmem:[#allocation15 + $0x334] sm:$0xf0]  ;;  %v12937_v24 = vor.u32 %v14587_v33, %v12936_v59  ;;  %v6966_v26 = vadd.f32 %v6965_v22, %v6953_v34  ;;  %v15607_v57 = vpack.c.bf16 %v7255_v0, %v7255_v0  ;;  %v12840_v59 = vld [vmem:[#allocation15 + $0xe0] sm:$0xf] }
 0x41e   :  { %v13112_v34 = vld [vmem:[#allocation15 + $0x300] sm:$0xf]  ;;  %v14657_v0 = vld [vmem:[#allocation15 + $0x3d4] sm:$0xf0] }
 0x41f   :  { %8469 = vmatpush.bf16.msrb.mxu0 %v12865_v4  ;;  %v14639_v4 = vld [vmem:[#allocation15 + $0x344] sm:$0xf0]  ;;  %v6979_v47 = vadd.f32 %v15563_v6, %v6966_v26  ;;  %v7006_v42 = vpop.f32.mrf.mxu2  ;;  %v6967_v62 = vpop.f32.mrf.mxu3  ;;  %v12824_v40 = vld [vmem:[#allocation15 + $0xc0] sm:$0xf] }
 0x420   :  { %8440 = vmatpush.bf16.msra.mxu2 %v12761_v25  ;;  %v13145_v20 = vor.u32 %v14639_v4, %v13144_v10  ;;  %v12928_v25 = vld [vmem:[#allocation15 + $0x190] sm:$0xf]  ;;  %v14633_v4 = vld [vmem:[#allocation15 + $0x314] sm:$0xf0]  ;;  %v13208_v14 = vld [vmem:[#allocation15 + $0x3c0] sm:$0xf] }
 0x421   :  { %8478 = vmatpush.bf16.msrb.mxu1 %v12961_v18  ;;  %7219 = vmatpush.bf16.msrb.mxu3 %v11813_v3  ;;  %v14585_v18 = vld [vmem:[#allocation15 + $0x194] sm:$0xf0]  ;;  %v7045_v3 = vpop.f32.mrf.mxu1  ;;  %v15605_v6 = vadd.f32 %v15572_v53, %v6979_v47  ;;  %v14563_v53 = vld [vmem:[#allocation15 + $0xe4] sm:$0xf0]  ;;  %v13209_v54 = vor.u32 %v14655_v50, %v13208_v14  ;;  %v13192_v62 = vld [vmem:[#allocation15 + $0x3a0] sm:$0xf] }
 0x422   :  { %v14559_v47 = vld [vmem:[#allocation15 + $0xc4] sm:$0xf0]  ;;  %v13217_v3 = vor.u32 %v14657_v0, %v13216_v23  ;;  %v13424_v23 = vld [vmem:[#allocation15 + $0x570] sm:$0xf] }
 0x423   :  { %8470 = vmatpush.bf16.msrb.mxu0 %v12857_v41  ;;  %v13136_v41 = vld [vmem:[#allocation15 + $0x330] sm:$0xf]  ;;  %v15600_v21 = vpop.f32.mrf.mxu0  ;;  %v14675_v14 = vld [vmem:[#allocation15 + $0x464] sm:$0xf0] }
 0x424   :  { %8441 = vmatpush.bf16.msra.mxu2 %v12753_v16  ;;  %v13137_v1 = vor.u32 %v14637_v17, %v13136_v41  ;;  %v11618_v16 = vld [vmem:[#allocation12 + $0x958] sm:$0xf0]  ;;  %v14609_v17 = vld [vmem:[#allocation15 + $0x254] sm:$0xf0] }
 0x425   :  { %8479 = vmatpush.bf16.msrb.mxu1 %v12953_v46  ;;  %7220 = vmatpush.bf16.msrb.mxu3 %v11765_v56  ;;  %v12929_v46 = vor.u32 %v14585_v18, %v12928_v25  ;;  %v13120_v56 = vld [vmem:[#allocation15 + $0x310] sm:$0xf]  ;;  %v11621_v10 = vor.u32 %v14251_v63, %v11618_v16  ;;  %v14607_v18 = vld [vmem:[#allocation15 + $0x244] sm:$0xf0]  ;;  %v14605_v63 = vld [vmem:[#allocation15 + $0x234] sm:$0xf0]  ;;  %v15616_v16 = vpack.c.bf16 %v7261_v44, %v7261_v44 }
 0x426   :  { %8471 = vmatmul.bf16.vlgmr.msrb.gmra.mxu0 %v15587_v31  ;;  %v13121_v33 = vor.u32 %v14633_v4, %v13120_v56  ;;  %v13024_v41 = vld [vmem:[#allocation15 + $0x250] sm:$0xf]  ;;  %v12808_v4 = vld [vmem:[#allocation15 + $0xa0] sm:$0xf] }
 0x427   :  { %8515 = vmatpush.bf16.msra.mxu0 %v13169_v13  ;;  %v11666_v13 = vld [vmem:[#allocation12 + $0x9b8] sm:$0xf0]  ;;  %v13025_v22 = vor.u32 %v14609_v17, %v13024_v41  ;;  %v13176_v44 = vld [vmem:[#allocation15 + $0x380] sm:$0xf] }
 0x428   :  { %8442 = vmatpush.bf16.msra.mxu2 %v12745_v5 }
 0x429   :  { %8480 = vmatpush.bf16.msrb.mxu1 %v12945_v28  ;;  %7221 = vmatpush.bf16.msrb.mxu3 %v11717_v15  ;;  %v13233_v15 = vor.u32 %v14661_v19, %v13232_v29  ;;  %v14555_v29 = vld [vmem:[#allocation15 + $0xa4] sm:$0xf0] }
 0x42b   :  { %8516 = vmatpush.bf16.msra.mxu0 %v13161_v52  ;;  %v11669_v52 = vor.u32 %v14263_v36, %v11666_v13  ;;  %v7084_v28 = vpop.f32.mrf.mxu0  ;;  %v13224_v36 = vld [vmem:[#allocation15 + $0x3e0] sm:$0xf]  ;;  %v12841_v13 = vor.u32 %v14563_v53, %v12840_v59  ;;  %v12800_v53 = vld [vmem:[#allocation15 + $0x90] sm:$0xf] }
 0x42c   :  { %8443 = vmatpush.bf16.msra.mxu2 %v12737_v58  ;;  %v14631_v58 = vld [vmem:[#allocation15 + $0x304] sm:$0xf0]  ;;  %v13225_v26 = vor.u32 %v14659_v35, %v13224_v36  ;;  %v14601_v28 = vld [vmem:[#allocation15 + $0x214] sm:$0xf0]  ;;  %v13184_v36 = vld [vmem:[#allocation15 + $0x390] sm:$0xf] }
 0x42d   :  { %8481 = vmatpush.bf16.msrb.mxu1 %v12937_v24  ;;  %7222 = vmatpush.bf16.msrb.mxu3 %v11669_v52  ;;  %v12832_v24 = vld [vmem:[#allocation15 + $0xd0] sm:$0xf]  ;;  %v13113_v25 = vor.u32 %v14631_v58, %v13112_v34  ;;  %v12993_v59 = vor.u32 %v14601_v28, %v12992_v7  ;;  %v12984_v34 = vld [vmem:[#allocation15 + $0x200] sm:$0xf]  ;;  %v14599_v58 = vld [vmem:[#allocation15 + $0x204] sm:$0xf0] }
 0x42e   :  { %v12833_v52 = vor.u32 %v14561_v32, %v12832_v24  ;;  %v14649_v35 = vld [vmem:[#allocation15 + $0x394] sm:$0xf0]  ;;  %v7259_v24 = vmax.f32 %v15523_v39, 0.0 }
 0x42f   :  { %8517 = vmatpush.bf16.msra.mxu0 %v13153_v60  ;;  %v12848_v60 = vld [vmem:[#allocation15 + $0xf0] sm:$0xf]  ;;  %v14673_v7 = vld [vmem:[#allocation15 + $0x454] sm:$0xf0] }
 0x430   :  { %8444 = vmatpush.bf16.msra.mxu2 %v12729_v49  ;;  %v12849_v5 = vor.u32 %v14565_v8, %v12848_v60  ;;  %v13008_v49 = vld [vmem:[#allocation15 + $0x230] sm:$0xf]  ;;  %v13000_v60 = vld [vmem:[#allocation15 + $0x220] sm:$0xf]  ;;  %v14603_v8 = vld [vmem:[#allocation15 + $0x224] sm:$0xf0] }
 0x431   :  { %8482 = vmatpush.bf16.msrb.mxu1 %v12929_v46  ;;  %7223 = vmatpush.bf16.msrb.mxu3 %v11621_v10  ;;  %v13009_v42 = vor.u32 %v14605_v63, %v13008_v49  ;;  %v12816_v46 = vld [vmem:[#allocation15 + $0xb0] sm:$0xf]  ;;  %v15619_v56 = vpop.f32.mrf.mxu1  ;;  %v13001_v10 = vor.u32 %v14603_v8, %v13000_v60  ;;  %v14647_v49 = vld [vmem:[#allocation15 + $0x384] sm:$0xf0]  ;;  %v13288_v63 = vld [vmem:[#allocation15 + $0x460] sm:$0xf] }
 0x432   :  { %v15621_v19 = vpop.f32.mrf.mxu2  ;;  %v14705_v28 = vld [vmem:[#allocation15 + $0x554] sm:$0xf0] }
 0x433   :  { %8518 = vmatpush.bf16.msra.mxu0 %v13145_v20  ;;  %v13033_v20 = vor.u32 %v14611_v51, %v13032_v45  ;;  %8445 = vmatmul.bf16.vlgmr.msra.gmra.mxu2 %v15607_v57  ;;  %v14653_v45 = vld [vmem:[#allocation15 + $0x3b4] sm:$0xf0] }
 0x434   :  { %8489 = vmatpush.bf16.msrb.mxu2 %v13041_v55  ;;  %7224 = vmatmul.bf16.vlgmr.msrb.gmra.mxu3 %v15356_v61  ;;  %v12825_v61 = vor.u32 %v14559_v47, %v12824_v40  ;;  %v14557_v55 = vld [vmem:[#allocation15 + $0xb4] sm:$0xf0]  ;;  %v13104_v40 = vld [vmem:[#allocation15 + $0x2f0] sm:$0xf] }
 0x435   :  { %8450 = vmatpush.bf16.msra.mxu3 %v12849_v5  ;;  %8483 = vmatpush.bf16.msrb.mxu1 %v12921_v9  ;;  %v12817_v51 = vor.u32 %v14557_v55, %v12816_v46  ;;  %v14651_v9 = vld [vmem:[#allocation15 + $0x3a4] sm:$0xf0]  ;;  %v14629_v47 = vld [vmem:[#allocation15 + $0x2f4] sm:$0xf0]  ;;  %v15629_v46 = vpack.c.bf16 %v7259_v24, %v7259_v24 }
 0x436   :  { %v13193_v17 = vor.u32 %v14651_v9, %v13192_v62  ;;  %v13105_v55 = vor.u32 %v14629_v47, %v13104_v40  ;;  %v14623_v24 = vld [vmem:[#allocation15 + $0x2c4] sm:$0xf0]  ;;  %v13256_v40 = vld [vmem:[#allocation15 + $0x420] sm:$0xf] }
 0x437   :  { %8519 = vmatpush.bf16.msra.mxu0 %v13137_v1  ;;  %v13016_v1 = vld [vmem:[#allocation15 + $0x240] sm:$0xf]  ;;  %v15625_v41 = vpop.f32.mrf.mxu3  ;;  %v14667_v47 = vld [vmem:[#allocation15 + $0x424] sm:$0xf0] }
 0x438   :  { %8490 = vmatpush.bf16.msrb.mxu2 %v13033_v20  ;;  %8484 = vmatmul.bf16.vlgmr.msrb.gmra.mxu1 %v15611_v48  ;;  %v13017_v38 = vor.u32 %v14607_v18, %v13016_v1  ;;  %v12809_v20 = vor.u32 %v14555_v29, %v12808_v4  ;;  %v12985_v1 = vor.u32 %v14599_v58, %v12984_v34  ;;  %v14551_v18 = vld [vmem:[#allocation15 + $0x84] sm:$0xf0]  ;;  %v7262_v29 = vmax.f32 %v15581_v2, 0.0  ;;  %v13400_v58 = vld [vmem:[#allocation15 + $0x540] sm:$0xf] }
 0x439   :  { %8528 = vmatpush.bf16.msra.mxu1 %v13233_v15  ;;  %8451 = vmatpush.bf16.msra.mxu3 %v12841_v13  ;;  %v13296_v13 = vld [vmem:[#allocation15 + $0x470] sm:$0xf]  ;;  %v14671_v34 = vld [vmem:[#allocation15 + $0x444] sm:$0xf0] }
 0x43a   :  { %v7058_v0 = vpop.f32.mrf.mxu2  ;;  %v15635_v2 = vpack.c.bf16 %v7262_v29, %v7262_v29  ;;  %v13056_v29 = vld [vmem:[#allocation15 + $0x290] sm:$0xf] }
 0x43b   :  { %8520 = vmatpush.bf16.msra.mxu0 %v13129_v43  ;;  %v13200_v43 = vld [vmem:[#allocation15 + $0x3b0] sm:$0xf] }
 0x43c   :  { %8491 = vmatpush.bf16.msrb.mxu2 %v13025_v22  ;;  %v13201_v5 = vor.u32 %v14653_v45, %v13200_v43  ;;  %v14677_v22 = vld [vmem:[#allocation15 + $0x474] sm:$0xf0]  ;;  %v13177_v43 = vor.u32 %v14647_v49, %v13176_v44  ;;  %v13289_v45 = vor.u32 %v14675_v14, %v13288_v63  ;;  %v13072_v0 = vld [vmem:[#allocation15 + $0x2b0] sm:$0xf]  ;;  %v14699_v49 = vld [vmem:[#allocation15 + $0x524] sm:$0xf0] }
 0x43d   :  { %8529 = vmatpush.bf16.msra.mxu1 %v13225_v26  ;;  %8452 = vmatpush.bf16.msra.mxu3 %v12833_v52  ;;  %v7097_v26 = vpop.f32.mrf.mxu1  ;;  %v13185_v52 = vor.u32 %v14649_v35, %v13184_v36  ;;  %v14703_v36 = vld [vmem:[#allocation15 + $0x544] sm:$0xf0] }
 0x43e   :  { %v14669_v26 = vld [vmem:[#allocation15 + $0x434] sm:$0xf0] }
 0x43f   :  { %8521 = vmatpush.bf16.msra.mxu0 %v13121_v33  ;;  %v14553_v33 = vld [vmem:[#allocation15 + $0x94] sm:$0xf0]  ;;  %v7019_v8 = vpop.f32.mrf.mxu3 }
 0x440   :  { %8492 = vmatpush.bf16.msrb.mxu2 %v13017_v38  ;;  %v12801_v32 = vor.u32 %v14553_v33, %v12800_v53  ;;  %v13297_v38 = vor.u32 %v14677_v22, %v13296_v13  ;;  %v14625_v53 = vld [vmem:[#allocation15 + $0x2d4] sm:$0xf0]  ;;  %v13272_v33 = vld [vmem:[#allocation15 + $0x440] sm:$0xf]  ;;  %v13376_v8 = vld [vmem:[#allocation15 + $0x510] sm:$0xf] }
 0x441   :  { %8530 = vmatpush.bf16.msra.mxu1 %v13217_v3  ;;  %8453 = vmatpush.bf16.msra.mxu3 %v12825_v61  ;;  %v14709_v3 = vld [vmem:[#allocation15 + $0x574] sm:$0xf0]  ;;  %v13416_v61 = vld [vmem:[#allocation15 + $0x560] sm:$0xf]  ;;  %v13273_v13 = vor.u32 %v14671_v34, %v13272_v33 }
 0x442   :  { %v13425_v39 = vor.u32 %v14709_v3, %v13424_v23  ;;  %v13080_v22 = vld [vmem:[#allocation15 + $0x2c0] sm:$0xf] }
 0x443   :  { %8522 = vmatpush.bf16.msra.mxu0 %v13113_v25  ;;  %v15623_v15 = vpop.f32.mrf.mxu0  ;;  %v12792_v25 = vld [vmem:[#allocation15 + $0x80] sm:$0xf]  ;;  %v13081_v44 = vor.u32 %v14623_v24, %v13080_v22  ;;  %v12914_v22 = vld [vmem:[#allocation15 + $0x178] sm:$0xf0] }
 0x444   :  { %8493 = vmatpush.bf16.msrb.mxu2 %v13009_v42  ;;  %v12793_v50 = vor.u32 %v14551_v18, %v12792_v25  ;;  %v7256_v42 = vmax.f32 %v15449_v12, 0.0  ;;  %v13408_v12 = vld [vmem:[#allocation15 + $0x550] sm:$0xf]  ;;  %v14701_v18 = vld [vmem:[#allocation15 + $0x534] sm:$0xf0] }
 0x445   :  { %8531 = vmatpush.bf16.msra.mxu1 %v13209_v54  ;;  %8454 = vmatpush.bf16.msra.mxu3 %v12817_v51  ;;  %v14707_v54 = vld [vmem:[#allocation15 + $0x564] sm:$0xf0]  ;;  %v13096_v51 = vld [vmem:[#allocation15 + $0x2e0] sm:$0xf]  ;;  %v13264_v25 = vld [vmem:[#allocation15 + $0x430] sm:$0xf] }
 0x446   :  { %8523 = vmatmul.bf16.vlgmr.msra.gmra.mxu0 %v15616_v16  ;;  %v13417_v4 = vor.u32 %v14707_v54, %v13416_v61  ;;  %v15633_v62 = vpack.c.bf16 %v7256_v42, %v7256_v42  ;;  %v13265_v23 = vor.u32 %v14669_v26, %v13264_v25  ;;  %v13384_v3 = vld [vmem:[#allocation15 + $0x520] sm:$0xf]  ;;  %v14619_v61 = vld [vmem:[#allocation15 + $0x2a4] sm:$0xf0]  ;;  %v13248_v54 = vld [vmem:[#allocation15 + $0x410] sm:$0xf] }
 0x447   :  { %8567 = vmatpush.bf16.msrb.mxu0 %v13425_v39  ;;  %v13257_v39 = vor.u32 %v14667_v47, %v13256_v40  ;;  %v13385_v42 = vor.u32 %v14699_v49, %v13384_v3  ;;  %v13368_v33 = vld [vmem:[#allocation15 + $0x500] sm:$0xf]  ;;  %v13360_v26 = vld [vmem:[#allocation15 + $0x4f0] sm:$0xf]  ;;  %v14725_v47 = vld [vmem:[#allocation15 + $0x5f4] sm:$0xf0] }
 0x448   :  { %8494 = vmatpush.bf16.msrb.mxu2 %v13001_v10  ;;  %v14627_v10 = vld [vmem:[#allocation15 + $0x2e4] sm:$0xf0]  ;;  %v14578_v3 = vld [vmem:[#allocation15 + $0x164] sm:$0xf] }
 0x449   :  { %8532 = vmatpush.bf16.msra.mxu1 %v13201_v5  ;;  %8455 = vmatpush.bf16.msra.mxu3 %v12809_v20  ;;  %v13280_v5 = vld [vmem:[#allocation15 + $0x450] sm:$0xf]  ;;  %v13097_v9 = vor.u32 %v14627_v10, %v13096_v51  ;;  %v7057_v10 = vadd.f32 %v15621_v19, %v15595_v11  ;;  %v13048_v19 = vld [vmem:[#allocation15 + $0x280] sm:$0xf] }
 0x44a   :  { %v13281_v20 = vor.u32 %v14673_v7, %v13280_v5  ;;  %v14617_v5 = vld [vmem:[#allocation15 + $0x294] sm:$0xf0] }
 0x44b   :  { %v7136_v60 = vpop.f32.mrf.mxu0  ;;  %8568 = vmatpush.bf16.msrb.mxu0 %v13417_v4  ;;  %v13057_v11 = vor.u32 %v14617_v5, %v13056_v29  ;;  %v13344_v29 = vld [vmem:[#allocation15 + $0x4d0] sm:$0xf] }
 0x44c   :  { %8495 = vmatpush.bf16.msrb.mxu2 %v12993_v59  ;;  %v13088_v59 = vld [vmem:[#allocation15 + $0x2d0] sm:$0xf]  ;;  %v14665_v60 = vld [vmem:[#allocation15 + $0x414] sm:$0xf0] }
 0x44d   :  { %8533 = vmatpush.bf16.msra.mxu1 %v13193_v17  ;;  %8456 = vmatpush.bf16.msra.mxu3 %v12801_v32  ;;  %v13409_v17 = vor.u32 %v14705_v28, %v13408_v12  ;;  %v13089_v35 = vor.u32 %v14625_v53, %v13088_v59  ;;  %v13401_v32 = vor.u32 %v14703_v36, %v13400_v58  ;;  %v14663_v59 = vld [vmem:[#allocation15 + $0x404] sm:$0xf0]  ;;  %v14548_v53 = vld [vmem:[#allocation15 + $0x74] sm:$0xf] }
 0x44e   :  { %v13249_v4 = vor.u32 %v14665_v60, %v13248_v54  ;;  %v12906_v54 = vld [vmem:[#allocation15 + $0x168] sm:$0xf0]  ;;  %v14544_v60 = vld [vmem:[#allocation15 + $0x54] sm:$0xf] }
 0x44f   :  { %8569 = vmatpush.bf16.msrb.mxu0 %v13409_v17  ;;  %v14695_v17 = vld [vmem:[#allocation15 + $0x504] sm:$0xf0] }
 0x450   :  { %8496 = vmatpush.bf16.msrb.mxu2 %v12985_v1  ;;  %v13392_v1 = vld [vmem:[#allocation15 + $0x530] sm:$0xf] }
 0x451   :  { %8534 = vmatpush.bf16.msra.mxu1 %v13185_v52  ;;  %8457 = vmatpush.bf16.msra.mxu3 %v12793_v50  ;;  %v14621_v52 = vld [vmem:[#allocation15 + $0x2b4] sm:$0xf0]  ;;  %v13064_v50 = vld [vmem:[#allocation15 + $0x2a0] sm:$0xf] }
 0x452   :  { %v13073_v63 = vor.u32 %v14621_v52, %v13072_v0  ;;  %v13065_v51 = vor.u32 %v14619_v61, %v13064_v50  ;;  %v12778_v0 = vld [vmem:[#allocation15 + $0x68] sm:$0xf0]  ;;  %v13488_v52 = vld [vmem:[#allocation15 + $0x5f0] sm:$0xf]  ;;  %v14691_v61 = vld [vmem:[#allocation15 + $0x4e4] sm:$0xf0] }
 0x453   :  { %8497 = vmatmul.bf16.vlgmr.msrb.gmra.mxu2 %v15629_v46  ;;  %8570 = vmatpush.bf16.msrb.mxu0 %v13401_v32 }
 0x454   :  { %8541 = vmatpush.bf16.msra.mxu2 %v13297_v38  ;;  %8458 = vmatmul.bf16.vlgmr.msra.gmra.mxu3 %v15633_v62  ;;  %v13393_v38 = vor.u32 %v14701_v18, %v13392_v1  ;;  %v14693_v1 = vld [vmem:[#allocation15 + $0x4f4] sm:$0xf0] }
 0x455   :  { %8502 = vmatpush.bf16.msrb.mxu3 %v13105_v55  ;;  %8535 = vmatpush.bf16.msra.mxu1 %v13177_v43  ;;  %v15639_v14 = vpop.f32.mrf.mxu1  ;;  %v15641_v55 = vpop.f32.mrf.mxu2  ;;  %v14697_v43 = vld [vmem:[#allocation15 + $0x514] sm:$0xf0]  ;;  %v13361_v40 = vor.u32 %v14693_v1, %v13360_v26  ;;  %v12882_v1 = vld [vmem:[#allocation15 + $0x138] sm:$0xf0] }
 0x456   :  { %v13377_v7 = vor.u32 %v14697_v43, %v13376_v8  ;;  %v12770_v8 = vld [vmem:[#allocation15 + $0x58] sm:$0xf0]  ;;  %v12909_v43 = vor.u32 %v14578_v3, %v12906_v54  ;;  %v14570_v3 = vld [vmem:[#allocation15 + $0x124] sm:$0xf]  ;;  %v14683_v54 = vld [vmem:[#allocation15 + $0x4a4] sm:$0xf0] }
 0x457   :  { %8571 = vmatpush.bf16.msrb.mxu0 %v13393_v38  ;;  %v7260_v38 = vmax.f32 %v15538_v27, 0.0  ;;  %v13480_v27 = vld [vmem:[#allocation15 + $0x5e0] sm:$0xf] }
 0x458   :  { %8542 = vmatpush.bf16.msra.mxu2 %v13289_v45  ;;  %8536 = vmatmul.bf16.vlgmr.msra.gmra.mxu1 %v15635_v2  ;;  %v7005_v45 = vadd.f32 %v15597_v37, %v15605_v6  ;;  %v12786_v6 = vld [vmem:[#allocation15 + $0x78] sm:$0xf0] }
 0x459   :  { %8503 = vmatpush.bf16.msrb.mxu3 %v13097_v9  ;;  %v7069_v9 = vpop.f32.mrf.mxu3  ;;  %v12789_v25 = vor.u32 %v14548_v53, %v12786_v6  ;;  %v14721_v6 = vld [vmem:[#allocation15 + $0x5d4] sm:$0xf0] }
 0x45a   :  { %v7018_v12 = vadd.f32 %v15625_v41, %v7005_v45  ;;  %v7070_v37 = vadd.f32 %v7069_v9, %v7057_v10  ;;  %v13369_v41 = vor.u32 %v14695_v17, %v13368_v33  ;;  %v14723_v45 = vld [vmem:[#allocation15 + $0x5e4] sm:$0xf0]  ;;  %v15658_v10 = vpack.c.bf16 %v7260_v38, %v7260_v38  ;;  %v14689_v9 = vld [vmem:[#allocation15 + $0x4d4] sm:$0xf0]  ;;  %v14574_v33 = vld [vmem:[#allocation15 + $0x144] sm:$0xf] }
 0x45b   :  { %8572 = vmatpush.bf16.msrb.mxu0 %v13385_v42  ;;  %v13489_v42 = vor.u32 %v14725_v47, %v13488_v52  ;;  %v13481_v5 = vor.u32 %v14723_v45, %v13480_v27  ;;  %v12890_v17 = vld [vmem:[#allocation15 + $0x148] sm:$0xf0]  ;;  %v14538_v52 = vld [vmem:[#allocation15 + $0x24] sm:$0xf]  ;;  %v14717_v47 = vld [vmem:[#allocation15 + $0x5b4] sm:$0xf0] }
 0x45c   :  { %8543 = vmatpush.bf16.msra.mxu2 %v13281_v20  ;;  %v13240_v20 = vld [vmem:[#allocation15 + $0x400] sm:$0xf]  ;;  %v7083_v34 = vadd.f32 %v15600_v21, %v7070_v37  ;;  %v7263_v24 = vmax.f32 %v7018_v12, 0.0  ;;  %v12773_v12 = vor.u32 %v14544_v60, %v12770_v8  ;;  %v13472_v37 = vld [vmem:[#allocation15 + $0x5d0] sm:$0xf] }
 0x45d   :  { %8504 = vmatpush.bf16.msrb.mxu3 %v13089_v35  ;;  %v7149_v58 = vpop.f32.mrf.mxu1  ;;  %v13241_v36 = vor.u32 %v14663_v59, %v13240_v20  ;;  %v14615_v35 = vld [vmem:[#allocation15 + $0x284] sm:$0xf0]  ;;  %v7110_v32 = vpop.f32.mrf.mxu2  ;;  %8580 = vmatpush.bf16.msrb.mxu1 %v13489_v42  ;;  %v14542_v20 = vld [vmem:[#allocation15 + $0x44] sm:$0xf]  ;;  %v12762_v59 = vld [vmem:[#allocation15 + $0x48] sm:$0xf0] }
 0x45e   :  { %v13049_v21 = vor.u32 %v14615_v35, %v13048_v19  ;;  %v15655_v49 = vpack.c.bf16 %v7263_v24, %v7263_v24  ;;  %v13473_v19 = vor.u32 %v14721_v6, %v13472_v37  ;;  %v13336_v58 = vld [vmem:[#allocation15 + $0x4c0] sm:$0xf]  ;;  %v12893_v35 = vor.u32 %v14574_v33, %v12890_v17  ;;  %v14719_v24 = vld [vmem:[#allocation15 + $0x5c4] sm:$0xf0]  ;;  %v14572_v32 = vld [vmem:[#allocation15 + $0x134] sm:$0xf] }
 0x45f   :  { %8573 = vmatpush.bf16.msrb.mxu0 %v13377_v7  ;;  %v12898_v7 = vld [vmem:[#allocation15 + $0x158] sm:$0xf0]  ;;  %v12746_v38 = vld [vmem:[#allocation15 + $0x28] sm:$0xf0]  ;;  %v13320_v42 = vld [vmem:[#allocation15 + $0x4a0] sm:$0xf] }
 0x460   :  { %8544 = vmatpush.bf16.msra.mxu2 %v13273_v13  ;;  %v14580_v13 = vld [vmem:[#allocation15 + $0x174] sm:$0xf]  ;;  %v12738_v27 = vld [vmem:[#allocation15 + $0x18] sm:$0xf0]  ;;  %v13448_v45 = vld [vmem:[#allocation15 + $0x5a0] sm:$0xf] }
 0x461   :  { %8505 = vmatpush.bf16.msrb.mxu3 %v13081_v44  ;;  %v12917_v18 = vor.u32 %v14580_v13, %v12914_v22  ;;  %v15652_v44 = vadd.f32 %v15619_v56, %v7083_v34  ;;  %v13352_v56 = vld [vmem:[#allocation15 + $0x4e0] sm:$0xf]  ;;  %8581 = vmatpush.bf16.msrb.mxu1 %v13481_v5  ;;  %v12765_v34 = vor.u32 %v14542_v20, %v12762_v59  ;;  %v12754_v13 = vld [vmem:[#allocation15 + $0x38] sm:$0xf0]  ;;  %v14681_v20 = vld [vmem:[#allocation15 + $0x494] sm:$0xf0] }
 0x462   :  { %v13464_v22 = vld [vmem:[#allocation15 + $0x5c0] sm:$0xf]  ;;  %v14534_v59 = vld [vmem:[#allocation15 + $0x4] sm:$0xf]  ;;  %v12730_v33 = vld [vmem:[#allocation15 + $0x8] sm:$0xf0] }
 0x463   :  { %v15648_v28 = vpop.f32.mrf.mxu0  ;;  %8574 = vmatpush.bf16.msrb.mxu0 %v13369_v41  ;;  %v14540_v41 = vld [vmem:[#allocation15 + $0x34] sm:$0xf]  ;;  %v13465_v26 = vor.u32 %v14719_v24, %v13464_v22  ;;  %v12733_v22 = vor.u32 %v14534_v59, %v12730_v33  ;;  %v13304_v24 = vld [vmem:[#allocation15 + $0x480] sm:$0xf]  ;;  %v14606_v59 = vld [vmem:[#allocation15 + $0x244] sm:$0xf] }
 0x464   :  { %8545 = vmatpush.bf16.msra.mxu2 %v13265_v23  ;;  %v14546_v23 = vld [vmem:[#allocation15 + $0x64] sm:$0xf]  ;;  %v14612_v17 = vld [vmem:[#allocation15 + $0x274] sm:$0xf] }
 0x465   :  { %8506 = vmatpush.bf16.msrb.mxu3 %v13073_v63  ;;  %v12781_v50 = vor.u32 %v14546_v23, %v12778_v0  ;;  %8582 = vmatpush.bf16.msrb.mxu1 %v13473_v19  ;;  %v13328_v23 = vld [vmem:[#allocation15 + $0x4b0] sm:$0xf]  ;;  %v14685_v0 = vld [vmem:[#allocation15 + $0x4b4] sm:$0xf0]  ;;  %v14592_v33 = vld [vmem:[#allocation15 + $0x1d4] sm:$0xf] }
 0x466   :  { %v13440_v19 = vld [vmem:[#allocation15 + $0x590] sm:$0xf] }
 0x467   :  { %8619 = vmatpush.bf16.msra.mxu0 %v12917_v18  ;;  %v12757_v18 = vor.u32 %v14540_v41, %v12754_v13  ;;  %v12858_v41 = vld [vmem:[#allocation15 + $0x108] sm:$0xf0] }
 0x468   :  { %8546 = vmatpush.bf16.msra.mxu2 %v13257_v39  ;;  %v7071_v39 = vpop.f32.mrf.mxu3 }
 0x469   :  { %8507 = vmatpush.bf16.msrb.mxu3 %v13065_v51  ;;  %v14576_v51 = vld [vmem:[#allocation15 + $0x154] sm:$0xf]  ;;  %8583 = vmatpush.bf16.msrb.mxu1 %v13465_v26 }
 0x46a   :  { %v12901_v53 = vor.u32 %v14576_v51, %v12898_v7  ;;  %v14715_v51 = vld [vmem:[#allocation15 + $0x5a4] sm:$0xf0]  ;;  %v12866_v7 = vld [vmem:[#allocation15 + $0x118] sm:$0xf0] }
 0x46b   :  { %v7188_v63 = vpop.f32.mrf.mxu0  ;;  %8620 = vmatpush.bf16.msra.mxu0 %v12909_v43  ;;  %v14536_v43 = vld [vmem:[#allocation15 + $0x14] sm:$0xf]  ;;  %v13449_v5 = vor.u32 %v14715_v51, %v13448_v45  ;;  %v13026_v51 = vld [vmem:[#allocation15 + $0x258] sm:$0xf0] }
 0x46c   :  { %8547 = vmatpush.bf16.msra.mxu2 %v13249_v4  ;;  %v13353_v4 = vor.u32 %v14691_v61, %v13352_v56  ;;  %v13329_v63 = vor.u32 %v14685_v0, %v13328_v23  ;;  %v12749_v61 = vor.u32 %v14538_v52, %v12746_v38  ;;  %v12850_v23 = vld [vmem:[#allocation15 + $0xf8] sm:$0xf0]  ;;  %v14610_v0 = vld [vmem:[#allocation15 + $0x264] sm:$0xf]  ;;  %v13432_v52 = vld [vmem:[#allocation15 + $0x580] sm:$0xf] }
 0x46d   :  { %8508 = vmatpush.bf16.msrb.mxu3 %v13057_v11  ;;  %v13345_v11 = vor.u32 %v14689_v9, %v13344_v29  ;;  %v13321_v29 = vor.u32 %v14683_v54, %v13320_v42  ;;  %v13312_v9 = vld [vmem:[#allocation15 + $0x490] sm:$0xf]  ;;  %v14711_v38 = vld [vmem:[#allocation15 + $0x584] sm:$0xf0]  ;;  %v14608_v45 = vld [vmem:[#allocation15 + $0x254] sm:$0xf] }
 0x46f   :  { %8621 = vmatpush.bf16.msra.mxu0 %v12901_v53 }
 0x470   :  { %8548 = vmatpush.bf16.msra.mxu2 %v13241_v36  ;;  %v14687_v36 = vld [vmem:[#allocation15 + $0x4c4] sm:$0xf0] }
 0x471   :  { %8509 = vmatpush.bf16.msrb.mxu3 %v13049_v21  ;;  %v12885_v21 = vor.u32 %v14572_v32, %v12882_v1  ;;  %v14679_v32 = vld [vmem:[#allocation15 + $0x484] sm:$0xf0] }
 0x473   :  { %8549 = vmatmul.bf16.vlgmr.msra.gmra.mxu2 %v15655_v49  ;;  %8622 = vmatpush.bf16.msra.mxu0 %v12893_v35 }
 0x474   :  { %8593 = vmatpush.bf16.msrb.mxu2 %v12789_v25  ;;  %8510 = vmatmul.bf16.vlgmr.msrb.gmra.mxu3 %v15658_v10  ;;  %v13337_v25 = vor.u32 %v14687_v36, %v13336_v58  ;;  %v14566_v58 = vld [vmem:[#allocation15 + $0x104] sm:$0xf]  ;;  %v13313_v36 = vor.u32 %v14681_v20, %v13312_v9  ;;  %v14560_v9 = vld [vmem:[#allocation15 + $0xd4] sm:$0xf]  ;;  %v12834_v20 = vld [vmem:[#allocation15 + $0xd8] sm:$0xf0] }
 0x475   :  { %8554 = vmatpush.bf16.msra.mxu3 %v13361_v40  ;;  %v13456_v40 = vld [vmem:[#allocation15 + $0x5b0] sm:$0xf]  ;;  %v15661_v56 = vpop.f32.mrf.mxu1 }
 0x476   :  { %v13457_v39 = vor.u32 %v14717_v47, %v13456_v40  ;;  %v15663_v8 = vpop.f32.mrf.mxu2  ;;  %v13305_v40 = vor.u32 %v14679_v32, %v13304_v24  ;;  %v14596_v47 = vld [vmem:[#allocation15 + $0x1f4] sm:$0xf]  ;;  %v12954_v24 = vld [vmem:[#allocation15 + $0x1c8] sm:$0xf0] }
 0x477   :  { %8623 = vmatpush.bf16.msra.mxu0 %v12885_v21  ;;  %v15667_v6 = vpop.f32.mrf.mxu3  ;;  %v13034_v21 = vld [vmem:[#allocation15 + $0x268] sm:$0xf0] }
 0x478   :  { %8594 = vmatpush.bf16.msrb.mxu2 %v12781_v50  ;;  %v12874_v50 = vld [vmem:[#allocation15 + $0x128] sm:$0xf0]  ;;  %8584 = vmatpush.bf16.msrb.mxu1 %v13457_v39  ;;  %v13433_v39 = vor.u32 %v14711_v38, %v13432_v52  ;;  %v13037_v54 = vor.u32 %v14610_v0, %v13034_v21  ;;  %v14588_v0 = vld [vmem:[#allocation15 + $0x1b4] sm:$0xf]  ;;  %v12946_v21 = vld [vmem:[#allocation15 + $0x1b8] sm:$0xf0] }
 0x479   :  { %8555 = vmatpush.bf16.msra.mxu3 %v13353_v4  ;;  %v12877_v60 = vor.u32 %v14570_v3, %v12874_v50  ;;  %v14568_v4 = vld [vmem:[#allocation15 + $0x114] sm:$0xf]  ;;  %v7264_v3 = vmax.f32 %v15652_v44, 0.0  ;;  %v12978_v50 = vld [vmem:[#allocation15 + $0x1f8] sm:$0xf0] }
 0x47a   :  { %v12869_v53 = vor.u32 %v14568_v4, %v12866_v7  ;;  %v3425_v4 = vperm.slane %v15589_v30, 2  ;;  %v14594_v44 = vld [vmem:[#allocation15 + $0x1e4] sm:$0xf]  ;;  %v13018_v30 = vld [vmem:[#allocation15 + $0x248] sm:$0xf0] }
 0x47b   :  { %8624 = vmatpush.bf16.msra.mxu0 %v12877_v60  ;;  %v14562_v60 = vld [vmem:[#allocation15 + $0xe4] sm:$0xf] }
 0x47c   :  { %8595 = vmatpush.bf16.msrb.mxu2 %v12773_v12  ;;  %v12741_v12 = vor.u32 %v14536_v43, %v12738_v27  ;;  %8585 = vmatpush.bf16.msrb.mxu1 %v13449_v5  ;;  %v12842_v43 = vld [vmem:[#allocation15 + $0xe8] sm:$0xf0]  ;;  %v12981_v27 = vor.u32 %v14596_v47, %v12978_v50  ;;  %v15672_v5 = vpack.c.bf16 %v7264_v3, %v7264_v3  ;;  %v14554_v3 = vld [vmem:[#allocation15 + $0xa4] sm:$0xf]  ;;  %v14600_v50 = vld [vmem:[#allocation15 + $0x214] sm:$0xf] }
 0x47d   :  { %8556 = vmatpush.bf16.msra.mxu3 %v13345_v11  ;;  %v13042_v11 = vld [vmem:[#allocation15 + $0x278] sm:$0xf0]  ;;  %v7201_v13 = vpop.f32.mrf.mxu1  ;;  %v12845_v7 = vor.u32 %v14562_v60, %v12842_v43 }
 0x47e   :  { %v7162_v26 = vpop.f32.mrf.mxu2  ;;  %v13045_v1 = vor.u32 %v14612_v17, %v13042_v11  ;;  %v7109_v17 = vadd.f32 %v15641_v55, %v3425_v4  ;;  %v12837_v11 = vor.u32 %v14560_v9, %v12834_v20  ;;  %v13010_v13 = vld [vmem:[#allocation15 + $0x238] sm:$0xf0] }
 0x47f   :  { %8625 = vmatpush.bf16.msra.mxu0 %v12869_v53  ;;  %v7123_v42 = vpop.f32.mrf.mxu3  ;;  %v14556_v26 = vld [vmem:[#allocation15 + $0xb4] sm:$0xf]  ;;  %v13170_v20 = vld [vmem:[#allocation15 + $0x378] sm:$0xf0] }
 0x480   :  { %8596 = vmatpush.bf16.msrb.mxu2 %v12765_v34  ;;  %v14713_v34 = vld [vmem:[#allocation15 + $0x594] sm:$0xf0]  ;;  %v14586_v42 = vld [vmem:[#allocation15 + $0x1a4] sm:$0xf] }
 0x481   :  { %8557 = vmatpush.bf16.msra.mxu3 %v13337_v25  ;;  %v13441_v35 = vor.u32 %v14713_v34, %v13440_v19  ;;  %v12861_v25 = vor.u32 %v14566_v58, %v12858_v41  ;;  %v7122_v19 = vadd.f32 %v15667_v6, %v7109_v17  ;;  %v13021_v34 = vor.u32 %v14606_v59, %v13018_v30  ;;  %v14558_v58 = vld [vmem:[#allocation15 + $0xc4] sm:$0xf]  ;;  %v14604_v41 = vld [vmem:[#allocation15 + $0x234] sm:$0xf] }
 0x482   :  { %v13013_v55 = vor.u32 %v14604_v41, %v13010_v13  ;;  %v14676_v59 = vld [vmem:[#allocation15 + $0x474] sm:$0xf]  ;;  %v14642_v41 = vld [vmem:[#allocation15 + $0x364] sm:$0xf] }
 0x483   :  { %v15665_v37 = vpop.f32.mrf.mxu0  ;;  %8586 = vmatpush.bf16.msrb.mxu1 %v13441_v35  ;;  %8626 = vmatpush.bf16.msra.mxu0 %v12861_v25  ;;  %v7135_v25 = vadd.f32 %v15623_v15, %v7122_v19  ;;  %v12810_v15 = vld [vmem:[#allocation15 + $0xa8] sm:$0xf0]  ;;  %v14550_v19 = vld [vmem:[#allocation15 + $0x84] sm:$0xf]  ;;  %v14628_v13 = vld [vmem:[#allocation15 + $0x2f4] sm:$0xf] }
 0x484   :  { %8597 = vmatpush.bf16.msrb.mxu2 %v12757_v18  ;;  %v14564_v18 = vld [vmem:[#allocation15 + $0xf4] sm:$0xf]  ;;  %v12813_v60 = vor.u32 %v14554_v3, %v12810_v15  ;;  %v14626_v3 = vld [vmem:[#allocation15 + $0x2e4] sm:$0xf]  ;;  %v13098_v15 = vld [vmem:[#allocation15 + $0x2e8] sm:$0xf0] }
 0x485   :  { %8558 = vmatpush.bf16.msra.mxu3 %v13329_v63  ;;  %v12853_v63 = vor.u32 %v14564_v18, %v12850_v23  ;;  %v14602_v18 = vld [vmem:[#allocation15 + $0x224] sm:$0xf]  ;;  %v13002_v23 = vld [vmem:[#allocation15 + $0x228] sm:$0xf0]  ;;  %v7148_v47 = vadd.f32 %v15639_v14, %v7135_v25 }
 0x486   :  { %v14674_v25 = vld [vmem:[#allocation15 + $0x464] sm:$0xf] }
 0x487   :  { %8587 = vmatpush.bf16.msrb.mxu1 %v13433_v39  ;;  %v7161_v43 = vadd.f32 %v15663_v8, %v7148_v47  ;;  %v14640_v47 = vld [vmem:[#allocation15 + $0x354] sm:$0xf] }
 0x488   :  { %8598 = vmatpush.bf16.msrb.mxu2 %v12749_v61 }
 0x489   :  { %8559 = vmatpush.bf16.msra.mxu3 %v13321_v29  ;;  %v12970_v29 = vld [vmem:[#allocation15 + $0x1e8] sm:$0xf0] }
 0x48a   :  { %v12973_v53 = vor.u32 %v14594_v44, %v12970_v29  ;;  %v14598_v29 = vld [vmem:[#allocation15 + $0x204] sm:$0xf] }
 0x48b   :  { %v7240_v61 = vpop.f32.mrf.mxu0  ;;  %8632 = vmatpush.bf16.msra.mxu1 %v12981_v27 }
 0x48c   :  { %8599 = vmatpush.bf16.msrb.mxu2 %v12741_v12  ;;  %v13029_v12 = vor.u32 %v14608_v45, %v13026_v51  ;;  %v12994_v61 = vld [vmem:[#allocation15 + $0x218] sm:$0xf0]  ;;  %v14552_v45 = vld [vmem:[#allocation15 + $0x94] sm:$0xf] }
 0x48d   :  { %8560 = vmatpush.bf16.msra.mxu3 %v13313_v36  ;;  %v12826_v36 = vld [vmem:[#allocation15 + $0xc8] sm:$0xf0]  ;;  %v12997_v27 = vor.u32 %v14600_v50, %v12994_v61  ;;  %v12802_v51 = vld [vmem:[#allocation15 + $0x98] sm:$0xf0]  ;;  %v14672_v50 = vld [vmem:[#allocation15 + $0x454] sm:$0xf] }
 0x48e   :  { %v12829_v32 = vor.u32 %v14558_v58, %v12826_v36  ;;  %v12805_v30 = vor.u32 %v14552_v45, %v12802_v51  ;;  %v13282_v61 = vld [vmem:[#allocation15 + $0x458] sm:$0xf0]  ;;  %v14624_v45 = vld [vmem:[#allocation15 + $0x2d4] sm:$0xf] }
 0x48f   :  { %8633 = vmatpush.bf16.msra.mxu1 %v12973_v53  ;;  %v13298_v53 = vld [vmem:[#allocation15 + $0x478] sm:$0xf0] }
 0x490   :  { %8600 = vmatpush.bf16.msrb.mxu2 %v12733_v22  ;;  %v14590_v22 = vld [vmem:[#allocation15 + $0x1c4] sm:$0xf]  ;;  %v13090_v51 = vld [vmem:[#allocation15 + $0x2d8] sm:$0xf0] }
 0x491   :  { %8561 = vmatpush.bf16.msra.mxu3 %v13305_v40  ;;  %v12957_v6 = vor.u32 %v14590_v22, %v12954_v24  ;;  %v13005_v40 = vor.u32 %v14602_v18, %v13002_v23  ;;  %v13106_v22 = vld [vmem:[#allocation15 + $0x2f8] sm:$0xf0]  ;;  %v12922_v18 = vld [vmem:[#allocation15 + $0x188] sm:$0xf0] }
 0x492   :  { %v13109_v23 = vor.u32 %v14628_v13, %v13106_v22 }
 0x493   :  { %8601 = vmatmul.bf16.vlgmr.msrb.gmra.mxu2 %v15607_v57  ;;  %v12962_v57 = vld [vmem:[#allocation15 + $0x1d8] sm:$0xf0] }
 0x494   :  { %8645 = vmatpush.bf16.msra.mxu2 %v13045_v1  ;;  %8562 = vmatmul.bf16.vlgmr.msra.gmra.mxu3 %v15672_v5  ;;  %v12965_v35 = vor.u32 %v14592_v33, %v12962_v57  ;;  %v12818_v1 = vld [vmem:[#allocation15 + $0xb8] sm:$0xf0]  ;;  %v14584_v33 = vld [vmem:[#allocation15 + $0x194] sm:$0xf] }
 0x495   :  { %8606 = vmatpush.bf16.msrb.mxu3 %v12853_v63  ;;  %v12821_v52 = vor.u32 %v14556_v26, %v12818_v1  ;;  %v15678_v38 = vpop.f32.mrf.mxu1  ;;  %v12949_v63 = vor.u32 %v14588_v0, %v12946_v21  ;;  %v12930_v57 = vld [vmem:[#allocation15 + $0x198] sm:$0xf0] }
 0x496   :  { %8634 = vmatpush.bf16.msra.mxu1 %v12965_v35  ;;  %v15681_v39 = vpop.f32.mrf.mxu2  ;;  %v13301_v35 = vor.u32 %v14676_v59, %v13298_v53  ;;  %v12933_v26 = vor.u32 %v14584_v33, %v12930_v57  ;;  %v13082_v59 = vld [vmem:[#allocation15 + $0x2c8] sm:$0xf0]  ;;  %v13138_v53 = vld [vmem:[#allocation15 + $0x338] sm:$0xf0] }
 0x497   :  { %v7173_v44 = vpop.f32.mrf.mxu3  ;;  %v13266_v33 = vld [vmem:[#allocation15 + $0x438] sm:$0xf0] }
 0x498   :  { %8646 = vmatpush.bf16.msra.mxu2 %v13037_v54  ;;  %v12938_v54 = vld [vmem:[#allocation15 + $0x1a8] sm:$0xf0]  ;;  %v7174_v9 = vadd.f32 %v7173_v44, %v7161_v43  ;;  %v13285_v43 = vor.u32 %v14672_v50, %v13282_v61  ;;  %v14670_v44 = vld [vmem:[#allocation15 + $0x444] sm:$0xf]  ;;  %v14782_v57 = vld [vmem:[#allocation14 + $0x8] sm:$0xf] }
 0x499   :  { %8607 = vmatpush.bf16.msrb.mxu3 %v12845_v7  ;;  %v12941_v14 = vor.u32 %v14586_v42, %v12938_v54  ;;  %v12986_v7 = vld [vmem:[#allocation15 + $0x208] sm:$0xf0]  ;;  %v13101_v54 = vor.u32 %v14626_v3, %v13098_v15  ;;  %v14630_v3 = vld [vmem:[#allocation15 + $0x304] sm:$0xf]  ;;  %v14616_v15 = vld [vmem:[#allocation15 + $0x294] sm:$0xf] }
 0x49a   :  { %8635 = vmatpush.bf16.msra.mxu1 %v12957_v6  ;;  %v7265_v8 = vmax.f32 %v7174_v9, 0.0  ;;  %v14582_v6 = vld [vmem:[#allocation15 + $0x184] sm:$0xf]  ;;  %v14636_v9 = vld [vmem:[#allocation15 + $0x334] sm:$0xf] }
 0x49b   :  { %v12925_v42 = vor.u32 %v14582_v6, %v12922_v18  ;;  %v13066_v6 = vld [vmem:[#allocation15 + $0x2a8] sm:$0xf0] }
 0x49c   :  { %8647 = vmatpush.bf16.msra.mxu2 %v13029_v12  ;;  %v14644_v12 = vld [vmem:[#allocation15 + $0x374] sm:$0xf]  ;;  %v15686_v24 = vpack.c.bf16 %v7265_v8, %v7265_v8  ;;  %v3426_v8 = vperm.slane %v14782_v57, 3  ;;  %v13362_v57 = vld [vmem:[#allocation15 + $0x4f8] sm:$0xf0] }
 0x49d   :  { %8608 = vmatpush.bf16.msrb.mxu3 %v12837_v11  ;;  %v7253_v17 = vpop.f32.mrf.mxu1  ;;  %v12989_v11 = vor.u32 %v14598_v29, %v12986_v7  ;;  %v13173_v36 = vor.u32 %v14644_v12, %v13170_v20  ;;  %v13274_v29 = vld [vmem:[#allocation15 + $0x448] sm:$0xf0]  ;;  %v13093_v7 = vor.u32 %v14624_v45, %v13090_v51  ;;  %v14622_v20 = vld [vmem:[#allocation15 + $0x2c4] sm:$0xf] }
 0x49e   :  { %8636 = vmatpush.bf16.msra.mxu1 %v12949_v63  ;;  %v7214_v58 = vpop.f32.mrf.mxu2  ;;  %8575 = vmatmul.bf16.vlgmr.msrb.gmra.mxu0 %v15686_v24  ;;  %v13154_v63 = vld [vmem:[#allocation15 + $0x358] sm:$0xf0]  ;;  %v13277_v12 = vor.u32 %v14670_v44, %v13274_v29  ;;  %v13141_v17 = vor.u32 %v14636_v9, %v13138_v53  ;;  %v7187_v22 = vadd.f32 %v15648_v28, %v3426_v8  ;;  %v14660_v9 = vld [vmem:[#allocation15 + $0x3f4] sm:$0xf]  ;;  %v14706_v53 = vld [vmem:[#allocation15 + $0x564] sm:$0xf] }
 0x49f   :  { %8671 = vmatpush.bf16.msrb.mxu0 %v13173_v36  ;;  %v7175_v21 = vpop.f32.mrf.mxu3  ;;  %v13074_v58 = vld [vmem:[#allocation15 + $0x2b8] sm:$0xf0]  ;;  %v13130_v36 = vld [vmem:[#allocation15 + $0x328] sm:$0xf0] }
 0x4a0   :  { %8648 = vmatpush.bf16.msra.mxu2 %v13021_v34  ;;  %v12794_v34 = vld [vmem:[#allocation15 + $0x88] sm:$0xf0]  ;;  %v13250_v21 = vld [vmem:[#allocation15 + $0x418] sm:$0xf0] }
 0x4a1   :  { %8609 = vmatpush.bf16.msrb.mxu3 %v12829_v32  ;;  %v13162_v32 = vld [vmem:[#allocation15 + $0x368] sm:$0xf0]  ;;  %v12797_v1 = vor.u32 %v14550_v19, %v12794_v34  ;;  %v14634_v19 = vld [vmem:[#allocation15 + $0x324] sm:$0xf]  ;;  %v14620_v34 = vld [vmem:[#allocation15 + $0x2b4] sm:$0xf] }
 0x4a2   :  { %8637 = vmatpush.bf16.msra.mxu1 %v12941_v14  ;;  %v13146_v14 = vld [vmem:[#allocation15 + $0x348] sm:$0xf0]  ;;  %v13077_v13 = vor.u32 %v14620_v34, %v13074_v58  ;;  %v14658_v34 = vld [vmem:[#allocation15 + $0x3e4] sm:$0xf] }
 0x4a3   :  { %v15684_v4 = vpop.f32.mrf.mxu0 }
 0x4a4   :  { %8649 = vmatpush.bf16.msra.mxu2 %v13013_v55  ;;  %v13290_v55 = vld [vmem:[#allocation15 + $0x468] sm:$0xf0] }
 0x4a5   :  { %8610 = vmatpush.bf16.msrb.mxu3 %v12821_v52  ;;  %v13165_v52 = vor.u32 %v14642_v41, %v13162_v32  ;;  %v13258_v41 = vld [vmem:[#allocation15 + $0x428] sm:$0xf0] }
 0x4a6   :  { %8638 = vmatpush.bf16.msra.mxu1 %v12933_v26  ;;  %v14632_v26 = vld [vmem:[#allocation15 + $0x314] sm:$0xf] }
 0x4a7   :  { %8672 = vmatpush.bf16.msrb.mxu0 %v13165_v52 }
 0x4a8   :  { %8650 = vmatpush.bf16.msra.mxu2 %v13005_v40  ;;  %v13293_v40 = vor.u32 %v14674_v25, %v13290_v55  ;;  %v13133_v25 = vor.u32 %v14634_v19, %v13130_v36 }
 0x4a9   :  { %8611 = vmatpush.bf16.msrb.mxu3 %v12813_v60  ;;  %v13157_v60 = vor.u32 %v14640_v47, %v13154_v63  ;;  %v13058_v63 = vld [vmem:[#allocation15 + $0x298] sm:$0xf0] }
 0x4aa   :  { %8639 = vmatpush.bf16.msra.mxu1 %v12925_v42  ;;  %v13114_v42 = vld [vmem:[#allocation15 + $0x308] sm:$0xf0]  ;;  %v13061_v45 = vor.u32 %v14616_v15, %v13058_v63  ;;  %v14686_v15 = vld [vmem:[#allocation15 + $0x4c4] sm:$0xf] }
 0x4ab   :  { %v8474_v0 = vpop.f32.mrf.mxu0  ;;  %8673 = vmatpush.bf16.msrb.mxu0 %v13157_v60  ;;  %v13242_v60 = vld [vmem:[#allocation15 + $0x408] sm:$0xf0] }
 0x4ac   :  { %8651 = vmatpush.bf16.msra.mxu2 %v12997_v27  ;;  %v14638_v27 = vld [vmem:[#allocation15 + $0x344] sm:$0xf]  ;;  %v14664_v0 = vld [vmem:[#allocation15 + $0x414] sm:$0xf]  ;;  %v13338_v63 = vld [vmem:[#allocation15 + $0x4c8] sm:$0xf0] }
 0x4ad   :  { %8612 = vmatpush.bf16.msrb.mxu3 %v12805_v30  ;;  %v14668_v30 = vld [vmem:[#allocation15 + $0x434] sm:$0xf]  ;;  %v13253_v47 = vor.u32 %v14664_v0, %v13250_v21  ;;  %v13402_v0 = vld [vmem:[#allocation15 + $0x548] sm:$0xf0]  ;;  %v13346_v21 = vld [vmem:[#allocation15 + $0x4d8] sm:$0xf0] }
 0x4ae   :  { %8627 = vmatmul.bf16.vlgmr.msra.gmra.mxu0 %v15587_v31  ;;  %v7200_v31 = vadd.f32 %v15661_v56, %v7187_v22  ;;  %v13426_v56 = vld [vmem:[#allocation15 + $0x578] sm:$0xf0]  ;;  %v13354_v22 = vld [vmem:[#allocation15 + $0x4e8] sm:$0xf0] }
 0x4b0   :  { %8652 = vmatpush.bf16.msra.mxu2 %v12989_v11  ;;  %v13269_v11 = vor.u32 %v14668_v30, %v13266_v33  ;;  %v7213_v28 = vadd.f32 %v15681_v39, %v7200_v31  ;;  %v13418_v30 = vld [vmem:[#allocation15 + $0x568] sm:$0xf0]  ;;  %v14692_v33 = vld [vmem:[#allocation15 + $0x4f4] sm:$0xf] }
 0x4b1   :  { %8613 = vmatpush.bf16.msrb.mxu3 %v12797_v1  ;;  %v14618_v1 = vld [vmem:[#allocation15 + $0x2a4] sm:$0xf]  ;;  %v13421_v19 = vor.u32 %v14706_v53, %v13418_v30  ;;  %v13365_v36 = vor.u32 %v14692_v33, %v13362_v57  ;;  %v13322_v30 = vld [vmem:[#allocation15 + $0x4a8] sm:$0xf0] }
 0x4b2   :  { %v13069_v52 = vor.u32 %v14618_v1, %v13066_v6  ;;  %v13218_v6 = vld [vmem:[#allocation15 + $0x3d8] sm:$0xf0]  ;;  %v14682_v53 = vld [vmem:[#allocation15 + $0x4a4] sm:$0xf] }
 0x4b3   :  { %8653 = vmatmul.bf16.vlgmr.msra.gmra.mxu2 %v15629_v46  ;;  %v13149_v46 = vor.u32 %v14638_v27, %v13146_v14  ;;  %v14708_v27 = vld [vmem:[#allocation15 + $0x574] sm:$0xf]  ;;  %v13117_v14 = vor.u32 %v14630_v3, %v13114_v42  ;;  %v13394_v3 = vld [vmem:[#allocation15 + $0x538] sm:$0xf0] }
 0x4b4   :  { %8697 = vmatpush.bf16.msrb.mxu2 %v13301_v35  ;;  %8614 = vmatmul.bf16.vlgmr.msrb.gmra.mxu3 %v15633_v62  ;;  %v13085_v62 = vor.u32 %v14622_v20, %v13082_v59  ;;  %v14666_v35 = vld [vmem:[#allocation15 + $0x424] sm:$0xf]  ;;  %v13234_v59 = vld [vmem:[#allocation15 + $0x3f8] sm:$0xf0] }
 0x4b5   :  { %8658 = vmatpush.bf16.msra.mxu3 %v13109_v23  ;;  %8674 = vmatpush.bf16.msrb.mxu0 %v13149_v46  ;;  %v15693_v32 = vpop.f32.mrf.mxu1  ;;  %v13261_v55 = vor.u32 %v14666_v35, %v13258_v41  ;;  %v13122_v23 = vld [vmem:[#allocation15 + $0x318] sm:$0xf0]  ;;  %v14614_v46 = vld [vmem:[#allocation15 + $0x284] sm:$0xf]  ;;  %v14704_v35 = vld [vmem:[#allocation15 + $0x554] sm:$0xf] }
 0x4b6   :  { %v15695_v18 = vpop.f32.mrf.mxu2  ;;  %v13410_v41 = vld [vmem:[#allocation15 + $0x558] sm:$0xf0] }
 0x4b7   :  { %v7225_v61 = vpop.f32.mrf.mxu3 }
 0x4b8   :  { %8698 = vmatpush.bf16.msrb.mxu2 %v13293_v40  ;;  %v13125_v40 = vor.u32 %v14632_v26, %v13122_v23  ;;  %v14656_v26 = vld [vmem:[#allocation15 + $0x3d4] sm:$0xf]  ;;  %v14702_v23 = vld [vmem:[#allocation15 + $0x544] sm:$0xf] }
 0x4b9   :  { %8659 = vmatpush.bf16.msra.mxu3 %v13101_v54  ;;  %8675 = vmatpush.bf16.msrb.mxu0 %v13141_v17  ;;  %v14662_v54 = vld [vmem:[#allocation15 + $0x404] sm:$0xf]  ;;  %v13405_v31 = vor.u32 %v14702_v23, %v13402_v0  ;;  %v13306_v23 = vld [vmem:[#allocation15 + $0x488] sm:$0xf0]  ;;  %v14724_v0 = vld [vmem:[#allocation15 + $0x5f4] sm:$0xf] }
 0x4ba   :  { %v13245_v44 = vor.u32 %v14662_v54, %v13242_v60  ;;  %v14652_v54 = vld [vmem:[#allocation15 + $0x3b4] sm:$0xf]  ;;  %v13341_v60 = vor.u32 %v14686_v15, %v13338_v63  ;;  %v14718_v63 = vld [vmem:[#allocation15 + $0x5c4] sm:$0xf] }
 0x4bc   :  { %8699 = vmatpush.bf16.msrb.mxu2 %v13285_v43  ;;  %v7226_v43 = vadd.f32 %v7225_v61, %v7213_v28  ;;  %v15709_v61 = vld [vmem:[#allocation17] sm:$0x3] }
 0x4bd   :  { %8660 = vmatpush.bf16.msra.mxu3 %v13093_v7  ;;  %8676 = vmatpush.bf16.msrb.mxu0 %v13133_v25  ;;  %v8487_v51 = vpop.f32.mrf.mxu1  ;;  %v13429_v7 = vor.u32 %v14708_v27, %v13426_v56  ;;  %v14698_v27 = vld [vmem:[#allocation15 + $0x524] sm:$0xf]  ;;  %v13386_v56 = vld [vmem:[#allocation15 + $0x528] sm:$0xf0] }
 0x4be   :  { %v7239_v39 = vadd.f32 %v15665_v37, %v7226_v43  ;;  %v8448_v29 = vpop.f32.mrf.mxu2  ;;  %v13202_v43 = vld [vmem:[#allocation15 + $0x3b8] sm:$0xf0]  ;;  %v7473_v51 = vperm.slane %v15709_v61, 0 }
 0x4bf   :  { %v7227_v17 = vpop.f32.mrf.mxu3  ;;  %v13389_v29 = vor.u32 %v14698_v27, %v13386_v56  ;;  %v14714_v27 = vld [vmem:[#allocation15 + $0x5a4] sm:$0xf]  ;;  %v13450_v56 = vld [vmem:[#allocation15 + $0x5a8] sm:$0xf0] }
 0x4c0   :  { %8700 = vmatpush.bf16.msrb.mxu2 %v13277_v12  ;;  %v13050_v12 = vld [vmem:[#allocation15 + $0x288] sm:$0xf0]  ;;  %v7252_v20 = vadd.f32 %v15678_v38, %v7239_v39  ;;  %v13330_v39 = vld [vmem:[#allocation15 + $0x4b8] sm:$0xf0]  ;;  %v8447_v33 = vadd.f32 %v15695_v18, %v7473_v51 }
 0x4c1   :  { %8661 = vmatpush.bf16.msra.mxu3 %v13085_v62  ;;  %8677 = vmatpush.bf16.msrb.mxu0 %v13125_v40  ;;  %v13053_v37 = vor.u32 %v14614_v46, %v13050_v12  ;;  %v13226_v38 = vld [vmem:[#allocation15 + $0x3e8] sm:$0xf0] }
 0x4c2   :  { %v7266_v8 = vmax.f32 %v7252_v20, 0.0  ;;  %v13229_v25 = vor.u32 %v14658_v34, %v13226_v38  ;;  %v13210_v40 = vld [vmem:[#allocation15 + $0x3c8] sm:$0xf0]  ;;  %v14696_v20 = vld [vmem:[#allocation15 + $0x514] sm:$0xf] }
 0x4c3   :  { %v15699_v50 = vpop.f32.mrf.mxu0  ;;  %v14694_v34 = vld [vmem:[#allocation15 + $0x504] sm:$0xf]  ;;  %v14680_v38 = vld [vmem:[#allocation15 + $0x494] sm:$0xf] }
 0x4c4   :  { %8701 = vmatpush.bf16.msrb.mxu2 %v13269_v11  ;;  %v13237_v11 = vor.u32 %v14660_v9, %v13234_v59  ;;  %v15703_v58 = vpack.c.bf16 %v7266_v8, %v7266_v8  ;;  %v13194_v9 = vld [vmem:[#allocation15 + $0x3a8] sm:$0xf0]  ;;  %v13378_v59 = vld [vmem:[#allocation15 + $0x518] sm:$0xf0] }
 0x4c5   :  { %8662 = vmatpush.bf16.msra.mxu3 %v13077_v13  ;;  %8678 = vmatpush.bf16.msrb.mxu0 %v13117_v14  ;;  %v14690_v13 = vld [vmem:[#allocation15 + $0x4e4] sm:$0xf] }
 0x4c6   :  { %8588 = vmatmul.bf16.vlgmr.msrb.gmra.mxu1 %v15703_v58  ;;  %v13357_v1 = vor.u32 %v14690_v13, %v13354_v22 }
 0x4c7   :  { %8684 = vmatpush.bf16.msrb.mxu1 %v13237_v11  ;;  %v13325_v11 = vor.u32 %v14682_v53, %v13322_v30  ;;  %v13552_v30 = vld [vmem:[#allocation18 + $0x70] sm:$0xf] }
 0x4c8   :  { %8702 = vmatpush.bf16.msrb.mxu2 %v13261_v55  ;;  %8679 = vmatmul.bf16.vlgmr.msrb.gmra.mxu0 %v15616_v16  ;;  %v13413_v55 = vor.u32 %v14704_v35, %v13410_v41  ;;  %v14688_v16 = vld [vmem:[#allocation15 + $0x4d4] sm:$0xf]  ;;  %v13314_v35 = vld [vmem:[#allocation15 + $0x498] sm:$0xf0] }
 0x4c9   :  { %8663 = vmatpush.bf16.msra.mxu3 %v13069_v52  ;;  %8723 = vmatpush.bf16.msra.mxu0 %v13429_v7  ;;  %v14654_v52 = vld [vmem:[#allocation15 + $0x3c4] sm:$0xf]  ;;  %v13349_v28 = vor.u32 %v14688_v16, %v13346_v21  ;;  %v13490_v16 = vld [vmem:[#allocation15 + $0x5f8] sm:$0xf0] }
 0x4ca   :  { %v13213_v42 = vor.u32 %v14654_v52, %v13210_v40  ;;  %v14650_v7 = vld [vmem:[#allocation15 + $0x3a4] sm:$0xf]  ;;  %v13493_v52 = vor.u32 %v14724_v0, %v13490_v16  ;;  %v13482_v40 = vld [vmem:[#allocation15 + $0x5e8] sm:$0xf0]  ;;  %v13520_v16 = vld [vmem:[#allocation18 + $0x30] sm:$0xf] }
 0x4cb   :  { %v8526_v62 = vpop.f32.mrf.mxu0  ;;  %8685 = vmatpush.bf16.msrb.mxu1 %v13229_v25  ;;  %v13197_v8 = vor.u32 %v14650_v7, %v13194_v9  ;;  %v13317_v25 = vor.u32 %v14680_v38, %v13314_v35  ;;  %v14737_v35 = vld [vmem:[#allocation18 + $0x54] sm:$0xf0] }
 0x4cc   :  { %8703 = vmatpush.bf16.msrb.mxu2 %v13253_v47  ;;  %v14700_v47 = vld [vmem:[#allocation15 + $0x534] sm:$0xf] }
 0x4cd   :  { %8664 = vmatpush.bf16.msra.mxu3 %v13061_v45  ;;  %8724 = vmatpush.bf16.msra.mxu0 %v13421_v19  ;;  %v14684_v45 = vld [vmem:[#allocation15 + $0x4b4] sm:$0xf]  ;;  %v13186_v19 = vld [vmem:[#allocation15 + $0x398] sm:$0xf0] }
 0x4ce   :  { %v13333_v12 = vor.u32 %v14684_v45, %v13330_v39  ;;  %v14648_v62 = vld [vmem:[#allocation15 + $0x394] sm:$0xf]  ;;  %v13453_v39 = vor.u32 %v14714_v27, %v13450_v56  ;;  %v13496_v27 = vld [vmem:[#allocation18] sm:$0xf]  ;;  %v14727_v56 = vld [vmem:[#allocation18 + $0x4] sm:$0xf0] }
 0x4d0   :  { %8704 = vmatpush.bf16.msrb.mxu2 %v13245_v44  ;;  %v13205_v44 = vor.u32 %v14652_v54, %v13202_v43  ;;  %v14716_v54 = vld [vmem:[#allocation15 + $0x5b4] sm:$0xf] }
 0x4d1   :  { %8665 = vmatpush.bf16.msra.mxu3 %v13053_v37  ;;  %8725 = vmatpush.bf16.msra.mxu0 %v13413_v55  ;;  %v13381_v37 = vor.u32 %v14696_v20, %v13378_v59  ;;  %v14646_v55 = vld [vmem:[#allocation15 + $0x384] sm:$0xf] }
 0x4d3   :  { %8705 = vmatmul.bf16.vlgmr.msrb.gmra.mxu2 %v15655_v49  ;;  %v13221_v49 = vor.u32 %v14656_v26, %v13218_v6  ;;  %v13178_v26 = vld [vmem:[#allocation15 + $0x388] sm:$0xf0] }
 0x4d4   :  { %8666 = vmatmul.bf16.vlgmr.msra.gmra.mxu3 %v15658_v10  ;;  %v13397_v10 = vor.u32 %v14700_v47, %v13394_v3  ;;  %v13474_v3 = vld [vmem:[#allocation15 + $0x5d8] sm:$0xf0] }
 0x4d5   :  { %8710 = vmatpush.bf16.msrb.mxu3 %v13365_v36  ;;  %8686 = vmatpush.bf16.msrb.mxu1 %v13221_v49  ;;  %v15712_v14 = vpop.f32.mrf.mxu1  ;;  %v13370_v36 = vld [vmem:[#allocation15 + $0x508] sm:$0xf0]  ;;  %v13181_v49 = vor.u32 %v14646_v55, %v13178_v26  ;;  %v14734_v55 = vld [vmem:[#allocation18 + $0x44] sm:$0xf] }
 0x4d6   :  { %8726 = vmatpush.bf16.msra.mxu0 %v13405_v31  ;;  %v8498_v46 = vpop.f32.mrf.mxu2  ;;  %8640 = vmatmul.bf16.vlgmr.msra.gmra.mxu1 %v15611_v48  ;;  %v13189_v48 = vor.u32 %v14648_v62, %v13186_v19  ;;  %v13373_v18 = vor.u32 %v14694_v34, %v13370_v36  ;;  %v13544_v62 = vld [vmem:[#allocation18 + $0x60] sm:$0xf]  ;;  %v13546_v34 = vld [vmem:[#allocation18 + $0x68] sm:$0xf0] }
 0x4d7   :  { %v8459_v57 = vpop.f32.mrf.mxu3 }
 0x4d8   :  { %v8460_v17 = vadd.f32 %v8459_v57, %v8447_v33  ;;  %v14741_v33 = vld [vmem:[#allocation18 + $0x74] sm:$0xf0]  ;;  %v14740_v57 = vld [vmem:[#allocation18 + $0x74] sm:$0xf] }
 0x4d9   :  { %8711 = vmatpush.bf16.msrb.mxu3 %v13357_v1  ;;  %8687 = vmatpush.bf16.msrb.mxu1 %v13213_v42  ;;  %v14678_v1 = vld [vmem:[#allocation15 + $0x484] sm:$0xf]  ;;  %v13466_v42 = vld [vmem:[#allocation15 + $0x5c8] sm:$0xf0] }
 0x4da   :  { %8727 = vmatpush.bf16.msra.mxu0 %v13397_v10  ;;  %v8473_v41 = vadd.f32 %v15684_v4, %v8460_v17  ;;  %v13309_v31 = vor.u32 %v14678_v1, %v13306_v23  ;;  %v13469_v10 = vor.u32 %v14718_v63, %v13466_v42  ;;  %v14739_v17 = vld [vmem:[#allocation18 + $0x64] sm:$0xf0]  ;;  %v13504_v63 = vld [vmem:[#allocation18 + $0x10] sm:$0xf]  ;;  %v14729_v42 = vld [vmem:[#allocation18 + $0x14] sm:$0xf0] }
 0x4db   :  { %v13545_v19 = vor.u32 %v14739_v17, %v13544_v62 }
 0x4dc   :  { %v8486_v6 = vadd.f32 %v15693_v32, %v8473_v41  ;;  %v14720_v32 = vld [vmem:[#allocation15 + $0x5d4] sm:$0xf] }
 0x4dd   :  { %8712 = vmatpush.bf16.msrb.mxu3 %v13349_v28  ;;  %8688 = vmatpush.bf16.msrb.mxu1 %v13205_v44  ;;  %v8539_v13 = vpop.f32.mrf.mxu1  ;;  %v14722_v28 = vld [vmem:[#allocation15 + $0x5e4] sm:$0xf]  ;;  %v13477_v15 = vor.u32 %v14720_v32, %v13474_v3  ;;  %v13442_v44 = vld [vmem:[#allocation15 + $0x598] sm:$0xf0]  ;;  %v14736_v41 = vld [vmem:[#allocation18 + $0x54] sm:$0xf] }
 0x4de   :  { %8728 = vmatpush.bf16.msra.mxu0 %v13389_v29  ;;  %v8500_v22 = vpop.f32.mrf.mxu2  ;;  %v8499_v21 = vadd.f32 %v8498_v46, %v8486_v6  ;;  %v13485_v47 = vor.u32 %v14722_v28, %v13482_v40  ;;  %v14710_v46 = vld [vmem:[#allocation15 + $0x584] sm:$0xf]  ;;  %v13530_v6 = vld [vmem:[#allocation18 + $0x48] sm:$0xf0]  ;;  %v14731_v28 = vld [vmem:[#allocation18 + $0x24] sm:$0xf0] }
 0x4df   :  { %v8461_v4 = vpop.f32.mrf.mxu3  ;;  %v13528_v22 = vld [vmem:[#allocation18 + $0x40] sm:$0xf]  ;;  %v13533_v23 = vor.u32 %v14734_v55, %v13530_v6  ;;  %v13514_v32 = vld [vmem:[#allocation18 + $0x28] sm:$0xf0]  ;;  %v14753_v55 = vld [vmem:[#allocation18 + $0xd4] sm:$0xf0] }
 0x4e0   :  { %v14732_v4 = vld [vmem:[#allocation18 + $0x34] sm:$0xf] }
 0x4e1   :  { %8713 = vmatpush.bf16.msrb.mxu3 %v13341_v60  ;;  %8689 = vmatpush.bf16.msrb.mxu1 %v13197_v8  ;;  %v13458_v60 = vld [vmem:[#allocation15 + $0x5b8] sm:$0xf0]  ;;  %v13553_v8 = vor.u32 %v14741_v33, %v13552_v30 }
 0x4e2   :  { %8729 = vmatpush.bf16.msra.mxu0 %v13381_v37 }
 0x4e3   :  { %8951 = vmatpush.bf16.msra.mxu2 %v13553_v8  ;;  %v13616_v8 = vld [vmem:[#allocation18 + $0xf0] sm:$0xf] }
 0x4e5   :  { %8714 = vmatpush.bf16.msrb.mxu3 %v13333_v12  ;;  %8690 = vmatpush.bf16.msrb.mxu1 %v13189_v48  ;;  %v13434_v12 = vld [vmem:[#allocation15 + $0x588] sm:$0xf0]  ;;  %v13538_v48 = vld [vmem:[#allocation18 + $0x58] sm:$0xf0] }
 0x4e6   :  { %8730 = vmatpush.bf16.msra.mxu0 %v13373_v18  ;;  %v13437_v53 = vor.u32 %v14710_v46, %v13434_v12  ;;  %v13541_v18 = vor.u32 %v14736_v41, %v13538_v48  ;;  %v13610_v48 = vld [vmem:[#allocation18 + $0xe8] sm:$0xf0] }
 0x4e7   :  { %8952 = vmatpush.bf16.msra.mxu2 %v13545_v19 }
 0x4e9   :  { %8715 = vmatpush.bf16.msrb.mxu3 %v13325_v11  ;;  %8731 = vmatmul.bf16.vlgmr.msra.gmra.mxu0 %v15686_v24  ;;  %v13461_v24 = vor.u32 %v14716_v54, %v13458_v60  ;;  %v14738_v11 = vld [vmem:[#allocation18 + $0x64] sm:$0xf]  ;;  %v13505_v60 = vor.u32 %v14729_v42, %v13504_v63  ;;  %v13586_v63 = vld [vmem:[#allocation18 + $0xb8] sm:$0xf0] }
 0x4ea   :  { %8691 = vmatpush.bf16.msrb.mxu1 %v13181_v49  ;;  %v13549_v36 = vor.u32 %v14738_v11, %v13546_v34  ;;  %v13618_v11 = vld [vmem:[#allocation18 + $0xf8] sm:$0xf0]  ;;  %v7474_v34 = vperm.slane %v15709_v61, 1 }
 0x4ed   :  { %8716 = vmatpush.bf16.msrb.mxu3 %v13317_v25  ;;  %8692 = vmatmul.bf16.vlgmr.msrb.gmra.mxu1 %v15635_v2  ;;  %v14712_v2 = vld [vmem:[#allocation15 + $0x594] sm:$0xf]  ;;  %v14735_v25 = vld [vmem:[#allocation18 + $0x44] sm:$0xf0] }
 0x4ee   :  { %8736 = vmatpush.bf16.msra.mxu1 %v13493_v52  ;;  %v13445_v29 = vor.u32 %v14712_v2, %v13442_v44  ;;  %v13529_v1 = vor.u32 %v14735_v25, %v13528_v22  ;;  %v13512_v52 = vld [vmem:[#allocation18 + $0x20] sm:$0xf]  ;;  %v13600_v25 = vld [vmem:[#allocation18 + $0xd0] sm:$0xf] }
 0x4ef   :  { %v13513_v3 = vor.u32 %v14731_v28, %v13512_v52  ;;  %v13601_v6 = vor.u32 %v14753_v55, %v13600_v25 }
 0x4f1   :  { %8717 = vmatpush.bf16.msrb.mxu3 %v13309_v31  ;;  %v13522_v31 = vld [vmem:[#allocation18 + $0x38] sm:$0xf0] }
 0x4f2   :  { %8737 = vmatpush.bf16.msra.mxu1 %v13485_v47  ;;  %v13525_v40 = vor.u32 %v14732_v4, %v13522_v31  ;;  %v14730_v47 = vld [vmem:[#allocation18 + $0x24] sm:$0xf]  ;;  %v13592_v4 = vld [vmem:[#allocation18 + $0xc0] sm:$0xf] }
 0x4f3   :  { %v14750_v31 = vld [vmem:[#allocation18 + $0xc4] sm:$0xf] }
 0x4f4   :  { %8718 = vmatmul.bf16.vlgmr.msrb.gmra.mxu3 %v15672_v5 }
 0x4f6   :  { %8738 = vmatpush.bf16.msra.mxu1 %v13477_v15  ;;  %v8550_v43 = vpop.f32.mrf.mxu2  ;;  %v13517_v15 = vor.u32 %v14730_v47, %v13514_v32  ;;  %v13584_v47 = vld [vmem:[#allocation18 + $0xb0] sm:$0xf]  ;;  %v14749_v32 = vld [vmem:[#allocation18 + $0xb4] sm:$0xf0] }
 0x4f7   :  { %v8511_v45 = vpop.f32.mrf.mxu3 }
 0x4f8   :  { %v8512_v51 = vadd.f32 %v8511_v45, %v8499_v21  ;;  %v14733_v21 = vld [vmem:[#allocation18 + $0x34] sm:$0xf0]  ;;  %v14726_v45 = vld [vmem:[#allocation18 + $0x4] sm:$0xf] }
 0x4f9   :  { %v13521_v49 = vor.u32 %v14733_v21, %v13520_v16 }
 0x4fa   :  { %8739 = vmatpush.bf16.msra.mxu1 %v13469_v10  ;;  %v8525_v5 = vadd.f32 %v15699_v50, %v8512_v51  ;;  %v13554_v50 = vld [vmem:[#allocation18 + $0x78] sm:$0xf0]  ;;  %v14728_v10 = vld [vmem:[#allocation18 + $0x14] sm:$0xf]  ;;  %v13498_v51 = vld [vmem:[#allocation18 + $0x8] sm:$0xf0] }
 0x4fb   :  { %v13557_v37 = vor.u32 %v14740_v57, %v13554_v50  ;;  %v13501_v2 = vor.u32 %v14726_v45, %v13498_v51  ;;  %v14757_v50 = vld [vmem:[#allocation18 + $0xf4] sm:$0xf0]  ;;  %v13578_v45 = vld [vmem:[#allocation18 + $0xa8] sm:$0xf0] }
 0x4fc   :  { %v8538_v9 = vadd.f32 %v15712_v14, %v8525_v5  ;;  %v13617_v17 = vor.u32 %v14757_v50, %v13616_v8  ;;  %v13562_v8 = vld [vmem:[#allocation18 + $0x88] sm:$0xf0] }
 0x4fd   :  { %8977 = vmatpush.bf16.msrb.mxu0 %v13557_v37  ;;  %v14756_v37 = vld [vmem:[#allocation18 + $0xf4] sm:$0xf] }
 0x4fe   :  { %8740 = vmatpush.bf16.msra.mxu1 %v13461_v24  ;;  %v8552_v7 = vpop.f32.mrf.mxu2  ;;  %v15723_v20 = vadd.f32 %v8550_v43, %v8538_v9  ;;  %v13506_v24 = vld [vmem:[#allocation18 + $0x18] sm:$0xf0]  ;;  %v13621_v19 = vor.u32 %v14756_v37, %v13618_v11  ;;  %8964 = vmatpush.bf16.msra.mxu3 %v13617_v17 }
 0x4ff   :  { %v8513_v59 = vpop.f32.mrf.mxu3  ;;  %v13509_v43 = vor.u32 %v14728_v10, %v13506_v24  ;;  %v13576_v24 = vld [vmem:[#allocation18 + $0xa0] sm:$0xf] }
 0x501   :  { %8978 = vmatpush.bf16.msrb.mxu0 %v13549_v36 }
 0x502   :  { %8741 = vmatpush.bf16.msra.mxu1 %v13453_v39  ;;  %v13497_v39 = vor.u32 %v14727_v56, %v13496_v27  ;;  %v14746_v56 = vld [vmem:[#allocation18 + $0xa4] sm:$0xf] }
 0x503   :  { %v13581_v51 = vor.u32 %v14746_v56, %v13578_v45 }
 0x505   :  { %8979 = vmatpush.bf16.msrb.mxu0 %v13541_v18 }
 0x506   :  { %8742 = vmatpush.bf16.msra.mxu1 %v13445_v29 }
 0x509   :  { %8980 = vmatpush.bf16.msrb.mxu0 %v13533_v23  ;;  %v13602_v23 = vld [vmem:[#allocation18 + $0xd8] sm:$0xf0] }
 0x50a   :  { %8743 = vmatpush.bf16.msra.mxu1 %v13437_v53 }
 0x50d   :  { %8744 = vmatmul.bf16.vlgmr.msra.gmra.mxu1 %v15703_v58  ;;  %v13536_v58 = vld [vmem:[#allocation18 + $0x50] sm:$0xf]  ;;  %8981 = vmatpush.bf16.msrb.mxu0 %v13525_v40  ;;  %v13594_v40 = vld [vmem:[#allocation18 + $0xc8] sm:$0xf0] }
 0x50e   :  { %v13537_v13 = vor.u32 %v14737_v35, %v13536_v58  ;;  %8990 = vmatpush.bf16.msrb.mxu1 %v13621_v19  ;;  %v14754_v35 = vld [vmem:[#allocation18 + $0xe4] sm:$0xf] }
 0x50f   :  { %v13613_v22 = vor.u32 %v14754_v35, %v13610_v48 }
 0x510   :  { %8953 = vmatpush.bf16.msra.mxu2 %v13537_v13 }
 0x511   :  { %8982 = vmatpush.bf16.msrb.mxu0 %v13517_v15  ;;  %v14748_v15 = vld [vmem:[#allocation18 + $0xb4] sm:$0xf] }
 0x512   :  { %8991 = vmatpush.bf16.msrb.mxu1 %v13613_v22 }
 0x514   :  { %8954 = vmatpush.bf16.msra.mxu2 %v13529_v1 }
 0x515   :  { %8983 = vmatpush.bf16.msrb.mxu0 %v13509_v43  ;;  %v14747_v43 = vld [vmem:[#allocation18 + $0xa4] sm:$0xf0] }
 0x516   :  { %v15726_v14 = vpop.f32.mrf.mxu2 }
 0x517   :  { %v8563_v38 = vpop.f32.mrf.mxu3  ;;  %v8603_v61 = vadd.f32 %v15726_v14, %v7474_v34  ;;  %v13597_v14 = vor.u32 %v14750_v31, %v13594_v40 }
 0x518   :  { %8955 = vmatpush.bf16.msra.mxu2 %v13521_v49  ;;  %v8564_v59 = vadd.f32 %v8563_v38, %v15723_v20  ;;  %v13608_v20 = vld [vmem:[#allocation18 + $0xe0] sm:$0xf]  ;;  %v14755_v38 = vld [vmem:[#allocation18 + $0xe4] sm:$0xf0] }
 0x519   :  { %8984 = vmatpush.bf16.msrb.mxu0 %v13501_v2  ;;  %v13609_v13 = vor.u32 %v14755_v38, %v13608_v20  ;;  %v14751_v49 = vld [vmem:[#allocation18 + $0xc4] sm:$0xf0] }
 0x51a   :  { %v13593_v28 = vor.u32 %v14751_v49, %v13592_v4 }
 0x51b   :  { %v8576_v54 = vpop.f32.mrf.mxu0  ;;  %8965 = vmatpush.bf16.msra.mxu3 %v13609_v13 }
 0x51c   :  { %8956 = vmatpush.bf16.msra.mxu2 %v13513_v3  ;;  %v8577_v53 = vadd.f32 %v8576_v54, %v8564_v59  ;;  %v13585_v54 = vor.u32 %v14749_v32, %v13584_v47 }
 0x51e   :  { %v8604_v26 = vpop.f32.mrf.mxu2 }
 0x51f   :  { %v8565_v0 = vpop.f32.mrf.mxu3  ;;  %v14752_v26 = vld [vmem:[#allocation18 + $0xd4] sm:$0xf]  ;;  %8966 = vmatpush.bf16.msra.mxu3 %v13601_v6 }
 0x520   :  { %8957 = vmatpush.bf16.msra.mxu2 %v13505_v60  ;;  %v13605_v0 = vor.u32 %v14752_v26, %v13602_v23  ;;  %v13589_v60 = vor.u32 %v14748_v15, %v13586_v63 }
 0x522   :  { %8992 = vmatpush.bf16.msrb.mxu1 %v13605_v0 }
 0x523   :  { %v8578_v44 = vpop.f32.mrf.mxu0  ;;  %8967 = vmatpush.bf16.msra.mxu3 %v13593_v28 }
 0x524   :  { %8958 = vmatpush.bf16.msra.mxu2 %v13497_v39  ;;  %v13577_v39 = vor.u32 %v14747_v43, %v13576_v24  ;;  %v13568_v44 = vld [vmem:[#allocation18 + $0x90] sm:$0xf] }
 0x526   :  { %8993 = vmatpush.bf16.msrb.mxu1 %v13597_v14 }
 0x527   :  { %8968 = vmatpush.bf16.msra.mxu3 %v13585_v54 }
 0x52a   :  { %8994 = vmatpush.bf16.msrb.mxu1 %v13589_v60 }
 0x52b   :  { %v8628_v7 = vpop.f32.mrf.mxu0  ;;  %8969 = vmatpush.bf16.msra.mxu3 %v13577_v39 }
 0x52e   :  { %8995 = vmatpush.bf16.msrb.mxu1 %v13581_v51 }
 0x533   :  { %v8630_v9 = vpop.f32.mrf.mxu0 }
 0x536   :  { %v15728_v5 = vpop.f32.mrf.mxu2 }
 0x537   :  { %v8615_v29 = vpop.f32.mrf.mxu3 }
 0x538   :  { %v8616_v16 = vadd.f32 %v8615_v29, %v8603_v61  ;;  %v14745_v29 = vld [vmem:[#allocation18 + $0x94] sm:$0xf0] }
 0x53a   :  { %v8629_v52 = vadd.f32 %v8628_v7, %v8616_v16  ;;  %v14744_v7 = vld [vmem:[#allocation18 + $0x94] sm:$0xf] }
 0x53e   :  { %v8656_v46 = vpop.f32.mrf.mxu2 }
 0x53f   :  { %v8617_v12 = vpop.f32.mrf.mxu3  ;;  %v13569_v46 = vor.u32 %v14745_v29, %v13568_v44 }
 0x540   :  { %v13570_v12 = vld [vmem:[#allocation18 + $0x98] sm:$0xf0] }
 0x541   :  { %v13573_v59 = vor.u32 %v14744_v7, %v13570_v12  ;;  %8970 = vmatpush.bf16.msra.mxu3 %v13569_v46 }
 0x543   :  { %v8589_v33 = vpop.f32.mrf.mxu1  ;;  %8996 = vmatpush.bf16.msrb.mxu1 %v13573_v59 }
 0x544   :  { %v8590_v57 = vadd.f32 %v8589_v33, %v8577_v53  ;;  %v13560_v53 = vld [vmem:[#allocation18 + $0x80] sm:$0xf]  ;;  %v14742_v33 = vld [vmem:[#allocation18 + $0x84] sm:$0xf] }
 0x545   :  { %v15731_v30 = vpop.f32.mrf.mxu0  ;;  %v13565_v37 = vor.u32 %v14742_v33, %v13562_v8 }
 0x546   :  { %v8749_v62 = vmax.f32 %v8590_v57, 0.0 }
 0x547   :  { %8997 = vmatpush.bf16.msrb.mxu1 %v13565_v37 }
 0x548   :  { %v8751_v36 = vpack.c.bf16 %v8749_v62, %v8749_v62 }
 0x54a   :  { %8959 = vmatmul.bf16.vlgmr.msra.gmra.mxu2 %v8751_v36  ;;  %8985 = vmatmul.bf16.vlgmr.msrb.gmra.mxu0 %v8751_v36 }
 0x54b   :  { %v8591_v18 = vpop.f32.mrf.mxu1 }
 0x54d   :  { %v8682_v41 = vpop.f32.mrf.mxu0 }
 0x553   :  { %v8641_v3 = vpop.f32.mrf.mxu1 }
 0x554   :  { %v8642_v42 = vadd.f32 %v8641_v3, %v8629_v52 }
 0x556   :  { %v15734_v58 = vpop.f32.mrf.mxu2  ;;  %v8655_v27 = vadd.f32 %v15728_v5, %v8642_v42  ;;  %v14743_v5 = vld [vmem:[#allocation18 + $0x84] sm:$0xf0]  ;;  %v14778_v42 = vld [vmem:[#allocation2] ss:$0 sm:$0xff] }
 0x557   :  { %v8667_v1 = vpop.f32.mrf.mxu3  ;;  %v13561_v57 = vor.u32 %v14743_v5, %v13560_v53 }
 0x558   :  { %v8668_v19 = vadd.f32 %v8667_v1, %v8655_v27  ;;  %v8785_v1 = vld [vmem:[#allocation20] sm:$0x3] }
 0x559   :  { %8971 = vmatpush.bf16.msra.mxu3 %v13561_v57  ;;  %v8788_v23 = vperm.slane %v8785_v1, 1  ;;  %v8787_v16 = vperm.slane %v8785_v1, 0 }
 0x55a   :  { %v8681_v36 = vadd.f32 %v15731_v30, %v8668_v19 }
 0x55b   :  { %v8643_v2 = vpop.f32.mrf.mxu1 }
 0x55e   :  { %v8708_v21 = vpop.f32.mrf.mxu2 }
 0x55f   :  { %v8669_v10 = vpop.f32.mrf.mxu3 }
 0x566   :  { %v8732_v9 = vpop.f32.mrf.mxu0 }
 0x56a   :  { %v8693_v50 = vpop.f32.mrf.mxu1 }
 0x56b   :  { %v8694_v20 = vadd.f32 %v8693_v50, %v8681_v36 }
 0x56d   :  { %v8707_v38 = vadd.f32 %v15734_v58, %v8694_v20  ;;  %v9005_v58 = vld [vmem:[#allocation21] sm:$0x3] }
 0x56e   :  { %v8734_v62 = vpop.f32.mrf.mxu0  ;;  %v9007_v28 = vperm.slane %v9005_v58, 0  ;;  %v9008_v40 = vperm.slane %v9005_v58, 1 }
 0x572   :  { %v8695_v11 = vpop.f32.mrf.mxu1 }
 0x577   :  { %v8719_v17 = vpop.f32.mrf.mxu3 }
 0x578   :  { %v8720_v35 = vadd.f32 %v8719_v17, %v8707_v38 }
 0x57a   :  { %v8733_v41 = vadd.f32 %v8732_v9, %v8720_v35 }
 0x57f   :  { %v8721_v34 = vpop.f32.mrf.mxu3 }
 0x58a   :  { %v8745_v13 = vpop.f32.mrf.mxu1 }
 0x58b   :  { %v8746_v48 = vadd.f32 %v8745_v13, %v8733_v41 }
 0x58d   :  { %v8750_v18 = vmax.f32 %v8746_v48, 0.0 }
 0x58f   :  { %v8752_v22 = vpack.c.bf16 %v8750_v18, %v8750_v18 }
 0x591   :  { %8972 = vmatmul.bf16.vlgmr.msra.gmra.mxu3 %v8752_v22  ;;  %8998 = vmatmul.bf16.vlgmr.msrb.gmra.mxu1 %v8752_v22 }
 0x592   :  { %v8747_v25 = vpop.f32.mrf.mxu1 }
 0x5c7   :  { %v8986_v55 = vpop.f32.mrf.mxu0 }
 0x5c8   :  { %v8987_v30 = vadd.f32 %v8986_v55, %v8788_v23 }
 0x5cd   :  { %v8960_v26 = vpop.f32.mrf.mxu2 }
 0x5ce   :  { %v8961_v4 = vadd.f32 %v8960_v26, %v8787_v16 }
 0x5cf   :  { %v8988_v61 = vpop.f32.mrf.mxu0 }
 0x5d5   :  { %v8962_v6 = vpop.f32.mrf.mxu2 }
 0x60e   :  { %v8999_v0 = vpop.f32.mrf.mxu1 }
 0x60f   :  { %v9000_v21 = vadd.f32 %v8999_v0, %v8987_v30 }
 0x611   :  { %v9004_v31 = vmax.f32 %v9000_v21, 0.0 }
 0x613   :  { %v9012_v14 = vmul.f32 %v9008_v40, %v9004_v31 }
 0x614   :  { %v8973_v49 = vpop.f32.mrf.mxu3 }
 0x615   :  { %v8974_v52 = vadd.f32 %v8973_v49, %v8961_v4 }
 0x616   :  { %v9001_v47 = vpop.f32.mrf.mxu1 }
 0x617   :  { %v9003_v32 = vmax.f32 %v8974_v52, 0.0 }
 0x619   :  { %v9011_v3 = vmul.f32 %v9007_v28, %v9003_v32 }
 0x61b   :  { %v9013_v15 = vadd.f32 %v9012_v14, %v9011_v3 }
 0x61c   :  { %v8975_v63 = vpop.f32.mrf.mxu3 }
 0x61d   :  { %9014 = vadd.xlane.f32.xlu0 %v9013_v15 }
 0x690   :  { %v9015_v10 = vpop.xlane.xlu0 %9014 }
 0x691   :  { %v9020_v54 = vadd.f32 %v14778_v42, %v9015_v10 }
 0x693   :  { %9021 = vxpose.xlu0.b32.start.end [1/1] (short) (narrow) %v9020_v54, 8 }
 0x737   :  { %v9037_v60 = vpop.trf.xlu0 }
 0x738   :  { %9054 = vst.msk [vmem:[#allocation23] sm:$0x1] %vm9053_vm0, %v9037_v60 }
 0x739   :  { %9065 = dma.vmem_to_hbm [thread:$0]  %s9061_s11, 16, %s9063_s25, [#allocation5]  }
 0x73a   :  { %15109 = dma.done.wait [#allocation5], 16  }
 0x73b   :  { %15110 = vsyncadd [#allocation5], 4294967280 }
 0x73c   :  { %9070 = vsyncpa [#allocation4], 1 }
 0x73d   :  { %9071 = vsyncpa [#allocation7], 1 }
 0x73e   :  { %9072 = vsyncpa [#allocation10], 1 }
 0x73f   :  { %9073 = vsyncpa [#allocation13], 1 }
 0x740   :  { %9074 = vsyncpa [#allocation16], 1 }
 0x741   :  { %9075 = vsyncpa [#allocation19], 1 }
 0x742   :  { %9076 = vsyncpa [#allocation22], 1 }
 0x743   :  { %9077 = vsyncpa [#allocation5], 1 }

</bundles_post_ra>
